<compile_context>
chip_gen: v6e
topology: v6e:2x2x1
jax: 0.10.0
libtpu: 0.0.40
codegen_flags: <defaults>
</compile_context>

<pallas_src>
import jax
import jax.numpy as jnp
from jax.experimental import pallas as pl
from jax.experimental.pallas import tpu as pltpu


# MXU operand dtype: bf16 operands + f32 accumulation.  Set to jnp.float32 for
# bit-closer numerics vs. the PyTorch reference.
_MXU_DTYPE = jnp.bfloat16
_GN_EPS = 1e-5          # python float -> folds to a literal (no jaxpr const capture)
_APPROX_GELU = False    # True: tanh GELU on the EUP (cheaper, slightly different numerics)


# ------------------------------ in-kernel math ------------------------------

def _gelu(x):
    if _APPROX_GELU:
        return jax.nn.gelu(x, approximate=True)
    # exact (erf) GELU == torch.nn.GELU default; constants are python floats so
    # nothing is captured as a jaxpr constant.
    return 0.5 * x * (1.0 + jax.lax.erf(x * 0.7071067811865476))


def _shift_rows(p, d):
    """out[i] = p[i + d]; rows shifted out of range become zero.  d in {-1, 0, 1}."""
    if d == 0:
        return p
    zero = jnp.zeros_like(p[:1])
    if p.shape[0] == 1:
        return zero
    if d < 0:
        return jnp.concatenate([zero, p[:-1]], axis=0)
    return jnp.concatenate([p[1:], zero], axis=0)


def _shift_cols(p, d):
    """out[:, j] = p[:, j + d]; cols shifted out of range become zero."""
    if d == 0:
        return p
    zero = jnp.zeros_like(p[:, :1])
    if p.shape[1] == 1:
        return zero
    if d < 0:
        return jnp.concatenate([zero, p[:, :-1]], axis=1)
    return jnp.concatenate([p[:, 1:], zero], axis=1)


def _dw_conv3x3(x, dw_w, dw_b):
    """Depthwise 3x3, stride 1, zero padding 1 (halo handled by zero shifts).
    x: (h, w, c) f32; dw_w: (9, c); dw_b: (1, c)."""
    h, w, c = x.shape
    acc = jnp.zeros((h, w, c), jnp.float32)
    for kh in range(3):
        for kw in range(3):
            tap = _shift_cols(_shift_rows(x, kh - 1), kw - 1)
            acc = acc + tap * dw_w[kh * 3 + kw][None, None, :]
    return acc + dw_b[None]                       # (1, c) -> (1, 1, c)


def _dw_conv3x3_s2(planes, dw_w, dw_b):
    """Depthwise 3x3, stride 2, zero padding 1, computed directly from the four
    parity planes of the *unpadded* input: planes[rp][cp][i, j] = x[2i+rp, 2j+cp]."""
    ho, wo, c = planes[0][0].shape
    acc = jnp.zeros((ho, wo, c), jnp.float32)
    # tap (kh, kw) needs x[2i + kh - 1, 2j + kw - 1]:
    #   k == 0 -> odd-parity plane shifted by -1 (zero-filled first row/col)
    #   k == 1 -> even-parity plane, no shift;   k == 2 -> odd-parity plane, no shift
    par_shift = {0: (1, -1), 1: (0, 0), 2: (1, 0)}
    for kh in range(3):
        rp, rs = par_shift[kh]
        for kw in range(3):
            cp, cs = par_shift[kw]
            tap = _shift_cols(_shift_rows(planes[rp][cp], rs), cs)
            acc = acc + tap * dw_w[kh * 3 + kw][None, None, :]
    return acc + dw_b[None]


def _group_norm(x):
    """GroupNorm with num_groups == C (per-channel stats over H*W), single-sweep
    statistics.  The affine (gamma, beta) is folded into pw1 by the wrapper."""
    inv_hw = 1.0 / (x.shape[0] * x.shape[1])
    s = jnp.sum(x, axis=(0, 1), keepdims=True)
    ss = jnp.sum(x * x, axis=(0, 1), keepdims=True)
    mean = s * inv_hw
    var = jnp.maximum(ss * inv_hw - mean * mean, 0.0)
    return (x - mean) * jax.lax.rsqrt(var + _GN_EPS)


def _pw(x2, w_ref, b_ref):
    """Pointwise (1x1) conv as a matmul: operands in the weight's dtype
    (bf16 by default), accumulation in f32."""
    w = w_ref[...]
    return (jnp.dot(x2.astype(w.dtype), w, preferred_element_type=jnp.float32)
            + b_ref[...].astype(jnp.float32))


# ----------------------------- fused stage kernel ----------------------------

def _make_stage_kernel(*, h, w, cin, stem, n_blocks):
    """Builds a fused per-image stage kernel:
         stem 1x1 conv  OR  stride-2 MedNeXtDown, followed by n_blocks MedNeXt
         blocks.  All intermediates stay in VMEM; only the stage output is
         written back to HBM."""

    def kernel(x_ref, *refs):
        o_ref = refs[-1]
        wi = iter(refs[:-1])

        if stem:
            ho, wo = h, w
            sw = next(wi)[...].astype(jnp.float32)            # (cin, C)
            sb = next(wi)[...].astype(jnp.float32)            # (1, C)
            cs = sw.shape[1]
            x2 = x_ref[...].astype(jnp.float32).reshape(h * w, cin)
            cur = jnp.zeros((h * w, cs), jnp.float32)
            for ci in range(cin):                             # cin is tiny: VPU FMAs
                cur = cur + x2[:, ci:ci + 1] * sw[ci:ci + 1, :]
            cur = cur + sb
        else:
            ho, wo = h // 2, w // 2
            # parity planes of the unpadded input, read straight off the VMEM
            # block with strided loads (nothing extra touches HBM).
            ee = x_ref[pl.ds(0, ho, 2), pl.ds(0, wo, 2), :].astype(jnp.float32)
            eo = x_ref[pl.ds(0, ho, 2), pl.ds(1, wo, 2), :].astype(jnp.float32)
            oe = x_ref[pl.ds(1, ho, 2), pl.ds(0, wo, 2), :].astype(jnp.float32)
            oo = x_ref[pl.ds(1, ho, 2), pl.ds(1, wo, 2), :].astype(jnp.float32)
            dw_w = next(wi)[...].astype(jnp.float32)          # (9, cin)
            dw_b = next(wi)[...].astype(jnp.float32)          # (1, cin)
            y = _group_norm(_dw_conv3x3_s2(((ee, eo), (oe, oo)), dw_w, dw_b))
            w1, b1, w2, b2, rw, rb = (next(wi) for _ in range(6))
            hmid = _gelu(_pw(y.reshape(ho * wo, cin), w1, b1))
            # 1x1 stride-2 shortcut reads x[::2, ::2] == the even/even plane,
            # already resident in VMEM.
            cur = _pw(hmid, w2, b2) + _pw(ee.reshape(ho * wo, cin), rw, rb)

        c = cur.shape[-1]
        for _ in range(n_blocks):                             # static unroll
            dw_w = next(wi)[...].astype(jnp.float32)
            dw_b = next(wi)[...].astype(jnp.float32)
            w1, b1, w2, b2 = (next(wi) for _ in range(4))
            y = _group_norm(_dw_conv3x3(cur.reshape(ho, wo, c), dw_w, dw_b))
            hmid = _gelu(_pw(y.reshape(ho * wo, c), w1, b1))
            cur = _pw(hmid, w2, b2) + cur                     # residual (aligned read)

        o_ref[...] = cur.astype(o_ref.dtype)

    return kernel


# --------------------------------- wrappers ----------------------------------

def _fold_gn_into_pw1(p):
    """GN affine folded into pw1 (exact): w1' = diag(gamma) @ w1, b1' = beta @ w1 + b1."""
    gamma = p["gn_g"][0]
    w1 = p["pw1_w"] * gamma[:, None]
    b1 = p["pw1_b"] + p["gn_b"] @ p["pw1_w"]
    return w1, b1


def _block_weights(p):
    w1, b1 = _fold_gn_into_pw1(p)
    return [p["dw_w"], p["dw_b"], w1.astype(_MXU_DTYPE), b1,
            p["pw2_w"].astype(_MXU_DTYPE), p["pw2_b"]]


def _down_weights(p):
    w1, b1 = _fold_gn_into_pw1(p)
    return [p["dw_w"], p["dw_b"], w1.astype(_MXU_DTYPE), b1,
            p["pw2_w"].astype(_MXU_DTYPE), p["pw2_b"],
            p["res_w"].astype(_MXU_DTYPE), p["res_b"]]


def _compiler_params(vmem_needed_bytes):
    """Parallel batch grid + a generation-aware VMEM budget (v5e/v6e: 128 MiB
    physical, v7x: 64 MiB) sized from the actual per-grid-step footprint."""
    try:
        phys = int(pltpu.get_tpu_info().vmem_capacity_bytes)
    except Exception:   # interpret mode / older jax: assume the v5e/v6e size
        phys = 128 * 1024 * 1024
    limit = int(min(phys * 3 // 4, max(32 * 1024 * 1024, 2 * int(vmem_needed_bytes))))
    return pltpu.CompilerParams(
        dimension_semantics=("parallel",),
        vmem_limit_bytes=limit,
    )


def _run_stage(x, *, stem_p=None, down_p=None, block_ps=()):
    """One fused encoder stage == one pallas_call, grid over the batch."""
    n, h, w, cin = x.shape
    if stem_p is not None:
        weights = [stem_p["w"], stem_p["b"]]
        ho, wo, cout = h, w, stem_p["w"].shape[1]
    else:
        weights = _down_weights(down_p)
        ho, wo, cout = h // 2, w // 2, down_p["pw2_w"].shape[1]
    for bp in block_ps:
        weights += _block_weights(bp)

    m = ho * wo
    kernel = _make_stage_kernel(h=h, w=w, cin=cin, stem=stem_p is not None,
                                n_blocks=len(block_ps))

    # per-grid-step footprint: double-buffered input/output blocks, resident
    # weights, and ~a dozen (m, cmax) f32 intermediates
    cmax = max(max(wt.shape) for wt in weights)
    est = (2 * h * w * cin + 2 * m * cout + 12 * m * cmax) * 4
    est += sum(int(wt.size) * wt.dtype.itemsize for wt in weights)

    in_specs = [pl.BlockSpec((None, h, w, cin), lambda i: (i, 0, 0, 0))]
    in_specs += [pl.BlockSpec(wt.shape, lambda i: (0, 0)) for wt in weights]

    out = pl.pallas_call(
        kernel,
        grid=(n,),
        in_specs=in_specs,
        out_specs=pl.BlockSpec((None, m, cout), lambda i: (i, 0, 0)),
        out_shape=jax.ShapeDtypeStruct((n, m, cout), x.dtype),
        compiler_params=_compiler_params(est),
    )(x, *weights)
    return out.reshape(n, ho, wo, cout)


# -------------------------------- parameters ---------------------------------

def _init_block_params(key, c, exp):
    ks = jax.random.split(key, 3)
    hidden = exp * c
    return dict(
        dw_w=0.1 * jax.random.normal(ks[0], (9, c), jnp.float32),
        dw_b=jnp.zeros((1, c), jnp.float32),
        gn_g=jnp.ones((1, c), jnp.float32),
        gn_b=jnp.zeros((1, c), jnp.float32),
        pw1_w=0.1 * jax.random.normal(ks[1], (c, hidden), jnp.float32),
        pw1_b=jnp.zeros((1, hidden), jnp.float32),
        pw2_w=0.1 * jax.random.normal(ks[2], (hidden, c), jnp.float32),
        pw2_b=jnp.zeros((1, c), jnp.float32),
    )


def _init_down_params(key, cin, exp):
    ks = jax.random.split(key, 4)
    hidden = exp * cin
    cout = 2 * cin
    return dict(
        dw_w=0.1 * jax.random.normal(ks[0], (9, cin), jnp.float32),
        dw_b=jnp.zeros((1, cin), jnp.float32),
        gn_g=jnp.ones((1, cin), jnp.float32),
        gn_b=jnp.zeros((1, cin), jnp.float32),
        pw1_w=0.1 * jax.random.normal(ks[1], (cin, hidden), jnp.float32),
        pw1_b=jnp.zeros((1, hidden), jnp.float32),
        pw2_w=0.1 * jax.random.normal(ks[2], (hidden, cout), jnp.float32),
        pw2_b=jnp.zeros((1, cout), jnp.float32),
        res_w=0.1 * jax.random.normal(ks[3], (cin, cout), jnp.float32),
        res_b=jnp.zeros((1, cout), jnp.float32),
    )


def init_encoder_params(key, in_channels, c, blocks, expansion):
    n_keys = 1 + sum(blocks) + 4
    keys = iter(jax.random.split(key, n_keys))
    params = {}
    params["stem"] = dict(
        w=0.1 * jax.random.normal(next(keys), (in_channels, c), jnp.float32),
        b=jnp.zeros((1, c), jnp.float32),
    )
    params["enc1"] = [_init_block_params(next(keys), c, expansion[0]) for _ in range(blocks[0])]
    params["down2"] = _init_down_params(next(keys), c, expansion[0])
    params["enc2"] = [_init_block_params(next(keys), 2 * c, expansion[1]) for _ in range(blocks[1])]
    params["down3"] = _init_down_params(next(keys), 2 * c, expansion[1])
    params["enc3"] = [_init_block_params(next(keys), 4 * c, expansion[2]) for _ in range(blocks[2])]
    params["down4"] = _init_down_params(next(keys), 4 * c, expansion[2])
    params["enc4"] = [_init_block_params(next(keys), 8 * c, expansion[3]) for _ in range(blocks[3])]
    params["final"] = _init_down_params(next(keys), 8 * c, expansion[3])
    return params


# ------------------------------- full forward --------------------------------

def mednext_encoder_forward(x_nchw, params):
    x = jnp.transpose(x_nchw, (0, 2, 3, 1))          # NCHW -> NHWC for the kernels
    skips = []
    x = _run_stage(x, stem_p=params["stem"], block_ps=params["enc1"])
    skips.append(x)
    x = _run_stage(x, down_p=params["down2"], block_ps=params["enc2"])
    skips.append(x)
    x = _run_stage(x, down_p=params["down3"], block_ps=params["enc3"])
    skips.append(x)
    x = _run_stage(x, down_p=params["down4"], block_ps=params["enc4"])
    skips.append(x)
    out = _run_stage(x, down_p=params["final"], block_ps=[])
    to_nchw = lambda t: jnp.transpose(t, (0, 3, 1, 2))
    return to_nchw(out), [to_nchw(s) for s in skips[::-1]]


# ----------------------------------- main -------------------------------------

if __name__ == "__main__":
    key = jax.random.PRNGKey(0)
    k_x, k_p = jax.random.split(key)

    in_channels, C = 3, 16
    encoder_blocks = [1, 1, 1, 1]
    encoder_expansion = [2, 2, 2, 2]
    N, H, W = 2, 16, 16

    x = jax.random.normal(k_x, (N, in_channels, H, W), jnp.float32)
    params = init_encoder_params(k_p, in_channels, C, encoder_blocks, encoder_expansion)

    fwd = jax.jit(mednext_encoder_forward)
    out, skips = fwd(x, params)
    jax.block_until_ready(out)
    jax.block_until_ready(skips)

    assert out.shape == (N, 16 * C, 1, 1), out.shape
    assert [tuple(s.shape) for s in skips] == [
        (N, 8 * C, 2, 2), (N, 4 * C, 4, 4), (N, 2 * C, 8, 8), (N, C, 16, 16)
    ], [s.shape for s in skips]
    assert all(bool(jnp.all(jnp.isfinite(t))) for t in [out] + skips)

    print("KERNEL_OK")
</pallas_src>

<mosaic_0001>
module attributes {stable_mosaic.version = 11 : i64} {
  func.func @kernel(%arg0: i32, %arg1: memref<1x16x16x3xf32, #tpu.memory_space<vmem>>, %arg2: memref<3x16xf32, #tpu.memory_space<vmem>>, %arg3: memref<1x16xf32, #tpu.memory_space<vmem>>, %arg4: memref<9x16xf32, #tpu.memory_space<vmem>>, %arg5: memref<1x16xf32, #tpu.memory_space<vmem>>, %arg6: memref<16x32xbf16, #tpu.memory_space<vmem>>, %arg7: memref<1x32xf32, #tpu.memory_space<vmem>>, %arg8: memref<32x16xbf16, #tpu.memory_space<vmem>>, %arg9: memref<1x16xf32, #tpu.memory_space<vmem>>, %arg10: memref<1x256x16xf32, #tpu.memory_space<vmem>>) attributes {dimension_semantics = [#tpu.dimension_semantics<parallel>], iteration_bounds = array<i64: 2>, scalar_prefetch = 0 : i64, scratch_operands = 0 : i64, tpu.core_type = #tpu.core_type<tc>, window_params = [{transform_indices = @transform_0, window_bounds = array<i64: 1, 16, 16, 3>}, {pipeline_mode = #tpu.pipeline_mode<synchronous>, transform_indices = @transform_1, window_bounds = array<i64: 3, 16>}, {pipeline_mode = #tpu.pipeline_mode<synchronous>, transform_indices = @transform_2, window_bounds = array<i64: 1, 16>}, {pipeline_mode = #tpu.pipeline_mode<synchronous>, transform_indices = @transform_3, window_bounds = array<i64: 9, 16>}, {pipeline_mode = #tpu.pipeline_mode<synchronous>, transform_indices = @transform_4, window_bounds = array<i64: 1, 16>}, {pipeline_mode = #tpu.pipeline_mode<synchronous>, transform_indices = @transform_5, window_bounds = array<i64: 16, 32>}, {pipeline_mode = #tpu.pipeline_mode<synchronous>, transform_indices = @transform_6, window_bounds = array<i64: 1, 32>}, {pipeline_mode = #tpu.pipeline_mode<synchronous>, transform_indices = @transform_7, window_bounds = array<i64: 32, 16>}, {pipeline_mode = #tpu.pipeline_mode<synchronous>, transform_indices = @transform_8, window_bounds = array<i64: 1, 16>}, {transform_indices = @transform_9, window_bounds = array<i64: 1, 256, 16>}]} {
    %c0 = arith.constant 0 : index
    %c0_0 = arith.constant 0 : index
    %0 = vector.load %arg2[%c0, %c0_0] : memref<3x16xf32, #tpu.memory_space<vmem>>, vector<3x16xf32>
    %c0_1 = arith.constant 0 : index
    %c0_2 = arith.constant 0 : index
    %1 = vector.load %arg3[%c0_1, %c0_2] : memref<1x16xf32, #tpu.memory_space<vmem>>, vector<1x16xf32>
    %c0_3 = arith.constant 0 : index
    %c0_4 = arith.constant 0 : index
    %c0_5 = arith.constant 0 : index
    %c0_6 = arith.constant 0 : index
    %2 = vector.load %arg1[%c0_3, %c0_4, %c0_5, %c0_6] : memref<1x16x16x3xf32, #tpu.memory_space<vmem>>, vector<1x16x16x3xf32>
    %3 = vector.shape_cast %2 : vector<1x16x16x3xf32> to vector<16x16x3xf32>
    %4 = vector.shape_cast %3 : vector<16x16x3xf32> to vector<256x3xf32>
    %cst = arith.constant 0.000000e+00 : f32
    %5 = vector.broadcast %cst : f32 to vector<256x16xf32>
    %6 = vector.extract_strided_slice %4 {offsets = [0, 0], sizes = [256, 1], strides = [1, 1]} : vector<256x3xf32> to vector<256x1xf32>
    %7 = vector.extract_strided_slice %0 {offsets = [0, 0], sizes = [1, 16], strides = [1, 1]} : vector<3x16xf32> to vector<1x16xf32>
    %8 = vector.broadcast %6 : vector<256x1xf32> to vector<256x16xf32>
    %9 = vector.broadcast %7 : vector<1x16xf32> to vector<256x16xf32>
    %10 = arith.mulf %8, %9 : vector<256x16xf32>
    %11 = arith.addf %5, %10 : vector<256x16xf32>
    %12 = vector.extract_strided_slice %4 {offsets = [0, 1], sizes = [256, 1], strides = [1, 1]} : vector<256x3xf32> to vector<256x1xf32>
    %13 = vector.extract_strided_slice %0 {offsets = [1, 0], sizes = [1, 16], strides = [1, 1]} : vector<3x16xf32> to vector<1x16xf32>
    %14 = vector.broadcast %12 : vector<256x1xf32> to vector<256x16xf32>
    %15 = vector.broadcast %13 : vector<1x16xf32> to vector<256x16xf32>
    %16 = arith.mulf %14, %15 : vector<256x16xf32>
    %17 = arith.addf %11, %16 : vector<256x16xf32>
    %18 = vector.extract_strided_slice %4 {offsets = [0, 2], sizes = [256, 1], strides = [1, 1]} : vector<256x3xf32> to vector<256x1xf32>
    %19 = vector.extract_strided_slice %0 {offsets = [2, 0], sizes = [1, 16], strides = [1, 1]} : vector<3x16xf32> to vector<1x16xf32>
    %20 = vector.broadcast %18 : vector<256x1xf32> to vector<256x16xf32>
    %21 = vector.broadcast %19 : vector<1x16xf32> to vector<256x16xf32>
    %22 = arith.mulf %20, %21 : vector<256x16xf32>
    %23 = arith.addf %17, %22 : vector<256x16xf32>
    %24 = vector.broadcast %1 : vector<1x16xf32> to vector<256x16xf32>
    %25 = arith.addf %23, %24 : vector<256x16xf32>
    %c0_7 = arith.constant 0 : index
    %c0_8 = arith.constant 0 : index
    %26 = vector.load %arg4[%c0_7, %c0_8] : memref<9x16xf32, #tpu.memory_space<vmem>>, vector<9x16xf32>
    %c0_9 = arith.constant 0 : index
    %c0_10 = arith.constant 0 : index
    %27 = vector.load %arg5[%c0_9, %c0_10] : memref<1x16xf32, #tpu.memory_space<vmem>>, vector<1x16xf32>
    %28 = vector.shape_cast %25 : vector<256x16xf32> to vector<16x16x16xf32>
    %cst_11 = arith.constant 0.000000e+00 : f32
    %29 = vector.broadcast %cst_11 : f32 to vector<16x16x16xf32>
    %cst_12 = arith.constant 0.000000e+00 : f32
    %30 = vector.broadcast %cst_12 : f32 to vector<1x16x16xf32>
    %31 = vector.extract_strided_slice %28 {offsets = [0, 0, 0], sizes = [15, 16, 16], strides = [1, 1, 1]} : vector<16x16x16xf32> to vector<15x16x16xf32>
    %32 = tpu.concatenate %30, %31 in 0 : vector<1x16x16xf32>, vector<15x16x16xf32> -> vector<16x16x16xf32>
    %cst_13 = arith.constant 0.000000e+00 : f32
    %33 = vector.broadcast %cst_13 : f32 to vector<16x1x16xf32>
    %34 = vector.extract_strided_slice %32 {offsets = [0, 0, 0], sizes = [16, 15, 16], strides = [1, 1, 1]} : vector<16x16x16xf32> to vector<16x15x16xf32>
    %35 = tpu.concatenate %33, %34 in 1 : vector<16x1x16xf32>, vector<16x15x16xf32> -> vector<16x16x16xf32>
    %36 = vector.extract_strided_slice %26 {offsets = [0, 0], sizes = [1, 16], strides = [1, 1]} : vector<9x16xf32> to vector<1x16xf32>
    %37 = vector.shape_cast %36 : vector<1x16xf32> to vector<16xf32>
    %38 = vector.shape_cast %37 : vector<16xf32> to vector<1x1x16xf32>
    %39 = vector.broadcast %38 : vector<1x1x16xf32> to vector<16x16x16xf32>
    %40 = arith.mulf %35, %39 : vector<16x16x16xf32>
    %41 = arith.addf %29, %40 : vector<16x16x16xf32>
    %cst_14 = arith.constant 0.000000e+00 : f32
    %42 = vector.broadcast %cst_14 : f32 to vector<1x16x16xf32>
    %43 = vector.extract_strided_slice %28 {offsets = [0, 0, 0], sizes = [15, 16, 16], strides = [1, 1, 1]} : vector<16x16x16xf32> to vector<15x16x16xf32>
    %44 = tpu.concatenate %42, %43 in 0 : vector<1x16x16xf32>, vector<15x16x16xf32> -> vector<16x16x16xf32>
    %45 = vector.extract_strided_slice %26 {offsets = [1, 0], sizes = [1, 16], strides = [1, 1]} : vector<9x16xf32> to vector<1x16xf32>
    %46 = vector.shape_cast %45 : vector<1x16xf32> to vector<16xf32>
    %47 = vector.shape_cast %46 : vector<16xf32> to vector<1x1x16xf32>
    %48 = vector.broadcast %47 : vector<1x1x16xf32> to vector<16x16x16xf32>
    %49 = arith.mulf %44, %48 : vector<16x16x16xf32>
    %50 = arith.addf %41, %49 : vector<16x16x16xf32>
    %cst_15 = arith.constant 0.000000e+00 : f32
    %51 = vector.broadcast %cst_15 : f32 to vector<1x16x16xf32>
    %52 = vector.extract_strided_slice %28 {offsets = [0, 0, 0], sizes = [15, 16, 16], strides = [1, 1, 1]} : vector<16x16x16xf32> to vector<15x16x16xf32>
    %53 = tpu.concatenate %51, %52 in 0 : vector<1x16x16xf32>, vector<15x16x16xf32> -> vector<16x16x16xf32>
    %cst_16 = arith.constant 0.000000e+00 : f32
    %54 = vector.broadcast %cst_16 : f32 to vector<16x1x16xf32>
    %55 = vector.extract_strided_slice %53 {offsets = [0, 1, 0], sizes = [16, 15, 16], strides = [1, 1, 1]} : vector<16x16x16xf32> to vector<16x15x16xf32>
    %56 = tpu.concatenate %55, %54 in 1 : vector<16x15x16xf32>, vector<16x1x16xf32> -> vector<16x16x16xf32>
    %57 = vector.extract_strided_slice %26 {offsets = [2, 0], sizes = [1, 16], strides = [1, 1]} : vector<9x16xf32> to vector<1x16xf32>
    %58 = vector.shape_cast %57 : vector<1x16xf32> to vector<16xf32>
    %59 = vector.shape_cast %58 : vector<16xf32> to vector<1x1x16xf32>
    %60 = vector.broadcast %59 : vector<1x1x16xf32> to vector<16x16x16xf32>
    %61 = arith.mulf %56, %60 : vector<16x16x16xf32>
    %62 = arith.addf %50, %61 : vector<16x16x16xf32>
    %cst_17 = arith.constant 0.000000e+00 : f32
    %63 = vector.broadcast %cst_17 : f32 to vector<16x1x16xf32>
    %64 = vector.extract_strided_slice %28 {offsets = [0, 0, 0], sizes = [16, 15, 16], strides = [1, 1, 1]} : vector<16x16x16xf32> to vector<16x15x16xf32>
    %65 = tpu.concatenate %63, %64 in 1 : vector<16x1x16xf32>, vector<16x15x16xf32> -> vector<16x16x16xf32>
    %66 = vector.extract_strided_slice %26 {offsets = [3, 0], sizes = [1, 16], strides = [1, 1]} : vector<9x16xf32> to vector<1x16xf32>
    %67 = vector.shape_cast %66 : vector<1x16xf32> to vector<16xf32>
    %68 = vector.shape_cast %67 : vector<16xf32> to vector<1x1x16xf32>
    %69 = vector.broadcast %68 : vector<1x1x16xf32> to vector<16x16x16xf32>
    %70 = arith.mulf %65, %69 : vector<16x16x16xf32>
    %71 = arith.addf %62, %70 : vector<16x16x16xf32>
    %72 = vector.extract_strided_slice %26 {offsets = [4, 0], sizes = [1, 16], strides = [1, 1]} : vector<9x16xf32> to vector<1x16xf32>
    %73 = vector.shape_cast %72 : vector<1x16xf32> to vector<16xf32>
    %74 = vector.shape_cast %73 : vector<16xf32> to vector<1x1x16xf32>
    %75 = vector.broadcast %74 : vector<1x1x16xf32> to vector<16x16x16xf32>
    %76 = arith.mulf %28, %75 : vector<16x16x16xf32>
    %77 = arith.addf %71, %76 : vector<16x16x16xf32>
    %cst_18 = arith.constant 0.000000e+00 : f32
    %78 = vector.broadcast %cst_18 : f32 to vector<16x1x16xf32>
    %79 = vector.extract_strided_slice %28 {offsets = [0, 1, 0], sizes = [16, 15, 16], strides = [1, 1, 1]} : vector<16x16x16xf32> to vector<16x15x16xf32>
    %80 = tpu.concatenate %79, %78 in 1 : vector<16x15x16xf32>, vector<16x1x16xf32> -> vector<16x16x16xf32>
    %81 = vector.extract_strided_slice %26 {offsets = [5, 0], sizes = [1, 16], strides = [1, 1]} : vector<9x16xf32> to vector<1x16xf32>
    %82 = vector.shape_cast %81 : vector<1x16xf32> to vector<16xf32>
    %83 = vector.shape_cast %82 : vector<16xf32> to vector<1x1x16xf32>
    %84 = vector.broadcast %83 : vector<1x1x16xf32> to vector<16x16x16xf32>
    %85 = arith.mulf %80, %84 : vector<16x16x16xf32>
    %86 = arith.addf %77, %85 : vector<16x16x16xf32>
    %cst_19 = arith.constant 0.000000e+00 : f32
    %87 = vector.broadcast %cst_19 : f32 to vector<1x16x16xf32>
    %88 = vector.extract_strided_slice %28 {offsets = [1, 0, 0], sizes = [15, 16, 16], strides = [1, 1, 1]} : vector<16x16x16xf32> to vector<15x16x16xf32>
    %89 = tpu.concatenate %88, %87 in 0 : vector<15x16x16xf32>, vector<1x16x16xf32> -> vector<16x16x16xf32>
    %cst_20 = arith.constant 0.000000e+00 : f32
    %90 = vector.broadcast %cst_20 : f32 to vector<16x1x16xf32>
    %91 = vector.extract_strided_slice %89 {offsets = [0, 0, 0], sizes = [16, 15, 16], strides = [1, 1, 1]} : vector<16x16x16xf32> to vector<16x15x16xf32>
    %92 = tpu.concatenate %90, %91 in 1 : vector<16x1x16xf32>, vector<16x15x16xf32> -> vector<16x16x16xf32>
    %93 = vector.extract_strided_slice %26 {offsets = [6, 0], sizes = [1, 16], strides = [1, 1]} : vector<9x16xf32> to vector<1x16xf32>
    %94 = vector.shape_cast %93 : vector<1x16xf32> to vector<16xf32>
    %95 = vector.shape_cast %94 : vector<16xf32> to vector<1x1x16xf32>
    %96 = vector.broadcast %95 : vector<1x1x16xf32> to vector<16x16x16xf32>
    %97 = arith.mulf %92, %96 : vector<16x16x16xf32>
    %98 = arith.addf %86, %97 : vector<16x16x16xf32>
    %cst_21 = arith.constant 0.000000e+00 : f32
    %99 = vector.broadcast %cst_21 : f32 to vector<1x16x16xf32>
    %100 = vector.extract_strided_slice %28 {offsets = [1, 0, 0], sizes = [15, 16, 16], strides = [1, 1, 1]} : vector<16x16x16xf32> to vector<15x16x16xf32>
    %101 = tpu.concatenate %100, %99 in 0 : vector<15x16x16xf32>, vector<1x16x16xf32> -> vector<16x16x16xf32>
    %102 = vector.extract_strided_slice %26 {offsets = [7, 0], sizes = [1, 16], strides = [1, 1]} : vector<9x16xf32> to vector<1x16xf32>
    %103 = vector.shape_cast %102 : vector<1x16xf32> to vector<16xf32>
    %104 = vector.shape_cast %103 : vector<16xf32> to vector<1x1x16xf32>
    %105 = vector.broadcast %104 : vector<1x1x16xf32> to vector<16x16x16xf32>
    %106 = arith.mulf %101, %105 : vector<16x16x16xf32>
    %107 = arith.addf %98, %106 : vector<16x16x16xf32>
    %cst_22 = arith.constant 0.000000e+00 : f32
    %108 = vector.broadcast %cst_22 : f32 to vector<1x16x16xf32>
    %109 = vector.extract_strided_slice %28 {offsets = [1, 0, 0], sizes = [15, 16, 16], strides = [1, 1, 1]} : vector<16x16x16xf32> to vector<15x16x16xf32>
    %110 = tpu.concatenate %109, %108 in 0 : vector<15x16x16xf32>, vector<1x16x16xf32> -> vector<16x16x16xf32>
    %cst_23 = arith.constant 0.000000e+00 : f32
    %111 = vector.broadcast %cst_23 : f32 to vector<16x1x16xf32>
    %112 = vector.extract_strided_slice %110 {offsets = [0, 1, 0], sizes = [16, 15, 16], strides = [1, 1, 1]} : vector<16x16x16xf32> to vector<16x15x16xf32>
    %113 = tpu.concatenate %112, %111 in 1 : vector<16x15x16xf32>, vector<16x1x16xf32> -> vector<16x16x16xf32>
    %114 = vector.extract_strided_slice %26 {offsets = [8, 0], sizes = [1, 16], strides = [1, 1]} : vector<9x16xf32> to vector<1x16xf32>
    %115 = vector.shape_cast %114 : vector<1x16xf32> to vector<16xf32>
    %116 = vector.shape_cast %115 : vector<16xf32> to vector<1x1x16xf32>
    %117 = vector.broadcast %116 : vector<1x1x16xf32> to vector<16x16x16xf32>
    %118 = arith.mulf %113, %117 : vector<16x16x16xf32>
    %119 = arith.addf %107, %118 : vector<16x16x16xf32>
    %120 = vector.shape_cast %27 : vector<1x16xf32> to vector<1x1x16xf32>
    %121 = vector.broadcast %120 : vector<1x1x16xf32> to vector<16x16x16xf32>
    %122 = arith.addf %119, %121 : vector<16x16x16xf32>
    %cst_24 = arith.constant dense<0.000000e+00> : vector<16xf32>
    %123 = vector.multi_reduction <add>, %122, %cst_24 [0, 1] : vector<16x16x16xf32> to vector<16xf32>
    %124 = vector.shape_cast %123 : vector<16xf32> to vector<1x1x16xf32>
    %125 = arith.mulf %122, %122 : vector<16x16x16xf32>
    %cst_25 = arith.constant dense<0.000000e+00> : vector<16xf32>
    %126 = vector.multi_reduction <add>, %125, %cst_25 [0, 1] : vector<16x16x16xf32> to vector<16xf32>
    %127 = vector.shape_cast %126 : vector<16xf32> to vector<1x1x16xf32>
    %cst_26 = arith.constant 3.906250e-03 : f32
    %128 = vector.broadcast %cst_26 : f32 to vector<1x1x16xf32>
    %129 = arith.mulf %124, %128 : vector<1x1x16xf32>
    %cst_27 = arith.constant 3.906250e-03 : f32
    %130 = vector.broadcast %cst_27 : f32 to vector<1x1x16xf32>
    %131 = arith.mulf %127, %130 : vector<1x1x16xf32>
    %132 = arith.mulf %129, %129 : vector<1x1x16xf32>
    %133 = arith.subf %131, %132 : vector<1x1x16xf32>
    %cst_28 = arith.constant 0.000000e+00 : f32
    %134 = vector.broadcast %cst_28 : f32 to vector<1x1x16xf32>
    %135 = arith.maximumf %133, %134 : vector<1x1x16xf32>
    %136 = vector.broadcast %129 : vector<1x1x16xf32> to vector<16x16x16xf32>
    %137 = arith.subf %122, %136 : vector<16x16x16xf32>
    %cst_29 = arith.constant 9.99999974E-6 : f32
    %138 = vector.broadcast %cst_29 : f32 to vector<1x1x16xf32>
    %139 = arith.addf %135, %138 : vector<1x1x16xf32>
    %140 = math.rsqrt %139 : vector<1x1x16xf32>
    %141 = vector.broadcast %140 : vector<1x1x16xf32> to vector<16x16x16xf32>
    %142 = arith.mulf %137, %141 : vector<16x16x16xf32>
    %143 = vector.shape_cast %142 : vector<16x16x16xf32> to vector<256x16xf32>
    %c0_30 = arith.constant 0 : index
    %c0_31 = arith.constant 0 : index
    %144 = vector.load %arg6[%c0_30, %c0_31] : memref<16x32xbf16, #tpu.memory_space<vmem>>, vector<16x32xbf16>
    %145 = arith.truncf %143 : vector<256x16xf32> to vector<256x16xbf16>
    %cst_32 = arith.constant dense<0.000000e+00> : vector<256x32xf32>
    %146 = tpu.matmul %145, %144, %cst_32 {dimension_numbers = #tpu.dot_dimension_numbers<[1], [0], [0], [1], [0, 0, 1, 1], [], []>} : vector<256x16xbf16>, vector<16x32xbf16>, vector<256x32xf32> -> vector<256x32xf32>
    %c0_33 = arith.constant 0 : index
    %c0_34 = arith.constant 0 : index
    %147 = vector.load %arg7[%c0_33, %c0_34] : memref<1x32xf32, #tpu.memory_space<vmem>>, vector<1x32xf32>
    %148 = vector.broadcast %147 : vector<1x32xf32> to vector<256x32xf32>
    %149 = arith.addf %146, %148 : vector<256x32xf32>
    %cst_35 = arith.constant 5.000000e-01 : f32
    %150 = vector.broadcast %cst_35 : f32 to vector<256x32xf32>
    %151 = arith.mulf %150, %149 : vector<256x32xf32>
    %cst_36 = arith.constant 0.707106769 : f32
    %152 = vector.broadcast %cst_36 : f32 to vector<256x32xf32>
    %153 = arith.mulf %149, %152 : vector<256x32xf32>
    %154 = math.erf %153 : vector<256x32xf32>
    %cst_37 = arith.constant 1.000000e+00 : f32
    %155 = vector.broadcast %cst_37 : f32 to vector<256x32xf32>
    %156 = arith.addf %155, %154 : vector<256x32xf32>
    %157 = arith.mulf %151, %156 : vector<256x32xf32>
    %c0_38 = arith.constant 0 : index
    %c0_39 = arith.constant 0 : index
    %158 = vector.load %arg8[%c0_38, %c0_39] : memref<32x16xbf16, #tpu.memory_space<vmem>>, vector<32x16xbf16>
    %159 = arith.truncf %157 : vector<256x32xf32> to vector<256x32xbf16>
    %cst_40 = arith.constant dense<0.000000e+00> : vector<256x16xf32>
    %160 = tpu.matmul %159, %158, %cst_40 {dimension_numbers = #tpu.dot_dimension_numbers<[1], [0], [0], [1], [0, 0, 1, 1], [], []>} : vector<256x32xbf16>, vector<32x16xbf16>, vector<256x16xf32> -> vector<256x16xf32>
    %c0_41 = arith.constant 0 : index
    %c0_42 = arith.constant 0 : index
    %161 = vector.load %arg9[%c0_41, %c0_42] : memref<1x16xf32, #tpu.memory_space<vmem>>, vector<1x16xf32>
    %162 = vector.broadcast %161 : vector<1x16xf32> to vector<256x16xf32>
    %163 = arith.addf %160, %162 : vector<256x16xf32>
    %164 = arith.addf %163, %25 : vector<256x16xf32>
    %c0_43 = arith.constant 0 : index
    %c0_44 = arith.constant 0 : index
    %c0_45 = arith.constant 0 : index
    %165 = vector.load %arg10[%c0_43, %c0_44, %c0_45] : memref<1x256x16xf32, #tpu.memory_space<vmem>>, vector<1x256x16xf32>
    %166 = vector.shape_cast %165 : vector<1x256x16xf32> to vector<256x16xf32>
    %167 = vector.shape_cast %164 : vector<256x16xf32> to vector<1x256x16xf32>
    tpu.vector_store %arg10[%c0_43, %c0_44, %c0_45], %167 {strides = array<i32>} : memref<1x256x16xf32, #tpu.memory_space<vmem>>, vector<1x256x16xf32>,
    return
  }
  func.func @transform_0(%arg0: i32) -> (i32, i32, i32, i32) {
    %c0_i32 = arith.constant 0 : i32
    %c0_i32_0 = arith.constant 0 : i32
    %c0_i32_1 = arith.constant 0 : i32
    %c0_i32_2 = arith.constant 0 : i32
    return %arg0, %c0_i32, %c0_i32_0, %c0_i32_1 : i32, i32, i32, i32
  }
  func.func @transform_1(%arg0: i32) -> (i32, i32) {
    %c0_i32 = arith.constant 0 : i32
    %c0_i32_0 = arith.constant 0 : i32
    %c0_i32_1 = arith.constant 0 : i32
    return %c0_i32, %c0_i32_0 : i32, i32
  }
  func.func @transform_2(%arg0: i32) -> (i32, i32) {
    %c0_i32 = arith.constant 0 : i32
    %c0_i32_0 = arith.constant 0 : i32
    %c0_i32_1 = arith.constant 0 : i32
    return %c0_i32, %c0_i32_0 : i32, i32
  }
  func.func @transform_3(%arg0: i32) -> (i32, i32) {
    %c0_i32 = arith.constant 0 : i32
    %c0_i32_0 = arith.constant 0 : i32
    %c0_i32_1 = arith.constant 0 : i32
    return %c0_i32, %c0_i32_0 : i32, i32
  }
  func.func @transform_4(%arg0: i32) -> (i32, i32) {
    %c0_i32 = arith.constant 0 : i32
    %c0_i32_0 = arith.constant 0 : i32
    %c0_i32_1 = arith.constant 0 : i32
    return %c0_i32, %c0_i32_0 : i32, i32
  }
  func.func @transform_5(%arg0: i32) -> (i32, i32) {
    %c0_i32 = arith.constant 0 : i32
    %c0_i32_0 = arith.constant 0 : i32
    %c0_i32_1 = arith.constant 0 : i32
    return %c0_i32, %c0_i32_0 : i32, i32
  }
  func.func @transform_6(%arg0: i32) -> (i32, i32) {
    %c0_i32 = arith.constant 0 : i32
    %c0_i32_0 = arith.constant 0 : i32
    %c0_i32_1 = arith.constant 0 : i32
    return %c0_i32, %c0_i32_0 : i32, i32
  }
  func.func @transform_7(%arg0: i32) -> (i32, i32) {
    %c0_i32 = arith.constant 0 : i32
    %c0_i32_0 = arith.constant 0 : i32
    %c0_i32_1 = arith.constant 0 : i32
    return %c0_i32, %c0_i32_0 : i32, i32
  }
  func.func @transform_8(%arg0: i32) -> (i32, i32) {
    %c0_i32 = arith.constant 0 : i32
    %c0_i32_0 = arith.constant 0 : i32
    %c0_i32_1 = arith.constant 0 : i32
    return %c0_i32, %c0_i32_0 : i32, i32
  }
  func.func @transform_9(%arg0: i32) -> (i32, i32, i32) {
    %c0_i32 = arith.constant 0 : i32
    %c0_i32_0 = arith.constant 0 : i32
    %c0_i32_1 = arith.constant 0 : i32
    return %arg0, %c0_i32, %c0_i32_0 : i32, i32, i32
  }
}

module attributes {stable_mosaic.version = 11 : i64} {
  func.func @kernel(%arg0: i32, %arg1: memref<1x16x16x16xf32, #tpu.memory_space<vmem>>, %arg2: memref<9x16xf32, #tpu.memory_space<vmem>>, %arg3: memref<1x16xf32, #tpu.memory_space<vmem>>, %arg4: memref<16x32xbf16, #tpu.memory_space<vmem>>, %arg5: memref<1x32xf32, #tpu.memory_space<vmem>>, %arg6: memref<32x32xbf16, #tpu.memory_space<vmem>>, %arg7: memref<1x32xf32, #tpu.memory_space<vmem>>, %arg8: memref<16x32xbf16, #tpu.memory_space<vmem>>, %arg9: memref<1x32xf32, #tpu.memory_space<vmem>>, %arg10: memref<9x32xf32, #tpu.memory_space<vmem>>, %arg11: memref<1x32xf32, #tpu.memory_space<vmem>>, %arg12: memref<32x64xbf16, #tpu.memory_space<vmem>>, %arg13: memref<1x64xf32, #tpu.memory_space<vmem>>, %arg14: memref<64x32xbf16, #tpu.memory_space<vmem>>, %arg15: memref<1x32xf32, #tpu.memory_space<vmem>>, %arg16: memref<1x64x32xf32, #tpu.memory_space<vmem>>) attributes {dimension_semantics = [#tpu.dimension_semantics<parallel>], iteration_bounds = array<i64: 2>, scalar_prefetch = 0 : i64, scratch_operands = 0 : i64, tpu.core_type = #tpu.core_type<tc>, window_params = [{transform_indices = @transform_0, window_bounds = array<i64: 1, 16, 16, 16>}, {pipeline_mode = #tpu.pipeline_mode<synchronous>, transform_indices = @transform_1, window_bounds = array<i64: 9, 16>}, {pipeline_mode = #tpu.pipeline_mode<synchronous>, transform_indices = @transform_2, window_bounds = array<i64: 1, 16>}, {pipeline_mode = #tpu.pipeline_mode<synchronous>, transform_indices = @transform_3, window_bounds = array<i64: 16, 32>}, {pipeline_mode = #tpu.pipeline_mode<synchronous>, transform_indices = @transform_4, window_bounds = array<i64: 1, 32>}, {pipeline_mode = #tpu.pipeline_mode<synchronous>, transform_indices = @transform_5, window_bounds = array<i64: 32, 32>}, {pipeline_mode = #tpu.pipeline_mode<synchronous>, transform_indices = @transform_6, window_bounds = array<i64: 1, 32>}, {pipeline_mode = #tpu.pipeline_mode<synchronous>, transform_indices = @transform_7, window_bounds = array<i64: 16, 32>}, {pipeline_mode = #tpu.pipeline_mode<synchronous>, transform_indices = @transform_8, window_bounds = array<i64: 1, 32>}, {pipeline_mode = #tpu.pipeline_mode<synchronous>, transform_indices = @transform_9, window_bounds = array<i64: 9, 32>}, {pipeline_mode = #tpu.pipeline_mode<synchronous>, transform_indices = @transform_10, window_bounds = array<i64: 1, 32>}, {pipeline_mode = #tpu.pipeline_mode<synchronous>, transform_indices = @transform_11, window_bounds = array<i64: 32, 64>}, {pipeline_mode = #tpu.pipeline_mode<synchronous>, transform_indices = @transform_12, window_bounds = array<i64: 1, 64>}, {pipeline_mode = #tpu.pipeline_mode<synchronous>, transform_indices = @transform_13, window_bounds = array<i64: 64, 32>}, {pipeline_mode = #tpu.pipeline_mode<synchronous>, transform_indices = @transform_14, window_bounds = array<i64: 1, 32>}, {transform_indices = @transform_15, window_bounds = array<i64: 1, 64, 32>}]} {
    %c0 = arith.constant 0 : index
    %c0_0 = arith.constant 0 : index
    %c0_1 = arith.constant 0 : index
    %c0_2 = arith.constant 0 : index
    %0 = tpu.strided_load %arg1[%c0, %c0_0, %c0_1, %c0_2] {strides = array<i32: 1, 2, 2, 1>} : memref<1x16x16x16xf32, #tpu.memory_space<vmem>>, vector<1x8x8x16xf32>
    %1 = vector.shape_cast %0 : vector<1x8x8x16xf32> to vector<8x8x16xf32>
    %c0_3 = arith.constant 0 : index
    %c0_4 = arith.constant 0 : index
    %c1 = arith.constant 1 : index
    %c0_5 = arith.constant 0 : index
    %2 = tpu.strided_load %arg1[%c0_3, %c0_4, %c1, %c0_5] {strides = array<i32: 1, 2, 2, 1>} : memref<1x16x16x16xf32, #tpu.memory_space<vmem>>, vector<1x8x8x16xf32>
    %3 = vector.shape_cast %2 : vector<1x8x8x16xf32> to vector<8x8x16xf32>
    %c0_6 = arith.constant 0 : index
    %c1_7 = arith.constant 1 : index
    %c0_8 = arith.constant 0 : index
    %c0_9 = arith.constant 0 : index
    %4 = tpu.strided_load %arg1[%c0_6, %c1_7, %c0_8, %c0_9] {strides = array<i32: 1, 2, 2, 1>} : memref<1x16x16x16xf32, #tpu.memory_space<vmem>>, vector<1x8x8x16xf32>
    %5 = vector.shape_cast %4 : vector<1x8x8x16xf32> to vector<8x8x16xf32>
    %c0_10 = arith.constant 0 : index
    %c1_11 = arith.constant 1 : index
    %c1_12 = arith.constant 1 : index
    %c0_13 = arith.constant 0 : index
    %6 = tpu.strided_load %arg1[%c0_10, %c1_11, %c1_12, %c0_13] {strides = array<i32: 1, 2, 2, 1>} : memref<1x16x16x16xf32, #tpu.memory_space<vmem>>, vector<1x8x8x16xf32>
    %7 = vector.shape_cast %6 : vector<1x8x8x16xf32> to vector<8x8x16xf32>
    %c0_14 = arith.constant 0 : index
    %c0_15 = arith.constant 0 : index
    %8 = vector.load %arg2[%c0_14, %c0_15] : memref<9x16xf32, #tpu.memory_space<vmem>>, vector<9x16xf32>
    %c0_16 = arith.constant 0 : index
    %c0_17 = arith.constant 0 : index
    %9 = vector.load %arg3[%c0_16, %c0_17] : memref<1x16xf32, #tpu.memory_space<vmem>>, vector<1x16xf32>
    %cst = arith.constant 0.000000e+00 : f32
    %10 = vector.broadcast %cst : f32 to vector<8x8x16xf32>
    %cst_18 = arith.constant 0.000000e+00 : f32
    %11 = vector.broadcast %cst_18 : f32 to vector<1x8x16xf32>
    %12 = vector.extract_strided_slice %7 {offsets = [0, 0, 0], sizes = [7, 8, 16], strides = [1, 1, 1]} : vector<8x8x16xf32> to vector<7x8x16xf32>
    %13 = tpu.concatenate %11, %12 in 0 : vector<1x8x16xf32>, vector<7x8x16xf32> -> vector<8x8x16xf32>
    %cst_19 = arith.constant 0.000000e+00 : f32
    %14 = vector.broadcast %cst_19 : f32 to vector<8x1x16xf32>
    %15 = vector.extract_strided_slice %13 {offsets = [0, 0, 0], sizes = [8, 7, 16], strides = [1, 1, 1]} : vector<8x8x16xf32> to vector<8x7x16xf32>
    %16 = tpu.concatenate %14, %15 in 1 : vector<8x1x16xf32>, vector<8x7x16xf32> -> vector<8x8x16xf32>
    %17 = vector.extract_strided_slice %8 {offsets = [0, 0], sizes = [1, 16], strides = [1, 1]} : vector<9x16xf32> to vector<1x16xf32>
    %18 = vector.shape_cast %17 : vector<1x16xf32> to vector<16xf32>
    %19 = vector.shape_cast %18 : vector<16xf32> to vector<1x1x16xf32>
    %20 = vector.broadcast %19 : vector<1x1x16xf32> to vector<8x8x16xf32>
    %21 = arith.mulf %16, %20 : vector<8x8x16xf32>
    %22 = arith.addf %10, %21 : vector<8x8x16xf32>
    %cst_20 = arith.constant 0.000000e+00 : f32
    %23 = vector.broadcast %cst_20 : f32 to vector<1x8x16xf32>
    %24 = vector.extract_strided_slice %5 {offsets = [0, 0, 0], sizes = [7, 8, 16], strides = [1, 1, 1]} : vector<8x8x16xf32> to vector<7x8x16xf32>
    %25 = tpu.concatenate %23, %24 in 0 : vector<1x8x16xf32>, vector<7x8x16xf32> -> vector<8x8x16xf32>
    %26 = vector.extract_strided_slice %8 {offsets = [1, 0], sizes = [1, 16], strides = [1, 1]} : vector<9x16xf32> to vector<1x16xf32>
    %27 = vector.shape_cast %26 : vector<1x16xf32> to vector<16xf32>
    %28 = vector.shape_cast %27 : vector<16xf32> to vector<1x1x16xf32>
    %29 = vector.broadcast %28 : vector<1x1x16xf32> to vector<8x8x16xf32>
    %30 = arith.mulf %25, %29 : vector<8x8x16xf32>
    %31 = arith.addf %22, %30 : vector<8x8x16xf32>
    %cst_21 = arith.constant 0.000000e+00 : f32
    %32 = vector.broadcast %cst_21 : f32 to vector<1x8x16xf32>
    %33 = vector.extract_strided_slice %7 {offsets = [0, 0, 0], sizes = [7, 8, 16], strides = [1, 1, 1]} : vector<8x8x16xf32> to vector<7x8x16xf32>
    %34 = tpu.concatenate %32, %33 in 0 : vector<1x8x16xf32>, vector<7x8x16xf32> -> vector<8x8x16xf32>
    %35 = vector.extract_strided_slice %8 {offsets = [2, 0], sizes = [1, 16], strides = [1, 1]} : vector<9x16xf32> to vector<1x16xf32>
    %36 = vector.shape_cast %35 : vector<1x16xf32> to vector<16xf32>
    %37 = vector.shape_cast %36 : vector<16xf32> to vector<1x1x16xf32>
    %38 = vector.broadcast %37 : vector<1x1x16xf32> to vector<8x8x16xf32>
    %39 = arith.mulf %34, %38 : vector<8x8x16xf32>
    %40 = arith.addf %31, %39 : vector<8x8x16xf32>
    %cst_22 = arith.constant 0.000000e+00 : f32
    %41 = vector.broadcast %cst_22 : f32 to vector<8x1x16xf32>
    %42 = vector.extract_strided_slice %3 {offsets = [0, 0, 0], sizes = [8, 7, 16], strides = [1, 1, 1]} : vector<8x8x16xf32> to vector<8x7x16xf32>
    %43 = tpu.concatenate %41, %42 in 1 : vector<8x1x16xf32>, vector<8x7x16xf32> -> vector<8x8x16xf32>
    %44 = vector.extract_strided_slice %8 {offsets = [3, 0], sizes = [1, 16], strides = [1, 1]} : vector<9x16xf32> to vector<1x16xf32>
    %45 = vector.shape_cast %44 : vector<1x16xf32> to vector<16xf32>
    %46 = vector.shape_cast %45 : vector<16xf32> to vector<1x1x16xf32>
    %47 = vector.broadcast %46 : vector<1x1x16xf32> to vector<8x8x16xf32>
    %48 = arith.mulf %43, %47 : vector<8x8x16xf32>
    %49 = arith.addf %40, %48 : vector<8x8x16xf32>
    %50 = vector.extract_strided_slice %8 {offsets = [4, 0], sizes = [1, 16], strides = [1, 1]} : vector<9x16xf32> to vector<1x16xf32>
    %51 = vector.shape_cast %50 : vector<1x16xf32> to vector<16xf32>
    %52 = vector.shape_cast %51 : vector<16xf32> to vector<1x1x16xf32>
    %53 = vector.broadcast %52 : vector<1x1x16xf32> to vector<8x8x16xf32>
    %54 = arith.mulf %1, %53 : vector<8x8x16xf32>
    %55 = arith.addf %49, %54 : vector<8x8x16xf32>
    %56 = vector.extract_strided_slice %8 {offsets = [5, 0], sizes = [1, 16], strides = [1, 1]} : vector<9x16xf32> to vector<1x16xf32>
    %57 = vector.shape_cast %56 : vector<1x16xf32> to vector<16xf32>
    %58 = vector.shape_cast %57 : vector<16xf32> to vector<1x1x16xf32>
    %59 = vector.broadcast %58 : vector<1x1x16xf32> to vector<8x8x16xf32>
    %60 = arith.mulf %3, %59 : vector<8x8x16xf32>
    %61 = arith.addf %55, %60 : vector<8x8x16xf32>
    %cst_23 = arith.constant 0.000000e+00 : f32
    %62 = vector.broadcast %cst_23 : f32 to vector<8x1x16xf32>
    %63 = vector.extract_strided_slice %7 {offsets = [0, 0, 0], sizes = [8, 7, 16], strides = [1, 1, 1]} : vector<8x8x16xf32> to vector<8x7x16xf32>
    %64 = tpu.concatenate %62, %63 in 1 : vector<8x1x16xf32>, vector<8x7x16xf32> -> vector<8x8x16xf32>
    %65 = vector.extract_strided_slice %8 {offsets = [6, 0], sizes = [1, 16], strides = [1, 1]} : vector<9x16xf32> to vector<1x16xf32>
    %66 = vector.shape_cast %65 : vector<1x16xf32> to vector<16xf32>
    %67 = vector.shape_cast %66 : vector<16xf32> to vector<1x1x16xf32>
    %68 = vector.broadcast %67 : vector<1x1x16xf32> to vector<8x8x16xf32>
    %69 = arith.mulf %64, %68 : vector<8x8x16xf32>
    %70 = arith.addf %61, %69 : vector<8x8x16xf32>
    %71 = vector.extract_strided_slice %8 {offsets = [7, 0], sizes = [1, 16], strides = [1, 1]} : vector<9x16xf32> to vector<1x16xf32>
    %72 = vector.shape_cast %71 : vector<1x16xf32> to vector<16xf32>
    %73 = vector.shape_cast %72 : vector<16xf32> to vector<1x1x16xf32>
    %74 = vector.broadcast %73 : vector<1x1x16xf32> to vector<8x8x16xf32>
    %75 = arith.mulf %5, %74 : vector<8x8x16xf32>
    %76 = arith.addf %70, %75 : vector<8x8x16xf32>
    %77 = vector.extract_strided_slice %8 {offsets = [8, 0], sizes = [1, 16], strides = [1, 1]} : vector<9x16xf32> to vector<1x16xf32>
    %78 = vector.shape_cast %77 : vector<1x16xf32> to vector<16xf32>
    %79 = vector.shape_cast %78 : vector<16xf32> to vector<1x1x16xf32>
    %80 = vector.broadcast %79 : vector<1x1x16xf32> to vector<8x8x16xf32>
    %81 = arith.mulf %7, %80 : vector<8x8x16xf32>
    %82 = arith.addf %76, %81 : vector<8x8x16xf32>
    %83 = vector.shape_cast %9 : vector<1x16xf32> to vector<1x1x16xf32>
    %84 = vector.broadcast %83 : vector<1x1x16xf32> to vector<8x8x16xf32>
    %85 = arith.addf %82, %84 : vector<8x8x16xf32>
    %cst_24 = arith.constant dense<0.000000e+00> : vector<16xf32>
    %86 = vector.multi_reduction <add>, %85, %cst_24 [0, 1] : vector<8x8x16xf32> to vector<16xf32>
    %87 = vector.shape_cast %86 : vector<16xf32> to vector<1x1x16xf32>
    %88 = arith.mulf %85, %85 : vector<8x8x16xf32>
    %cst_25 = arith.constant dense<0.000000e+00> : vector<16xf32>
    %89 = vector.multi_reduction <add>, %88, %cst_25 [0, 1] : vector<8x8x16xf32> to vector<16xf32>
    %90 = vector.shape_cast %89 : vector<16xf32> to vector<1x1x16xf32>
    %cst_26 = arith.constant 1.562500e-02 : f32
    %91 = vector.broadcast %cst_26 : f32 to vector<1x1x16xf32>
    %92 = arith.mulf %87, %91 : vector<1x1x16xf32>
    %cst_27 = arith.constant 1.562500e-02 : f32
    %93 = vector.broadcast %cst_27 : f32 to vector<1x1x16xf32>
    %94 = arith.mulf %90, %93 : vector<1x1x16xf32>
    %95 = arith.mulf %92, %92 : vector<1x1x16xf32>
    %96 = arith.subf %94, %95 : vector<1x1x16xf32>
    %cst_28 = arith.constant 0.000000e+00 : f32
    %97 = vector.broadcast %cst_28 : f32 to vector<1x1x16xf32>
    %98 = arith.maximumf %96, %97 : vector<1x1x16xf32>
    %99 = vector.broadcast %92 : vector<1x1x16xf32> to vector<8x8x16xf32>
    %100 = arith.subf %85, %99 : vector<8x8x16xf32>
    %cst_29 = arith.constant 9.99999974E-6 : f32
    %101 = vector.broadcast %cst_29 : f32 to vector<1x1x16xf32>
    %102 = arith.addf %98, %101 : vector<1x1x16xf32>
    %103 = math.rsqrt %102 : vector<1x1x16xf32>
    %104 = vector.broadcast %103 : vector<1x1x16xf32> to vector<8x8x16xf32>
    %105 = arith.mulf %100, %104 : vector<8x8x16xf32>
    %106 = vector.shape_cast %105 : vector<8x8x16xf32> to vector<64x16xf32>
    %c0_30 = arith.constant 0 : index
    %c0_31 = arith.constant 0 : index
    %107 = vector.load %arg4[%c0_30, %c0_31] : memref<16x32xbf16, #tpu.memory_space<vmem>>, vector<16x32xbf16>
    %108 = arith.truncf %106 : vector<64x16xf32> to vector<64x16xbf16>
    %cst_32 = arith.constant dense<0.000000e+00> : vector<64x32xf32>
    %109 = tpu.matmul %108, %107, %cst_32 {dimension_numbers = #tpu.dot_dimension_numbers<[1], [0], [0], [1], [0, 0, 1, 1], [], []>} : vector<64x16xbf16>, vector<16x32xbf16>, vector<64x32xf32> -> vector<64x32xf32>
    %c0_33 = arith.constant 0 : index
    %c0_34 = arith.constant 0 : index
    %110 = vector.load %arg5[%c0_33, %c0_34] : memref<1x32xf32, #tpu.memory_space<vmem>>, vector<1x32xf32>
    %111 = vector.broadcast %110 : vector<1x32xf32> to vector<64x32xf32>
    %112 = arith.addf %109, %111 : vector<64x32xf32>
    %cst_35 = arith.constant 5.000000e-01 : f32
    %113 = vector.broadcast %cst_35 : f32 to vector<64x32xf32>
    %114 = arith.mulf %113, %112 : vector<64x32xf32>
    %cst_36 = arith.constant 0.707106769 : f32
    %115 = vector.broadcast %cst_36 : f32 to vector<64x32xf32>
    %116 = arith.mulf %112, %115 : vector<64x32xf32>
    %117 = math.erf %116 : vector<64x32xf32>
    %cst_37 = arith.constant 1.000000e+00 : f32
    %118 = vector.broadcast %cst_37 : f32 to vector<64x32xf32>
    %119 = arith.addf %118, %117 : vector<64x32xf32>
    %120 = arith.mulf %114, %119 : vector<64x32xf32>
    %c0_38 = arith.constant 0 : index
    %c0_39 = arith.constant 0 : index
    %121 = vector.load %arg6[%c0_38, %c0_39] : memref<32x32xbf16, #tpu.memory_space<vmem>>, vector<32x32xbf16>
    %122 = arith.truncf %120 : vector<64x32xf32> to vector<64x32xbf16>
    %cst_40 = arith.constant dense<0.000000e+00> : vector<64x32xf32>
    %123 = tpu.matmul %122, %121, %cst_40 {dimension_numbers = #tpu.dot_dimension_numbers<[1], [0], [0], [1], [0, 0, 1, 1], [], []>} : vector<64x32xbf16>, vector<32x32xbf16>, vector<64x32xf32> -> vector<64x32xf32>
    %c0_41 = arith.constant 0 : index
    %c0_42 = arith.constant 0 : index
    %124 = vector.load %arg7[%c0_41, %c0_42] : memref<1x32xf32, #tpu.memory_space<vmem>>, vector<1x32xf32>
    %125 = vector.broadcast %124 : vector<1x32xf32> to vector<64x32xf32>
    %126 = arith.addf %123, %125 : vector<64x32xf32>
    %127 = vector.shape_cast %1 : vector<8x8x16xf32> to vector<64x16xf32>
    %c0_43 = arith.constant 0 : index
    %c0_44 = arith.constant 0 : index
    %128 = vector.load %arg8[%c0_43, %c0_44] : memref<16x32xbf16, #tpu.memory_space<vmem>>, vector<16x32xbf16>
    %129 = arith.truncf %127 : vector<64x16xf32> to vector<64x16xbf16>
    %cst_45 = arith.constant dense<0.000000e+00> : vector<64x32xf32>
    %130 = tpu.matmul %129, %128, %cst_45 {dimension_numbers = #tpu.dot_dimension_numbers<[1], [0], [0], [1], [0, 0, 1, 1], [], []>} : vector<64x16xbf16>, vector<16x32xbf16>, vector<64x32xf32> -> vector<64x32xf32>
    %c0_46 = arith.constant 0 : index
    %c0_47 = arith.constant 0 : index
    %131 = vector.load %arg9[%c0_46, %c0_47] : memref<1x32xf32, #tpu.memory_space<vmem>>, vector<1x32xf32>
    %132 = vector.broadcast %131 : vector<1x32xf32> to vector<64x32xf32>
    %133 = arith.addf %130, %132 : vector<64x32xf32>
    %134 = arith.addf %126, %133 : vector<64x32xf32>
    %c0_48 = arith.constant 0 : index
    %c0_49 = arith.constant 0 : index
    %135 = vector.load %arg10[%c0_48, %c0_49] : memref<9x32xf32, #tpu.memory_space<vmem>>, vector<9x32xf32>
    %c0_50 = arith.constant 0 : index
    %c0_51 = arith.constant 0 : index
    %136 = vector.load %arg11[%c0_50, %c0_51] : memref<1x32xf32, #tpu.memory_space<vmem>>, vector<1x32xf32>
    %137 = vector.shape_cast %134 : vector<64x32xf32> to vector<8x8x32xf32>
    %cst_52 = arith.constant 0.000000e+00 : f32
    %138 = vector.broadcast %cst_52 : f32 to vector<8x8x32xf32>
    %cst_53 = arith.constant 0.000000e+00 : f32
    %139 = vector.broadcast %cst_53 : f32 to vector<1x8x32xf32>
    %140 = vector.extract_strided_slice %137 {offsets = [0, 0, 0], sizes = [7, 8, 32], strides = [1, 1, 1]} : vector<8x8x32xf32> to vector<7x8x32xf32>
    %141 = tpu.concatenate %139, %140 in 0 : vector<1x8x32xf32>, vector<7x8x32xf32> -> vector<8x8x32xf32>
    %cst_54 = arith.constant 0.000000e+00 : f32
    %142 = vector.broadcast %cst_54 : f32 to vector<8x1x32xf32>
    %143 = vector.extract_strided_slice %141 {offsets = [0, 0, 0], sizes = [8, 7, 32], strides = [1, 1, 1]} : vector<8x8x32xf32> to vector<8x7x32xf32>
    %144 = tpu.concatenate %142, %143 in 1 : vector<8x1x32xf32>, vector<8x7x32xf32> -> vector<8x8x32xf32>
    %145 = vector.extract_strided_slice %135 {offsets = [0, 0], sizes = [1, 32], strides = [1, 1]} : vector<9x32xf32> to vector<1x32xf32>
    %146 = vector.shape_cast %145 : vector<1x32xf32> to vector<32xf32>
    %147 = vector.shape_cast %146 : vector<32xf32> to vector<1x1x32xf32>
    %148 = vector.broadcast %147 : vector<1x1x32xf32> to vector<8x8x32xf32>
    %149 = arith.mulf %144, %148 : vector<8x8x32xf32>
    %150 = arith.addf %138, %149 : vector<8x8x32xf32>
    %cst_55 = arith.constant 0.000000e+00 : f32
    %151 = vector.broadcast %cst_55 : f32 to vector<1x8x32xf32>
    %152 = vector.extract_strided_slice %137 {offsets = [0, 0, 0], sizes = [7, 8, 32], strides = [1, 1, 1]} : vector<8x8x32xf32> to vector<7x8x32xf32>
    %153 = tpu.concatenate %151, %152 in 0 : vector<1x8x32xf32>, vector<7x8x32xf32> -> vector<8x8x32xf32>
    %154 = vector.extract_strided_slice %135 {offsets = [1, 0], sizes = [1, 32], strides = [1, 1]} : vector<9x32xf32> to vector<1x32xf32>
    %155 = vector.shape_cast %154 : vector<1x32xf32> to vector<32xf32>
    %156 = vector.shape_cast %155 : vector<32xf32> to vector<1x1x32xf32>
    %157 = vector.broadcast %156 : vector<1x1x32xf32> to vector<8x8x32xf32>
    %158 = arith.mulf %153, %157 : vector<8x8x32xf32>
    %159 = arith.addf %150, %158 : vector<8x8x32xf32>
    %cst_56 = arith.constant 0.000000e+00 : f32
    %160 = vector.broadcast %cst_56 : f32 to vector<1x8x32xf32>
    %161 = vector.extract_strided_slice %137 {offsets = [0, 0, 0], sizes = [7, 8, 32], strides = [1, 1, 1]} : vector<8x8x32xf32> to vector<7x8x32xf32>
    %162 = tpu.concatenate %160, %161 in 0 : vector<1x8x32xf32>, vector<7x8x32xf32> -> vector<8x8x32xf32>
    %cst_57 = arith.constant 0.000000e+00 : f32
    %163 = vector.broadcast %cst_57 : f32 to vector<8x1x32xf32>
    %164 = vector.extract_strided_slice %162 {offsets = [0, 1, 0], sizes = [8, 7, 32], strides = [1, 1, 1]} : vector<8x8x32xf32> to vector<8x7x32xf32>
    %165 = tpu.concatenate %164, %163 in 1 : vector<8x7x32xf32>, vector<8x1x32xf32> -> vector<8x8x32xf32>
    %166 = vector.extract_strided_slice %135 {offsets = [2, 0], sizes = [1, 32], strides = [1, 1]} : vector<9x32xf32> to vector<1x32xf32>
    %167 = vector.shape_cast %166 : vector<1x32xf32> to vector<32xf32>
    %168 = vector.shape_cast %167 : vector<32xf32> to vector<1x1x32xf32>
    %169 = vector.broadcast %168 : vector<1x1x32xf32> to vector<8x8x32xf32>
    %170 = arith.mulf %165, %169 : vector<8x8x32xf32>
    %171 = arith.addf %159, %170 : vector<8x8x32xf32>
    %cst_58 = arith.constant 0.000000e+00 : f32
    %172 = vector.broadcast %cst_58 : f32 to vector<8x1x32xf32>
    %173 = vector.extract_strided_slice %137 {offsets = [0, 0, 0], sizes = [8, 7, 32], strides = [1, 1, 1]} : vector<8x8x32xf32> to vector<8x7x32xf32>
    %174 = tpu.concatenate %172, %173 in 1 : vector<8x1x32xf32>, vector<8x7x32xf32> -> vector<8x8x32xf32>
    %175 = vector.extract_strided_slice %135 {offsets = [3, 0], sizes = [1, 32], strides = [1, 1]} : vector<9x32xf32> to vector<1x32xf32>
    %176 = vector.shape_cast %175 : vector<1x32xf32> to vector<32xf32>
    %177 = vector.shape_cast %176 : vector<32xf32> to vector<1x1x32xf32>
    %178 = vector.broadcast %177 : vector<1x1x32xf32> to vector<8x8x32xf32>
    %179 = arith.mulf %174, %178 : vector<8x8x32xf32>
    %180 = arith.addf %171, %179 : vector<8x8x32xf32>
    %181 = vector.extract_strided_slice %135 {offsets = [4, 0], sizes = [1, 32], strides = [1, 1]} : vector<9x32xf32> to vector<1x32xf32>
    %182 = vector.shape_cast %181 : vector<1x32xf32> to vector<32xf32>
    %183 = vector.shape_cast %182 : vector<32xf32> to vector<1x1x32xf32>
    %184 = vector.broadcast %183 : vector<1x1x32xf32> to vector<8x8x32xf32>
    %185 = arith.mulf %137, %184 : vector<8x8x32xf32>
    %186 = arith.addf %180, %185 : vector<8x8x32xf32>
    %cst_59 = arith.constant 0.000000e+00 : f32
    %187 = vector.broadcast %cst_59 : f32 to vector<8x1x32xf32>
    %188 = vector.extract_strided_slice %137 {offsets = [0, 1, 0], sizes = [8, 7, 32], strides = [1, 1, 1]} : vector<8x8x32xf32> to vector<8x7x32xf32>
    %189 = tpu.concatenate %188, %187 in 1 : vector<8x7x32xf32>, vector<8x1x32xf32> -> vector<8x8x32xf32>
    %190 = vector.extract_strided_slice %135 {offsets = [5, 0], sizes = [1, 32], strides = [1, 1]} : vector<9x32xf32> to vector<1x32xf32>
    %191 = vector.shape_cast %190 : vector<1x32xf32> to vector<32xf32>
    %192 = vector.shape_cast %191 : vector<32xf32> to vector<1x1x32xf32>
    %193 = vector.broadcast %192 : vector<1x1x32xf32> to vector<8x8x32xf32>
    %194 = arith.mulf %189, %193 : vector<8x8x32xf32>
    %195 = arith.addf %186, %194 : vector<8x8x32xf32>
    %cst_60 = arith.constant 0.000000e+00 : f32
    %196 = vector.broadcast %cst_60 : f32 to vector<1x8x32xf32>
    %197 = vector.extract_strided_slice %137 {offsets = [1, 0, 0], sizes = [7, 8, 32], strides = [1, 1, 1]} : vector<8x8x32xf32> to vector<7x8x32xf32>
    %198 = tpu.concatenate %197, %196 in 0 : vector<7x8x32xf32>, vector<1x8x32xf32> -> vector<8x8x32xf32>
    %cst_61 = arith.constant 0.000000e+00 : f32
    %199 = vector.broadcast %cst_61 : f32 to vector<8x1x32xf32>
    %200 = vector.extract_strided_slice %198 {offsets = [0, 0, 0], sizes = [8, 7, 32], strides = [1, 1, 1]} : vector<8x8x32xf32> to vector<8x7x32xf32>
    %201 = tpu.concatenate %199, %200 in 1 : vector<8x1x32xf32>, vector<8x7x32xf32> -> vector<8x8x32xf32>
    %202 = vector.extract_strided_slice %135 {offsets = [6, 0], sizes = [1, 32], strides = [1, 1]} : vector<9x32xf32> to vector<1x32xf32>
    %203 = vector.shape_cast %202 : vector<1x32xf32> to vector<32xf32>
    %204 = vector.shape_cast %203 : vector<32xf32> to vector<1x1x32xf32>
    %205 = vector.broadcast %204 : vector<1x1x32xf32> to vector<8x8x32xf32>
    %206 = arith.mulf %201, %205 : vector<8x8x32xf32>
    %207 = arith.addf %195, %206 : vector<8x8x32xf32>
    %cst_62 = arith.constant 0.000000e+00 : f32
    %208 = vector.broadcast %cst_62 : f32 to vector<1x8x32xf32>
    %209 = vector.extract_strided_slice %137 {offsets = [1, 0, 0], sizes = [7, 8, 32], strides = [1, 1, 1]} : vector<8x8x32xf32> to vector<7x8x32xf32>
    %210 = tpu.concatenate %209, %208 in 0 : vector<7x8x32xf32>, vector<1x8x32xf32> -> vector<8x8x32xf32>
    %211 = vector.extract_strided_slice %135 {offsets = [7, 0], sizes = [1, 32], strides = [1, 1]} : vector<9x32xf32> to vector<1x32xf32>
    %212 = vector.shape_cast %211 : vector<1x32xf32> to vector<32xf32>
    %213 = vector.shape_cast %212 : vector<32xf32> to vector<1x1x32xf32>
    %214 = vector.broadcast %213 : vector<1x1x32xf32> to vector<8x8x32xf32>
    %215 = arith.mulf %210, %214 : vector<8x8x32xf32>
    %216 = arith.addf %207, %215 : vector<8x8x32xf32>
    %cst_63 = arith.constant 0.000000e+00 : f32
    %217 = vector.broadcast %cst_63 : f32 to vector<1x8x32xf32>
    %218 = vector.extract_strided_slice %137 {offsets = [1, 0, 0], sizes = [7, 8, 32], strides = [1, 1, 1]} : vector<8x8x32xf32> to vector<7x8x32xf32>
    %219 = tpu.concatenate %218, %217 in 0 : vector<7x8x32xf32>, vector<1x8x32xf32> -> vector<8x8x32xf32>
    %cst_64 = arith.constant 0.000000e+00 : f32
    %220 = vector.broadcast %cst_64 : f32 to vector<8x1x32xf32>
    %221 = vector.extract_strided_slice %219 {offsets = [0, 1, 0], sizes = [8, 7, 32], strides = [1, 1, 1]} : vector<8x8x32xf32> to vector<8x7x32xf32>
    %222 = tpu.concatenate %221, %220 in 1 : vector<8x7x32xf32>, vector<8x1x32xf32> -> vector<8x8x32xf32>
    %223 = vector.extract_strided_slice %135 {offsets = [8, 0], sizes = [1, 32], strides = [1, 1]} : vector<9x32xf32> to vector<1x32xf32>
    %224 = vector.shape_cast %223 : vector<1x32xf32> to vector<32xf32>
    %225 = vector.shape_cast %224 : vector<32xf32> to vector<1x1x32xf32>
    %226 = vector.broadcast %225 : vector<1x1x32xf32> to vector<8x8x32xf32>
    %227 = arith.mulf %222, %226 : vector<8x8x32xf32>
    %228 = arith.addf %216, %227 : vector<8x8x32xf32>
    %229 = vector.shape_cast %136 : vector<1x32xf32> to vector<1x1x32xf32>
    %230 = vector.broadcast %229 : vector<1x1x32xf32> to vector<8x8x32xf32>
    %231 = arith.addf %228, %230 : vector<8x8x32xf32>
    %cst_65 = arith.constant dense<0.000000e+00> : vector<32xf32>
    %232 = vector.multi_reduction <add>, %231, %cst_65 [0, 1] : vector<8x8x32xf32> to vector<32xf32>
    %233 = vector.shape_cast %232 : vector<32xf32> to vector<1x1x32xf32>
    %234 = arith.mulf %231, %231 : vector<8x8x32xf32>
    %cst_66 = arith.constant dense<0.000000e+00> : vector<32xf32>
    %235 = vector.multi_reduction <add>, %234, %cst_66 [0, 1] : vector<8x8x32xf32> to vector<32xf32>
    %236 = vector.shape_cast %235 : vector<32xf32> to vector<1x1x32xf32>
    %cst_67 = arith.constant 1.562500e-02 : f32
    %237 = vector.broadcast %cst_67 : f32 to vector<1x1x32xf32>
    %238 = arith.mulf %233, %237 : vector<1x1x32xf32>
    %cst_68 = arith.constant 1.562500e-02 : f32
    %239 = vector.broadcast %cst_68 : f32 to vector<1x1x32xf32>
    %240 = arith.mulf %236, %239 : vector<1x1x32xf32>
    %241 = arith.mulf %238, %238 : vector<1x1x32xf32>
    %242 = arith.subf %240, %241 : vector<1x1x32xf32>
    %cst_69 = arith.constant 0.000000e+00 : f32
    %243 = vector.broadcast %cst_69 : f32 to vector<1x1x32xf32>
    %244 = arith.maximumf %242, %243 : vector<1x1x32xf32>
    %245 = vector.broadcast %238 : vector<1x1x32xf32> to vector<8x8x32xf32>
    %246 = arith.subf %231, %245 : vector<8x8x32xf32>
    %cst_70 = arith.constant 9.99999974E-6 : f32
    %247 = vector.broadcast %cst_70 : f32 to vector<1x1x32xf32>
    %248 = arith.addf %244, %247 : vector<1x1x32xf32>
    %249 = math.rsqrt %248 : vector<1x1x32xf32>
    %250 = vector.broadcast %249 : vector<1x1x32xf32> to vector<8x8x32xf32>
    %251 = arith.mulf %246, %250 : vector<8x8x32xf32>
    %252 = vector.shape_cast %251 : vector<8x8x32xf32> to vector<64x32xf32>
    %c0_71 = arith.constant 0 : index
    %c0_72 = arith.constant 0 : index
    %253 = vector.load %arg12[%c0_71, %c0_72] : memref<32x64xbf16, #tpu.memory_space<vmem>>, vector<32x64xbf16>
    %254 = arith.truncf %252 : vector<64x32xf32> to vector<64x32xbf16>
    %cst_73 = arith.constant dense<0.000000e+00> : vector<64x64xf32>
    %255 = tpu.matmul %254, %253, %cst_73 {dimension_numbers = #tpu.dot_dimension_numbers<[1], [0], [0], [1], [0, 0, 1, 1], [], []>} : vector<64x32xbf16>, vector<32x64xbf16>, vector<64x64xf32> -> vector<64x64xf32>
    %c0_74 = arith.constant 0 : index
    %c0_75 = arith.constant 0 : index
    %256 = vector.load %arg13[%c0_74, %c0_75] : memref<1x64xf32, #tpu.memory_space<vmem>>, vector<1x64xf32>
    %257 = vector.broadcast %256 : vector<1x64xf32> to vector<64x64xf32>
    %258 = arith.addf %255, %257 : vector<64x64xf32>
    %cst_76 = arith.constant 5.000000e-01 : f32
    %259 = vector.broadcast %cst_76 : f32 to vector<64x64xf32>
    %260 = arith.mulf %259, %258 : vector<64x64xf32>
    %cst_77 = arith.constant 0.707106769 : f32
    %261 = vector.broadcast %cst_77 : f32 to vector<64x64xf32>
    %262 = arith.mulf %258, %261 : vector<64x64xf32>
    %263 = math.erf %262 : vector<64x64xf32>
    %cst_78 = arith.constant 1.000000e+00 : f32
    %264 = vector.broadcast %cst_78 : f32 to vector<64x64xf32>
    %265 = arith.addf %264, %263 : vector<64x64xf32>
    %266 = arith.mulf %260, %265 : vector<64x64xf32>
    %c0_79 = arith.constant 0 : index
    %c0_80 = arith.constant 0 : index
    %267 = vector.load %arg14[%c0_79, %c0_80] : memref<64x32xbf16, #tpu.memory_space<vmem>>, vector<64x32xbf16>
    %268 = arith.truncf %266 : vector<64x64xf32> to vector<64x64xbf16>
    %cst_81 = arith.constant dense<0.000000e+00> : vector<64x32xf32>
    %269 = tpu.matmul %268, %267, %cst_81 {dimension_numbers = #tpu.dot_dimension_numbers<[1], [0], [0], [1], [0, 0, 1, 1], [], []>} : vector<64x64xbf16>, vector<64x32xbf16>, vector<64x32xf32> -> vector<64x32xf32>
    %c0_82 = arith.constant 0 : index
    %c0_83 = arith.constant 0 : index
    %270 = vector.load %arg15[%c0_82, %c0_83] : memref<1x32xf32, #tpu.memory_space<vmem>>, vector<1x32xf32>
    %271 = vector.broadcast %270 : vector<1x32xf32> to vector<64x32xf32>
    %272 = arith.addf %269, %271 : vector<64x32xf32>
    %273 = arith.addf %272, %134 : vector<64x32xf32>
    %c0_84 = arith.constant 0 : index
    %c0_85 = arith.constant 0 : index
    %c0_86 = arith.constant 0 : index
    %274 = vector.load %arg16[%c0_84, %c0_85, %c0_86] : memref<1x64x32xf32, #tpu.memory_space<vmem>>, vector<1x64x32xf32>
    %275 = vector.shape_cast %274 : vector<1x64x32xf32> to vector<64x32xf32>
    %276 = vector.shape_cast %273 : vector<64x32xf32> to vector<1x64x32xf32>
    tpu.vector_store %arg16[%c0_84, %c0_85, %c0_86], %276 {strides = array<i32>} : memref<1x64x32xf32, #tpu.memory_space<vmem>>, vector<1x64x32xf32>,
    return
  }
  func.func @transform_0(%arg0: i32) -> (i32, i32, i32, i32) {
    %c0_i32 = arith.constant 0 : i32
    %c0_i32_0 = arith.constant 0 : i32
    %c0_i32_1 = arith.constant 0 : i32
    %c0_i32_2 = arith.constant 0 : i32
    return %arg0, %c0_i32, %c0_i32_0, %c0_i32_1 : i32, i32, i32, i32
  }
  func.func @transform_1(%arg0: i32) -> (i32, i32) {
    %c0_i32 = arith.constant 0 : i32
    %c0_i32_0 = arith.constant 0 : i32
    %c0_i32_1 = arith.constant 0 : i32
    return %c0_i32, %c0_i32_0 : i32, i32
  }
  func.func @transform_2(%arg0: i32) -> (i32, i32) {
    %c0_i32 = arith.constant 0 : i32
    %c0_i32_0 = arith.constant 0 : i32
    %c0_i32_1 = arith.constant 0 : i32
    return %c0_i32, %c0_i32_0 : i32, i32
  }
  func.func @transform_3(%arg0: i32) -> (i32, i32) {
    %c0_i32 = arith.constant 0 : i32
    %c0_i32_0 = arith.constant 0 : i32
    %c0_i32_1 = arith.constant 0 : i32
    return %c0_i32, %c0_i32_0 : i32, i32
  }
  func.func @transform_4(%arg0: i32) -> (i32, i32) {
    %c0_i32 = arith.constant 0 : i32
    %c0_i32_0 = arith.constant 0 : i32
    %c0_i32_1 = arith.constant 0 : i32
    return %c0_i32, %c0_i32_0 : i32, i32
  }
  func.func @transform_5(%arg0: i32) -> (i32, i32) {
    %c0_i32 = arith.constant 0 : i32
    %c0_i32_0 = arith.constant 0 : i32
    %c0_i32_1 = arith.constant 0 : i32
    return %c0_i32, %c0_i32_0 : i32, i32
  }
  func.func @transform_6(%arg0: i32) -> (i32, i32) {
    %c0_i32 = arith.constant 0 : i32
    %c0_i32_0 = arith.constant 0 : i32
    %c0_i32_1 = arith.constant 0 : i32
    return %c0_i32, %c0_i32_0 : i32, i32
  }
  func.func @transform_7(%arg0: i32) -> (i32, i32) {
    %c0_i32 = arith.constant 0 : i32
    %c0_i32_0 = arith.constant 0 : i32
    %c0_i32_1 = arith.constant 0 : i32
    return %c0_i32, %c0_i32_0 : i32, i32
  }
  func.func @transform_8(%arg0: i32) -> (i32, i32) {
    %c0_i32 = arith.constant 0 : i32
    %c0_i32_0 = arith.constant 0 : i32
    %c0_i32_1 = arith.constant 0 : i32
    return %c0_i32, %c0_i32_0 : i32, i32
  }
  func.func @transform_9(%arg0: i32) -> (i32, i32) {
    %c0_i32 = arith.constant 0 : i32
    %c0_i32_0 = arith.constant 0 : i32
    %c0_i32_1 = arith.constant 0 : i32
    return %c0_i32, %c0_i32_0 : i32, i32
  }
  func.func @transform_10(%arg0: i32) -> (i32, i32) {
    %c0_i32 = arith.constant 0 : i32
    %c0_i32_0 = arith.constant 0 : i32
    %c0_i32_1 = arith.constant 0 : i32
    return %c0_i32, %c0_i32_0 : i32, i32
  }
  func.func @transform_11(%arg0: i32) -> (i32, i32) {
    %c0_i32 = arith.constant 0 : i32
    %c0_i32_0 = arith.constant 0 : i32
    %c0_i32_1 = arith.constant 0 : i32
    return %c0_i32, %c0_i32_0 : i32, i32
  }
  func.func @transform_12(%arg0: i32) -> (i32, i32) {
    %c0_i32 = arith.constant 0 : i32
    %c0_i32_0 = arith.constant 0 : i32
    %c0_i32_1 = arith.constant 0 : i32
    return %c0_i32, %c0_i32_0 : i32, i32
  }
  func.func @transform_13(%arg0: i32) -> (i32, i32) {
    %c0_i32 = arith.constant 0 : i32
    %c0_i32_0 = arith.constant 0 : i32
    %c0_i32_1 = arith.constant 0 : i32
    return %c0_i32, %c0_i32_0 : i32, i32
  }
  func.func @transform_14(%arg0: i32) -> (i32, i32) {
    %c0_i32 = arith.constant 0 : i32
    %c0_i32_0 = arith.constant 0 : i32
    %c0_i32_1 = arith.constant 0 : i32
    return %c0_i32, %c0_i32_0 : i32, i32
  }
  func.func @transform_15(%arg0: i32) -> (i32, i32, i32) {
    %c0_i32 = arith.constant 0 : i32
    %c0_i32_0 = arith.constant 0 : i32
    %c0_i32_1 = arith.constant 0 : i32
    return %arg0, %c0_i32, %c0_i32_0 : i32, i32, i32
  }
}

module attributes {stable_mosaic.version = 11 : i64} {
  func.func @kernel(%arg0: i32, %arg1: memref<1x8x8x32xf32, #tpu.memory_space<vmem>>, %arg2: memref<9x32xf32, #tpu.memory_space<vmem>>, %arg3: memref<1x32xf32, #tpu.memory_space<vmem>>, %arg4: memref<32x64xbf16, #tpu.memory_space<vmem>>, %arg5: memref<1x64xf32, #tpu.memory_space<vmem>>, %arg6: memref<64x64xbf16, #tpu.memory_space<vmem>>, %arg7: memref<1x64xf32, #tpu.memory_space<vmem>>, %arg8: memref<32x64xbf16, #tpu.memory_space<vmem>>, %arg9: memref<1x64xf32, #tpu.memory_space<vmem>>, %arg10: memref<9x64xf32, #tpu.memory_space<vmem>>, %arg11: memref<1x64xf32, #tpu.memory_space<vmem>>, %arg12: memref<64x128xbf16, #tpu.memory_space<vmem>>, %arg13: memref<1x128xf32, #tpu.memory_space<vmem>>, %arg14: memref<128x64xbf16, #tpu.memory_space<vmem>>, %arg15: memref<1x64xf32, #tpu.memory_space<vmem>>, %arg16: memref<1x16x64xf32, #tpu.memory_space<vmem>>) attributes {dimension_semantics = [#tpu.dimension_semantics<parallel>], iteration_bounds = array<i64: 2>, scalar_prefetch = 0 : i64, scratch_operands = 0 : i64, tpu.core_type = #tpu.core_type<tc>, window_params = [{transform_indices = @transform_0, window_bounds = array<i64: 1, 8, 8, 32>}, {pipeline_mode = #tpu.pipeline_mode<synchronous>, transform_indices = @transform_1, window_bounds = array<i64: 9, 32>}, {pipeline_mode = #tpu.pipeline_mode<synchronous>, transform_indices = @transform_2, window_bounds = array<i64: 1, 32>}, {pipeline_mode = #tpu.pipeline_mode<synchronous>, transform_indices = @transform_3, window_bounds = array<i64: 32, 64>}, {pipeline_mode = #tpu.pipeline_mode<synchronous>, transform_indices = @transform_4, window_bounds = array<i64: 1, 64>}, {pipeline_mode = #tpu.pipeline_mode<synchronous>, transform_indices = @transform_5, window_bounds = array<i64: 64, 64>}, {pipeline_mode = #tpu.pipeline_mode<synchronous>, transform_indices = @transform_6, window_bounds = array<i64: 1, 64>}, {pipeline_mode = #tpu.pipeline_mode<synchronous>, transform_indices = @transform_7, window_bounds = array<i64: 32, 64>}, {pipeline_mode = #tpu.pipeline_mode<synchronous>, transform_indices = @transform_8, window_bounds = array<i64: 1, 64>}, {pipeline_mode = #tpu.pipeline_mode<synchronous>, transform_indices = @transform_9, window_bounds = array<i64: 9, 64>}, {pipeline_mode = #tpu.pipeline_mode<synchronous>, transform_indices = @transform_10, window_bounds = array<i64: 1, 64>}, {pipeline_mode = #tpu.pipeline_mode<synchronous>, transform_indices = @transform_11, window_bounds = array<i64: 64, 128>}, {pipeline_mode = #tpu.pipeline_mode<synchronous>, transform_indices = @transform_12, window_bounds = array<i64: 1, 128>}, {pipeline_mode = #tpu.pipeline_mode<synchronous>, transform_indices = @transform_13, window_bounds = array<i64: 128, 64>}, {pipeline_mode = #tpu.pipeline_mode<synchronous>, transform_indices = @transform_14, window_bounds = array<i64: 1, 64>}, {transform_indices = @transform_15, window_bounds = array<i64: 1, 16, 64>}]} {
    %c0 = arith.constant 0 : index
    %c0_0 = arith.constant 0 : index
    %c0_1 = arith.constant 0 : index
    %c0_2 = arith.constant 0 : index
    %0 = tpu.strided_load %arg1[%c0, %c0_0, %c0_1, %c0_2] {strides = array<i32: 1, 2, 2, 1>} : memref<1x8x8x32xf32, #tpu.memory_space<vmem>>, vector<1x4x4x32xf32>
    %1 = vector.shape_cast %0 : vector<1x4x4x32xf32> to vector<4x4x32xf32>
    %c0_3 = arith.constant 0 : index
    %c0_4 = arith.constant 0 : index
    %c1 = arith.constant 1 : index
    %c0_5 = arith.constant 0 : index
    %2 = tpu.strided_load %arg1[%c0_3, %c0_4, %c1, %c0_5] {strides = array<i32: 1, 2, 2, 1>} : memref<1x8x8x32xf32, #tpu.memory_space<vmem>>, vector<1x4x4x32xf32>
    %3 = vector.shape_cast %2 : vector<1x4x4x32xf32> to vector<4x4x32xf32>
    %c0_6 = arith.constant 0 : index
    %c1_7 = arith.constant 1 : index
    %c0_8 = arith.constant 0 : index
    %c0_9 = arith.constant 0 : index
    %4 = tpu.strided_load %arg1[%c0_6, %c1_7, %c0_8, %c0_9] {strides = array<i32: 1, 2, 2, 1>} : memref<1x8x8x32xf32, #tpu.memory_space<vmem>>, vector<1x4x4x32xf32>
    %5 = vector.shape_cast %4 : vector<1x4x4x32xf32> to vector<4x4x32xf32>
    %c0_10 = arith.constant 0 : index
    %c1_11 = arith.constant 1 : index
    %c1_12 = arith.constant 1 : index
    %c0_13 = arith.constant 0 : index
    %6 = tpu.strided_load %arg1[%c0_10, %c1_11, %c1_12, %c0_13] {strides = array<i32: 1, 2, 2, 1>} : memref<1x8x8x32xf32, #tpu.memory_space<vmem>>, vector<1x4x4x32xf32>
    %7 = vector.shape_cast %6 : vector<1x4x4x32xf32> to vector<4x4x32xf32>
    %c0_14 = arith.constant 0 : index
    %c0_15 = arith.constant 0 : index
    %8 = vector.load %arg2[%c0_14, %c0_15] : memref<9x32xf32, #tpu.memory_space<vmem>>, vector<9x32xf32>
    %c0_16 = arith.constant 0 : index
    %c0_17 = arith.constant 0 : index
    %9 = vector.load %arg3[%c0_16, %c0_17] : memref<1x32xf32, #tpu.memory_space<vmem>>, vector<1x32xf32>
    %cst = arith.constant 0.000000e+00 : f32
    %10 = vector.broadcast %cst : f32 to vector<4x4x32xf32>
    %cst_18 = arith.constant 0.000000e+00 : f32
    %11 = vector.broadcast %cst_18 : f32 to vector<1x4x32xf32>
    %12 = vector.extract_strided_slice %7 {offsets = [0, 0, 0], sizes = [3, 4, 32], strides = [1, 1, 1]} : vector<4x4x32xf32> to vector<3x4x32xf32>
    %13 = tpu.concatenate %11, %12 in 0 : vector<1x4x32xf32>, vector<3x4x32xf32> -> vector<4x4x32xf32>
    %cst_19 = arith.constant 0.000000e+00 : f32
    %14 = vector.broadcast %cst_19 : f32 to vector<4x1x32xf32>
    %15 = vector.extract_strided_slice %13 {offsets = [0, 0, 0], sizes = [4, 3, 32], strides = [1, 1, 1]} : vector<4x4x32xf32> to vector<4x3x32xf32>
    %16 = tpu.concatenate %14, %15 in 1 : vector<4x1x32xf32>, vector<4x3x32xf32> -> vector<4x4x32xf32>
    %17 = vector.extract_strided_slice %8 {offsets = [0, 0], sizes = [1, 32], strides = [1, 1]} : vector<9x32xf32> to vector<1x32xf32>
    %18 = vector.shape_cast %17 : vector<1x32xf32> to vector<32xf32>
    %19 = vector.shape_cast %18 : vector<32xf32> to vector<1x1x32xf32>
    %20 = vector.broadcast %19 : vector<1x1x32xf32> to vector<4x4x32xf32>
    %21 = arith.mulf %16, %20 : vector<4x4x32xf32>
    %22 = arith.addf %10, %21 : vector<4x4x32xf32>
    %cst_20 = arith.constant 0.000000e+00 : f32
    %23 = vector.broadcast %cst_20 : f32 to vector<1x4x32xf32>
    %24 = vector.extract_strided_slice %5 {offsets = [0, 0, 0], sizes = [3, 4, 32], strides = [1, 1, 1]} : vector<4x4x32xf32> to vector<3x4x32xf32>
    %25 = tpu.concatenate %23, %24 in 0 : vector<1x4x32xf32>, vector<3x4x32xf32> -> vector<4x4x32xf32>
    %26 = vector.extract_strided_slice %8 {offsets = [1, 0], sizes = [1, 32], strides = [1, 1]} : vector<9x32xf32> to vector<1x32xf32>
    %27 = vector.shape_cast %26 : vector<1x32xf32> to vector<32xf32>
    %28 = vector.shape_cast %27 : vector<32xf32> to vector<1x1x32xf32>
    %29 = vector.broadcast %28 : vector<1x1x32xf32> to vector<4x4x32xf32>
    %30 = arith.mulf %25, %29 : vector<4x4x32xf32>
    %31 = arith.addf %22, %30 : vector<4x4x32xf32>
    %cst_21 = arith.constant 0.000000e+00 : f32
    %32 = vector.broadcast %cst_21 : f32 to vector<1x4x32xf32>
    %33 = vector.extract_strided_slice %7 {offsets = [0, 0, 0], sizes = [3, 4, 32], strides = [1, 1, 1]} : vector<4x4x32xf32> to vector<3x4x32xf32>
    %34 = tpu.concatenate %32, %33 in 0 : vector<1x4x32xf32>, vector<3x4x32xf32> -> vector<4x4x32xf32>
    %35 = vector.extract_strided_slice %8 {offsets = [2, 0], sizes = [1, 32], strides = [1, 1]} : vector<9x32xf32> to vector<1x32xf32>
    %36 = vector.shape_cast %35 : vector<1x32xf32> to vector<32xf32>
    %37 = vector.shape_cast %36 : vector<32xf32> to vector<1x1x32xf32>
    %38 = vector.broadcast %37 : vector<1x1x32xf32> to vector<4x4x32xf32>
    %39 = arith.mulf %34, %38 : vector<4x4x32xf32>
    %40 = arith.addf %31, %39 : vector<4x4x32xf32>
    %cst_22 = arith.constant 0.000000e+00 : f32
    %41 = vector.broadcast %cst_22 : f32 to vector<4x1x32xf32>
    %42 = vector.extract_strided_slice %3 {offsets = [0, 0, 0], sizes = [4, 3, 32], strides = [1, 1, 1]} : vector<4x4x32xf32> to vector<4x3x32xf32>
    %43 = tpu.concatenate %41, %42 in 1 : vector<4x1x32xf32>, vector<4x3x32xf32> -> vector<4x4x32xf32>
    %44 = vector.extract_strided_slice %8 {offsets = [3, 0], sizes = [1, 32], strides = [1, 1]} : vector<9x32xf32> to vector<1x32xf32>
    %45 = vector.shape_cast %44 : vector<1x32xf32> to vector<32xf32>
    %46 = vector.shape_cast %45 : vector<32xf32> to vector<1x1x32xf32>
    %47 = vector.broadcast %46 : vector<1x1x32xf32> to vector<4x4x32xf32>
    %48 = arith.mulf %43, %47 : vector<4x4x32xf32>
    %49 = arith.addf %40, %48 : vector<4x4x32xf32>
    %50 = vector.extract_strided_slice %8 {offsets = [4, 0], sizes = [1, 32], strides = [1, 1]} : vector<9x32xf32> to vector<1x32xf32>
    %51 = vector.shape_cast %50 : vector<1x32xf32> to vector<32xf32>
    %52 = vector.shape_cast %51 : vector<32xf32> to vector<1x1x32xf32>
    %53 = vector.broadcast %52 : vector<1x1x32xf32> to vector<4x4x32xf32>
    %54 = arith.mulf %1, %53 : vector<4x4x32xf32>
    %55 = arith.addf %49, %54 : vector<4x4x32xf32>
    %56 = vector.extract_strided_slice %8 {offsets = [5, 0], sizes = [1, 32], strides = [1, 1]} : vector<9x32xf32> to vector<1x32xf32>
    %57 = vector.shape_cast %56 : vector<1x32xf32> to vector<32xf32>
    %58 = vector.shape_cast %57 : vector<32xf32> to vector<1x1x32xf32>
    %59 = vector.broadcast %58 : vector<1x1x32xf32> to vector<4x4x32xf32>
    %60 = arith.mulf %3, %59 : vector<4x4x32xf32>
    %61 = arith.addf %55, %60 : vector<4x4x32xf32>
    %cst_23 = arith.constant 0.000000e+00 : f32
    %62 = vector.broadcast %cst_23 : f32 to vector<4x1x32xf32>
    %63 = vector.extract_strided_slice %7 {offsets = [0, 0, 0], sizes = [4, 3, 32], strides = [1, 1, 1]} : vector<4x4x32xf32> to vector<4x3x32xf32>
    %64 = tpu.concatenate %62, %63 in 1 : vector<4x1x32xf32>, vector<4x3x32xf32> -> vector<4x4x32xf32>
    %65 = vector.extract_strided_slice %8 {offsets = [6, 0], sizes = [1, 32], strides = [1, 1]} : vector<9x32xf32> to vector<1x32xf32>
    %66 = vector.shape_cast %65 : vector<1x32xf32> to vector<32xf32>
    %67 = vector.shape_cast %66 : vector<32xf32> to vector<1x1x32xf32>
    %68 = vector.broadcast %67 : vector<1x1x32xf32> to vector<4x4x32xf32>
    %69 = arith.mulf %64, %68 : vector<4x4x32xf32>
    %70 = arith.addf %61, %69 : vector<4x4x32xf32>
    %71 = vector.extract_strided_slice %8 {offsets = [7, 0], sizes = [1, 32], strides = [1, 1]} : vector<9x32xf32> to vector<1x32xf32>
    %72 = vector.shape_cast %71 : vector<1x32xf32> to vector<32xf32>
    %73 = vector.shape_cast %72 : vector<32xf32> to vector<1x1x32xf32>
    %74 = vector.broadcast %73 : vector<1x1x32xf32> to vector<4x4x32xf32>
    %75 = arith.mulf %5, %74 : vector<4x4x32xf32>
    %76 = arith.addf %70, %75 : vector<4x4x32xf32>
    %77 = vector.extract_strided_slice %8 {offsets = [8, 0], sizes = [1, 32], strides = [1, 1]} : vector<9x32xf32> to vector<1x32xf32>
    %78 = vector.shape_cast %77 : vector<1x32xf32> to vector<32xf32>
    %79 = vector.shape_cast %78 : vector<32xf32> to vector<1x1x32xf32>
    %80 = vector.broadcast %79 : vector<1x1x32xf32> to vector<4x4x32xf32>
    %81 = arith.mulf %7, %80 : vector<4x4x32xf32>
    %82 = arith.addf %76, %81 : vector<4x4x32xf32>
    %83 = vector.shape_cast %9 : vector<1x32xf32> to vector<1x1x32xf32>
    %84 = vector.broadcast %83 : vector<1x1x32xf32> to vector<4x4x32xf32>
    %85 = arith.addf %82, %84 : vector<4x4x32xf32>
    %cst_24 = arith.constant dense<0.000000e+00> : vector<32xf32>
    %86 = vector.multi_reduction <add>, %85, %cst_24 [0, 1] : vector<4x4x32xf32> to vector<32xf32>
    %87 = vector.shape_cast %86 : vector<32xf32> to vector<1x1x32xf32>
    %88 = arith.mulf %85, %85 : vector<4x4x32xf32>
    %cst_25 = arith.constant dense<0.000000e+00> : vector<32xf32>
    %89 = vector.multi_reduction <add>, %88, %cst_25 [0, 1] : vector<4x4x32xf32> to vector<32xf32>
    %90 = vector.shape_cast %89 : vector<32xf32> to vector<1x1x32xf32>
    %cst_26 = arith.constant 6.250000e-02 : f32
    %91 = vector.broadcast %cst_26 : f32 to vector<1x1x32xf32>
    %92 = arith.mulf %87, %91 : vector<1x1x32xf32>
    %cst_27 = arith.constant 6.250000e-02 : f32
    %93 = vector.broadcast %cst_27 : f32 to vector<1x1x32xf32>
    %94 = arith.mulf %90, %93 : vector<1x1x32xf32>
    %95 = arith.mulf %92, %92 : vector<1x1x32xf32>
    %96 = arith.subf %94, %95 : vector<1x1x32xf32>
    %cst_28 = arith.constant 0.000000e+00 : f32
    %97 = vector.broadcast %cst_28 : f32 to vector<1x1x32xf32>
    %98 = arith.maximumf %96, %97 : vector<1x1x32xf32>
    %99 = vector.broadcast %92 : vector<1x1x32xf32> to vector<4x4x32xf32>
    %100 = arith.subf %85, %99 : vector<4x4x32xf32>
    %cst_29 = arith.constant 9.99999974E-6 : f32
    %101 = vector.broadcast %cst_29 : f32 to vector<1x1x32xf32>
    %102 = arith.addf %98, %101 : vector<1x1x32xf32>
    %103 = math.rsqrt %102 : vector<1x1x32xf32>
    %104 = vector.broadcast %103 : vector<1x1x32xf32> to vector<4x4x32xf32>
    %105 = arith.mulf %100, %104 : vector<4x4x32xf32>
    %106 = vector.shape_cast %105 : vector<4x4x32xf32> to vector<16x32xf32>
    %c0_30 = arith.constant 0 : index
    %c0_31 = arith.constant 0 : index
    %107 = vector.load %arg4[%c0_30, %c0_31] : memref<32x64xbf16, #tpu.memory_space<vmem>>, vector<32x64xbf16>
    %108 = arith.truncf %106 : vector<16x32xf32> to vector<16x32xbf16>
    %cst_32 = arith.constant dense<0.000000e+00> : vector<16x64xf32>
    %109 = tpu.matmul %108, %107, %cst_32 {dimension_numbers = #tpu.dot_dimension_numbers<[1], [0], [0], [1], [0, 0, 1, 1], [], []>} : vector<16x32xbf16>, vector<32x64xbf16>, vector<16x64xf32> -> vector<16x64xf32>
    %c0_33 = arith.constant 0 : index
    %c0_34 = arith.constant 0 : index
    %110 = vector.load %arg5[%c0_33, %c0_34] : memref<1x64xf32, #tpu.memory_space<vmem>>, vector<1x64xf32>
    %111 = vector.broadcast %110 : vector<1x64xf32> to vector<16x64xf32>
    %112 = arith.addf %109, %111 : vector<16x64xf32>
    %cst_35 = arith.constant 5.000000e-01 : f32
    %113 = vector.broadcast %cst_35 : f32 to vector<16x64xf32>
    %114 = arith.mulf %113, %112 : vector<16x64xf32>
    %cst_36 = arith.constant 0.707106769 : f32
    %115 = vector.broadcast %cst_36 : f32 to vector<16x64xf32>
    %116 = arith.mulf %112, %115 : vector<16x64xf32>
    %117 = math.erf %116 : vector<16x64xf32>
    %cst_37 = arith.constant 1.000000e+00 : f32
    %118 = vector.broadcast %cst_37 : f32 to vector<16x64xf32>
    %119 = arith.addf %118, %117 : vector<16x64xf32>
    %120 = arith.mulf %114, %119 : vector<16x64xf32>
    %c0_38 = arith.constant 0 : index
    %c0_39 = arith.constant 0 : index
    %121 = vector.load %arg6[%c0_38, %c0_39] : memref<64x64xbf16, #tpu.memory_space<vmem>>, vector<64x64xbf16>
    %122 = arith.truncf %120 : vector<16x64xf32> to vector<16x64xbf16>
    %cst_40 = arith.constant dense<0.000000e+00> : vector<16x64xf32>
    %123 = tpu.matmul %122, %121, %cst_40 {dimension_numbers = #tpu.dot_dimension_numbers<[1], [0], [0], [1], [0, 0, 1, 1], [], []>} : vector<16x64xbf16>, vector<64x64xbf16>, vector<16x64xf32> -> vector<16x64xf32>
    %c0_41 = arith.constant 0 : index
    %c0_42 = arith.constant 0 : index
    %124 = vector.load %arg7[%c0_41, %c0_42] : memref<1x64xf32, #tpu.memory_space<vmem>>, vector<1x64xf32>
    %125 = vector.broadcast %124 : vector<1x64xf32> to vector<16x64xf32>
    %126 = arith.addf %123, %125 : vector<16x64xf32>
    %127 = vector.shape_cast %1 : vector<4x4x32xf32> to vector<16x32xf32>
    %c0_43 = arith.constant 0 : index
    %c0_44 = arith.constant 0 : index
    %128 = vector.load %arg8[%c0_43, %c0_44] : memref<32x64xbf16, #tpu.memory_space<vmem>>, vector<32x64xbf16>
    %129 = arith.truncf %127 : vector<16x32xf32> to vector<16x32xbf16>
    %cst_45 = arith.constant dense<0.000000e+00> : vector<16x64xf32>
    %130 = tpu.matmul %129, %128, %cst_45 {dimension_numbers = #tpu.dot_dimension_numbers<[1], [0], [0], [1], [0, 0, 1, 1], [], []>} : vector<16x32xbf16>, vector<32x64xbf16>, vector<16x64xf32> -> vector<16x64xf32>
    %c0_46 = arith.constant 0 : index
    %c0_47 = arith.constant 0 : index
    %131 = vector.load %arg9[%c0_46, %c0_47] : memref<1x64xf32, #tpu.memory_space<vmem>>, vector<1x64xf32>
    %132 = vector.broadcast %131 : vector<1x64xf32> to vector<16x64xf32>
    %133 = arith.addf %130, %132 : vector<16x64xf32>
    %134 = arith.addf %126, %133 : vector<16x64xf32>
    %c0_48 = arith.constant 0 : index
    %c0_49 = arith.constant 0 : index
    %135 = vector.load %arg10[%c0_48, %c0_49] : memref<9x64xf32, #tpu.memory_space<vmem>>, vector<9x64xf32>
    %c0_50 = arith.constant 0 : index
    %c0_51 = arith.constant 0 : index
    %136 = vector.load %arg11[%c0_50, %c0_51] : memref<1x64xf32, #tpu.memory_space<vmem>>, vector<1x64xf32>
    %137 = vector.shape_cast %134 : vector<16x64xf32> to vector<4x4x64xf32>
    %cst_52 = arith.constant 0.000000e+00 : f32
    %138 = vector.broadcast %cst_52 : f32 to vector<4x4x64xf32>
    %cst_53 = arith.constant 0.000000e+00 : f32
    %139 = vector.broadcast %cst_53 : f32 to vector<1x4x64xf32>
    %140 = vector.extract_strided_slice %137 {offsets = [0, 0, 0], sizes = [3, 4, 64], strides = [1, 1, 1]} : vector<4x4x64xf32> to vector<3x4x64xf32>
    %141 = tpu.concatenate %139, %140 in 0 : vector<1x4x64xf32>, vector<3x4x64xf32> -> vector<4x4x64xf32>
    %cst_54 = arith.constant 0.000000e+00 : f32
    %142 = vector.broadcast %cst_54 : f32 to vector<4x1x64xf32>
    %143 = vector.extract_strided_slice %141 {offsets = [0, 0, 0], sizes = [4, 3, 64], strides = [1, 1, 1]} : vector<4x4x64xf32> to vector<4x3x64xf32>
    %144 = tpu.concatenate %142, %143 in 1 : vector<4x1x64xf32>, vector<4x3x64xf32> -> vector<4x4x64xf32>
    %145 = vector.extract_strided_slice %135 {offsets = [0, 0], sizes = [1, 64], strides = [1, 1]} : vector<9x64xf32> to vector<1x64xf32>
    %146 = vector.shape_cast %145 : vector<1x64xf32> to vector<64xf32>
    %147 = vector.shape_cast %146 : vector<64xf32> to vector<1x1x64xf32>
    %148 = vector.broadcast %147 : vector<1x1x64xf32> to vector<4x4x64xf32>
    %149 = arith.mulf %144, %148 : vector<4x4x64xf32>
    %150 = arith.addf %138, %149 : vector<4x4x64xf32>
    %cst_55 = arith.constant 0.000000e+00 : f32
    %151 = vector.broadcast %cst_55 : f32 to vector<1x4x64xf32>
    %152 = vector.extract_strided_slice %137 {offsets = [0, 0, 0], sizes = [3, 4, 64], strides = [1, 1, 1]} : vector<4x4x64xf32> to vector<3x4x64xf32>
    %153 = tpu.concatenate %151, %152 in 0 : vector<1x4x64xf32>, vector<3x4x64xf32> -> vector<4x4x64xf32>
    %154 = vector.extract_strided_slice %135 {offsets = [1, 0], sizes = [1, 64], strides = [1, 1]} : vector<9x64xf32> to vector<1x64xf32>
    %155 = vector.shape_cast %154 : vector<1x64xf32> to vector<64xf32>
    %156 = vector.shape_cast %155 : vector<64xf32> to vector<1x1x64xf32>
    %157 = vector.broadcast %156 : vector<1x1x64xf32> to vector<4x4x64xf32>
    %158 = arith.mulf %153, %157 : vector<4x4x64xf32>
    %159 = arith.addf %150, %158 : vector<4x4x64xf32>
    %cst_56 = arith.constant 0.000000e+00 : f32
    %160 = vector.broadcast %cst_56 : f32 to vector<1x4x64xf32>
    %161 = vector.extract_strided_slice %137 {offsets = [0, 0, 0], sizes = [3, 4, 64], strides = [1, 1, 1]} : vector<4x4x64xf32> to vector<3x4x64xf32>
    %162 = tpu.concatenate %160, %161 in 0 : vector<1x4x64xf32>, vector<3x4x64xf32> -> vector<4x4x64xf32>
    %cst_57 = arith.constant 0.000000e+00 : f32
    %163 = vector.broadcast %cst_57 : f32 to vector<4x1x64xf32>
    %164 = vector.extract_strided_slice %162 {offsets = [0, 1, 0], sizes = [4, 3, 64], strides = [1, 1, 1]} : vector<4x4x64xf32> to vector<4x3x64xf32>
    %165 = tpu.concatenate %164, %163 in 1 : vector<4x3x64xf32>, vector<4x1x64xf32> -> vector<4x4x64xf32>
    %166 = vector.extract_strided_slice %135 {offsets = [2, 0], sizes = [1, 64], strides = [1, 1]} : vector<9x64xf32> to vector<1x64xf32>
    %167 = vector.shape_cast %166 : vector<1x64xf32> to vector<64xf32>
    %168 = vector.shape_cast %167 : vector<64xf32> to vector<1x1x64xf32>
    %169 = vector.broadcast %168 : vector<1x1x64xf32> to vector<4x4x64xf32>
    %170 = arith.mulf %165, %169 : vector<4x4x64xf32>
    %171 = arith.addf %159, %170 : vector<4x4x64xf32>
    %cst_58 = arith.constant 0.000000e+00 : f32
    %172 = vector.broadcast %cst_58 : f32 to vector<4x1x64xf32>
    %173 = vector.extract_strided_slice %137 {offsets = [0, 0, 0], sizes = [4, 3, 64], strides = [1, 1, 1]} : vector<4x4x64xf32> to vector<4x3x64xf32>
    %174 = tpu.concatenate %172, %173 in 1 : vector<4x1x64xf32>, vector<4x3x64xf32> -> vector<4x4x64xf32>
    %175 = vector.extract_strided_slice %135 {offsets = [3, 0], sizes = [1, 64], strides = [1, 1]} : vector<9x64xf32> to vector<1x64xf32>
    %176 = vector.shape_cast %175 : vector<1x64xf32> to vector<64xf32>
    %177 = vector.shape_cast %176 : vector<64xf32> to vector<1x1x64xf32>
    %178 = vector.broadcast %177 : vector<1x1x64xf32> to vector<4x4x64xf32>
    %179 = arith.mulf %174, %178 : vector<4x4x64xf32>
    %180 = arith.addf %171, %179 : vector<4x4x64xf32>
    %181 = vector.extract_strided_slice %135 {offsets = [4, 0], sizes = [1, 64], strides = [1, 1]} : vector<9x64xf32> to vector<1x64xf32>
    %182 = vector.shape_cast %181 : vector<1x64xf32> to vector<64xf32>
    %183 = vector.shape_cast %182 : vector<64xf32> to vector<1x1x64xf32>
    %184 = vector.broadcast %183 : vector<1x1x64xf32> to vector<4x4x64xf32>
    %185 = arith.mulf %137, %184 : vector<4x4x64xf32>
    %186 = arith.addf %180, %185 : vector<4x4x64xf32>
    %cst_59 = arith.constant 0.000000e+00 : f32
    %187 = vector.broadcast %cst_59 : f32 to vector<4x1x64xf32>
    %188 = vector.extract_strided_slice %137 {offsets = [0, 1, 0], sizes = [4, 3, 64], strides = [1, 1, 1]} : vector<4x4x64xf32> to vector<4x3x64xf32>
    %189 = tpu.concatenate %188, %187 in 1 : vector<4x3x64xf32>, vector<4x1x64xf32> -> vector<4x4x64xf32>
    %190 = vector.extract_strided_slice %135 {offsets = [5, 0], sizes = [1, 64], strides = [1, 1]} : vector<9x64xf32> to vector<1x64xf32>
    %191 = vector.shape_cast %190 : vector<1x64xf32> to vector<64xf32>
    %192 = vector.shape_cast %191 : vector<64xf32> to vector<1x1x64xf32>
    %193 = vector.broadcast %192 : vector<1x1x64xf32> to vector<4x4x64xf32>
    %194 = arith.mulf %189, %193 : vector<4x4x64xf32>
    %195 = arith.addf %186, %194 : vector<4x4x64xf32>
    %cst_60 = arith.constant 0.000000e+00 : f32
    %196 = vector.broadcast %cst_60 : f32 to vector<1x4x64xf32>
    %197 = vector.extract_strided_slice %137 {offsets = [1, 0, 0], sizes = [3, 4, 64], strides = [1, 1, 1]} : vector<4x4x64xf32> to vector<3x4x64xf32>
    %198 = tpu.concatenate %197, %196 in 0 : vector<3x4x64xf32>, vector<1x4x64xf32> -> vector<4x4x64xf32>
    %cst_61 = arith.constant 0.000000e+00 : f32
    %199 = vector.broadcast %cst_61 : f32 to vector<4x1x64xf32>
    %200 = vector.extract_strided_slice %198 {offsets = [0, 0, 0], sizes = [4, 3, 64], strides = [1, 1, 1]} : vector<4x4x64xf32> to vector<4x3x64xf32>
    %201 = tpu.concatenate %199, %200 in 1 : vector<4x1x64xf32>, vector<4x3x64xf32> -> vector<4x4x64xf32>
    %202 = vector.extract_strided_slice %135 {offsets = [6, 0], sizes = [1, 64], strides = [1, 1]} : vector<9x64xf32> to vector<1x64xf32>
    %203 = vector.shape_cast %202 : vector<1x64xf32> to vector<64xf32>
    %204 = vector.shape_cast %203 : vector<64xf32> to vector<1x1x64xf32>
    %205 = vector.broadcast %204 : vector<1x1x64xf32> to vector<4x4x64xf32>
    %206 = arith.mulf %201, %205 : vector<4x4x64xf32>
    %207 = arith.addf %195, %206 : vector<4x4x64xf32>
    %cst_62 = arith.constant 0.000000e+00 : f32
    %208 = vector.broadcast %cst_62 : f32 to vector<1x4x64xf32>
    %209 = vector.extract_strided_slice %137 {offsets = [1, 0, 0], sizes = [3, 4, 64], strides = [1, 1, 1]} : vector<4x4x64xf32> to vector<3x4x64xf32>
    %210 = tpu.concatenate %209, %208 in 0 : vector<3x4x64xf32>, vector<1x4x64xf32> -> vector<4x4x64xf32>
    %211 = vector.extract_strided_slice %135 {offsets = [7, 0], sizes = [1, 64], strides = [1, 1]} : vector<9x64xf32> to vector<1x64xf32>
    %212 = vector.shape_cast %211 : vector<1x64xf32> to vector<64xf32>
    %213 = vector.shape_cast %212 : vector<64xf32> to vector<1x1x64xf32>
    %214 = vector.broadcast %213 : vector<1x1x64xf32> to vector<4x4x64xf32>
    %215 = arith.mulf %210, %214 : vector<4x4x64xf32>
    %216 = arith.addf %207, %215 : vector<4x4x64xf32>
    %cst_63 = arith.constant 0.000000e+00 : f32
    %217 = vector.broadcast %cst_63 : f32 to vector<1x4x64xf32>
    %218 = vector.extract_strided_slice %137 {offsets = [1, 0, 0], sizes = [3, 4, 64], strides = [1, 1, 1]} : vector<4x4x64xf32> to vector<3x4x64xf32>
    %219 = tpu.concatenate %218, %217 in 0 : vector<3x4x64xf32>, vector<1x4x64xf32> -> vector<4x4x64xf32>
    %cst_64 = arith.constant 0.000000e+00 : f32
    %220 = vector.broadcast %cst_64 : f32 to vector<4x1x64xf32>
    %221 = vector.extract_strided_slice %219 {offsets = [0, 1, 0], sizes = [4, 3, 64], strides = [1, 1, 1]} : vector<4x4x64xf32> to vector<4x3x64xf32>
    %222 = tpu.concatenate %221, %220 in 1 : vector<4x3x64xf32>, vector<4x1x64xf32> -> vector<4x4x64xf32>
    %223 = vector.extract_strided_slice %135 {offsets = [8, 0], sizes = [1, 64], strides = [1, 1]} : vector<9x64xf32> to vector<1x64xf32>
    %224 = vector.shape_cast %223 : vector<1x64xf32> to vector<64xf32>
    %225 = vector.shape_cast %224 : vector<64xf32> to vector<1x1x64xf32>
    %226 = vector.broadcast %225 : vector<1x1x64xf32> to vector<4x4x64xf32>
    %227 = arith.mulf %222, %226 : vector<4x4x64xf32>
    %228 = arith.addf %216, %227 : vector<4x4x64xf32>
    %229 = vector.shape_cast %136 : vector<1x64xf32> to vector<1x1x64xf32>
    %230 = vector.broadcast %229 : vector<1x1x64xf32> to vector<4x4x64xf32>
    %231 = arith.addf %228, %230 : vector<4x4x64xf32>
    %cst_65 = arith.constant dense<0.000000e+00> : vector<64xf32>
    %232 = vector.multi_reduction <add>, %231, %cst_65 [0, 1] : vector<4x4x64xf32> to vector<64xf32>
    %233 = vector.shape_cast %232 : vector<64xf32> to vector<1x1x64xf32>
    %234 = arith.mulf %231, %231 : vector<4x4x64xf32>
    %cst_66 = arith.constant dense<0.000000e+00> : vector<64xf32>
    %235 = vector.multi_reduction <add>, %234, %cst_66 [0, 1] : vector<4x4x64xf32> to vector<64xf32>
    %236 = vector.shape_cast %235 : vector<64xf32> to vector<1x1x64xf32>
    %cst_67 = arith.constant 6.250000e-02 : f32
    %237 = vector.broadcast %cst_67 : f32 to vector<1x1x64xf32>
    %238 = arith.mulf %233, %237 : vector<1x1x64xf32>
    %cst_68 = arith.constant 6.250000e-02 : f32
    %239 = vector.broadcast %cst_68 : f32 to vector<1x1x64xf32>
    %240 = arith.mulf %236, %239 : vector<1x1x64xf32>
    %241 = arith.mulf %238, %238 : vector<1x1x64xf32>
    %242 = arith.subf %240, %241 : vector<1x1x64xf32>
    %cst_69 = arith.constant 0.000000e+00 : f32
    %243 = vector.broadcast %cst_69 : f32 to vector<1x1x64xf32>
    %244 = arith.maximumf %242, %243 : vector<1x1x64xf32>
    %245 = vector.broadcast %238 : vector<1x1x64xf32> to vector<4x4x64xf32>
    %246 = arith.subf %231, %245 : vector<4x4x64xf32>
    %cst_70 = arith.constant 9.99999974E-6 : f32
    %247 = vector.broadcast %cst_70 : f32 to vector<1x1x64xf32>
    %248 = arith.addf %244, %247 : vector<1x1x64xf32>
    %249 = math.rsqrt %248 : vector<1x1x64xf32>
    %250 = vector.broadcast %249 : vector<1x1x64xf32> to vector<4x4x64xf32>
    %251 = arith.mulf %246, %250 : vector<4x4x64xf32>
    %252 = vector.shape_cast %251 : vector<4x4x64xf32> to vector<16x64xf32>
    %c0_71 = arith.constant 0 : index
    %c0_72 = arith.constant 0 : index
    %253 = vector.load %arg12[%c0_71, %c0_72] : memref<64x128xbf16, #tpu.memory_space<vmem>>, vector<64x128xbf16>
    %254 = arith.truncf %252 : vector<16x64xf32> to vector<16x64xbf16>
    %cst_73 = arith.constant dense<0.000000e+00> : vector<16x128xf32>
    %255 = tpu.matmul %254, %253, %cst_73 {dimension_numbers = #tpu.dot_dimension_numbers<[1], [0], [0], [1], [0, 0, 1, 1], [], []>} : vector<16x64xbf16>, vector<64x128xbf16>, vector<16x128xf32> -> vector<16x128xf32>
    %c0_74 = arith.constant 0 : index
    %c0_75 = arith.constant 0 : index
    %256 = vector.load %arg13[%c0_74, %c0_75] : memref<1x128xf32, #tpu.memory_space<vmem>>, vector<1x128xf32>
    %257 = vector.broadcast %256 : vector<1x128xf32> to vector<16x128xf32>
    %258 = arith.addf %255, %257 : vector<16x128xf32>
    %cst_76 = arith.constant 5.000000e-01 : f32
    %259 = vector.broadcast %cst_76 : f32 to vector<16x128xf32>
    %260 = arith.mulf %259, %258 : vector<16x128xf32>
    %cst_77 = arith.constant 0.707106769 : f32
    %261 = vector.broadcast %cst_77 : f32 to vector<16x128xf32>
    %262 = arith.mulf %258, %261 : vector<16x128xf32>
    %263 = math.erf %262 : vector<16x128xf32>
    %cst_78 = arith.constant 1.000000e+00 : f32
    %264 = vector.broadcast %cst_78 : f32 to vector<16x128xf32>
    %265 = arith.addf %264, %263 : vector<16x128xf32>
    %266 = arith.mulf %260, %265 : vector<16x128xf32>
    %c0_79 = arith.constant 0 : index
    %c0_80 = arith.constant 0 : index
    %267 = vector.load %arg14[%c0_79, %c0_80] : memref<128x64xbf16, #tpu.memory_space<vmem>>, vector<128x64xbf16>
    %268 = arith.truncf %266 : vector<16x128xf32> to vector<16x128xbf16>
    %cst_81 = arith.constant dense<0.000000e+00> : vector<16x64xf32>
    %269 = tpu.matmul %268, %267, %cst_81 {dimension_numbers = #tpu.dot_dimension_numbers<[1], [0], [0], [1], [0, 0, 1, 1], [], []>} : vector<16x128xbf16>, vector<128x64xbf16>, vector<16x64xf32> -> vector<16x64xf32>
    %c0_82 = arith.constant 0 : index
    %c0_83 = arith.constant 0 : index
    %270 = vector.load %arg15[%c0_82, %c0_83] : memref<1x64xf32, #tpu.memory_space<vmem>>, vector<1x64xf32>
    %271 = vector.broadcast %270 : vector<1x64xf32> to vector<16x64xf32>
    %272 = arith.addf %269, %271 : vector<16x64xf32>
    %273 = arith.addf %272, %134 : vector<16x64xf32>
    %c0_84 = arith.constant 0 : index
    %c0_85 = arith.constant 0 : index
    %c0_86 = arith.constant 0 : index
    %274 = vector.load %arg16[%c0_84, %c0_85, %c0_86] : memref<1x16x64xf32, #tpu.memory_space<vmem>>, vector<1x16x64xf32>
    %275 = vector.shape_cast %274 : vector<1x16x64xf32> to vector<16x64xf32>
    %276 = vector.shape_cast %273 : vector<16x64xf32> to vector<1x16x64xf32>
    tpu.vector_store %arg16[%c0_84, %c0_85, %c0_86], %276 {strides = array<i32>} : memref<1x16x64xf32, #tpu.memory_space<vmem>>, vector<1x16x64xf32>,
    return
  }
  func.func @transform_0(%arg0: i32) -> (i32, i32, i32, i32) {
    %c0_i32 = arith.constant 0 : i32
    %c0_i32_0 = arith.constant 0 : i32
    %c0_i32_1 = arith.constant 0 : i32
    %c0_i32_2 = arith.constant 0 : i32
    return %arg0, %c0_i32, %c0_i32_0, %c0_i32_1 : i32, i32, i32, i32
  }
  func.func @transform_1(%arg0: i32) -> (i32, i32) {
    %c0_i32 = arith.constant 0 : i32
    %c0_i32_0 = arith.constant 0 : i32
    %c0_i32_1 = arith.constant 0 : i32
    return %c0_i32, %c0_i32_0 : i32, i32
  }
  func.func @transform_2(%arg0: i32) -> (i32, i32) {
    %c0_i32 = arith.constant 0 : i32
    %c0_i32_0 = arith.constant 0 : i32
    %c0_i32_1 = arith.constant 0 : i32
    return %c0_i32, %c0_i32_0 : i32, i32
  }
  func.func @transform_3(%arg0: i32) -> (i32, i32) {
    %c0_i32 = arith.constant 0 : i32
    %c0_i32_0 = arith.constant 0 : i32
    %c0_i32_1 = arith.constant 0 : i32
    return %c0_i32, %c0_i32_0 : i32, i32
  }
  func.func @transform_4(%arg0: i32) -> (i32, i32) {
    %c0_i32 = arith.constant 0 : i32
    %c0_i32_0 = arith.constant 0 : i32
    %c0_i32_1 = arith.constant 0 : i32
    return %c0_i32, %c0_i32_0 : i32, i32
  }
  func.func @transform_5(%arg0: i32) -> (i32, i32) {
    %c0_i32 = arith.constant 0 : i32
    %c0_i32_0 = arith.constant 0 : i32
    %c0_i32_1 = arith.constant 0 : i32
    return %c0_i32, %c0_i32_0 : i32, i32
  }
  func.func @transform_6(%arg0: i32) -> (i32, i32) {
    %c0_i32 = arith.constant 0 : i32
    %c0_i32_0 = arith.constant 0 : i32
    %c0_i32_1 = arith.constant 0 : i32
    return %c0_i32, %c0_i32_0 : i32, i32
  }
  func.func @transform_7(%arg0: i32) -> (i32, i32) {
    %c0_i32 = arith.constant 0 : i32
    %c0_i32_0 = arith.constant 0 : i32
    %c0_i32_1 = arith.constant 0 : i32
    return %c0_i32, %c0_i32_0 : i32, i32
  }
  func.func @transform_8(%arg0: i32) -> (i32, i32) {
    %c0_i32 = arith.constant 0 : i32
    %c0_i32_0 = arith.constant 0 : i32
    %c0_i32_1 = arith.constant 0 : i32
    return %c0_i32, %c0_i32_0 : i32, i32
  }
  func.func @transform_9(%arg0: i32) -> (i32, i32) {
    %c0_i32 = arith.constant 0 : i32
    %c0_i32_0 = arith.constant 0 : i32
    %c0_i32_1 = arith.constant 0 : i32
    return %c0_i32, %c0_i32_0 : i32, i32
  }
  func.func @transform_10(%arg0: i32) -> (i32, i32) {
    %c0_i32 = arith.constant 0 : i32
    %c0_i32_0 = arith.constant 0 : i32
    %c0_i32_1 = arith.constant 0 : i32
    return %c0_i32, %c0_i32_0 : i32, i32
  }
  func.func @transform_11(%arg0: i32) -> (i32, i32) {
    %c0_i32 = arith.constant 0 : i32
    %c0_i32_0 = arith.constant 0 : i32
    %c0_i32_1 = arith.constant 0 : i32
    return %c0_i32, %c0_i32_0 : i32, i32
  }
  func.func @transform_12(%arg0: i32) -> (i32, i32) {
    %c0_i32 = arith.constant 0 : i32
    %c0_i32_0 = arith.constant 0 : i32
    %c0_i32_1 = arith.constant 0 : i32
    return %c0_i32, %c0_i32_0 : i32, i32
  }
  func.func @transform_13(%arg0: i32) -> (i32, i32) {
    %c0_i32 = arith.constant 0 : i32
    %c0_i32_0 = arith.constant 0 : i32
    %c0_i32_1 = arith.constant 0 : i32
    return %c0_i32, %c0_i32_0 : i32, i32
  }
  func.func @transform_14(%arg0: i32) -> (i32, i32) {
    %c0_i32 = arith.constant 0 : i32
    %c0_i32_0 = arith.constant 0 : i32
    %c0_i32_1 = arith.constant 0 : i32
    return %c0_i32, %c0_i32_0 : i32, i32
  }
  func.func @transform_15(%arg0: i32) -> (i32, i32, i32) {
    %c0_i32 = arith.constant 0 : i32
    %c0_i32_0 = arith.constant 0 : i32
    %c0_i32_1 = arith.constant 0 : i32
    return %arg0, %c0_i32, %c0_i32_0 : i32, i32, i32
  }
}

module attributes {stable_mosaic.version = 11 : i64} {
  func.func @kernel(%arg0: i32, %arg1: memref<1x4x4x64xf32, #tpu.memory_space<vmem>>, %arg2: memref<9x64xf32, #tpu.memory_space<vmem>>, %arg3: memref<1x64xf32, #tpu.memory_space<vmem>>, %arg4: memref<64x128xbf16, #tpu.memory_space<vmem>>, %arg5: memref<1x128xf32, #tpu.memory_space<vmem>>, %arg6: memref<128x128xbf16, #tpu.memory_space<vmem>>, %arg7: memref<1x128xf32, #tpu.memory_space<vmem>>, %arg8: memref<64x128xbf16, #tpu.memory_space<vmem>>, %arg9: memref<1x128xf32, #tpu.memory_space<vmem>>, %arg10: memref<9x128xf32, #tpu.memory_space<vmem>>, %arg11: memref<1x128xf32, #tpu.memory_space<vmem>>, %arg12: memref<128x256xbf16, #tpu.memory_space<vmem>>, %arg13: memref<1x256xf32, #tpu.memory_space<vmem>>, %arg14: memref<256x128xbf16, #tpu.memory_space<vmem>>, %arg15: memref<1x128xf32, #tpu.memory_space<vmem>>, %arg16: memref<1x4x128xf32, #tpu.memory_space<vmem>>) attributes {dimension_semantics = [#tpu.dimension_semantics<parallel>], iteration_bounds = array<i64: 2>, scalar_prefetch = 0 : i64, scratch_operands = 0 : i64, tpu.core_type = #tpu.core_type<tc>, window_params = [{transform_indices = @transform_0, window_bounds = array<i64: 1, 4, 4, 64>}, {pipeline_mode = #tpu.pipeline_mode<synchronous>, transform_indices = @transform_1, window_bounds = array<i64: 9, 64>}, {pipeline_mode = #tpu.pipeline_mode<synchronous>, transform_indices = @transform_2, window_bounds = array<i64: 1, 64>}, {pipeline_mode = #tpu.pipeline_mode<synchronous>, transform_indices = @transform_3, window_bounds = array<i64: 64, 128>}, {pipeline_mode = #tpu.pipeline_mode<synchronous>, transform_indices = @transform_4, window_bounds = array<i64: 1, 128>}, {pipeline_mode = #tpu.pipeline_mode<synchronous>, transform_indices = @transform_5, window_bounds = array<i64: 128, 128>}, {pipeline_mode = #tpu.pipeline_mode<synchronous>, transform_indices = @transform_6, window_bounds = array<i64: 1, 128>}, {pipeline_mode = #tpu.pipeline_mode<synchronous>, transform_indices = @transform_7, window_bounds = array<i64: 64, 128>}, {pipeline_mode = #tpu.pipeline_mode<synchronous>, transform_indices = @transform_8, window_bounds = array<i64: 1, 128>}, {pipeline_mode = #tpu.pipeline_mode<synchronous>, transform_indices = @transform_9, window_bounds = array<i64: 9, 128>}, {pipeline_mode = #tpu.pipeline_mode<synchronous>, transform_indices = @transform_10, window_bounds = array<i64: 1, 128>}, {pipeline_mode = #tpu.pipeline_mode<synchronous>, transform_indices = @transform_11, window_bounds = array<i64: 128, 256>}, {pipeline_mode = #tpu.pipeline_mode<synchronous>, transform_indices = @transform_12, window_bounds = array<i64: 1, 256>}, {pipeline_mode = #tpu.pipeline_mode<synchronous>, transform_indices = @transform_13, window_bounds = array<i64: 256, 128>}, {pipeline_mode = #tpu.pipeline_mode<synchronous>, transform_indices = @transform_14, window_bounds = array<i64: 1, 128>}, {transform_indices = @transform_15, window_bounds = array<i64: 1, 4, 128>}]} {
    %c0 = arith.constant 0 : index
    %c0_0 = arith.constant 0 : index
    %c0_1 = arith.constant 0 : index
    %c0_2 = arith.constant 0 : index
    %0 = tpu.strided_load %arg1[%c0, %c0_0, %c0_1, %c0_2] {strides = array<i32: 1, 2, 2, 1>} : memref<1x4x4x64xf32, #tpu.memory_space<vmem>>, vector<1x2x2x64xf32>
    %1 = vector.shape_cast %0 : vector<1x2x2x64xf32> to vector<2x2x64xf32>
    %c0_3 = arith.constant 0 : index
    %c0_4 = arith.constant 0 : index
    %c1 = arith.constant 1 : index
    %c0_5 = arith.constant 0 : index
    %2 = tpu.strided_load %arg1[%c0_3, %c0_4, %c1, %c0_5] {strides = array<i32: 1, 2, 2, 1>} : memref<1x4x4x64xf32, #tpu.memory_space<vmem>>, vector<1x2x2x64xf32>
    %3 = vector.shape_cast %2 : vector<1x2x2x64xf32> to vector<2x2x64xf32>
    %c0_6 = arith.constant 0 : index
    %c1_7 = arith.constant 1 : index
    %c0_8 = arith.constant 0 : index
    %c0_9 = arith.constant 0 : index
    %4 = tpu.strided_load %arg1[%c0_6, %c1_7, %c0_8, %c0_9] {strides = array<i32: 1, 2, 2, 1>} : memref<1x4x4x64xf32, #tpu.memory_space<vmem>>, vector<1x2x2x64xf32>
    %5 = vector.shape_cast %4 : vector<1x2x2x64xf32> to vector<2x2x64xf32>
    %c0_10 = arith.constant 0 : index
    %c1_11 = arith.constant 1 : index
    %c1_12 = arith.constant 1 : index
    %c0_13 = arith.constant 0 : index
    %6 = tpu.strided_load %arg1[%c0_10, %c1_11, %c1_12, %c0_13] {strides = array<i32: 1, 2, 2, 1>} : memref<1x4x4x64xf32, #tpu.memory_space<vmem>>, vector<1x2x2x64xf32>
    %7 = vector.shape_cast %6 : vector<1x2x2x64xf32> to vector<2x2x64xf32>
    %c0_14 = arith.constant 0 : index
    %c0_15 = arith.constant 0 : index
    %8 = vector.load %arg2[%c0_14, %c0_15] : memref<9x64xf32, #tpu.memory_space<vmem>>, vector<9x64xf32>
    %c0_16 = arith.constant 0 : index
    %c0_17 = arith.constant 0 : index
    %9 = vector.load %arg3[%c0_16, %c0_17] : memref<1x64xf32, #tpu.memory_space<vmem>>, vector<1x64xf32>
    %cst = arith.constant 0.000000e+00 : f32
    %10 = vector.broadcast %cst : f32 to vector<2x2x64xf32>
    %cst_18 = arith.constant 0.000000e+00 : f32
    %11 = vector.broadcast %cst_18 : f32 to vector<1x2x64xf32>
    %12 = vector.extract_strided_slice %7 {offsets = [0, 0, 0], sizes = [1, 2, 64], strides = [1, 1, 1]} : vector<2x2x64xf32> to vector<1x2x64xf32>
    %13 = tpu.concatenate %11, %12 in 0 : vector<1x2x64xf32>, vector<1x2x64xf32> -> vector<2x2x64xf32>
    %cst_19 = arith.constant 0.000000e+00 : f32
    %14 = vector.broadcast %cst_19 : f32 to vector<2x1x64xf32>
    %15 = vector.extract_strided_slice %13 {offsets = [0, 0, 0], sizes = [2, 1, 64], strides = [1, 1, 1]} : vector<2x2x64xf32> to vector<2x1x64xf32>
    %16 = tpu.concatenate %14, %15 in 1 : vector<2x1x64xf32>, vector<2x1x64xf32> -> vector<2x2x64xf32>
    %17 = vector.extract_strided_slice %8 {offsets = [0, 0], sizes = [1, 64], strides = [1, 1]} : vector<9x64xf32> to vector<1x64xf32>
    %18 = vector.shape_cast %17 : vector<1x64xf32> to vector<64xf32>
    %19 = vector.shape_cast %18 : vector<64xf32> to vector<1x1x64xf32>
    %20 = vector.broadcast %19 : vector<1x1x64xf32> to vector<2x2x64xf32>
    %21 = arith.mulf %16, %20 : vector<2x2x64xf32>
    %22 = arith.addf %10, %21 : vector<2x2x64xf32>
    %cst_20 = arith.constant 0.000000e+00 : f32
    %23 = vector.broadcast %cst_20 : f32 to vector<1x2x64xf32>
    %24 = vector.extract_strided_slice %5 {offsets = [0, 0, 0], sizes = [1, 2, 64], strides = [1, 1, 1]} : vector<2x2x64xf32> to vector<1x2x64xf32>
    %25 = tpu.concatenate %23, %24 in 0 : vector<1x2x64xf32>, vector<1x2x64xf32> -> vector<2x2x64xf32>
    %26 = vector.extract_strided_slice %8 {offsets = [1, 0], sizes = [1, 64], strides = [1, 1]} : vector<9x64xf32> to vector<1x64xf32>
    %27 = vector.shape_cast %26 : vector<1x64xf32> to vector<64xf32>
    %28 = vector.shape_cast %27 : vector<64xf32> to vector<1x1x64xf32>
    %29 = vector.broadcast %28 : vector<1x1x64xf32> to vector<2x2x64xf32>
    %30 = arith.mulf %25, %29 : vector<2x2x64xf32>
    %31 = arith.addf %22, %30 : vector<2x2x64xf32>
    %cst_21 = arith.constant 0.000000e+00 : f32
    %32 = vector.broadcast %cst_21 : f32 to vector<1x2x64xf32>
    %33 = vector.extract_strided_slice %7 {offsets = [0, 0, 0], sizes = [1, 2, 64], strides = [1, 1, 1]} : vector<2x2x64xf32> to vector<1x2x64xf32>
    %34 = tpu.concatenate %32, %33 in 0 : vector<1x2x64xf32>, vector<1x2x64xf32> -> vector<2x2x64xf32>
    %35 = vector.extract_strided_slice %8 {offsets = [2, 0], sizes = [1, 64], strides = [1, 1]} : vector<9x64xf32> to vector<1x64xf32>
    %36 = vector.shape_cast %35 : vector<1x64xf32> to vector<64xf32>
    %37 = vector.shape_cast %36 : vector<64xf32> to vector<1x1x64xf32>
    %38 = vector.broadcast %37 : vector<1x1x64xf32> to vector<2x2x64xf32>
    %39 = arith.mulf %34, %38 : vector<2x2x64xf32>
    %40 = arith.addf %31, %39 : vector<2x2x64xf32>
    %cst_22 = arith.constant 0.000000e+00 : f32
    %41 = vector.broadcast %cst_22 : f32 to vector<2x1x64xf32>
    %42 = vector.extract_strided_slice %3 {offsets = [0, 0, 0], sizes = [2, 1, 64], strides = [1, 1, 1]} : vector<2x2x64xf32> to vector<2x1x64xf32>
    %43 = tpu.concatenate %41, %42 in 1 : vector<2x1x64xf32>, vector<2x1x64xf32> -> vector<2x2x64xf32>
    %44 = vector.extract_strided_slice %8 {offsets = [3, 0], sizes = [1, 64], strides = [1, 1]} : vector<9x64xf32> to vector<1x64xf32>
    %45 = vector.shape_cast %44 : vector<1x64xf32> to vector<64xf32>
    %46 = vector.shape_cast %45 : vector<64xf32> to vector<1x1x64xf32>
    %47 = vector.broadcast %46 : vector<1x1x64xf32> to vector<2x2x64xf32>
    %48 = arith.mulf %43, %47 : vector<2x2x64xf32>
    %49 = arith.addf %40, %48 : vector<2x2x64xf32>
    %50 = vector.extract_strided_slice %8 {offsets = [4, 0], sizes = [1, 64], strides = [1, 1]} : vector<9x64xf32> to vector<1x64xf32>
    %51 = vector.shape_cast %50 : vector<1x64xf32> to vector<64xf32>
    %52 = vector.shape_cast %51 : vector<64xf32> to vector<1x1x64xf32>
    %53 = vector.broadcast %52 : vector<1x1x64xf32> to vector<2x2x64xf32>
    %54 = arith.mulf %1, %53 : vector<2x2x64xf32>
    %55 = arith.addf %49, %54 : vector<2x2x64xf32>
    %56 = vector.extract_strided_slice %8 {offsets = [5, 0], sizes = [1, 64], strides = [1, 1]} : vector<9x64xf32> to vector<1x64xf32>
    %57 = vector.shape_cast %56 : vector<1x64xf32> to vector<64xf32>
    %58 = vector.shape_cast %57 : vector<64xf32> to vector<1x1x64xf32>
    %59 = vector.broadcast %58 : vector<1x1x64xf32> to vector<2x2x64xf32>
    %60 = arith.mulf %3, %59 : vector<2x2x64xf32>
    %61 = arith.addf %55, %60 : vector<2x2x64xf32>
    %cst_23 = arith.constant 0.000000e+00 : f32
    %62 = vector.broadcast %cst_23 : f32 to vector<2x1x64xf32>
    %63 = vector.extract_strided_slice %7 {offsets = [0, 0, 0], sizes = [2, 1, 64], strides = [1, 1, 1]} : vector<2x2x64xf32> to vector<2x1x64xf32>
    %64 = tpu.concatenate %62, %63 in 1 : vector<2x1x64xf32>, vector<2x1x64xf32> -> vector<2x2x64xf32>
    %65 = vector.extract_strided_slice %8 {offsets = [6, 0], sizes = [1, 64], strides = [1, 1]} : vector<9x64xf32> to vector<1x64xf32>
    %66 = vector.shape_cast %65 : vector<1x64xf32> to vector<64xf32>
    %67 = vector.shape_cast %66 : vector<64xf32> to vector<1x1x64xf32>
    %68 = vector.broadcast %67 : vector<1x1x64xf32> to vector<2x2x64xf32>
    %69 = arith.mulf %64, %68 : vector<2x2x64xf32>
    %70 = arith.addf %61, %69 : vector<2x2x64xf32>
    %71 = vector.extract_strided_slice %8 {offsets = [7, 0], sizes = [1, 64], strides = [1, 1]} : vector<9x64xf32> to vector<1x64xf32>
    %72 = vector.shape_cast %71 : vector<1x64xf32> to vector<64xf32>
    %73 = vector.shape_cast %72 : vector<64xf32> to vector<1x1x64xf32>
    %74 = vector.broadcast %73 : vector<1x1x64xf32> to vector<2x2x64xf32>
    %75 = arith.mulf %5, %74 : vector<2x2x64xf32>
    %76 = arith.addf %70, %75 : vector<2x2x64xf32>
    %77 = vector.extract_strided_slice %8 {offsets = [8, 0], sizes = [1, 64], strides = [1, 1]} : vector<9x64xf32> to vector<1x64xf32>
    %78 = vector.shape_cast %77 : vector<1x64xf32> to vector<64xf32>
    %79 = vector.shape_cast %78 : vector<64xf32> to vector<1x1x64xf32>
    %80 = vector.broadcast %79 : vector<1x1x64xf32> to vector<2x2x64xf32>
    %81 = arith.mulf %7, %80 : vector<2x2x64xf32>
    %82 = arith.addf %76, %81 : vector<2x2x64xf32>
    %83 = vector.shape_cast %9 : vector<1x64xf32> to vector<1x1x64xf32>
    %84 = vector.broadcast %83 : vector<1x1x64xf32> to vector<2x2x64xf32>
    %85 = arith.addf %82, %84 : vector<2x2x64xf32>
    %cst_24 = arith.constant dense<0.000000e+00> : vector<64xf32>
    %86 = vector.multi_reduction <add>, %85, %cst_24 [0, 1] : vector<2x2x64xf32> to vector<64xf32>
    %87 = vector.shape_cast %86 : vector<64xf32> to vector<1x1x64xf32>
    %88 = arith.mulf %85, %85 : vector<2x2x64xf32>
    %cst_25 = arith.constant dense<0.000000e+00> : vector<64xf32>
    %89 = vector.multi_reduction <add>, %88, %cst_25 [0, 1] : vector<2x2x64xf32> to vector<64xf32>
    %90 = vector.shape_cast %89 : vector<64xf32> to vector<1x1x64xf32>
    %cst_26 = arith.constant 2.500000e-01 : f32
    %91 = vector.broadcast %cst_26 : f32 to vector<1x1x64xf32>
    %92 = arith.mulf %87, %91 : vector<1x1x64xf32>
    %cst_27 = arith.constant 2.500000e-01 : f32
    %93 = vector.broadcast %cst_27 : f32 to vector<1x1x64xf32>
    %94 = arith.mulf %90, %93 : vector<1x1x64xf32>
    %95 = arith.mulf %92, %92 : vector<1x1x64xf32>
    %96 = arith.subf %94, %95 : vector<1x1x64xf32>
    %cst_28 = arith.constant 0.000000e+00 : f32
    %97 = vector.broadcast %cst_28 : f32 to vector<1x1x64xf32>
    %98 = arith.maximumf %96, %97 : vector<1x1x64xf32>
    %99 = vector.broadcast %92 : vector<1x1x64xf32> to vector<2x2x64xf32>
    %100 = arith.subf %85, %99 : vector<2x2x64xf32>
    %cst_29 = arith.constant 9.99999974E-6 : f32
    %101 = vector.broadcast %cst_29 : f32 to vector<1x1x64xf32>
    %102 = arith.addf %98, %101 : vector<1x1x64xf32>
    %103 = math.rsqrt %102 : vector<1x1x64xf32>
    %104 = vector.broadcast %103 : vector<1x1x64xf32> to vector<2x2x64xf32>
    %105 = arith.mulf %100, %104 : vector<2x2x64xf32>
    %106 = vector.shape_cast %105 : vector<2x2x64xf32> to vector<4x64xf32>
    %c0_30 = arith.constant 0 : index
    %c0_31 = arith.constant 0 : index
    %107 = vector.load %arg4[%c0_30, %c0_31] : memref<64x128xbf16, #tpu.memory_space<vmem>>, vector<64x128xbf16>
    %108 = arith.truncf %106 : vector<4x64xf32> to vector<4x64xbf16>
    %cst_32 = arith.constant dense<0.000000e+00> : vector<4x128xf32>
    %109 = tpu.matmul %108, %107, %cst_32 {dimension_numbers = #tpu.dot_dimension_numbers<[1], [0], [0], [1], [0, 0, 1, 1], [], []>} : vector<4x64xbf16>, vector<64x128xbf16>, vector<4x128xf32> -> vector<4x128xf32>
    %c0_33 = arith.constant 0 : index
    %c0_34 = arith.constant 0 : index
    %110 = vector.load %arg5[%c0_33, %c0_34] : memref<1x128xf32, #tpu.memory_space<vmem>>, vector<1x128xf32>
    %111 = vector.broadcast %110 : vector<1x128xf32> to vector<4x128xf32>
    %112 = arith.addf %109, %111 : vector<4x128xf32>
    %cst_35 = arith.constant 5.000000e-01 : f32
    %113 = vector.broadcast %cst_35 : f32 to vector<4x128xf32>
    %114 = arith.mulf %113, %112 : vector<4x128xf32>
    %cst_36 = arith.constant 0.707106769 : f32
    %115 = vector.broadcast %cst_36 : f32 to vector<4x128xf32>
    %116 = arith.mulf %112, %115 : vector<4x128xf32>
    %117 = math.erf %116 : vector<4x128xf32>
    %cst_37 = arith.constant 1.000000e+00 : f32
    %118 = vector.broadcast %cst_37 : f32 to vector<4x128xf32>
    %119 = arith.addf %118, %117 : vector<4x128xf32>
    %120 = arith.mulf %114, %119 : vector<4x128xf32>
    %c0_38 = arith.constant 0 : index
    %c0_39 = arith.constant 0 : index
    %121 = vector.load %arg6[%c0_38, %c0_39] : memref<128x128xbf16, #tpu.memory_space<vmem>>, vector<128x128xbf16>
    %122 = arith.truncf %120 : vector<4x128xf32> to vector<4x128xbf16>
    %cst_40 = arith.constant dense<0.000000e+00> : vector<4x128xf32>
    %123 = tpu.matmul %122, %121, %cst_40 {dimension_numbers = #tpu.dot_dimension_numbers<[1], [0], [0], [1], [0, 0, 1, 1], [], []>} : vector<4x128xbf16>, vector<128x128xbf16>, vector<4x128xf32> -> vector<4x128xf32>
    %c0_41 = arith.constant 0 : index
    %c0_42 = arith.constant 0 : index
    %124 = vector.load %arg7[%c0_41, %c0_42] : memref<1x128xf32, #tpu.memory_space<vmem>>, vector<1x128xf32>
    %125 = vector.broadcast %124 : vector<1x128xf32> to vector<4x128xf32>
    %126 = arith.addf %123, %125 : vector<4x128xf32>
    %127 = vector.shape_cast %1 : vector<2x2x64xf32> to vector<4x64xf32>
    %c0_43 = arith.constant 0 : index
    %c0_44 = arith.constant 0 : index
    %128 = vector.load %arg8[%c0_43, %c0_44] : memref<64x128xbf16, #tpu.memory_space<vmem>>, vector<64x128xbf16>
    %129 = arith.truncf %127 : vector<4x64xf32> to vector<4x64xbf16>
    %cst_45 = arith.constant dense<0.000000e+00> : vector<4x128xf32>
    %130 = tpu.matmul %129, %128, %cst_45 {dimension_numbers = #tpu.dot_dimension_numbers<[1], [0], [0], [1], [0, 0, 1, 1], [], []>} : vector<4x64xbf16>, vector<64x128xbf16>, vector<4x128xf32> -> vector<4x128xf32>
    %c0_46 = arith.constant 0 : index
    %c0_47 = arith.constant 0 : index
    %131 = vector.load %arg9[%c0_46, %c0_47] : memref<1x128xf32, #tpu.memory_space<vmem>>, vector<1x128xf32>
    %132 = vector.broadcast %131 : vector<1x128xf32> to vector<4x128xf32>
    %133 = arith.addf %130, %132 : vector<4x128xf32>
    %134 = arith.addf %126, %133 : vector<4x128xf32>
    %c0_48 = arith.constant 0 : index
    %c0_49 = arith.constant 0 : index
    %135 = vector.load %arg10[%c0_48, %c0_49] : memref<9x128xf32, #tpu.memory_space<vmem>>, vector<9x128xf32>
    %c0_50 = arith.constant 0 : index
    %c0_51 = arith.constant 0 : index
    %136 = vector.load %arg11[%c0_50, %c0_51] : memref<1x128xf32, #tpu.memory_space<vmem>>, vector<1x128xf32>
    %137 = vector.shape_cast %134 : vector<4x128xf32> to vector<2x2x128xf32>
    %cst_52 = arith.constant 0.000000e+00 : f32
    %138 = vector.broadcast %cst_52 : f32 to vector<2x2x128xf32>
    %cst_53 = arith.constant 0.000000e+00 : f32
    %139 = vector.broadcast %cst_53 : f32 to vector<1x2x128xf32>
    %140 = vector.extract_strided_slice %137 {offsets = [0, 0, 0], sizes = [1, 2, 128], strides = [1, 1, 1]} : vector<2x2x128xf32> to vector<1x2x128xf32>
    %141 = tpu.concatenate %139, %140 in 0 : vector<1x2x128xf32>, vector<1x2x128xf32> -> vector<2x2x128xf32>
    %cst_54 = arith.constant 0.000000e+00 : f32
    %142 = vector.broadcast %cst_54 : f32 to vector<2x1x128xf32>
    %143 = vector.extract_strided_slice %141 {offsets = [0, 0, 0], sizes = [2, 1, 128], strides = [1, 1, 1]} : vector<2x2x128xf32> to vector<2x1x128xf32>
    %144 = tpu.concatenate %142, %143 in 1 : vector<2x1x128xf32>, vector<2x1x128xf32> -> vector<2x2x128xf32>
    %145 = vector.extract_strided_slice %135 {offsets = [0, 0], sizes = [1, 128], strides = [1, 1]} : vector<9x128xf32> to vector<1x128xf32>
    %146 = vector.shape_cast %145 : vector<1x128xf32> to vector<128xf32>
    %147 = vector.shape_cast %146 : vector<128xf32> to vector<1x1x128xf32>
    %148 = vector.broadcast %147 : vector<1x1x128xf32> to vector<2x2x128xf32>
    %149 = arith.mulf %144, %148 : vector<2x2x128xf32>
    %150 = arith.addf %138, %149 : vector<2x2x128xf32>
    %cst_55 = arith.constant 0.000000e+00 : f32
    %151 = vector.broadcast %cst_55 : f32 to vector<1x2x128xf32>
    %152 = vector.extract_strided_slice %137 {offsets = [0, 0, 0], sizes = [1, 2, 128], strides = [1, 1, 1]} : vector<2x2x128xf32> to vector<1x2x128xf32>
    %153 = tpu.concatenate %151, %152 in 0 : vector<1x2x128xf32>, vector<1x2x128xf32> -> vector<2x2x128xf32>
    %154 = vector.extract_strided_slice %135 {offsets = [1, 0], sizes = [1, 128], strides = [1, 1]} : vector<9x128xf32> to vector<1x128xf32>
    %155 = vector.shape_cast %154 : vector<1x128xf32> to vector<128xf32>
    %156 = vector.shape_cast %155 : vector<128xf32> to vector<1x1x128xf32>
    %157 = vector.broadcast %156 : vector<1x1x128xf32> to vector<2x2x128xf32>
    %158 = arith.mulf %153, %157 : vector<2x2x128xf32>
    %159 = arith.addf %150, %158 : vector<2x2x128xf32>
    %cst_56 = arith.constant 0.000000e+00 : f32
    %160 = vector.broadcast %cst_56 : f32 to vector<1x2x128xf32>
    %161 = vector.extract_strided_slice %137 {offsets = [0, 0, 0], sizes = [1, 2, 128], strides = [1, 1, 1]} : vector<2x2x128xf32> to vector<1x2x128xf32>
    %162 = tpu.concatenate %160, %161 in 0 : vector<1x2x128xf32>, vector<1x2x128xf32> -> vector<2x2x128xf32>
    %cst_57 = arith.constant 0.000000e+00 : f32
    %163 = vector.broadcast %cst_57 : f32 to vector<2x1x128xf32>
    %164 = vector.extract_strided_slice %162 {offsets = [0, 1, 0], sizes = [2, 1, 128], strides = [1, 1, 1]} : vector<2x2x128xf32> to vector<2x1x128xf32>
    %165 = tpu.concatenate %164, %163 in 1 : vector<2x1x128xf32>, vector<2x1x128xf32> -> vector<2x2x128xf32>
    %166 = vector.extract_strided_slice %135 {offsets = [2, 0], sizes = [1, 128], strides = [1, 1]} : vector<9x128xf32> to vector<1x128xf32>
    %167 = vector.shape_cast %166 : vector<1x128xf32> to vector<128xf32>
    %168 = vector.shape_cast %167 : vector<128xf32> to vector<1x1x128xf32>
    %169 = vector.broadcast %168 : vector<1x1x128xf32> to vector<2x2x128xf32>
    %170 = arith.mulf %165, %169 : vector<2x2x128xf32>
    %171 = arith.addf %159, %170 : vector<2x2x128xf32>
    %cst_58 = arith.constant 0.000000e+00 : f32
    %172 = vector.broadcast %cst_58 : f32 to vector<2x1x128xf32>
    %173 = vector.extract_strided_slice %137 {offsets = [0, 0, 0], sizes = [2, 1, 128], strides = [1, 1, 1]} : vector<2x2x128xf32> to vector<2x1x128xf32>
    %174 = tpu.concatenate %172, %173 in 1 : vector<2x1x128xf32>, vector<2x1x128xf32> -> vector<2x2x128xf32>
    %175 = vector.extract_strided_slice %135 {offsets = [3, 0], sizes = [1, 128], strides = [1, 1]} : vector<9x128xf32> to vector<1x128xf32>
    %176 = vector.shape_cast %175 : vector<1x128xf32> to vector<128xf32>
    %177 = vector.shape_cast %176 : vector<128xf32> to vector<1x1x128xf32>
    %178 = vector.broadcast %177 : vector<1x1x128xf32> to vector<2x2x128xf32>
    %179 = arith.mulf %174, %178 : vector<2x2x128xf32>
    %180 = arith.addf %171, %179 : vector<2x2x128xf32>
    %181 = vector.extract_strided_slice %135 {offsets = [4, 0], sizes = [1, 128], strides = [1, 1]} : vector<9x128xf32> to vector<1x128xf32>
    %182 = vector.shape_cast %181 : vector<1x128xf32> to vector<128xf32>
    %183 = vector.shape_cast %182 : vector<128xf32> to vector<1x1x128xf32>
    %184 = vector.broadcast %183 : vector<1x1x128xf32> to vector<2x2x128xf32>
    %185 = arith.mulf %137, %184 : vector<2x2x128xf32>
    %186 = arith.addf %180, %185 : vector<2x2x128xf32>
    %cst_59 = arith.constant 0.000000e+00 : f32
    %187 = vector.broadcast %cst_59 : f32 to vector<2x1x128xf32>
    %188 = vector.extract_strided_slice %137 {offsets = [0, 1, 0], sizes = [2, 1, 128], strides = [1, 1, 1]} : vector<2x2x128xf32> to vector<2x1x128xf32>
    %189 = tpu.concatenate %188, %187 in 1 : vector<2x1x128xf32>, vector<2x1x128xf32> -> vector<2x2x128xf32>
    %190 = vector.extract_strided_slice %135 {offsets = [5, 0], sizes = [1, 128], strides = [1, 1]} : vector<9x128xf32> to vector<1x128xf32>
    %191 = vector.shape_cast %190 : vector<1x128xf32> to vector<128xf32>
    %192 = vector.shape_cast %191 : vector<128xf32> to vector<1x1x128xf32>
    %193 = vector.broadcast %192 : vector<1x1x128xf32> to vector<2x2x128xf32>
    %194 = arith.mulf %189, %193 : vector<2x2x128xf32>
    %195 = arith.addf %186, %194 : vector<2x2x128xf32>
    %cst_60 = arith.constant 0.000000e+00 : f32
    %196 = vector.broadcast %cst_60 : f32 to vector<1x2x128xf32>
    %197 = vector.extract_strided_slice %137 {offsets = [1, 0, 0], sizes = [1, 2, 128], strides = [1, 1, 1]} : vector<2x2x128xf32> to vector<1x2x128xf32>
    %198 = tpu.concatenate %197, %196 in 0 : vector<1x2x128xf32>, vector<1x2x128xf32> -> vector<2x2x128xf32>
    %cst_61 = arith.constant 0.000000e+00 : f32
    %199 = vector.broadcast %cst_61 : f32 to vector<2x1x128xf32>
    %200 = vector.extract_strided_slice %198 {offsets = [0, 0, 0], sizes = [2, 1, 128], strides = [1, 1, 1]} : vector<2x2x128xf32> to vector<2x1x128xf32>
    %201 = tpu.concatenate %199, %200 in 1 : vector<2x1x128xf32>, vector<2x1x128xf32> -> vector<2x2x128xf32>
    %202 = vector.extract_strided_slice %135 {offsets = [6, 0], sizes = [1, 128], strides = [1, 1]} : vector<9x128xf32> to vector<1x128xf32>
    %203 = vector.shape_cast %202 : vector<1x128xf32> to vector<128xf32>
    %204 = vector.shape_cast %203 : vector<128xf32> to vector<1x1x128xf32>
    %205 = vector.broadcast %204 : vector<1x1x128xf32> to vector<2x2x128xf32>
    %206 = arith.mulf %201, %205 : vector<2x2x128xf32>
    %207 = arith.addf %195, %206 : vector<2x2x128xf32>
    %cst_62 = arith.constant 0.000000e+00 : f32
    %208 = vector.broadcast %cst_62 : f32 to vector<1x2x128xf32>
    %209 = vector.extract_strided_slice %137 {offsets = [1, 0, 0], sizes = [1, 2, 128], strides = [1, 1, 1]} : vector<2x2x128xf32> to vector<1x2x128xf32>
    %210 = tpu.concatenate %209, %208 in 0 : vector<1x2x128xf32>, vector<1x2x128xf32> -> vector<2x2x128xf32>
    %211 = vector.extract_strided_slice %135 {offsets = [7, 0], sizes = [1, 128], strides = [1, 1]} : vector<9x128xf32> to vector<1x128xf32>
    %212 = vector.shape_cast %211 : vector<1x128xf32> to vector<128xf32>
    %213 = vector.shape_cast %212 : vector<128xf32> to vector<1x1x128xf32>
    %214 = vector.broadcast %213 : vector<1x1x128xf32> to vector<2x2x128xf32>
    %215 = arith.mulf %210, %214 : vector<2x2x128xf32>
    %216 = arith.addf %207, %215 : vector<2x2x128xf32>
    %cst_63 = arith.constant 0.000000e+00 : f32
    %217 = vector.broadcast %cst_63 : f32 to vector<1x2x128xf32>
    %218 = vector.extract_strided_slice %137 {offsets = [1, 0, 0], sizes = [1, 2, 128], strides = [1, 1, 1]} : vector<2x2x128xf32> to vector<1x2x128xf32>
    %219 = tpu.concatenate %218, %217 in 0 : vector<1x2x128xf32>, vector<1x2x128xf32> -> vector<2x2x128xf32>
    %cst_64 = arith.constant 0.000000e+00 : f32
    %220 = vector.broadcast %cst_64 : f32 to vector<2x1x128xf32>
    %221 = vector.extract_strided_slice %219 {offsets = [0, 1, 0], sizes = [2, 1, 128], strides = [1, 1, 1]} : vector<2x2x128xf32> to vector<2x1x128xf32>
    %222 = tpu.concatenate %221, %220 in 1 : vector<2x1x128xf32>, vector<2x1x128xf32> -> vector<2x2x128xf32>
    %223 = vector.extract_strided_slice %135 {offsets = [8, 0], sizes = [1, 128], strides = [1, 1]} : vector<9x128xf32> to vector<1x128xf32>
    %224 = vector.shape_cast %223 : vector<1x128xf32> to vector<128xf32>
    %225 = vector.shape_cast %224 : vector<128xf32> to vector<1x1x128xf32>
    %226 = vector.broadcast %225 : vector<1x1x128xf32> to vector<2x2x128xf32>
    %227 = arith.mulf %222, %226 : vector<2x2x128xf32>
    %228 = arith.addf %216, %227 : vector<2x2x128xf32>
    %229 = vector.shape_cast %136 : vector<1x128xf32> to vector<1x1x128xf32>
    %230 = vector.broadcast %229 : vector<1x1x128xf32> to vector<2x2x128xf32>
    %231 = arith.addf %228, %230 : vector<2x2x128xf32>
    %cst_65 = arith.constant dense<0.000000e+00> : vector<128xf32>
    %232 = vector.multi_reduction <add>, %231, %cst_65 [0, 1] : vector<2x2x128xf32> to vector<128xf32>
    %233 = vector.shape_cast %232 : vector<128xf32> to vector<1x1x128xf32>
    %234 = arith.mulf %231, %231 : vector<2x2x128xf32>
    %cst_66 = arith.constant dense<0.000000e+00> : vector<128xf32>
    %235 = vector.multi_reduction <add>, %234, %cst_66 [0, 1] : vector<2x2x128xf32> to vector<128xf32>
    %236 = vector.shape_cast %235 : vector<128xf32> to vector<1x1x128xf32>
    %cst_67 = arith.constant 2.500000e-01 : f32
    %237 = vector.broadcast %cst_67 : f32 to vector<1x1x128xf32>
    %238 = arith.mulf %233, %237 : vector<1x1x128xf32>
    %cst_68 = arith.constant 2.500000e-01 : f32
    %239 = vector.broadcast %cst_68 : f32 to vector<1x1x128xf32>
    %240 = arith.mulf %236, %239 : vector<1x1x128xf32>
    %241 = arith.mulf %238, %238 : vector<1x1x128xf32>
    %242 = arith.subf %240, %241 : vector<1x1x128xf32>
    %cst_69 = arith.constant 0.000000e+00 : f32
    %243 = vector.broadcast %cst_69 : f32 to vector<1x1x128xf32>
    %244 = arith.maximumf %242, %243 : vector<1x1x128xf32>
    %245 = vector.broadcast %238 : vector<1x1x128xf32> to vector<2x2x128xf32>
    %246 = arith.subf %231, %245 : vector<2x2x128xf32>
    %cst_70 = arith.constant 9.99999974E-6 : f32
    %247 = vector.broadcast %cst_70 : f32 to vector<1x1x128xf32>
    %248 = arith.addf %244, %247 : vector<1x1x128xf32>
    %249 = math.rsqrt %248 : vector<1x1x128xf32>
    %250 = vector.broadcast %249 : vector<1x1x128xf32> to vector<2x2x128xf32>
    %251 = arith.mulf %246, %250 : vector<2x2x128xf32>
    %252 = vector.shape_cast %251 : vector<2x2x128xf32> to vector<4x128xf32>
    %c0_71 = arith.constant 0 : index
    %c0_72 = arith.constant 0 : index
    %253 = vector.load %arg12[%c0_71, %c0_72] : memref<128x256xbf16, #tpu.memory_space<vmem>>, vector<128x256xbf16>
    %254 = arith.truncf %252 : vector<4x128xf32> to vector<4x128xbf16>
    %cst_73 = arith.constant dense<0.000000e+00> : vector<4x256xf32>
    %255 = tpu.matmul %254, %253, %cst_73 {dimension_numbers = #tpu.dot_dimension_numbers<[1], [0], [0], [1], [0, 0, 1, 1], [], []>} : vector<4x128xbf16>, vector<128x256xbf16>, vector<4x256xf32> -> vector<4x256xf32>
    %c0_74 = arith.constant 0 : index
    %c0_75 = arith.constant 0 : index
    %256 = vector.load %arg13[%c0_74, %c0_75] : memref<1x256xf32, #tpu.memory_space<vmem>>, vector<1x256xf32>
    %257 = vector.broadcast %256 : vector<1x256xf32> to vector<4x256xf32>
    %258 = arith.addf %255, %257 : vector<4x256xf32>
    %cst_76 = arith.constant 5.000000e-01 : f32
    %259 = vector.broadcast %cst_76 : f32 to vector<4x256xf32>
    %260 = arith.mulf %259, %258 : vector<4x256xf32>
    %cst_77 = arith.constant 0.707106769 : f32
    %261 = vector.broadcast %cst_77 : f32 to vector<4x256xf32>
    %262 = arith.mulf %258, %261 : vector<4x256xf32>
    %263 = math.erf %262 : vector<4x256xf32>
    %cst_78 = arith.constant 1.000000e+00 : f32
    %264 = vector.broadcast %cst_78 : f32 to vector<4x256xf32>
    %265 = arith.addf %264, %263 : vector<4x256xf32>
    %266 = arith.mulf %260, %265 : vector<4x256xf32>
    %c0_79 = arith.constant 0 : index
    %c0_80 = arith.constant 0 : index
    %267 = vector.load %arg14[%c0_79, %c0_80] : memref<256x128xbf16, #tpu.memory_space<vmem>>, vector<256x128xbf16>
    %268 = arith.truncf %266 : vector<4x256xf32> to vector<4x256xbf16>
    %cst_81 = arith.constant dense<0.000000e+00> : vector<4x128xf32>
    %269 = tpu.matmul %268, %267, %cst_81 {dimension_numbers = #tpu.dot_dimension_numbers<[1], [0], [0], [1], [0, 0, 1, 1], [], []>} : vector<4x256xbf16>, vector<256x128xbf16>, vector<4x128xf32> -> vector<4x128xf32>
    %c0_82 = arith.constant 0 : index
    %c0_83 = arith.constant 0 : index
    %270 = vector.load %arg15[%c0_82, %c0_83] : memref<1x128xf32, #tpu.memory_space<vmem>>, vector<1x128xf32>
    %271 = vector.broadcast %270 : vector<1x128xf32> to vector<4x128xf32>
    %272 = arith.addf %269, %271 : vector<4x128xf32>
    %273 = arith.addf %272, %134 : vector<4x128xf32>
    %c0_84 = arith.constant 0 : index
    %c0_85 = arith.constant 0 : index
    %c0_86 = arith.constant 0 : index
    %274 = vector.load %arg16[%c0_84, %c0_85, %c0_86] : memref<1x4x128xf32, #tpu.memory_space<vmem>>, vector<1x4x128xf32>
    %275 = vector.shape_cast %274 : vector<1x4x128xf32> to vector<4x128xf32>
    %276 = vector.shape_cast %273 : vector<4x128xf32> to vector<1x4x128xf32>
    tpu.vector_store %arg16[%c0_84, %c0_85, %c0_86], %276 {strides = array<i32>} : memref<1x4x128xf32, #tpu.memory_space<vmem>>, vector<1x4x128xf32>,
    return
  }
  func.func @transform_0(%arg0: i32) -> (i32, i32, i32, i32) {
    %c0_i32 = arith.constant 0 : i32
    %c0_i32_0 = arith.constant 0 : i32
    %c0_i32_1 = arith.constant 0 : i32
    %c0_i32_2 = arith.constant 0 : i32
    return %arg0, %c0_i32, %c0_i32_0, %c0_i32_1 : i32, i32, i32, i32
  }
  func.func @transform_1(%arg0: i32) -> (i32, i32) {
    %c0_i32 = arith.constant 0 : i32
    %c0_i32_0 = arith.constant 0 : i32
    %c0_i32_1 = arith.constant 0 : i32
    return %c0_i32, %c0_i32_0 : i32, i32
  }
  func.func @transform_2(%arg0: i32) -> (i32, i32) {
    %c0_i32 = arith.constant 0 : i32
    %c0_i32_0 = arith.constant 0 : i32
    %c0_i32_1 = arith.constant 0 : i32
    return %c0_i32, %c0_i32_0 : i32, i32
  }
  func.func @transform_3(%arg0: i32) -> (i32, i32) {
    %c0_i32 = arith.constant 0 : i32
    %c0_i32_0 = arith.constant 0 : i32
    %c0_i32_1 = arith.constant 0 : i32
    return %c0_i32, %c0_i32_0 : i32, i32
  }
  func.func @transform_4(%arg0: i32) -> (i32, i32) {
    %c0_i32 = arith.constant 0 : i32
    %c0_i32_0 = arith.constant 0 : i32
    %c0_i32_1 = arith.constant 0 : i32
    return %c0_i32, %c0_i32_0 : i32, i32
  }
  func.func @transform_5(%arg0: i32) -> (i32, i32) {
    %c0_i32 = arith.constant 0 : i32
    %c0_i32_0 = arith.constant 0 : i32
    %c0_i32_1 = arith.constant 0 : i32
    return %c0_i32, %c0_i32_0 : i32, i32
  }
  func.func @transform_6(%arg0: i32) -> (i32, i32) {
    %c0_i32 = arith.constant 0 : i32
    %c0_i32_0 = arith.constant 0 : i32
    %c0_i32_1 = arith.constant 0 : i32
    return %c0_i32, %c0_i32_0 : i32, i32
  }
  func.func @transform_7(%arg0: i32) -> (i32, i32) {
    %c0_i32 = arith.constant 0 : i32
    %c0_i32_0 = arith.constant 0 : i32
    %c0_i32_1 = arith.constant 0 : i32
    return %c0_i32, %c0_i32_0 : i32, i32
  }
  func.func @transform_8(%arg0: i32) -> (i32, i32) {
    %c0_i32 = arith.constant 0 : i32
    %c0_i32_0 = arith.constant 0 : i32
    %c0_i32_1 = arith.constant 0 : i32
    return %c0_i32, %c0_i32_0 : i32, i32
  }
  func.func @transform_9(%arg0: i32) -> (i32, i32) {
    %c0_i32 = arith.constant 0 : i32
    %c0_i32_0 = arith.constant 0 : i32
    %c0_i32_1 = arith.constant 0 : i32
    return %c0_i32, %c0_i32_0 : i32, i32
  }
  func.func @transform_10(%arg0: i32) -> (i32, i32) {
    %c0_i32 = arith.constant 0 : i32
    %c0_i32_0 = arith.constant 0 : i32
    %c0_i32_1 = arith.constant 0 : i32
    return %c0_i32, %c0_i32_0 : i32, i32
  }
  func.func @transform_11(%arg0: i32) -> (i32, i32) {
    %c0_i32 = arith.constant 0 : i32
    %c0_i32_0 = arith.constant 0 : i32
    %c0_i32_1 = arith.constant 0 : i32
    return %c0_i32, %c0_i32_0 : i32, i32
  }
  func.func @transform_12(%arg0: i32) -> (i32, i32) {
    %c0_i32 = arith.constant 0 : i32
    %c0_i32_0 = arith.constant 0 : i32
    %c0_i32_1 = arith.constant 0 : i32
    return %c0_i32, %c0_i32_0 : i32, i32
  }
  func.func @transform_13(%arg0: i32) -> (i32, i32) {
    %c0_i32 = arith.constant 0 : i32
    %c0_i32_0 = arith.constant 0 : i32
    %c0_i32_1 = arith.constant 0 : i32
    return %c0_i32, %c0_i32_0 : i32, i32
  }
  func.func @transform_14(%arg0: i32) -> (i32, i32) {
    %c0_i32 = arith.constant 0 : i32
    %c0_i32_0 = arith.constant 0 : i32
    %c0_i32_1 = arith.constant 0 : i32
    return %c0_i32, %c0_i32_0 : i32, i32
  }
  func.func @transform_15(%arg0: i32) -> (i32, i32, i32) {
    %c0_i32 = arith.constant 0 : i32
    %c0_i32_0 = arith.constant 0 : i32
    %c0_i32_1 = arith.constant 0 : i32
    return %arg0, %c0_i32, %c0_i32_0 : i32, i32, i32
  }
}

module attributes {stable_mosaic.version = 11 : i64} {
  func.func @kernel(%arg0: i32, %arg1: memref<1x2x2x128xf32, #tpu.memory_space<vmem>>, %arg2: memref<9x128xf32, #tpu.memory_space<vmem>>, %arg3: memref<1x128xf32, #tpu.memory_space<vmem>>, %arg4: memref<128x256xbf16, #tpu.memory_space<vmem>>, %arg5: memref<1x256xf32, #tpu.memory_space<vmem>>, %arg6: memref<256x256xbf16, #tpu.memory_space<vmem>>, %arg7: memref<1x256xf32, #tpu.memory_space<vmem>>, %arg8: memref<128x256xbf16, #tpu.memory_space<vmem>>, %arg9: memref<1x256xf32, #tpu.memory_space<vmem>>, %arg10: memref<1x1x256xf32, #tpu.memory_space<vmem>>) attributes {dimension_semantics = [#tpu.dimension_semantics<parallel>], iteration_bounds = array<i64: 2>, scalar_prefetch = 0 : i64, scratch_operands = 0 : i64, tpu.core_type = #tpu.core_type<tc>, window_params = [{transform_indices = @transform_0, window_bounds = array<i64: 1, 2, 2, 128>}, {pipeline_mode = #tpu.pipeline_mode<synchronous>, transform_indices = @transform_1, window_bounds = array<i64: 9, 128>}, {pipeline_mode = #tpu.pipeline_mode<synchronous>, transform_indices = @transform_2, window_bounds = array<i64: 1, 128>}, {pipeline_mode = #tpu.pipeline_mode<synchronous>, transform_indices = @transform_3, window_bounds = array<i64: 128, 256>}, {pipeline_mode = #tpu.pipeline_mode<synchronous>, transform_indices = @transform_4, window_bounds = array<i64: 1, 256>}, {pipeline_mode = #tpu.pipeline_mode<synchronous>, transform_indices = @transform_5, window_bounds = array<i64: 256, 256>}, {pipeline_mode = #tpu.pipeline_mode<synchronous>, transform_indices = @transform_6, window_bounds = array<i64: 1, 256>}, {pipeline_mode = #tpu.pipeline_mode<synchronous>, transform_indices = @transform_7, window_bounds = array<i64: 128, 256>}, {pipeline_mode = #tpu.pipeline_mode<synchronous>, transform_indices = @transform_8, window_bounds = array<i64: 1, 256>}, {transform_indices = @transform_9, window_bounds = array<i64: 1, 1, 256>}]} {
    %c0 = arith.constant 0 : index
    %c0_0 = arith.constant 0 : index
    %c0_1 = arith.constant 0 : index
    %c0_2 = arith.constant 0 : index
    %0 = tpu.strided_load %arg1[%c0, %c0_0, %c0_1, %c0_2] {strides = array<i32: 1, 2, 2, 1>} : memref<1x2x2x128xf32, #tpu.memory_space<vmem>>, vector<1x1x1x128xf32>
    %1 = vector.shape_cast %0 : vector<1x1x1x128xf32> to vector<1x1x128xf32>
    %c0_3 = arith.constant 0 : index
    %c0_4 = arith.constant 0 : index
    %c1 = arith.constant 1 : index
    %c0_5 = arith.constant 0 : index
    %2 = tpu.strided_load %arg1[%c0_3, %c0_4, %c1, %c0_5] {strides = array<i32: 1, 2, 2, 1>} : memref<1x2x2x128xf32, #tpu.memory_space<vmem>>, vector<1x1x1x128xf32>
    %3 = vector.shape_cast %2 : vector<1x1x1x128xf32> to vector<1x1x128xf32>
    %c0_6 = arith.constant 0 : index
    %c1_7 = arith.constant 1 : index
    %c0_8 = arith.constant 0 : index
    %c0_9 = arith.constant 0 : index
    %4 = tpu.strided_load %arg1[%c0_6, %c1_7, %c0_8, %c0_9] {strides = array<i32: 1, 2, 2, 1>} : memref<1x2x2x128xf32, #tpu.memory_space<vmem>>, vector<1x1x1x128xf32>
    %5 = vector.shape_cast %4 : vector<1x1x1x128xf32> to vector<1x1x128xf32>
    %c0_10 = arith.constant 0 : index
    %c1_11 = arith.constant 1 : index
    %c1_12 = arith.constant 1 : index
    %c0_13 = arith.constant 0 : index
    %6 = tpu.strided_load %arg1[%c0_10, %c1_11, %c1_12, %c0_13] {strides = array<i32: 1, 2, 2, 1>} : memref<1x2x2x128xf32, #tpu.memory_space<vmem>>, vector<1x1x1x128xf32>
    %7 = vector.shape_cast %6 : vector<1x1x1x128xf32> to vector<1x1x128xf32>
    %c0_14 = arith.constant 0 : index
    %c0_15 = arith.constant 0 : index
    %8 = vector.load %arg2[%c0_14, %c0_15] : memref<9x128xf32, #tpu.memory_space<vmem>>, vector<9x128xf32>
    %c0_16 = arith.constant 0 : index
    %c0_17 = arith.constant 0 : index
    %9 = vector.load %arg3[%c0_16, %c0_17] : memref<1x128xf32, #tpu.memory_space<vmem>>, vector<1x128xf32>
    %cst = arith.constant 0.000000e+00 : f32
    %10 = vector.broadcast %cst : f32 to vector<1x1x128xf32>
    %cst_18 = arith.constant 0.000000e+00 : f32
    %11 = vector.broadcast %cst_18 : f32 to vector<1x1x128xf32>
    %12 = vector.extract_strided_slice %8 {offsets = [0, 0], sizes = [1, 128], strides = [1, 1]} : vector<9x128xf32> to vector<1x128xf32>
    %13 = vector.shape_cast %12 : vector<1x128xf32> to vector<128xf32>
    %14 = vector.shape_cast %13 : vector<128xf32> to vector<1x1x128xf32>
    %15 = arith.mulf %11, %14 : vector<1x1x128xf32>
    %16 = arith.addf %10, %15 : vector<1x1x128xf32>
    %cst_19 = arith.constant 0.000000e+00 : f32
    %17 = vector.broadcast %cst_19 : f32 to vector<1x1x128xf32>
    %18 = vector.extract_strided_slice %8 {offsets = [1, 0], sizes = [1, 128], strides = [1, 1]} : vector<9x128xf32> to vector<1x128xf32>
    %19 = vector.shape_cast %18 : vector<1x128xf32> to vector<128xf32>
    %20 = vector.shape_cast %19 : vector<128xf32> to vector<1x1x128xf32>
    %21 = arith.mulf %17, %20 : vector<1x1x128xf32>
    %22 = arith.addf %16, %21 : vector<1x1x128xf32>
    %cst_20 = arith.constant 0.000000e+00 : f32
    %23 = vector.broadcast %cst_20 : f32 to vector<1x1x128xf32>
    %24 = vector.extract_strided_slice %8 {offsets = [2, 0], sizes = [1, 128], strides = [1, 1]} : vector<9x128xf32> to vector<1x128xf32>
    %25 = vector.shape_cast %24 : vector<1x128xf32> to vector<128xf32>
    %26 = vector.shape_cast %25 : vector<128xf32> to vector<1x1x128xf32>
    %27 = arith.mulf %23, %26 : vector<1x1x128xf32>
    %28 = arith.addf %22, %27 : vector<1x1x128xf32>
    %cst_21 = arith.constant 0.000000e+00 : f32
    %29 = vector.broadcast %cst_21 : f32 to vector<1x1x128xf32>
    %30 = vector.extract_strided_slice %8 {offsets = [3, 0], sizes = [1, 128], strides = [1, 1]} : vector<9x128xf32> to vector<1x128xf32>
    %31 = vector.shape_cast %30 : vector<1x128xf32> to vector<128xf32>
    %32 = vector.shape_cast %31 : vector<128xf32> to vector<1x1x128xf32>
    %33 = arith.mulf %29, %32 : vector<1x1x128xf32>
    %34 = arith.addf %28, %33 : vector<1x1x128xf32>
    %35 = vector.extract_strided_slice %8 {offsets = [4, 0], sizes = [1, 128], strides = [1, 1]} : vector<9x128xf32> to vector<1x128xf32>
    %36 = vector.shape_cast %35 : vector<1x128xf32> to vector<128xf32>
    %37 = vector.shape_cast %36 : vector<128xf32> to vector<1x1x128xf32>
    %38 = arith.mulf %1, %37 : vector<1x1x128xf32>
    %39 = arith.addf %34, %38 : vector<1x1x128xf32>
    %40 = vector.extract_strided_slice %8 {offsets = [5, 0], sizes = [1, 128], strides = [1, 1]} : vector<9x128xf32> to vector<1x128xf32>
    %41 = vector.shape_cast %40 : vector<1x128xf32> to vector<128xf32>
    %42 = vector.shape_cast %41 : vector<128xf32> to vector<1x1x128xf32>
    %43 = arith.mulf %3, %42 : vector<1x1x128xf32>
    %44 = arith.addf %39, %43 : vector<1x1x128xf32>
    %cst_22 = arith.constant 0.000000e+00 : f32
    %45 = vector.broadcast %cst_22 : f32 to vector<1x1x128xf32>
    %46 = vector.extract_strided_slice %8 {offsets = [6, 0], sizes = [1, 128], strides = [1, 1]} : vector<9x128xf32> to vector<1x128xf32>
    %47 = vector.shape_cast %46 : vector<1x128xf32> to vector<128xf32>
    %48 = vector.shape_cast %47 : vector<128xf32> to vector<1x1x128xf32>
    %49 = arith.mulf %45, %48 : vector<1x1x128xf32>
    %50 = arith.addf %44, %49 : vector<1x1x128xf32>
    %51 = vector.extract_strided_slice %8 {offsets = [7, 0], sizes = [1, 128], strides = [1, 1]} : vector<9x128xf32> to vector<1x128xf32>
    %52 = vector.shape_cast %51 : vector<1x128xf32> to vector<128xf32>
    %53 = vector.shape_cast %52 : vector<128xf32> to vector<1x1x128xf32>
    %54 = arith.mulf %5, %53 : vector<1x1x128xf32>
    %55 = arith.addf %50, %54 : vector<1x1x128xf32>
    %56 = vector.extract_strided_slice %8 {offsets = [8, 0], sizes = [1, 128], strides = [1, 1]} : vector<9x128xf32> to vector<1x128xf32>
    %57 = vector.shape_cast %56 : vector<1x128xf32> to vector<128xf32>
    %58 = vector.shape_cast %57 : vector<128xf32> to vector<1x1x128xf32>
    %59 = arith.mulf %7, %58 : vector<1x1x128xf32>
    %60 = arith.addf %55, %59 : vector<1x1x128xf32>
    %61 = vector.shape_cast %9 : vector<1x128xf32> to vector<1x1x128xf32>
    %62 = arith.addf %60, %61 : vector<1x1x128xf32>
    %cst_23 = arith.constant dense<0.000000e+00> : vector<128xf32>
    %63 = vector.multi_reduction <add>, %62, %cst_23 [0, 1] : vector<1x1x128xf32> to vector<128xf32>
    %64 = vector.shape_cast %63 : vector<128xf32> to vector<1x1x128xf32>
    %65 = arith.mulf %62, %62 : vector<1x1x128xf32>
    %cst_24 = arith.constant dense<0.000000e+00> : vector<128xf32>
    %66 = vector.multi_reduction <add>, %65, %cst_24 [0, 1] : vector<1x1x128xf32> to vector<128xf32>
    %67 = vector.shape_cast %66 : vector<128xf32> to vector<1x1x128xf32>
    %cst_25 = arith.constant 1.000000e+00 : f32
    %68 = vector.broadcast %cst_25 : f32 to vector<1x1x128xf32>
    %69 = arith.mulf %64, %68 : vector<1x1x128xf32>
    %cst_26 = arith.constant 1.000000e+00 : f32
    %70 = vector.broadcast %cst_26 : f32 to vector<1x1x128xf32>
    %71 = arith.mulf %67, %70 : vector<1x1x128xf32>
    %72 = arith.mulf %69, %69 : vector<1x1x128xf32>
    %73 = arith.subf %71, %72 : vector<1x1x128xf32>
    %cst_27 = arith.constant 0.000000e+00 : f32
    %74 = vector.broadcast %cst_27 : f32 to vector<1x1x128xf32>
    %75 = arith.maximumf %73, %74 : vector<1x1x128xf32>
    %76 = arith.subf %62, %69 : vector<1x1x128xf32>
    %cst_28 = arith.constant 9.99999974E-6 : f32
    %77 = vector.broadcast %cst_28 : f32 to vector<1x1x128xf32>
    %78 = arith.addf %75, %77 : vector<1x1x128xf32>
    %79 = math.rsqrt %78 : vector<1x1x128xf32>
    %80 = arith.mulf %76, %79 : vector<1x1x128xf32>
    %81 = vector.shape_cast %80 : vector<1x1x128xf32> to vector<1x128xf32>
    %c0_29 = arith.constant 0 : index
    %c0_30 = arith.constant 0 : index
    %82 = vector.load %arg4[%c0_29, %c0_30] : memref<128x256xbf16, #tpu.memory_space<vmem>>, vector<128x256xbf16>
    %83 = arith.truncf %81 : vector<1x128xf32> to vector<1x128xbf16>
    %cst_31 = arith.constant dense<0.000000e+00> : vector<1x256xf32>
    %84 = tpu.matmul %83, %82, %cst_31 {dimension_numbers = #tpu.dot_dimension_numbers<[1], [0], [0], [1], [0, 0, 1, 1], [], []>} : vector<1x128xbf16>, vector<128x256xbf16>, vector<1x256xf32> -> vector<1x256xf32>
    %c0_32 = arith.constant 0 : index
    %c0_33 = arith.constant 0 : index
    %85 = vector.load %arg5[%c0_32, %c0_33] : memref<1x256xf32, #tpu.memory_space<vmem>>, vector<1x256xf32>
    %86 = arith.addf %84, %85 : vector<1x256xf32>
    %cst_34 = arith.constant 5.000000e-01 : f32
    %87 = vector.broadcast %cst_34 : f32 to vector<1x256xf32>
    %88 = arith.mulf %87, %86 : vector<1x256xf32>
    %cst_35 = arith.constant 0.707106769 : f32
    %89 = vector.broadcast %cst_35 : f32 to vector<1x256xf32>
    %90 = arith.mulf %86, %89 : vector<1x256xf32>
    %91 = math.erf %90 : vector<1x256xf32>
    %cst_36 = arith.constant 1.000000e+00 : f32
    %92 = vector.broadcast %cst_36 : f32 to vector<1x256xf32>
    %93 = arith.addf %92, %91 : vector<1x256xf32>
    %94 = arith.mulf %88, %93 : vector<1x256xf32>
    %c0_37 = arith.constant 0 : index
    %c0_38 = arith.constant 0 : index
    %95 = vector.load %arg6[%c0_37, %c0_38] : memref<256x256xbf16, #tpu.memory_space<vmem>>, vector<256x256xbf16>
    %96 = arith.truncf %94 : vector<1x256xf32> to vector<1x256xbf16>
    %cst_39 = arith.constant dense<0.000000e+00> : vector<1x256xf32>
    %97 = tpu.matmul %96, %95, %cst_39 {dimension_numbers = #tpu.dot_dimension_numbers<[1], [0], [0], [1], [0, 0, 1, 1], [], []>} : vector<1x256xbf16>, vector<256x256xbf16>, vector<1x256xf32> -> vector<1x256xf32>
    %c0_40 = arith.constant 0 : index
    %c0_41 = arith.constant 0 : index
    %98 = vector.load %arg7[%c0_40, %c0_41] : memref<1x256xf32, #tpu.memory_space<vmem>>, vector<1x256xf32>
    %99 = arith.addf %97, %98 : vector<1x256xf32>
    %100 = vector.shape_cast %1 : vector<1x1x128xf32> to vector<1x128xf32>
    %c0_42 = arith.constant 0 : index
    %c0_43 = arith.constant 0 : index
    %101 = vector.load %arg8[%c0_42, %c0_43] : memref<128x256xbf16, #tpu.memory_space<vmem>>, vector<128x256xbf16>
    %102 = arith.truncf %100 : vector<1x128xf32> to vector<1x128xbf16>
    %cst_44 = arith.constant dense<0.000000e+00> : vector<1x256xf32>
    %103 = tpu.matmul %102, %101, %cst_44 {dimension_numbers = #tpu.dot_dimension_numbers<[1], [0], [0], [1], [0, 0, 1, 1], [], []>} : vector<1x128xbf16>, vector<128x256xbf16>, vector<1x256xf32> -> vector<1x256xf32>
    %c0_45 = arith.constant 0 : index
    %c0_46 = arith.constant 0 : index
    %104 = vector.load %arg9[%c0_45, %c0_46] : memref<1x256xf32, #tpu.memory_space<vmem>>, vector<1x256xf32>
    %105 = arith.addf %103, %104 : vector<1x256xf32>
    %106 = arith.addf %99, %105 : vector<1x256xf32>
    %c0_47 = arith.constant 0 : index
    %c0_48 = arith.constant 0 : index
    %c0_49 = arith.constant 0 : index
    %107 = vector.load %arg10[%c0_47, %c0_48, %c0_49] : memref<1x1x256xf32, #tpu.memory_space<vmem>>, vector<1x1x256xf32>
    %108 = vector.shape_cast %107 : vector<1x1x256xf32> to vector<1x256xf32>
    %109 = vector.shape_cast %106 : vector<1x256xf32> to vector<1x1x256xf32>
    tpu.vector_store %arg10[%c0_47, %c0_48, %c0_49], %109 {strides = array<i32>} : memref<1x1x256xf32, #tpu.memory_space<vmem>>, vector<1x1x256xf32>,
    return
  }
  func.func @transform_0(%arg0: i32) -> (i32, i32, i32, i32) {
    %c0_i32 = arith.constant 0 : i32
    %c0_i32_0 = arith.constant 0 : i32
    %c0_i32_1 = arith.constant 0 : i32
    %c0_i32_2 = arith.constant 0 : i32
    return %arg0, %c0_i32, %c0_i32_0, %c0_i32_1 : i32, i32, i32, i32
  }
  func.func @transform_1(%arg0: i32) -> (i32, i32) {
    %c0_i32 = arith.constant 0 : i32
    %c0_i32_0 = arith.constant 0 : i32
    %c0_i32_1 = arith.constant 0 : i32
    return %c0_i32, %c0_i32_0 : i32, i32
  }
  func.func @transform_2(%arg0: i32) -> (i32, i32) {
    %c0_i32 = arith.constant 0 : i32
    %c0_i32_0 = arith.constant 0 : i32
    %c0_i32_1 = arith.constant 0 : i32
    return %c0_i32, %c0_i32_0 : i32, i32
  }
  func.func @transform_3(%arg0: i32) -> (i32, i32) {
    %c0_i32 = arith.constant 0 : i32
    %c0_i32_0 = arith.constant 0 : i32
    %c0_i32_1 = arith.constant 0 : i32
    return %c0_i32, %c0_i32_0 : i32, i32
  }
  func.func @transform_4(%arg0: i32) -> (i32, i32) {
    %c0_i32 = arith.constant 0 : i32
    %c0_i32_0 = arith.constant 0 : i32
    %c0_i32_1 = arith.constant 0 : i32
    return %c0_i32, %c0_i32_0 : i32, i32
  }
  func.func @transform_5(%arg0: i32) -> (i32, i32) {
    %c0_i32 = arith.constant 0 : i32
    %c0_i32_0 = arith.constant 0 : i32
    %c0_i32_1 = arith.constant 0 : i32
    return %c0_i32, %c0_i32_0 : i32, i32
  }
  func.func @transform_6(%arg0: i32) -> (i32, i32) {
    %c0_i32 = arith.constant 0 : i32
    %c0_i32_0 = arith.constant 0 : i32
    %c0_i32_1 = arith.constant 0 : i32
    return %c0_i32, %c0_i32_0 : i32, i32
  }
  func.func @transform_7(%arg0: i32) -> (i32, i32) {
    %c0_i32 = arith.constant 0 : i32
    %c0_i32_0 = arith.constant 0 : i32
    %c0_i32_1 = arith.constant 0 : i32
    return %c0_i32, %c0_i32_0 : i32, i32
  }
  func.func @transform_8(%arg0: i32) -> (i32, i32) {
    %c0_i32 = arith.constant 0 : i32
    %c0_i32_0 = arith.constant 0 : i32
    %c0_i32_1 = arith.constant 0 : i32
    return %c0_i32, %c0_i32_0 : i32, i32
  }
  func.func @transform_9(%arg0: i32) -> (i32, i32, i32) {
    %c0_i32 = arith.constant 0 : i32
    %c0_i32_0 = arith.constant 0 : i32
    %c0_i32_1 = arith.constant 0 : i32
    return %arg0, %c0_i32, %c0_i32_0 : i32, i32, i32
  }
}

</mosaic_0001>

<bundles_post_ra>
// kernel: mednext_encoder_forward.6
= control target key start
LH: loop header
LB: loop body
LE: loop exit
PB: predicated region body
PF: predicated region fallthrough
CT: control target
= control target key end

     0   :  { %s2244_s18 = smov 0   ;;  %s3097_s0 = inlined_call_operand.vmem [shape: f32[2,16,16,16], index: 0, kind: input, shape index: {}]   ;;  %s3098_s1 = inlined_call_operand.vmem [shape: f32[9,16], index: 1, kind: input, shape index: {}]   ;;  %s3099_s2 = inlined_call_operand.vmem [shape: f32[1,16], index: 2, kind: input, shape index: {}]   ;;  %s3100_s3 = inlined_call_operand.vmem [shape: bf16[16,32], index: 3, kind: input, shape index: {}]   ;;  %s3101_s4 = inlined_call_operand.vmem [shape: f32[1,32], index: 4, kind: input, shape index: {}]   ;;  %s3102_s5 = inlined_call_operand.vmem [shape: bf16[32,32], index: 5, kind: input, shape index: {}]   ;;  %s3103_s6 = inlined_call_operand.vmem [shape: f32[1,32], index: 6, kind: input, shape index: {}]   ;;  %s3104_s7 = inlined_call_operand.vmem [shape: bf16[16,32], index: 7, kind: input, shape index: {}]   ;;  %s3105_s8 = inlined_call_operand.vmem [shape: f32[1,32], index: 8, kind: input, shape index: {}]   ;;  %s3106_s9 = inlined_call_operand.vmem [shape: f32[9,32], index: 9, kind: input, shape index: {}]   ;;  %s3107_s10 = inlined_call_operand.vmem [shape: f32[1,32], index: 10, kind: input, shape index: {}]   ;;  %s3108_s11 = inlined_call_operand.vmem [shape: bf16[32,64], index: 11, kind: input, shape index: {}]   ;;  %s3109_s12 = inlined_call_operand.vmem [shape: f32[1,64], index: 12, kind: input, shape index: {}]   ;;  %s3110_s13 = inlined_call_operand.vmem [shape: bf16[64,32], index: 13, kind: input, shape index: {}]   ;;  %s3111_s14 = inlined_call_operand.vmem [shape: f32[1,32], index: 14, kind: input, shape index: {}]   ;;  %s3112_s15 = inlined_call_operand.vmem [shape: f32[2,64,32], index: 15, kind: output, shape index: {}]  }
   0x1 LB: > { %s1925_s19 = sadd.s32 4294967295, %s2161_s18   ;;  %p1929_p0 = scmp.ge.s32.totalorder %s2161_s18, 1  ;;  %s2161_s18 = sphi %s2244_s18, %s25_s18  }
   0x2   : > { %p437_p1 = scmp.lt.s32.totalorder %s2161_s18, 3 }
   0x4   : > { %p438_p2 = pnand %p1929_p0, %p437_p1 }
   0x6   : > { %441 = sbr.rel (%p438_p2) target bundleno = 1084 (0x43c), region = 80 }
   0xb   : > { %v2109_v0 = vld [vmem:[%s3100_s3] sm:$0xff]   ;;  %p485_p3 = scmp.lt.s32.totalorder %s1925_s19, 1  ;;  %v595_v1 = vlaneseq  ;;  %v3118_v3 = vmov 0.0   ;;  %vm586_vm0 = vcmask 1040384   ;;  %vm825_vm1 = vcmask 130048  }
   0xc   : > { %2038 = vmatprep.subr.bf16.mxu0 %v2109_v0  ;;  %2098 = vmatprep.subr.bf16.mxu1 %v2109_v0  ;;  %v2260_v2 = vld [vmem:[%s3098_s1] sm:$0xff]  ;;  %v570_v4 = vrot.slane %v3118_v3, 7  ;;  %vm1062_vm2 = vcmask 261120   ;;  %vm1331_vm3 = vcmask 1046528   ;;  %vm1761_vm4 = vcmask 523264  }
   0xd   : > { %s3236_s19 = smov (!%p485_p3, %s1925_s19), 1  ;;  %3157 = vst [vmem:[#allocation2_spill] sm:$0xff] %v2260_v2  ;;  %v2263_v5 = vshrl.u32 %v595_v1, 7  ;;  %2039 = vmatpush3.bf16.msra.mxu0 %v2109_v0  ;;  %2099 = vmatpush3.bf16.msra.mxu1 %v2109_v0 }
   0xe   : > { %s2006_s24 = sshll.u32 %s3236_s19, 8  ;;  %v2285_v15 = vsel %vm586_vm0, 0.0, %v570_v4 }
   0xf   : > { %3158 = vst [vmem:[#allocation3_spill] sm:$0xff] %v2263_v5  ;;  %v3120_v6 = vsub.s32 0, %v2263_v5  ;;  %v3119_v7 = vsub.s32 1, %v2263_v5  ;;  %v3117_v8 = vsub.s32 2, %v2263_v5  ;;  %s2272_s27 = scalar_lea.vmem %s3097_s0, %s2006_s24  ;;  %v3115_v9 = vsub.s32 3, %v2263_v5  ;;  %3161 = vst [vmem:[#allocation6_spill] sm:$0xff] %v2285_v15 }
  0x10   : > { %v3116_v10 = vsub.s32 4, %v2263_v5  ;;  %v3114_v11 = vsub.s32 5, %v2263_v5  ;;  %v3113_v12 = vsub.s32 6, %v2263_v5  ;;  %v2279_v13 = vld [vmem:[%s2272_s27] ss:$2 sm:$0xff] }
  0x11   : > { %3159 = vst [vmem:[#allocation4_spill] sm:$0xff] %v2279_v13  ;;  %v2282_v14 = vld [vmem:[%s2272_s27 + $0x20] ss:$2 sm:$0xff]  ;;  %v2290_v16 = vrot.slane %v2260_v2, %v3120_v6  ;;  %v618_v24 = vrot.slane %v2260_v2, %v3119_v7  ;;  %v2322_v26 = vld [vmem:[%s2272_s27 + $0x1] ss:$2 sm:$0xff]  ;;  %v2334_v29 = vrot.slane %v2260_v2, %v3117_v8  ;;  %v2339_v30 = vrot.slane %v2260_v2, %v3115_v9 }
  0x12   : > { %3160 = vst [vmem:[#allocation5_spill] sm:$0xff] %v2282_v14  ;;  %v2293_v17 = vld [vmem:[%s2272_s27 + $0x40] ss:$2 sm:$0xff]  ;;  %v710_v20 = vrot.slane %v2260_v2, %v3116_v10  ;;  %v2319_v25 = vrot.slane %v2260_v2, %v3114_v11  ;;  %v2325_v27 = vld [vmem:[%s2272_s27 + $0x21] ss:$2 sm:$0xff]  ;;  %v2344_v31 = vrot.slane %v2260_v2, %v3113_v12 }
  0x13   : > { %3162 = vst [vmem:[#allocation7_spill] sm:$0xff] %v2293_v17  ;;  %v2296_v18 = vld [vmem:[%s2272_s27 + $0x60] ss:$2 sm:$0xff]  ;;  %v2329_v28 = vmul.f32 %v2290_v16, %v2285_v15  ;;  %v2347_v32 = vld [vmem:[%s2272_s27 + $0x41] ss:$2 sm:$0xff]  ;;  %v639_v5 = vmul.f32 0.0, %v2334_v29 }
  0x14   : > { %3163 = vst [vmem:[#allocation8_spill] sm:$0xff] %v2296_v18  ;;  %v2299_v19 = vld [vmem:[%s2272_s27 + $0x80] ss:$2 sm:$0xff]  ;;  %v2350_v33 = vld [vmem:[%s2272_s27 + $0x61] ss:$2 sm:$0xff]  ;;  %v2356_v35 = vmul.f32 %v710_v20, %v2279_v13  ;;  %v2359_v36 = vmul.f32 %v2282_v14, %v710_v20  ;;  %v2362_v37 = vmul.f32 %v2293_v17, %v710_v20  ;;  %v2365_v38 = vmul.f32 %v2296_v18, %v710_v20 }
  0x15   : > { %3164 = vst [vmem:[#allocation9_spill] sm:$0xff] %v2299_v19  ;;  %v2305_v21 = vld [vmem:[%s2272_s27 + $0xa0] ss:$2 sm:$0xff]  ;;  %v2353_v34 = vld [vmem:[%s2272_s27 + $0x81] ss:$2 sm:$0xff]  ;;  %v2377_v42 = vmul.f32 %v2299_v19, %v710_v20  ;;  %v2399_v49 = vmul.f32 %v2322_v26, %v2319_v25  ;;  %v2403_v50 = vmul.f32 %v2325_v27, %v2319_v25  ;;  %v2407_v51 = vmul.f32 %v2347_v32, %v2319_v25 }
  0x16   : > { %3165 = vst [vmem:[#allocation10_spill] sm:$0xff] %v2305_v21  ;;  %v2308_v22 = vld [vmem:[%s2272_s27 + $0xc0] ss:$2 sm:$0xff]  ;;  %v2368_v39 = vld [vmem:[%s2272_s27 + $0xa1] ss:$2 sm:$0xff]  ;;  %v2380_v43 = vmul.f32 %v2305_v21, %v710_v20  ;;  %v2411_v52 = vmul.f32 %v2350_v33, %v2319_v25  ;;  %v2423_v57 = vmul.f32 %v2353_v34, %v2319_v25 }
  0x17   : > { %3166 = vst [vmem:[#allocation11_spill] sm:$0xff] %v2308_v22  ;;  %v2311_v23 = vld [vmem:[%s2272_s27 + $0xe0] ss:$2 sm:$0xff]  ;;  %v2371_v40 = vld [vmem:[%s2272_s27 + $0x10] ss:$2 sm:$0xff]  ;;  %v2383_v44 = vmul.f32 %v2308_v22, %v710_v20  ;;  %v2427_v58 = vmul.f32 %v2368_v39, %v2319_v25 }
  0x18   : > { %3167 = vst [vmem:[#allocation12_spill] sm:$0xff] %v2311_v23  ;;  %3168 = vst [vmem:[#allocation13_spill] sm:$0xff] %v2371_v40  ;;  %v2374_v41 = vld [vmem:[%s2272_s27 + $0x30] ss:$2 sm:$0xff]  ;;  %v2386_v45 = vmul.f32 %v2311_v23, %v710_v20  ;;  %v620_v55 = vmul.f32 %v2371_v40, %v618_v24  ;;  %v2430_v59 = vld [vmem:[%s2272_s27 + $0x11] ss:$2 sm:$0xff] }
  0x19   : > { %3169 = vst [vmem:[#allocation14_spill] sm:$0xff] %v2374_v41  ;;  %v2389_v46 = vld [vmem:[%s2272_s27 + $0x50] ss:$2 sm:$0xff]  ;;  %v621_v56 = vmul.f32 %v2374_v41, %v618_v24  ;;  %3175 = vst [vmem:[#allocation20_spill] sm:$0xff] %v2430_v59  ;;  %v2433_v60 = vld [vmem:[%s2272_s27 + $0x31] ss:$2 sm:$0xff]  ;;  %v640_v9 = vmul.f32 %v2430_v59, %v2334_v29 }
  0x1a   : > { %3170 = vst [vmem:[#allocation15_spill] sm:$0xff] %v2389_v46  ;;  %v2392_v47 = vld [vmem:[%s2272_s27 + $0x70] ss:$2 sm:$0xff]  ;;  %3176 = vst [vmem:[#allocation21_spill] sm:$0xff] %v2433_v60  ;;  %v2436_v61 = vld [vmem:[%s2272_s27 + $0x51] ss:$2 sm:$0xff]  ;;  %v622_v62 = vmul.f32 %v2389_v46, %v618_v24  ;;  %v641_v10 = vmul.f32 %v2433_v60, %v2334_v29 }
  0x1b   : > { %3171 = vst [vmem:[#allocation16_spill] sm:$0xff] %v2392_v47  ;;  %v2395_v48 = vld [vmem:[%s2272_s27 + $0x90] ss:$2 sm:$0xff]  ;;  %3177 = vst [vmem:[#allocation22_spill] sm:$0xff] %v2436_v61  ;;  %v623_v63 = vmul.f32 %v2392_v47, %v618_v24  ;;  %v2443_v4 = vld [vmem:[%s2272_s27 + $0x71] ss:$2 sm:$0xff]  ;;  %v642_v8 = vmul.f32 %v2436_v61, %v2334_v29 }
  0x1c   : > { %3172 = vst [vmem:[#allocation17_spill] sm:$0xff] %v2395_v48  ;;  %v2414_v53 = vld [vmem:[%s2272_s27 + $0xb0] ss:$2 sm:$0xff]  ;;  %v624_v0 = vmul.f32 %v2395_v48, %v618_v24  ;;  %3178 = vst [vmem:[#allocation23_spill] sm:$0xff] %v2443_v4  ;;  %v2446_v20 = vld [vmem:[%s2272_s27 + $0x91] ss:$2 sm:$0xff]  ;;  %v643_v15 = vmul.f32 %v2443_v4, %v2334_v29 }
  0x1d   : > { %3173 = vst [vmem:[#allocation18_spill] sm:$0xff] %v2414_v53  ;;  %v2417_v54 = vld [vmem:[%s2272_s27 + $0xd0] ss:$2 sm:$0xff]  ;;  %v625_v1 = vmul.f32 %v2414_v53, %v618_v24  ;;  %3179 = vst [vmem:[#allocation24_spill] sm:$0xff] %v2446_v20  ;;  %v2449_v12 = vld [vmem:[%s2272_s27 + $0xb1] ss:$2 sm:$0xff]  ;;  %v644_v23 = vmul.f32 %v2446_v20, %v2334_v29 }
  0x1e   : > { %3174 = vst [vmem:[#allocation19_spill] sm:$0xff] %v2417_v54  ;;  %v626_v11 = vmul.f32 %v2417_v54, %v618_v24  ;;  %v2459_v3 = vld [vmem:[%s2272_s27 + $0xd1] ss:$2 sm:$0xff]  ;;  %v571_v7 = vrot.slane %v2430_v59, 7  ;;  %v572_v6 = vrot.slane %v2433_v60, 7  ;;  %v573_v22 = vrot.slane %v2436_v61, 7 }
  0x1f   : > { %v574_v21 = vrot.slane %v2443_v4, 7  ;;  %v575_v19 = vrot.slane %v2446_v20, 7  ;;  %v576_v18 = vrot.slane %v2449_v12, 7  ;;  %v577_v17 = vrot.slane %v2459_v3, 7 }
  0x20   : > { %v2473_v14 = vsel %vm586_vm0, 0.0, %v571_v7  ;;  %v2476_v13 = vsel %vm586_vm0, 0.0, %v572_v6  ;;  %v619_v54 = vmul.f32 0.0, %v618_v24  ;;  %v2479_v53 = vsel %vm586_vm0, 0.0, %v573_v22 }
  0x21   : > { %3180 = vst [vmem:[#allocation25_spill] sm:$0xff] %v2479_v53  ;;  %v2482_v48 = vsel %vm586_vm0, 0.0, %v574_v21  ;;  %v2485_v47 = vsel %vm586_vm0, 0.0, %v575_v19  ;;  %v2488_v46 = vsel %vm586_vm0, 0.0, %v576_v18  ;;  %v2491_v41 = vsel %vm586_vm0, 0.0, %v577_v17 }
  0x22   : > { %3181 = vst [vmem:[#allocation26_spill] sm:$0xff] %v2482_v48  ;;  %3182 = vst [vmem:[#allocation27_spill] sm:$0xff] %v2485_v47  ;;  %v600_v6 = vmul.f32 %v2290_v16, %v2473_v14  ;;  %v601_v7 = vmul.f32 %v2290_v16, %v2476_v13  ;;  %v602_v22 = vmul.f32 %v2290_v16, %v2479_v53  ;;  %v1947_v53 = vld [vmem:[%s2272_s27 + $0xc1] ss:$2 sm:$0xff] }
  0x23   : > { %3183 = vst [vmem:[#allocation28_spill] sm:$0xff] %v2488_v46  ;;  %3184 = vst [vmem:[#allocation29_spill] sm:$0xff] %v2491_v41  ;;  %v603_v21 = vmul.f32 %v2290_v16, %v2482_v48  ;;  %v604_v18 = vmul.f32 %v2290_v16, %v2485_v47  ;;  %v605_v17 = vmul.f32 %v2290_v16, %v2488_v46 }
  0x24   : > { %v606_v19 = vmul.f32 %v2290_v16, %v2491_v41  ;;  %v627_v24 = vadd.f32 %v619_v54, %v2329_v28  ;;  %v628_v40 = vadd.f32 %v620_v55, %v600_v6  ;;  %v629_v20 = vadd.f32 %v621_v56, %v601_v7  ;;  %v1948_v16 = vld [vmem:[%s2272_s27 + $0xe1] ss:$2 sm:$0xff] }
  0x25   : > { %v630_v4 = vadd.f32 %v622_v62, %v602_v22  ;;  %v631_v61 = vadd.f32 %v623_v63, %v603_v21  ;;  %v632_v60 = vadd.f32 %v624_v0, %v604_v18  ;;  %v633_v2 = vadd.f32 %v625_v1, %v605_v17 }
  0x26   : > { %v634_v59 = vadd.f32 %v626_v11, %v606_v19  ;;  %v645_v47 = vmul.f32 %v2449_v12, %v2334_v29  ;;  %v646_v46 = vmul.f32 %v2459_v3, %v2334_v29  ;;  %v648_v48 = vadd.f32 %v640_v9, %v628_v40 }
  0x27   : > { %v649_v41 = vadd.f32 %v641_v10, %v629_v20  ;;  %v650_v28 = vadd.f32 %v642_v8, %v630_v4  ;;  %v651_v54 = vadd.f32 %v643_v15, %v631_v61  ;;  %v652_v55 = vadd.f32 %v644_v23, %v632_v60 }
  0x28   : > { %v647_v56 = vadd.f32 %v639_v5, %v627_v24  ;;  %v653_v62 = vadd.f32 %v645_v47, %v633_v2  ;;  %v654_v63 = vadd.f32 %v646_v46, %v634_v59  ;;  %v663_v11 = vrot.slane %v2322_v26, 7 }
  0x29   : > { %v664_v0 = vrot.slane %v2325_v27, 7  ;;  %v665_v1 = vrot.slane %v2347_v32, 7  ;;  %v666_v6 = vrot.slane %v2350_v33, 7  ;;  %v667_v29 = vrot.slane %v2353_v34, 7 }
  0x2a   : > { %v668_v9 = vrot.slane %v2368_v39, 7  ;;  %v669_v40 = vrot.slane %v1947_v53, 7  ;;  %v670_v10 = vrot.slane %v1948_v16, 7  ;;  %v679_v8 = vsel %vm586_vm0, 0.0, %v663_v11  ;;  %v2539_v11 = vld [vmem:[%s2272_s27 + $0xf1] ss:$2 sm:$0xff] }
  0x2b   : > { %v680_v5 = vsel %vm586_vm0, 0.0, %v664_v0  ;;  %v681_v2 = vsel %vm586_vm0, 0.0, %v665_v1  ;;  %v682_v15 = vsel %vm586_vm0, 0.0, %v666_v6  ;;  %v683_v23 = vsel %vm586_vm0, 0.0, %v667_v29 }
  0x2c   : > { %v684_v26 = vsel %vm586_vm0, 0.0, %v668_v9  ;;  %v685_v27 = vsel %vm586_vm0, 0.0, %v669_v40  ;;  %v686_v32 = vsel %vm586_vm0, 0.0, %v670_v10  ;;  %v691_v33 = vmul.f32 %v2339_v30, %v679_v8  ;;  %v3190_v8 = vld [vmem:[#allocation3_spill] sm:$0xff] }
  0x2d   : > { %v692_v34 = vmul.f32 %v2339_v30, %v680_v5  ;;  %v693_v39 = vmul.f32 %v2339_v30, %v681_v2  ;;  %v694_v46 = vmul.f32 %v2339_v30, %v682_v15  ;;  %v695_v47 = vmul.f32 %v2339_v30, %v683_v23  ;;  %v3191_v2 = vld [vmem:[#allocation20_spill] sm:$0xff] }
  0x2e   : > { %v696_v59 = vmul.f32 %v2339_v30, %v684_v26  ;;  %v697_v60 = vmul.f32 %v2339_v30, %v685_v27  ;;  %v698_v61 = vmul.f32 %v2339_v30, %v686_v32  ;;  %v699_v4 = vadd.f32 %v691_v33, %v647_v56  ;;  %v1956_v33 = vld [vmem:[%s2272_s27 + $0xf0] ss:$2 sm:$0xff]  ;;  %s2007_s27 = sshll.u32 %s3236_s19, 6 }
  0x2f   : > { %v700_v20 = vadd.f32 %v692_v34, %v648_v48  ;;  %v701_v7 = vadd.f32 %v693_v39, %v649_v41  ;;  %v702_v22 = vadd.f32 %v694_v46, %v650_v28  ;;  %v703_v21 = vadd.f32 %v695_v47, %v651_v54  ;;  %v3192_v46 = vld [vmem:[#allocation2_spill] sm:$0xff]  ;;  %s494_s30 = scalar_lea.vmem %s3112_s15, %s2007_s27 }
  0x30   : > { %v704_v18 = vadd.f32 %v696_v59, %v652_v55  ;;  %v705_v17 = vadd.f32 %v697_v60, %v653_v62  ;;  %v706_v19 = vadd.f32 %v698_v61, %v654_v63  ;;  %v719_v24 = vadd.f32 %v2356_v35, %v699_v4  ;;  %v3189_v63 = vld [vmem:[#allocation29_spill] sm:$0xff]  ;;  %v3194_v60 = vld [vmem:[#allocation22_spill] sm:$0xff]  ;;  %v3195_v4 = vld [vmem:[#allocation23_spill] sm:$0xff] }
  0x31   : > { %v720_v0 = vadd.f32 %v2359_v36, %v700_v20  ;;  %v721_v1 = vadd.f32 %v2362_v37, %v701_v7  ;;  %v722_v6 = vadd.f32 %v2365_v38, %v702_v22  ;;  %v723_v30 = vadd.f32 %v2377_v42, %v703_v21  ;;  %v3193_v59 = vld [vmem:[#allocation21_spill] sm:$0xff]  ;;  %v3196_v7 = vld [vmem:[#allocation24_spill] sm:$0xff] }
  0x32   : > { %v724_v48 = vadd.f32 %v2380_v43, %v704_v18  ;;  %v737_v41 = vmul.f32 %v1947_v53, %v2319_v25  ;;  %v738_v28 = vmul.f32 %v1948_v16, %v2319_v25  ;;  %v725_v54 = vadd.f32 %v2383_v44, %v705_v17  ;;  %v3187_v16 = vld [vmem:[#allocation27_spill] sm:$0xff]  ;;  %v3197_v18 = vld [vmem:[#allocation13_spill] sm:$0xff] }
  0x33   : > { %v726_v35 = vadd.f32 %v2386_v45, %v706_v19  ;;  %v739_v55 = vadd.f32 %v2399_v49, %v719_v24  ;;  %v740_v36 = vadd.f32 %v2403_v50, %v720_v0  ;;  %v741_v37 = vadd.f32 %v2407_v51, %v721_v1  ;;  %v3185_v45 = vld [vmem:[#allocation25_spill] sm:$0xff]  ;;  %v1965_v50 = vld [vmem:[%s3098_s1 + $0x8] ss:$0 sm:$0xff]  ;;  %v3198_v19 = vld [vmem:[#allocation14_spill] sm:$0xff] }
  0x34   : > { %v742_v38 = vadd.f32 %v2411_v52, %v722_v6  ;;  %v743_v42 = vadd.f32 %v2423_v57, %v723_v30  ;;  %v748_v43 = vrot.slane %v2539_v11, 7  ;;  %v744_v53 = vadd.f32 %v2427_v58, %v724_v48  ;;  %v3186_v52 = vld [vmem:[#allocation26_spill] sm:$0xff]  ;;  %v3199_v0 = vld [vmem:[#allocation15_spill] sm:$0xff]  ;;  %v3200_v6 = vld [vmem:[#allocation16_spill] sm:$0xff] }
  0x35   : > { %v755_v25 = vmul.f32 %v2344_v31, %v2473_v14  ;;  %v756_v44 = vmul.f32 %v2344_v31, %v2476_v13  ;;  %v757_v49 = vmul.f32 %v2344_v31, %v3185_v45  ;;  %v758_v57 = vmul.f32 %v2344_v31, %v3186_v52  ;;  %v3188_v14 = vld [vmem:[#allocation28_spill] sm:$0xff]  ;;  %v3201_v48 = vld [vmem:[#allocation17_spill] sm:$0xff] }
  0x36   : > { %v750_v51 = vsel %vm586_vm0, 0.0, %v748_v43  ;;  %v759_v58 = vmul.f32 %v2344_v31, %v3187_v16  ;;  %v760_v56 = vmul.f32 %v2344_v31, %v3188_v14  ;;  %v745_v13 = vadd.f32 %v737_v41, %v725_v54 }
  0x37   : > { %v746_v62 = vadd.f32 %v738_v28, %v726_v35  ;;  %v761_v29 = vmul.f32 %v2344_v31, %v3189_v63  ;;  %v762_v9 = vmul.f32 %v2344_v31, %v750_v51  ;;  %v763_v40 = vadd.f32 %v755_v25, %v739_v55  ;;  %v3202_v28 = vld [vmem:[#allocation18_spill] sm:$0xff]  ;;  %v3203_v35 = vld [vmem:[#allocation19_spill] sm:$0xff] }
  0x38   : > { %v764_v10 = vadd.f32 %v756_v44, %v740_v36  ;;  %v773_v5 = vsub.s32 7, %v3190_v8  ;;  %v795_v15 = vmul.f32 %v1965_v50, %v3191_v2  ;;  %v765_v23 = vadd.f32 %v757_v49, %v741_v37 }
  0x39   : > { %v766_v26 = vadd.f32 %v758_v57, %v742_v38  ;;  %v767_v27 = vadd.f32 %v759_v58, %v743_v42  ;;  %v768_v32 = vadd.f32 %v760_v56, %v744_v53  ;;  %v769_v34 = vadd.f32 %v761_v29, %v745_v13 }
  0x3a   : > { %v770_v39 = vadd.f32 %v762_v9, %v746_v62  ;;  %v774_v47 = vrot.slane %v3192_v46, %v773_v5  ;;  %v796_v31 = vmul.f32 %v1965_v50, %v3193_v59  ;;  %v797_v61 = vmul.f32 %v1965_v50, %v3194_v60 }
  0x3b   : > { %v798_v20 = vmul.f32 %v1965_v50, %v3195_v4  ;;  %v799_v22 = vmul.f32 %v1965_v50, %v3196_v7  ;;  %v800_v21 = vmul.f32 %v1965_v50, %v2449_v12  ;;  %v1966_v12 = vld [vmem:[%s3099_s2] ss:$0 sm:$0xff]  ;;  %v801_v45 = vmul.f32 %v1965_v50, %v2459_v3 }
  0x3c   : > { %v775_v17 = vmul.f32 %v3197_v18, %v774_v47  ;;  %v776_v24 = vmul.f32 %v3198_v19, %v774_v47  ;;  %v777_v1 = vmul.f32 %v3199_v0, %v774_v47  ;;  %v778_v30 = vmul.f32 %v3200_v6, %v774_v47 }
  0x3d   : > { %v779_v41 = vmul.f32 %v3201_v48, %v774_v47  ;;  %v780_v54 = vmul.f32 %v3202_v28, %v774_v47  ;;  %v781_v55 = vmul.f32 %v3203_v35, %v774_v47  ;;  %v782_v36 = vmul.f32 %v1956_v33, %v774_v47 }
  0x3e   : > { %v783_v37 = vadd.f32 %v775_v17, %v763_v40  ;;  %v784_v38 = vadd.f32 %v776_v24, %v764_v10  ;;  %v785_v42 = vadd.f32 %v777_v1, %v765_v23  ;;  %v786_v43 = vadd.f32 %v778_v30, %v766_v26 }
  0x3f   : > { %v787_v53 = vadd.f32 %v779_v41, %v767_v27  ;;  %v788_v25 = vadd.f32 %v780_v54, %v768_v32  ;;  %v789_v44 = vadd.f32 %v781_v55, %v769_v34  ;;  %v790_v16 = vadd.f32 %v782_v36, %v770_v39 }
  0x40   : > { %v803_v49 = vadd.f32 %v795_v15, %v783_v37  ;;  %v804_v51 = vadd.f32 %v796_v31, %v784_v38  ;;  %v805_v52 = vadd.f32 %v797_v61, %v785_v42  ;;  %v806_v57 = vadd.f32 %v798_v20, %v786_v43 }
  0x41   : > { %v802_v58 = vmul.f32 %v1965_v50, %v2539_v11  ;;  %v807_v14 = vadd.f32 %v799_v22, %v787_v53  ;;  %v808_v56 = vadd.f32 %v800_v21, %v788_v25  ;;  %v809_v9 = vadd.f32 %v801_v45, %v789_v44 }
  0x42   : > { %v2599_v13 = vadd.f32 %v1966_v12, %v803_v49  ;;  %v2601_v62 = vadd.f32 %v1966_v12, %v804_v51  ;;  %v2603_v63 = vadd.f32 %v1966_v12, %v805_v52  ;;  %v2605_v29 = vadd.f32 %v1966_v12, %v806_v57 }
  0x43   : > { %v2607_v40 = vadd.f32 %v1966_v12, %v807_v14  ;;  %v810_v50 = vadd.f32 %v802_v58, %v790_v16  ;;  %v2615_v2 = vadd.f32 %v1966_v12, %v808_v56  ;;  %v2625_v33 = vadd.f32 %v1966_v12, %v809_v9 }
  0x44   : > { %v826_v3 = vsel %vm825_vm1, %v2599_v13, 0.0  ;;  %v827_v10 = vsel %vm825_vm1, %v2601_v62, 0.0  ;;  %v829_v11 = vsel %vm825_vm1, %v2603_v63, 0.0  ;;  %v831_v23 = vsel %vm825_vm1, %v2605_v29, 0.0 }
  0x45   : > { %v828_v15 = vadd.f32 %v827_v10, %v826_v3  ;;  %v847_v26 = vmul.f32 %v2599_v13, %v2599_v13  ;;  %v848_v27 = vmul.f32 %v2601_v62, %v2601_v62  ;;  %v849_v32 = vmul.f32 %v2603_v63, %v2603_v63 }
  0x46   : > { %v850_v39 = vmul.f32 %v2605_v29, %v2605_v29  ;;  %v833_v46 = vsel %vm825_vm1, %v2607_v40, 0.0  ;;  %v851_v47 = vmul.f32 %v2607_v40, %v2607_v40  ;;  %v824_v20 = vadd.f32 %v1966_v12, %v810_v50 }
  0x47   : > { %v830_v34 = vadd.f32 %v829_v11, %v828_v15  ;;  %v855_v59 = vsel %vm825_vm1, %v847_v26, 0.0  ;;  %v856_v31 = vsel %vm825_vm1, %v848_v27, 0.0  ;;  %v858_v4 = vsel %vm825_vm1, %v849_v32, 0.0 }
  0x48   : > { %v857_v61 = vadd.f32 %v856_v31, %v855_v59  ;;  %v835_v7 = vsel %vm825_vm1, %v2615_v2, 0.0  ;;  %v852_v22 = vmul.f32 %v2615_v2, %v2615_v2  ;;  %v860_v21 = vsel %vm825_vm1, %v850_v39, 0.0 }
  0x49   : > { %v832_v60 = vadd.f32 %v831_v23, %v830_v34  ;;  %v837_v19 = vsel %vm825_vm1, %v2625_v33, 0.0  ;;  %v853_v24 = vmul.f32 %v2625_v33, %v2625_v33  ;;  %v862_v0 = vsel %vm825_vm1, %v851_v47, 0.0 }
  0x4a   : > { %v859_v17 = vadd.f32 %v858_v4, %v857_v61  ;;  %v839_v30 = vsel %vm825_vm1, %v824_v20, 0.0  ;;  %v854_v48 = vmul.f32 %v824_v20, %v824_v20  ;;  %v864_v41 = vsel %vm825_vm1, %v852_v22, 0.0 }
  0x4b   : > { %v834_v18 = vadd.f32 %v833_v46, %v832_v60  ;;  %v866_v35 = vsel %vm825_vm1, %v853_v24, 0.0  ;;  %v2112_v24 = vld [vmem:[%s3102_s5] sm:$0xff]  }
  0x4c   : > { %v861_v6 = vadd.f32 %v860_v21, %v859_v17  ;;  %v868_v37 = vsel %vm825_vm1, %v854_v48, 0.0  ;;  %v3207_v17 = vld [vmem:[#allocation8_spill] sm:$0xff] }
  0x4d   : > { %v836_v1 = vadd.f32 %v835_v7, %v834_v18  ;;  %v3206_v18 = vld [vmem:[#allocation7_spill] sm:$0xff]  ;;  %v3211_v48 = vld [vmem:[#allocation12_spill] sm:$0xff] }
  0x4e   : > { %v863_v54 = vadd.f32 %v862_v0, %v861_v6  ;;  %v3208_v0 = vld [vmem:[#allocation9_spill] sm:$0xff] }
  0x4f   : > { %v838_v28 = vadd.f32 %v837_v19, %v836_v1  ;;  %v1143_v19 = vpack.c.bf16 %v3207_v17, %v3206_v18  ;;  %v3209_v1 = vld [vmem:[#allocation10_spill] sm:$0xff] }
  0x50   : > { %v865_v36 = vadd.f32 %v864_v41, %v863_v54  ;;  %v1144_v6 = vpack.c.bf16 %v3209_v1, %v3208_v0 }
  0x51   : > { %v840_v55 = vadd.f32 %v839_v30, %v838_v28  ;;  %v3210_v30 = vld [vmem:[#allocation11_spill] sm:$0xff]  ;;  %v1967_v28 = vld [vmem:[%s3101_s4] ss:$0 sm:$0xff] }
  0x52   : > { %v867_v42 = vadd.f32 %v866_v35, %v865_v36  ;;  %v1145_v41 = vpack.c.bf16 %v3211_v48, %v3210_v30 }
  0x53   : > { %v841_v38 = vrot.slane %v840_v55, 4 }
  0x54   : > { %v869_v12 = vadd.f32 %v868_v37, %v867_v42 }
  0x55   : > { %v842_v43 = vadd.f32 %v841_v38, %v840_v55 }
  0x56   : > { %v870_v25 = vrot.slane %v869_v12, 4 }
  0x57   : > { %v843_v53 = vrot.slane %v842_v43, 2 }
  0x58   : > { %v871_v45 = vadd.f32 %v870_v25, %v869_v12 }
  0x59   : > { %v844_v44 = vadd.f32 %v843_v53, %v842_v43 }
  0x5a   : > { %v872_v51 = vrot.slane %v871_v45, 2 }
  0x5b   : > { %v845_v49 = vrot.slane %v844_v44, 1 }
  0x5c   : > { %v873_v57 = vadd.f32 %v872_v51, %v871_v45 }
  0x5d   : > { %v846_v52 = vadd.f32 %v845_v49, %v844_v44 }
  0x5e   : > { %v874_v16 = vrot.slane %v873_v57, 1 }
  0x5f   : > { %v876_v58 = vmul.f32 0.015625, %v846_v52 }
  0x60   : > { %v875_v14 = vadd.f32 %v874_v16, %v873_v57 }
  0x61   : > { %v878_v56 = vmul.f32 %v876_v58, %v876_v58  ;;  %v881_v50 = vsub.f32 %v2599_v13, %v876_v58  ;;  %v882_v15 = vsub.f32 %v2601_v62, %v876_v58  ;;  %v885_v23 = vsub.f32 %v2607_v40, %v876_v58 }
  0x62   : > { %v877_v9 = vmul.f32 0.015625, %v875_v14  ;;  %v886_v26 = vsub.f32 %v2615_v2, %v876_v58  ;;  %v883_v27 = vsub.f32 %v2603_v63, %v876_v58  ;;  %v884_v32 = vsub.f32 %v2605_v29, %v876_v58  ;;  %v2110_v63 = vld [vmem:[%s3104_s7] sm:$0xff]   ;;  %v2111_v29 = vld [vmem:[%s3102_s5 + $0x8] sm:$0xff]  }
  0x63   : > { %v887_v34 = vsub.f32 %v2625_v33, %v876_v58  ;;  %v888_v39 = vsub.f32 %v824_v20, %v876_v58  ;;  %2060 = vmatprep.subr.bf16.mxu0 %v2110_v63  ;;  %v3204_v33 = vld [vmem:[#allocation4_spill] sm:$0xff]  ;;  %v3205_v20 = vld [vmem:[#allocation5_spill] sm:$0xff]  ;;  %2048 = vmatprep.subr.bf16.mxu1 %v2111_v29 }
  0x64   : > { %v879_v3 = vsub.f32 %v877_v9, %v878_v56  ;;  %v1142_v21 = vpack.c.bf16 %v3205_v20, %v3204_v33 }
  0x66   : > { %v880_v10 = vmax.f32 %v879_v3, 0.0 }
  0x68   : > { %v889_v11 = vadd.f32 1e-05, %v880_v10 }
  0x6a   : > { %2119 = vrsqrt.f32 %v889_v11 }
  0x77   : > { %v2120_v46 = vpop.eup %2119 }
  0x78   : > { %v891_v47 = vmul.f32 %v2120_v46, %v881_v50  ;;  %v892_v59 = vmul.f32 %v2120_v46, %v882_v15  ;;  %v895_v31 = vmul.f32 %v2120_v46, %v885_v23  ;;  %v896_v60 = vmul.f32 %v2120_v46, %v886_v26 }
  0x79   : > { %v893_v61 = vmul.f32 %v2120_v46, %v883_v27  ;;  %v894_v13 = vmul.f32 %v2120_v46, %v884_v32  ;;  %v897_v4 = vmul.f32 %v2120_v46, %v887_v34  ;;  %v898_v62 = vmul.f32 %v2120_v46, %v888_v39 }
  0x7a   : > { %v901_v7 = vpack.c.bf16 %v892_v59, %v891_v47  ;;  %v903_v40 = vpack.c.bf16 %v896_v60, %v895_v31 }
  0x7b   : > { %v902_v22 = vpack.c.bf16 %v894_v13, %v893_v61  ;;  %v904_v2 = vpack.c.bf16 %v898_v62, %v897_v4 }
  0x7c   : > { %2040 = vmatprep.mubr.msk.bf16.mxu0 %vm825_vm1, %v901_v7  ;;  %2044 = vmatprep.mubr.msk.bf16.mxu1 %vm825_vm1, %v903_v40 }
  0x7d   : > { %2041 = vmatmul.mubr.msk.bf16.vlgmr.msra.gmra.mxu0 %vm825_vm1, %v902_v22  ;;  %2045 = vmatmul.mubr.msk.bf16.vlgmr.msra.gmra.mxu1 %vm825_vm1, %v904_v2 }
  0x7e   : > { %2061 = vmatpush3.bf16.msra.mxu0 %v2110_v63  ;;  %2049 = vmatpush3.bf16.msra.mxu1 %v2111_v29 }
  0x7f   : > { %2062 = vmatprep.mubr.msk.bf16.mxu0 %vm825_vm1, %v1142_v21  ;;  %2050 = vmatprep.subr.bf16.mxu1 %v2112_v24 }
  0x82   : > { %2051 = vmatpush3.bf16.msra.mxu1 %v2112_v24 }
  0x85   : > { %2063 = vmatmul.mubr.msk.bf16.vlgmr.msra.gmra.mxu0 %vm825_vm1, %v1143_v19 }
  0x86   : > { %2066 = vmatprep.mubr.msk.bf16.mxu0 %vm825_vm1, %v1144_v6 }
  0x8d   : > { %2067 = vmatmul.mubr.msk.bf16.gmra.mxu0 %vm825_vm1, %v1145_v41  ;;  %v2113_v41 = vld [vmem:[%s3108_s11 + $0x8] sm:$0xff]  }
  0x8e   : > { %2070 = vmatprep.subr.bf16.mxu1 %v2113_v41 }
 0x13d   : > { %v2042_v54 = vpop.f32.mrf.mxu0  ;;  %v2046_v35 = vpop.f32.mrf.mxu1 }
 0x13e   : > { %v973_v55 = vadd.f32 %v2042_v54, %v1967_v28  ;;  %v989_v14 = vadd.f32 %v2046_v35, %v1967_v28 }
 0x13f   : > { %v964_v36 = vpop.f32.mrf.mxu0  ;;  %v980_v37 = vpop.f32.mrf.mxu1 }
 0x140   : > { %v1005_v38 = vmul.f32 0.70710677, %v973_v55  ;;  %v965_v42 = vadd.f32 %v1967_v28, %v964_v36  ;;  %v981_v43 = vadd.f32 %v1967_v28, %v980_v37  ;;  %v1009_v10 = vmul.f32 0.70710677, %v989_v14  ;;  %v1244_v37 = vld [vmem:[%s3106_s9] sm:$0xff] }
 0x141   : > { %v2043_v12 = vpop.f32.mrf.mxu0  ;;  %v2047_v53 = vpop.f32.mrf.mxu1  ;;  %v997_v61 = vmul.f32 0.5, %v973_v55  ;;  %v1001_v1 = vmul.f32 0.5, %v989_v14  ;;  %v3216_v14 = vsub.s32 2, %v3190_v8 }
 0x142   : > { %v976_v25 = vadd.f32 %v2043_v12, %v1967_v28  ;;  %v1003_v44 = vmul.f32 0.70710677, %v965_v42  ;;  %2121 = verf.f32 %v1005_v38  ;;  %v1007_v51 = vmul.f32 0.70710677, %v981_v43 }
 0x143   : > { %v967_v45 = vpop.f32.mrf.mxu0  ;;  %v983_v49 = vpop.f32.mrf.mxu1  ;;  %v992_v57 = vadd.f32 %v2047_v53, %v1967_v28  ;;  %v995_v47 = vmul.f32 0.5, %v965_v42  ;;  %v999_v22 = vmul.f32 0.5, %v981_v43  ;;  %v3212_v42 = vsub.s32 0, %v3190_v8 }
 0x144   : > { %v1006_v52 = vmul.f32 0.70710677, %v976_v25  ;;  %2123 = verf.f32 %v1003_v44  ;;  %v968_v16 = vadd.f32 %v1967_v28, %v967_v45  ;;  %v984_v58 = vadd.f32 %v1967_v28, %v983_v49  ;;  %v2114_v28 = vld [vmem:[%s3108_s11] sm:$0xff]  }
 0x145   : > { %2125 = verf.f32 %v1007_v51  ;;  %v1010_v9 = vmul.f32 0.70710677, %v992_v57  ;;  %v998_v39 = vmul.f32 0.5, %v976_v25  ;;  %v1002_v0 = vmul.f32 0.5, %v992_v57  ;;  %v2064_v54 = vpop.f32.mrf.mxu0  ;;  %v1980_v25 = vld [vmem:[%s3105_s8] ss:$0 sm:$0xff] }
 0x146   : > { %2127 = verf.f32 %v1006_v52  ;;  %v1004_v56 = vmul.f32 0.70710677, %v968_v16  ;;  %v1008_v3 = vmul.f32 0.70710677, %v984_v58  ;;  %v996_v31 = vmul.f32 0.5, %v968_v16  ;;  %v3215_v57 = vld [vmem:[#allocation6_spill] sm:$0xff] }
 0x147   : > { %v1000_v4 = vmul.f32 0.5, %v984_v58  ;;  %v1205_v35 = vpop.f32.mrf.mxu0  ;;  %v2700_v43 = vrot.slane %v1244_v37, %v3212_v42  ;;  %v3213_v12 = vsub.s32 1, %v3190_v8  ;;  %v3214_v44 = vmov 0.0   ;;  %v2713_v49 = vld [vmem:[%s3103_s6] ss:$0 sm:$0xff] }
 0x148   : > { %2129 = verf.f32 %v1004_v56  ;;  %v1315_v45 = vrot.slane %v3214_v44, 1  ;;  %v1214_v52 = vadd.f32 %v2064_v54, %v1980_v25  ;;  %v2720_v56 = vrot.slane %v1244_v37, %v3216_v14 }
 0x149   : > { %2131 = verf.f32 %v1008_v3  ;;  %v2065_v55 = vpop.f32.mrf.mxu0  ;;  %v2704_v53 = vrot.slane %v1244_v37, %v3213_v12  ;;  %v1279_v16 = vmul.f32 %v2700_v43, %v3215_v57 }
 0x14a   : > { %2133 = verf.f32 %v1010_v9  ;;  %v2723_v3 = vsel %vm1331_vm3, %v1315_v45, 0.0 }
 0x14b   : > { %2135 = verf.f32 %v1009_v10  ;;  %v1208_v36 = vpop.f32.mrf.mxu0  ;;  %v1299_v58 = vmul.f32 0.0, %v2704_v53 }
 0x14d   : > { %v2068_v38 = vpop.f32.mrf.mxu0 }
 0x14f   : > { %v2122_v11 = vpop.eup %2121  ;;  %v1221_v51 = vpop.f32.mrf.mxu0 }
 0x150   : > { %v1021_v34 = vadd.f32 1.0, %v2122_v11 }
 0x151   : > { %v2124_v50 = vpop.eup %2123 }
 0x152   : > { %v2126_v15 = vpop.eup %2125  ;;  %v1019_v26 = vadd.f32 1.0, %v2124_v50  ;;  %v1029_v63 = vmul.f32 %v1021_v34, %v997_v61  ;;  %v2069_v50 = vpop.f32.mrf.mxu0  ;;  %v1217_v34 = vadd.f32 %v2065_v55, %v1980_v25  ;;  %v3219_v61 = vsub.s32 3, %v3190_v8 }
 0x153   : > { %v2128_v23 = vpop.eup %2127  ;;  %v1023_v59 = vadd.f32 1.0, %v2126_v15 }
 0x154   : > { %v1022_v27 = vadd.f32 1.0, %v2128_v23  ;;  %v1027_v40 = vmul.f32 %v1019_v26, %v995_v47  ;;  %v1307_v26 = vadd.f32 %v1299_v58, %v1279_v16  ;;  %v3218_v47 = vsub.s32 4, %v3190_v8 }
 0x155   : > { %v2130_v32 = vpop.eup %2129  ;;  %v1031_v20 = vmul.f32 %v1023_v59, %v999_v22 }
 0x156   : > { %v2132_v46 = vpop.eup %2131  ;;  %v1020_v60 = vadd.f32 1.0, %v2130_v32  ;;  %v1030_v13 = vmul.f32 %v1022_v27, %v998_v39  ;;  %v1344_v27 = vmul.f32 %v2720_v56, %v2723_v3  ;;  %v1206_v32 = vadd.f32 %v1980_v25, %v1205_v35 }
 0x157   : > { %v1024_v62 = vadd.f32 1.0, %v2132_v46  ;;  %v2134_v7 = vpop.eup %2133  ;;  %v2734_v59 = vrot.slane %v1244_v37, %v3218_v47 }
 0x158   : > { %v1028_v2 = vmul.f32 %v1020_v60, %v996_v31  ;;  %v2136_v33 = vpop.eup %2135  ;;  %v1040_v18 = vpack.c.bf16 %v1030_v13, %v1029_v63  ;;  %v1026_v17 = vadd.f32 1.0, %v2134_v7  ;;  %v2738_v31 = vrot.slane %v1244_v37, %v773_v5 }
 0x159   : > { %v1032_v29 = vmul.f32 %v1024_v62, %v1000_v4  ;;  %v1025_v24 = vadd.f32 1.0, %v2136_v33  ;;  %v1209_v60 = vadd.f32 %v1980_v25, %v1208_v36  ;;  %v2742_v13 = vrot.slane %v1244_v37, %v3219_v61 }
 0x15a   : > { %v1039_v21 = vpack.c.bf16 %v1028_v2, %v1027_v40  ;;  %v1034_v6 = vmul.f32 %v1026_v17, %v1002_v0  ;;  %v3221_v62 = vsub.s32 5, %v3190_v8  ;;  %v1224_v2 = vpop.f32.mrf.mxu0  ;;  %v1352_v63 = vadd.f32 %v1344_v27, %v1307_v26 }
 0x15b   : > { %v1041_v19 = vpack.c.bf16 %v1032_v29, %v1031_v20  ;;  %v1033_v30 = vmul.f32 %v1025_v24, %v1001_v1  ;;  %v1230_v29 = vadd.f32 %v2068_v38, %v1980_v25  ;;  %v3222_v5 = vsub.s32 6, %v3190_v8 }
 0x15c   : > { %2052 = vmatprep.mubr.msk.bf16.mxu1 %vm1062_vm2, %v1039_v21  ;;  %v2748_v7 = vrot.slane %v1244_v37, %v3221_v62  ;;  %v1222_v20 = vadd.f32 %v1980_v25, %v1221_v51 }
 0x15d   : > { %2053 = vmatmul.mubr.msk.bf16.vlgmr.msra.gmra.mxu1 %vm1062_vm2, %v1040_v18  ;;  %v1042_v48 = vpack.c.bf16 %v1034_v6, %v1033_v30  ;;  %v2753_v33 = vrot.slane %v1244_v37, %v3222_v5  ;;  %v1233_v6 = vadd.f32 %v2069_v50, %v1980_v25  ;;  %v2764_v30 = vadd.f32 %v1980_v25, %v1224_v2 }
 0x15e   : > { %2056 = vmatprep.mubr.msk.bf16.mxu1 %vm1062_vm2, %v1041_v19  ;;  %2071 = vmatpush3.bf16.msra.mxu1 %v2113_v41 }
 0x15f   : > { %2072 = vmatprep.subr.bf16.mxu1 %v2114_v28  ;;  %v2771_v41 = vmul.f32 %v2753_v33, %v3215_v57 }
 0x162   : > { %2073 = vmatpush3.bf16.msra.mxu1 %v2114_v28  ;;  %v2774_v28 = vmul.f32 0.0, %v2738_v31 }
 0x165   : > { %2057 = vmatmul.mubr.msk.bf16.gmra.mxu1 %vm1062_vm2, %v1042_v48 }
 0x21d   : > { %v2054_v9 = vpop.f32.mrf.mxu1 }
 0x21e   : > { %v1118_v10 = vadd.f32 %v2054_v9, %v2713_v49 }
 0x21f   : > { %v1109_v11 = vpop.f32.mrf.mxu1 }
 0x220   : > { %v2726_v15 = vadd.f32 %v1214_v52, %v1118_v10  ;;  %v1110_v23 = vadd.f32 %v2713_v49, %v1109_v11 }
 0x221   : > { %v2055_v39 = vpop.f32.mrf.mxu1 }
 0x222   : > { %3217 = vst [vmem:[#allocation25_spill] sm:$0xff] %v2726_v15  ;;  %v1256_v46 = vrot.slane %v2726_v15, 7  ;;  %v2744_v4 = vadd.f32 %v1206_v32, %v1110_v23  ;;  %v1121_v40 = vadd.f32 %v2055_v39, %v2713_v49  ;;  %v1318_v18 = vrot.slane %v2726_v15, 1 }
 0x223   : > { %v1112_v22 = vpop.f32.mrf.mxu1  ;;  %v1302_v8 = vmul.f32 %v2704_v53, %v2726_v15  ;;  %v2791_v44 = vmul.f32 %v2734_v59, %v2726_v15  ;;  %v2795_v45 = vmul.f32 %v2738_v31, %v2726_v15 }
 0x224   : > { %3220 = vst [vmem:[#allocation26_spill] sm:$0xff] %v2744_v4  ;;  %v2756_v21 = vsel %vm586_vm0, 0.0, %v1256_v46  ;;  %v1254_v17 = vrot.slane %v2744_v4, 7  ;;  %v1113_v19 = vadd.f32 %v2713_v49, %v1112_v22  ;;  %v1316_v0 = vrot.slane %v2744_v4, 1 }
 0x225   : > { %v2058_v24 = vpop.f32.mrf.mxu1  ;;  %v2762_v1 = vadd.f32 %v1217_v34, %v1121_v40  ;;  %v1282_v54 = vmul.f32 %v2700_v43, %v2756_v21  ;;  %v1300_v37 = vmul.f32 %v2704_v53, %v2744_v4  ;;  %v2787_v25 = vsel %vm1331_vm3, %v1318_v18, 0.0 }
 0x226   : > { %v1268_v48 = vsel %vm586_vm0, 0.0, %v1254_v17  ;;  %v2784_v42 = vadd.f32 %v1209_v60, %v1113_v19  ;;  %v1333_v51 = vsel %vm1331_vm3, %v1316_v0, 0.0  ;;  %v2801_v57 = vmul.f32 %v2742_v13, %v2756_v21  ;;  %v2840_v17 = vld [vmem:[%s3106_s9 + $0x8] ss:$0 sm:$0xff] }
 0x227   : > { %3223 = vst [vmem:[#allocation27_spill] sm:$0xff] %v2762_v1  ;;  %v1280_v35 = vmul.f32 %v2700_v43, %v1268_v48  ;;  %v1368_v55 = vmul.f32 %v2742_v13, %v1268_v48  ;;  %v1257_v36 = vrot.slane %v2762_v1, 7  ;;  %v1319_v38 = vrot.slane %v2762_v1, 1  ;;  %v1125_v12 = vpop.f32.mrf.mxu1 }
 0x228   : > { %3224 = vst [vmem:[#allocation28_spill] sm:$0xff] %v2784_v42  ;;  %v1134_v14 = vadd.f32 %v2058_v24, %v2713_v49  ;;  %v2804_v9 = vadd.f32 %v1302_v8, %v1282_v54  ;;  %v1388_v10 = vmul.f32 %v2734_v59, %v2744_v4  ;;  %v2811_v50 = vmul.f32 %v2720_v56, %v2787_v25 }
 0x229   : > { %v1271_v52 = vsel %vm586_vm0, 0.0, %v1257_v36  ;;  %v1308_v16 = vadd.f32 %v1300_v37, %v1280_v35  ;;  %v1376_v58 = vadd.f32 %v1368_v55, %v1352_v63  ;;  %v1345_v23 = vmul.f32 %v2720_v56, %v1333_v51  ;;  %v2059_v34 = vpop.f32.mrf.mxu1 }
 0x22a   : > { %v1283_v11 = vmul.f32 %v2700_v43, %v1271_v52  ;;  %v1411_v26 = vmul.f32 %v2748_v7, %v1333_v51  ;;  %v1336_v27 = vsel %vm1331_vm3, %v1319_v38, 0.0  ;;  %v1255_v32 = vrot.slane %v2784_v42, 7 }
 0x22b   : > { %v1303_v39 = vmul.f32 %v2704_v53, %v2762_v1  ;;  %v2820_v46 = vmul.f32 %v2742_v13, %v1271_v52  ;;  %v2824_v47 = vmul.f32 %v2734_v59, %v2762_v1  ;;  %v2827_v60 = vmul.f32 %v2753_v33, %v1271_v52 }
 0x22c   : > { %v1353_v61 = vadd.f32 %v1345_v23, %v1308_v16  ;;  %v1396_v62 = vadd.f32 %v1388_v10, %v1376_v58  ;;  %v2830_v40 = vsel %vm586_vm0, 0.0, %v1255_v32  ;;  %v2832_v22 = vadd.f32 %v1230_v29, %v1134_v14  ;;  %v1128_v58 = vpop.f32.mrf.mxu1 }
 0x22d   : > { %v1311_v2 = vadd.f32 %v1303_v39, %v1283_v11  ;;  %v1348_v63 = vmul.f32 %v2720_v56, %v1336_v27  ;;  %v1126_v5 = vadd.f32 %v2713_v49, %v1125_v12  ;;  %v1137_v18 = vadd.f32 %v2059_v34, %v2713_v49 }
 0x22e   : > { %3225 = vst [vmem:[#allocation29_spill] sm:$0xff] %v2832_v22  ;;  %v2843_v19 = vmul.f32 %v2748_v7, %v1336_v27  ;;  %v2847_v24 = vmul.f32 %v2738_v31, %v2762_v1  ;;  %v1369_v29 = vmul.f32 %v2742_v13, %v2830_v40  ;;  %v1260_v0 = vrot.slane %v2832_v22, 7 }
 0x22f   : > { %v2853_v8 = vmul.f32 %v2840_v17, %v1336_v27  ;;  %v1281_v48 = vmul.f32 %v2700_v43, %v2830_v40  ;;  %v1322_v54 = vrot.slane %v2832_v22, 1  ;;  %v2858_v35 = vadd.f32 %v1222_v20, %v1126_v5 }
 0x230   : > { %v2860_v55 = vadd.f32 %v1411_v26, %v1396_v62  ;;  %v1301_v36 = vmul.f32 %v2704_v53, %v2784_v42  ;;  %v1274_v37 = vsel %vm586_vm0, 0.0, %v1260_v0  ;;  %v2865_v38 = vadd.f32 %v1233_v6, %v1137_v18 }
 0x231   : > { %3226 = vst [vmem:[#allocation3_spill] sm:$0xff] %v2858_v35  ;;  %v1356_v12 = vadd.f32 %v1348_v63, %v1311_v2  ;;  %v1317_v51 = vrot.slane %v2784_v42, 1  ;;  %v1389_v52 = vmul.f32 %v2734_v59, %v2784_v42  ;;  %v1286_v16 = vmul.f32 %v2700_v43, %v1274_v37 }
 0x232   : > { %v1377_v20 = vadd.f32 %v1369_v29, %v1353_v61  ;;  %v2873_v14 = vmul.f32 %v2738_v31, %v2784_v42  ;;  %v1306_v10 = vmul.f32 %v2704_v53, %v2832_v22  ;;  %v1258_v6 = vrot.slane %v2858_v35, 7 }
 0x233   : > { %v1309_v11 = vadd.f32 %v1301_v36, %v1281_v48  ;;  %v1339_v23 = vsel %vm1331_vm3, %v1322_v54, 0.0  ;;  %v2881_v26 = vmul.f32 %v2734_v59, %v2832_v22  ;;  %v1320_v27 = vrot.slane %v2858_v35, 1 }
 0x234   : > { %v1314_v32 = vadd.f32 %v1306_v10, %v1286_v16  ;;  %v1272_v34 = vsel %vm586_vm0, 0.0, %v1258_v6  ;;  %v1361_v39 = vrot.slane %v2865_v38, 7  ;;  %v1129_v61 = vadd.f32 %v2713_v49, %v1128_v58 }
 0x235   : > { %v2889_v62 = vmul.f32 %v2738_v31, %v2832_v22  ;;  %v1284_v2 = vmul.f32 %v2700_v43, %v1272_v34  ;;  %v1304_v63 = vmul.f32 %v2704_v53, %v2858_v35  ;;  %v1372_v5 = vmul.f32 %v2742_v13, %v1272_v34 }
 0x236   : > { %v1397_v18 = vadd.f32 %v1389_v52, %v1377_v20  ;;  %v1374_v29 = vmul.f32 %v2742_v13, %v1274_v37  ;;  %v2897_v0 = vsel %vm1331_vm3, %v1320_v27, 0.0  ;;  %v1351_v48 = vmul.f32 %v2720_v56, %v1339_v23 }
 0x237   : > { %v1312_v49 = vadd.f32 %v1304_v63, %v1284_v2  ;;  %v1380_v54 = vadd.f32 %v1372_v5, %v1356_v12  ;;  %v1363_v36 = vsel %vm586_vm0, 0.0, %v1361_v39  ;;  %v1404_v16 = vrot.slane %v2865_v38, 1 }
 0x238   : > { %v1392_v58 = vmul.f32 %v2734_v59, %v2858_v35  ;;  %v1359_v10 = vadd.f32 %v1351_v48, %v1314_v32  ;;  %v1375_v6 = vmul.f32 %v2742_v13, %v1363_v36  ;;  %v2906_v52 = vadd.f32 %v2764_v30, %v1129_v61 }
 0x239   : > { %v1417_v20 = vmul.f32 %v2748_v7, %v1339_v23  ;;  %v1436_v27 = vmul.f32 %v2753_v33, %v1274_v37  ;;  %v2911_v2 = vmul.f32 %v2840_v17, %v1339_v23  ;;  %v1349_v12 = vmul.f32 %v2720_v56, %v2897_v0 }
 0x23a   : > { %v1400_v39 = vadd.f32 %v1392_v58, %v1380_v54  ;;  %v2917_v63 = vmul.f32 %v2738_v31, %v2858_v35  ;;  %v1259_v32 = vrot.slane %v2906_v52, 7  ;;  %v1334_v30 = vsel %vm1331_vm3, %v1317_v51, 0.0 }
 0x23b   : > { %3227 = vst [vmem:[#allocation20_spill] sm:$0xff] %v2911_v2  ;;  %v1357_v61 = vadd.f32 %v1349_v12, %v1312_v49  ;;  %v1395_v5 = vmul.f32 %v2734_v59, %v2865_v38  ;;  %v1406_v37 = vsel %vm1331_vm3, %v1404_v16, 0.0  ;;  %v1321_v23 = vrot.slane %v2906_v52, 1 }
 0x23c   : > { %v1415_v48 = vmul.f32 %v2748_v7, %v2897_v0  ;;  %v1383_v54 = vadd.f32 %v1375_v6, %v1359_v10  ;;  %v1273_v58 = vsel %vm586_vm0, 0.0, %v1259_v32  ;;  %v1305_v35 = vmul.f32 %v2704_v53, %v2906_v52 }
 0x23d   : > { %v1285_v22 = vmul.f32 %v2700_v43, %v1273_v58  ;;  %v1338_v51 = vsel %vm1331_vm3, %v1321_v23, 0.0  ;;  %v1373_v49 = vmul.f32 %v2742_v13, %v1273_v58  ;;  %v1346_v12 = vmul.f32 %v2720_v56, %v1334_v30 }
 0x23e   : > { %v1423_v16 = vadd.f32 %v1415_v48, %v1400_v39  ;;  %v1434_v42 = vmul.f32 %v2753_v33, %v1272_v34  ;;  %v1418_v1 = vmul.f32 %v2748_v7, %v1406_v37  ;;  %v1393_v10 = vmul.f32 %v2734_v59, %v2906_v52 }
 0x23f   : > { %v1313_v6 = vadd.f32 %v1305_v35, %v1285_v22  ;;  %v1350_v32 = vmul.f32 %v2720_v56, %v1338_v51  ;;  %v1381_v53 = vadd.f32 %v1373_v49, %v1357_v61  ;;  %v1354_v4 = vadd.f32 %v1346_v12, %v1309_v11 }
 0x240   : > { %v1403_v43 = vadd.f32 %v1395_v5, %v1383_v54  ;;  %v1435_v23 = vmul.f32 %v2753_v33, %v1273_v58  ;;  %v1355_v13 = vadd.f32 %v2811_v50, %v2804_v9  ;;  %v1412_v39 = vmul.f32 %v2748_v7, %v1334_v30 }
 0x241   : > { %v1358_v48 = vadd.f32 %v1350_v32, %v1313_v6  ;;  %v1401_v34 = vadd.f32 %v1393_v10, %v1381_v53  ;;  %v1416_v15 = vmul.f32 %v2748_v7, %v1338_v51  ;;  %v1378_v2 = vadd.f32 %v2801_v57, %v1354_v4 }
 0x242   : > { %v1443_v59 = vadd.f32 %v1435_v23, %v1423_v16  ;;  %v1379_v22 = vadd.f32 %v2820_v46, %v1355_v13  ;;  %v1420_v56 = vadd.f32 %v1412_v39, %v1397_v18  ;;  %v1431_v35 = vmul.f32 %v2753_v33, %v2830_v40  ;;  %v3228_v10 = vld [vmem:[#allocation20_spill] sm:$0xff] }
 0x243   : > { %v1382_v11 = vadd.f32 %v1374_v29, %v1358_v48  ;;  %v1424_v61 = vadd.f32 %v1416_v15, %v1401_v34  ;;  %v1398_v5 = vadd.f32 %v2791_v44, %v1378_v2  ;;  %v1413_v9 = vmul.f32 %v2748_v7, %v2787_v25 }
 0x244   : > { %v1426_v50 = vadd.f32 %v1418_v1, %v1403_v43  ;;  %v1399_v54 = vadd.f32 %v2824_v47, %v1379_v22  ;;  %v1432_v4 = vmul.f32 %v2753_v33, %v2756_v21  ;;  %v1439_v57 = vadd.f32 %v1431_v35, %v2860_v55 }
 0x245   : > { %v1402_v46 = vadd.f32 %v2881_v26, %v1382_v11  ;;  %v1444_v18 = vadd.f32 %v1436_v27, %v1424_v61  ;;  %v1455_v40 = vmul.f32 %v2738_v31, %v2906_v52  ;;  %v1421_v15 = vadd.f32 %v1413_v9, %v1398_v5 }
 0x246   : > { %v1437_v44 = vmul.f32 %v2753_v33, %v1363_v36  ;;  %v1457_v7 = vmul.f32 %v2738_v31, %v2865_v38  ;;  %v1422_v1 = vadd.f32 %v2843_v19, %v1399_v54  ;;  %v1440_v47 = vadd.f32 %v1432_v4, %v1420_v56 }
 0x247   : > { %v1425_v29 = vadd.f32 %v1417_v20, %v1402_v46  ;;  %v1463_v2 = vadd.f32 %v1455_v40, %v1443_v59  ;;  %v1441_v21 = vadd.f32 %v2827_v60, %v1421_v15  ;;  %v1459_v55 = vadd.f32 %v2873_v14, %v1439_v57  ;;  %v1987_v60 = vld [vmem:[%s3107_s10] ss:$0 sm:$0xff] }
 0x248   : > { %v1446_v26 = vadd.f32 %v2771_v41, %v1426_v50  ;;  %v1475_v27 = vmul.f32 %v2840_v17, %v1338_v51  ;;  %v1442_v58 = vadd.f32 %v1434_v42, %v1422_v1  ;;  %v1460_v49 = vadd.f32 %v2795_v45, %v1440_v47 }
 0x249   : > { %v1445_v33 = vadd.f32 %v1437_v44, %v1425_v29  ;;  %v1464_v36 = vadd.f32 %v2889_v62, %v1444_v18  ;;  %v1461_v31 = vadd.f32 %v2847_v24, %v1441_v21  ;;  %v1471_v19 = vmul.f32 %v2840_v17, %v1334_v30 }
 0x24a   : > { %v1474_v20 = vmul.f32 %v2840_v17, %v2897_v0  ;;  %v1477_v41 = vmul.f32 %v2840_v17, %v1406_v37  ;;  %v1462_v42 = vadd.f32 %v2917_v63, %v1442_v58  ;;  %v1472_v45 = vmul.f32 %v2840_v17, %v2787_v25 }
 0x24b   : > { %v1465_v14 = vadd.f32 %v1457_v7, %v1445_v33  ;;  %v1483_v62 = vadd.f32 %v1475_v27, %v1463_v2  ;;  %v1479_v51 = vadd.f32 %v1471_v19, %v1459_v55  ;;  %v1481_v24 = vadd.f32 %v2853_v8, %v1461_v31 }
 0x24c   : > { %v1478_v30 = vmul.f32 %v2840_v17, %v2723_v3  ;;  %v1466_v0 = vadd.f32 %v2774_v28, %v1446_v26  ;;  %v1480_v12 = vadd.f32 %v1472_v45, %v1460_v49  ;;  %v1482_v16 = vadd.f32 %v1474_v20, %v1462_v42 }
 0x24d   : > { %v1484_v6 = vadd.f32 %v3228_v10, %v1464_v36  ;;  %v1485_v37 = vadd.f32 %v1477_v41, %v1465_v14  ;;  %v2984_v32 = vadd.f32 %v1987_v60, %v1479_v51  ;;  %v2986_v63 = vadd.f32 %v1987_v60, %v1481_v24 }
 0x24e   : > { %v2988_v25 = vadd.f32 %v1987_v60, %v1480_v12  ;;  %v2990_v53 = vadd.f32 %v1987_v60, %v1482_v16  ;;  %v2992_v43 = vadd.f32 %v1987_v60, %v1483_v62  ;;  %v1486_v39 = vadd.f32 %v1478_v30, %v1466_v0 }
 0x24f   : > { %v1501_v3 = vsel %vm1062_vm2, %v2984_v32, 0.0  ;;  %v1522_v28 = vmul.f32 %v2984_v32, %v2984_v32  ;;  %v1504_v8 = vsel %vm1062_vm2, %v2986_v63, 0.0  ;;  %v1524_v13 = vmul.f32 %v2986_v63, %v2986_v63 }
 0x250   : > { %v1502_v17 = vsel %vm1062_vm2, %v2988_v25, 0.0  ;;  %v1523_v23 = vmul.f32 %v2988_v25, %v2988_v25  ;;  %v3006_v48 = vadd.f32 %v1987_v60, %v1484_v6  ;;  %v3008_v34 = vadd.f32 %v1987_v60, %v1485_v37 }
 0x251   : > { %v1503_v59 = vadd.f32 %v1502_v17, %v1501_v3  ;;  %v1525_v22 = vmul.f32 %v2990_v53, %v2990_v53  ;;  %v1530_v56 = vsel %vm1062_vm2, %v1522_v28, 0.0  ;;  %v1533_v11 = vsel %vm1062_vm2, %v1524_v13, 0.0 }
 0x252   : > { %v1531_v35 = vsel %vm1062_vm2, %v1523_v23, 0.0  ;;  %v1526_v9 = vmul.f32 %v2992_v43, %v2992_v43  ;;  %v1506_v50 = vsel %vm1062_vm2, %v2990_v53, 0.0  ;;  %v3019_v54 = vadd.f32 %v1987_v60, %v1486_v39 }
 0x253   : > { %v1505_v61 = vadd.f32 %v1504_v8, %v1503_v59  ;;  %v1532_v5 = vadd.f32 %v1531_v35, %v1530_v56  ;;  %v1508_v46 = vsel %vm1062_vm2, %v2992_v43, 0.0  ;;  %v1527_v18 = vmul.f32 %v3006_v48, %v3006_v48 }
 0x254   : > { %v1528_v40 = vmul.f32 %v3008_v34, %v3008_v34  ;;  %v1535_v15 = vsel %vm1062_vm2, %v1525_v22, 0.0  ;;  %v1510_v1 = vsel %vm1062_vm2, %v3006_v48, 0.0  ;;  %v1512_v47 = vsel %vm1062_vm2, %v3008_v34, 0.0 }
 0x255   : > { %v1507_v4 = vadd.f32 %v1506_v50, %v1505_v61  ;;  %v1534_v57 = vadd.f32 %v1533_v11, %v1532_v5  ;;  %v1537_v29 = vsel %vm1062_vm2, %v1526_v9, 0.0  ;;  %v1529_v55 = vmul.f32 %v3019_v54, %v3019_v54 }
 0x256   : > { %v1539_v26 = vsel %vm1062_vm2, %v1527_v18, 0.0  ;;  %v1541_v27 = vsel %vm1062_vm2, %v1528_v40, 0.0  ;;  %v1514_v33 = vsel %vm1062_vm2, %v3019_v54, 0.0  ;;  %v2116_v18 = vld [vmem:[%s3110_s13 + $0x10] sm:$0xff]   ;;  %v1988_v40 = vld [vmem:[%s3109_s12] ss:$0 sm:$0xff] }
 0x257   : > { %v1509_v44 = vadd.f32 %v1508_v46, %v1507_v4  ;;  %v1536_v7 = vadd.f32 %v1535_v15, %v1534_v57  ;;  %v1543_v19 = vsel %vm1062_vm2, %v1529_v55, 0.0  ;;  %v2115_v46 = vld [vmem:[%s3110_s13 + $0x18] sm:$0xff]  }
 0x258   : > { %2082 = vmatprep.subr.bf16.mxu0 %v2115_v46 }
 0x259   : > { %v1511_v2 = vadd.f32 %v1510_v1, %v1509_v44  ;;  %v1538_v21 = vadd.f32 %v1537_v29, %v1536_v7  ;;  %2083 = vmatpush3.bf16.msra.mxu0 %v2115_v46 }
 0x25a   : > { %2084 = vmatprep.subr.bf16.mxu0 %v2116_v18 }
 0x25b   : > { %v1513_v58 = vadd.f32 %v1512_v47, %v1511_v2  ;;  %v1540_v49 = vadd.f32 %v1539_v26, %v1538_v21 }
 0x25d   : > { %v1515_v36 = vadd.f32 %v1514_v33, %v1513_v58  ;;  %v1542_v31 = vadd.f32 %v1541_v27, %v1540_v49  ;;  %2085 = vmatpush3.bf16.msra.mxu0 %v2116_v18 }
 0x25f   : > { %v1516_v20 = vrot.slane %v1515_v36, 4  ;;  %v1544_v60 = vadd.f32 %v1543_v19, %v1542_v31 }
 0x261   : > { %v1517_v41 = vadd.f32 %v1516_v20, %v1515_v36  ;;  %v1545_v42 = vrot.slane %v1544_v60, 4 }
 0x263   : > { %v1518_v45 = vrot.slane %v1517_v41, 2  ;;  %v1546_v14 = vadd.f32 %v1545_v42, %v1544_v60 }
 0x265   : > { %v1519_v62 = vadd.f32 %v1518_v45, %v1517_v41  ;;  %v1547_v51 = vrot.slane %v1546_v14, 2 }
 0x267   : > { %v1520_v24 = vrot.slane %v1519_v62, 1  ;;  %v1548_v30 = vadd.f32 %v1547_v51, %v1546_v14 }
 0x269   : > { %v1521_v0 = vadd.f32 %v1520_v24, %v1519_v62  ;;  %v1549_v12 = vrot.slane %v1548_v30, 1 }
 0x26b   : > { %v1550_v16 = vadd.f32 %v1549_v12, %v1548_v30  ;;  %v1551_v10 = vmul.f32 0.015625, %v1521_v0 }
 0x26d   : > { %v1552_v6 = vmul.f32 0.015625, %v1550_v16  ;;  %v1553_v37 = vmul.f32 %v1551_v10, %v1551_v10  ;;  %v1556_v8 = vsub.f32 %v2984_v32, %v1551_v10  ;;  %v1557_v23 = vsub.f32 %v2988_v25, %v1551_v10 }
 0x26e   : > { %v1558_v13 = vsub.f32 %v2986_v63, %v1551_v10  ;;  %v1559_v39 = vsub.f32 %v2990_v53, %v1551_v10  ;;  %v1560_v22 = vsub.f32 %v2992_v43, %v1551_v10  ;;  %v1561_v56 = vsub.f32 %v3006_v48, %v1551_v10 }
 0x26f   : > { %v1554_v3 = vsub.f32 %v1552_v6, %v1553_v37  ;;  %v1562_v63 = vsub.f32 %v3008_v34, %v1551_v10  ;;  %v1563_v25 = vsub.f32 %v3019_v54, %v1551_v10  ;;  %v2117_v34 = vld [vmem:[%s3110_s13 + $0x8] sm:$0xff]   ;;  %v2118_v54 = vld [vmem:[%s3110_s13] sm:$0xff]  }
 0x270   : > { %2086 = vmatprep.subr.bf16.mxu0 %v2117_v34 }
 0x271   : > { %v1555_v28 = vmax.f32 %v1554_v3, 0.0  ;;  %2087 = vmatpush3.bf16.msra.mxu0 %v2117_v34 }
 0x272   : > { %2088 = vmatprep.subr.bf16.mxu0 %v2118_v54 }
 0x273   : > { %v1564_v17 = vadd.f32 1e-05, %v1555_v28 }
 0x275   : > { %2137 = vrsqrt.f32 %v1564_v17  ;;  %2089 = vmatpush3.bf16.msra.mxu0 %v2118_v54  ;;  %v1995_v54 = vld [vmem:[%s3111_s14] ss:$0 sm:$0xff] }
 0x282   : > { %v2138_v59 = vpop.eup %2137 }
 0x283   : > { %v1566_v35 = vmul.f32 %v2138_v59, %v1556_v8  ;;  %v1567_v11 = vmul.f32 %v2138_v59, %v1557_v23  ;;  %v1568_v61 = vmul.f32 %v2138_v59, %v1558_v13  ;;  %v1569_v5 = vmul.f32 %v2138_v59, %v1559_v39 }
 0x284   : > { %v1570_v9 = vmul.f32 %v2138_v59, %v1560_v22  ;;  %v1571_v50 = vmul.f32 %v2138_v59, %v1561_v56  ;;  %v1572_v53 = vmul.f32 %v2138_v59, %v1562_v63  ;;  %v1573_v43 = vmul.f32 %v2138_v59, %v1563_v25 }
 0x285   : > { %v1578_v4 = vpack.c.bf16 %v1567_v11, %v1566_v35  ;;  %v1579_v57 = vpack.c.bf16 %v1569_v5, %v1568_v61 }
 0x286   : > { %v1580_v32 = vpack.c.bf16 %v1571_v50, %v1570_v9  ;;  %v1581_v48 = vpack.c.bf16 %v1573_v43, %v1572_v53 }
 0x287   : > { %2074 = vmatprep.mubr.msk.bf16.mxu1 %vm1062_vm2, %v1578_v4 }
 0x288   : > { %2075 = vmatmul.mubr.msk.bf16.vlgmr.msra.gmra.mxu1 %vm1062_vm2, %v1579_v57 }
 0x289   : > { %2078 = vmatprep.mubr.msk.bf16.mxu1 %vm1062_vm2, %v1580_v32 }
 0x290   : > { %2079 = vmatmul.mubr.msk.bf16.gmra.mxu1 %vm1062_vm2, %v1581_v48 }
 0x348   : > { %v2076_v15 = vpop.f32.mrf.mxu1 }
 0x349   : > { %v1656_v44 = vadd.f32 %v2076_v15, %v1988_v40 }
 0x34a   : > { %v1647_v7 = vpop.f32.mrf.mxu1 }
 0x34b   : > { %v1648_v1 = vadd.f32 %v1988_v40, %v1647_v7  ;;  %v1688_v47 = vmul.f32 0.70710677, %v1656_v44  ;;  %v1680_v17 = vmul.f32 0.5, %v1656_v44  ;;  %v3229_v7 = vld [vmem:[#allocation25_spill] sm:$0xff] }
 0x34c   : > { %v2077_v29 = vpop.f32.mrf.mxu1 }
 0x34d   : > { %v1686_v2 = vmul.f32 0.70710677, %v1648_v1  ;;  %v1659_v21 = vadd.f32 %v2077_v29, %v1988_v40  ;;  %v1678_v37 = vmul.f32 0.5, %v1648_v1 }
 0x34e   : > { %v1650_v55 = vpop.f32.mrf.mxu1 }
 0x34f   : > { %2139 = verf.f32 %v1686_v2  ;;  %v1689_v26 = vmul.f32 0.70710677, %v1659_v21  ;;  %v1651_v27 = vadd.f32 %v1988_v40, %v1650_v55  ;;  %v1681_v6 = vmul.f32 0.5, %v1659_v21  ;;  %v3230_v2 = vld [vmem:[#allocation26_spill] sm:$0xff] }
 0x350   : > { %2141 = verf.f32 %v1688_v47  ;;  %v2080_v58 = vpop.f32.mrf.mxu1 }
 0x351   : > { %2143 = verf.f32 %v1689_v26  ;;  %v1687_v49 = vmul.f32 0.70710677, %v1651_v27  ;;  %v1672_v33 = vadd.f32 %v2080_v58, %v1988_v40  ;;  %v1679_v3 = vmul.f32 0.5, %v1651_v27  ;;  %v3231_v27 = vld [vmem:[#allocation27_spill] sm:$0xff] }
 0x352   : > { %v1663_v36 = vpop.f32.mrf.mxu1 }
 0x353   : > { %2145 = verf.f32 %v1687_v49  ;;  %v1664_v31 = vadd.f32 %v1988_v40, %v1663_v36  ;;  %v1692_v19 = vmul.f32 0.70710677, %v1672_v33  ;;  %v1684_v25 = vmul.f32 0.5, %v1672_v33  ;;  %v3232_v36 = vld [vmem:[#allocation28_spill] sm:$0xff] }
 0x354   : > { %v2081_v20 = vpop.f32.mrf.mxu1 }
 0x355   : > { %v1690_v60 = vmul.f32 0.70710677, %v1664_v31  ;;  %v1675_v41 = vadd.f32 %v2081_v20, %v1988_v40  ;;  %v1682_v57 = vmul.f32 0.5, %v1664_v31 }
 0x356   : > { %v1666_v42 = vpop.f32.mrf.mxu1 }
 0x357   : > { %2147 = verf.f32 %v1690_v60  ;;  %v1693_v45 = vmul.f32 0.70710677, %v1675_v41  ;;  %v1667_v14 = vadd.f32 %v1988_v40, %v1666_v42  ;;  %v1685_v4 = vmul.f32 0.5, %v1675_v41  ;;  %v3233_v60 = vld [vmem:[#allocation29_spill] sm:$0xff] }
 0x358   : > { %2149 = verf.f32 %v1692_v19 }
 0x359   : > { %2151 = verf.f32 %v1693_v45  ;;  %v1691_v62 = vmul.f32 0.70710677, %v1667_v14  ;;  %v1683_v32 = vmul.f32 0.5, %v1667_v14  ;;  %v3234_v14 = vld [vmem:[#allocation3_spill] sm:$0xff] }
 0x35b   : > { %2153 = verf.f32 %v1691_v62 }
 0x35c   : > { %v2140_v51 = vpop.eup %2139 }
 0x35d   : > { %v2142_v24 = vpop.eup %2141  ;;  %v1702_v0 = vadd.f32 1.0, %v2140_v51 }
 0x35e   : > { %v2144_v30 = vpop.eup %2143  ;;  %v1704_v10 = vadd.f32 1.0, %v2142_v24 }
 0x35f   : > { %v1705_v12 = vadd.f32 1.0, %v2144_v30  ;;  %v1710_v23 = vmul.f32 %v1702_v0, %v1678_v37 }
 0x360   : > { %v2146_v16 = vpop.eup %2145  ;;  %v1712_v59 = vmul.f32 %v1704_v10, %v1680_v17 }
 0x361   : > { %v1703_v28 = vadd.f32 1.0, %v2146_v16  ;;  %v1713_v8 = vmul.f32 %v1705_v12, %v1681_v6 }
 0x363   : > { %v1711_v13 = vmul.f32 %v1703_v28, %v1679_v3  ;;  %v1727_v11 = vpack.c.bf16 %v1713_v8, %v1712_v59 }
 0x364   : > { %v2148_v39 = vpop.eup %2147 }
 0x365   : > { %v2150_v22 = vpop.eup %2149  ;;  %v1726_v56 = vpack.c.bf16 %v1711_v13, %v1710_v23  ;;  %v1706_v61 = vadd.f32 1.0, %v2148_v39 }
 0x366   : > { %v2152_v35 = vpop.eup %2151  ;;  %v1708_v50 = vadd.f32 1.0, %v2150_v22 }
 0x367   : > { %v1709_v5 = vadd.f32 1.0, %v2152_v35  ;;  %2090 = vmatprep.mubr.msk.bf16.mxu0 %vm1761_vm4, %v1726_v56  ;;  %v1714_v43 = vmul.f32 %v1706_v61, %v1682_v57 }
 0x368   : > { %v2154_v9 = vpop.eup %2153  ;;  %2091 = vmatmul.mubr.msk.bf16.vlgmr.msra.gmra.mxu0 %vm1761_vm4, %v1727_v11  ;;  %v1716_v46 = vmul.f32 %v1708_v50, %v1684_v25 }
 0x369   : > { %v1707_v63 = vadd.f32 1.0, %v2154_v9  ;;  %v1717_v53 = vmul.f32 %v1709_v5, %v1685_v4 }
 0x36b   : > { %v1715_v48 = vmul.f32 %v1707_v63, %v1683_v32  ;;  %v1729_v34 = vpack.c.bf16 %v1717_v53, %v1716_v46 }
 0x36d   : > { %v1728_v18 = vpack.c.bf16 %v1715_v48, %v1714_v43 }
 0x36f   : > { %2094 = vmatprep.mubr.msk.bf16.mxu0 %vm1761_vm4, %v1728_v18 }
 0x370   : > { %2095 = vmatmul.mubr.msk.bf16.gmra.mxu0 %vm1761_vm4, %v1729_v34 }
 0x428   : > { %v2092_v40 = vpop.f32.mrf.mxu0 }
 0x429   : > { %v1817_v15 = vadd.f32 %v2092_v40, %v1995_v54 }
 0x42a   : > { %v1808_v44 = vpop.f32.mrf.mxu0 }
 0x42b   : > { %v1841_v1 = vadd.f32 %v1817_v15, %v3229_v7  ;;  %v1809_v47 = vadd.f32 %v1995_v54, %v1808_v44 }
 0x42c   : > { %v2093_v29 = vpop.f32.mrf.mxu0 }
 0x42d   : > { %1849 = vst.msk [vmem:[%s494_s30 + $0x10] sm:$0xff] %vm1062_vm2, %v1841_v1  ;;  %v1839_v21 = vadd.f32 %v1809_v47, %v3230_v2  ;;  %v1820_v55 = vadd.f32 %v2093_v29, %v1995_v54 }
 0x42e   : > { %v1811_v26 = vpop.f32.mrf.mxu0 }
 0x42f   : > { %1847 = vst.msk [vmem:[%s494_s30] sm:$0xff] %vm1062_vm2, %v1839_v21  ;;  %v1842_v58 = vadd.f32 %v1820_v55, %v3231_v27  ;;  %v1812_v49 = vadd.f32 %v1995_v54, %v1811_v26 }
 0x430   : > { %v2096_v33 = vpop.f32.mrf.mxu0 }
 0x431   : > { %1850 = vst.msk [vmem:[%s494_s30 + $0x18] sm:$0xff] %vm1062_vm2, %v1842_v58  ;;  %v1840_v31 = vadd.f32 %v1812_v49, %v3232_v36  ;;  %v1833_v19 = vadd.f32 %v2096_v33, %v1995_v54 }
 0x432   : > { %v1824_v20 = vpop.f32.mrf.mxu0 }
 0x433   : > { %1848 = vst.msk [vmem:[%s494_s30 + $0x8] sm:$0xff] %vm1062_vm2, %v1840_v31  ;;  %v1845_v41 = vadd.f32 %v1833_v19, %v3233_v60  ;;  %v1825_v42 = vadd.f32 %v1995_v54, %v1824_v20 }
 0x434   : > { %v2097_v45 = vpop.f32.mrf.mxu0 }
 0x435   : > { %1853 = vst.msk [vmem:[%s494_s30 + $0x30] sm:$0xff] %vm1062_vm2, %v1845_v41  ;;  %v1843_v62 = vadd.f32 %v1825_v42, %v3234_v14  ;;  %v1836_v51 = vadd.f32 %v2097_v45, %v1995_v54 }
 0x436   : > { %v1827_v24 = vpop.f32.mrf.mxu0 }
 0x437   : > { %1851 = vst.msk [vmem:[%s494_s30 + $0x20] sm:$0xff] %vm1062_vm2, %v1843_v62  ;;  %v1846_v30 = vadd.f32 %v1836_v51, %v2865_v38  ;;  %v1828_v0 = vadd.f32 %v1995_v54, %v1827_v24 }
 0x439   : > { %1854 = vst.msk [vmem:[%s494_s30 + $0x38] sm:$0xff] %vm1062_vm2, %v1846_v30  ;;  %v1844_v12 = vadd.f32 %v1828_v0, %v2906_v52 }
 0x43b   : > { %1852 = vst.msk [vmem:[%s494_s30 + $0x28] sm:$0xff] %vm1062_vm2, %v1844_v12 }
 0x43c PF: > { %s25_s18 = sadd.s32 1, %s2161_s18  }
 0x43d   : > { %p22_p4 = scmp.ge.s32.totalorder %s25_s18, 4  }
 0x43f   :  { %24 = sbr.rel (!%p22_p4) target bundleno = 1 (0x1), region = 141 }

// kernel: mednext_encoder_forward.7
= control target key start
LH: loop header
LB: loop body
LE: loop exit
PB: predicated region body
PF: predicated region fallthrough
CT: control target
= control target key end

     0   :  { %s1741_s18 = smov 0   ;;  %s2101_s0 = inlined_call_operand.vmem [shape: f32[2,8,8,32], index: 0, kind: input, shape index: {}]   ;;  %s2102_s1 = inlined_call_operand.vmem [shape: f32[9,32], index: 1, kind: input, shape index: {}]   ;;  %s2103_s2 = inlined_call_operand.vmem [shape: f32[1,32], index: 2, kind: input, shape index: {}]   ;;  %s2104_s3 = inlined_call_operand.vmem [shape: bf16[32,64], index: 3, kind: input, shape index: {}]   ;;  %s2105_s4 = inlined_call_operand.vmem [shape: f32[1,64], index: 4, kind: input, shape index: {}]   ;;  %s2106_s5 = inlined_call_operand.vmem [shape: bf16[64,64], index: 5, kind: input, shape index: {}]   ;;  %s2107_s6 = inlined_call_operand.vmem [shape: f32[1,64], index: 6, kind: input, shape index: {}]   ;;  %s2108_s7 = inlined_call_operand.vmem [shape: bf16[32,64], index: 7, kind: input, shape index: {}]   ;;  %s2109_s8 = inlined_call_operand.vmem [shape: f32[1,64], index: 8, kind: input, shape index: {}]   ;;  %s2110_s9 = inlined_call_operand.vmem [shape: f32[9,64], index: 9, kind: input, shape index: {}]   ;;  %s2111_s10 = inlined_call_operand.vmem [shape: f32[1,64], index: 10, kind: input, shape index: {}]   ;;  %s2112_s11 = inlined_call_operand.vmem [shape: bf16[64,128], index: 11, kind: input, shape index: {}]   ;;  %s2113_s12 = inlined_call_operand.vmem [shape: f32[1,128], index: 12, kind: input, shape index: {}]   ;;  %s2114_s13 = inlined_call_operand.vmem [shape: bf16[128,64], index: 13, kind: input, shape index: {}]   ;;  %s2115_s14 = inlined_call_operand.vmem [shape: f32[1,64], index: 14, kind: input, shape index: {}]   ;;  %s2116_s15 = inlined_call_operand.vmem [shape: f32[2,16,64], index: 15, kind: output, shape index: {}]  }
   0x1 LB: > { %s1463_s19 = sadd.s32 4294967295, %s1657_s18   ;;  %p1467_p0 = scmp.ge.s32.totalorder %s1657_s18, 1  ;;  %s1657_s18 = sphi %s1741_s18, %s25_s18  }
   0x2   : > { %p437_p1 = scmp.lt.s32.totalorder %s1657_s18, 3 }
   0x4   : > { %p438_p2 = pnand %p1467_p0, %p437_p1 }
   0x5   : > { %p485_p3 = scmp.lt.s32.totalorder (!%p438_p2), %s1463_s19, 1 }
   0x6   : > { %441 = sbr.rel (%p438_p2) target bundleno = 1010 (0x3f2), region = 80 }
   0xb   : > { %v1619_v0 = vld [vmem:[%s2104_s3 + $0x8] sm:$0xff]   ;;  %v547_v1 = vlaneseq  ;;  %v1659_v2 = vmov 0.0   ;;  %v1620_v3 = vld [vmem:[%s2104_s3] sm:$0xff]   ;;  %vm1660_vm0 = vmmov 0   ;;  %s2124_s19 = smov (!%p485_p3, %s1463_s19), 1  ;;  %vm542_vm1 = vcmask 1040384  }
   0xc   : > { %1549 = vmatprep.subr.bf16.mxu0 %v1659_v2  ;;  %1557 = vmatprep.subr.bf16.mxu1 %v1659_v2  ;;  %v527_v5 = vld [vmem:[%s2102_s1] sm:$0xff]  ;;  %v534_v6 = vrot.slane %v1659_v2, 7  ;;  %s1522_s26 = sshll.u32 %s2124_s19, 6  ;;  %vm685_vm2 = vcmask 257024   ;;  %vm763_vm3 = vcmask 261120   ;;  %vm858_vm4 = vcmask 523264  }
   0xd   : > { %1550 = vmatpush3.bf16.msra.mxu0 %v1619_v0  ;;  %1553 = vmatprep.mubr.msk.bf16.mxu0 %vm1660_vm0, %v1659_v2  ;;  %v1760_v4 = vshrl.u32 %v547_v1, 7  ;;  %s1780_s29 = scalar_lea.vmem %s2101_s0, %s1522_s26  ;;  %vm1031_vm5 = vcmask 1042432   ;;  %vm1136_vm6 = vcmask 519168   ;;  %s1523_s21 = sshll.u32 %s2124_s19, 4 }
   0xe   : > { %1551 = vmatprep.subr.bf16.mxu0 %v1659_v2  ;;  %1565 = vmatprep.mubr.msk.bf16.mxu1 %vm1660_vm0, %v1659_v2  ;;  %v1787_v15 = vld [vmem:[%s1780_s29] ss:$2 sm:$0xf]  ;;  %v1790_v16 = vsel %vm542_vm1, 0.0, %v534_v6  ;;  %s494_s24 = scalar_lea.vmem %s2116_s15, %s1523_s21 }
   0xf   : > { %v549_v7 = vsub.s32 0, %v1760_v4  ;;  %v561_v8 = vsub.s32 1, %v1760_v4  ;;  %v613_v9 = vsub.s32 4, %v1760_v4  ;;  %v2119_v10 = vsub.s32 5, %v1760_v4 }
  0x10   : > { %v573_v11 = vsub.s32 2, %v1760_v4  ;;  %v601_v13 = vsub.s32 3, %v1760_v4  ;;  %v2117_v14 = vsub.s32 6, %v1760_v4  ;;  %v2118_v18 = vsub.s32 7, %v1760_v4 }
  0x11   : > { %1552 = vmatpush3.bf16.msra.mxu0 %v1620_v3  ;;  %v550_v12 = vrot.slane %v527_v5, %v549_v7  ;;  %v614_v17 = vrot.slane %v527_v5, %v613_v9  ;;  %v1796_v19 = vld [vmem:[%s1780_s29 + $0x10] ss:$2 sm:$0xf]  ;;  %v1799_v20 = vld [vmem:[%s1780_s29 + $0x20] ss:$2 sm:$0xf]  ;;  %v562_v21 = vrot.slane %v527_v5, %v561_v8  ;;  %v1805_v22 = vrot.slane %v527_v5, %v2119_v10 }
  0x12   : > { %1569 = vmatprep.subr.bf16.mxu0 %v1659_v2  ;;  %v1808_v23 = vld [vmem:[%s1780_s29 + $0x30] ss:$2 sm:$0xf]  ;;  %v1475_v24 = vld [vmem:[%s1780_s29 + $0x1] ss:$2 sm:$0xf]  ;;  %v574_v25 = vrot.slane %v527_v5, %v573_v11  ;;  %v602_v29 = vrot.slane %v527_v5, %v601_v13  ;;  %v1824_v30 = vrot.slane %v527_v5, %v2117_v14  ;;  %v1839_v36 = vrot.slane %v527_v5, %v2118_v18 }
  0x13   : > { %v1814_v26 = vld [vmem:[%s1780_s29 + $0x8] ss:$2 sm:$0xf]  ;;  %v1817_v27 = vld [vmem:[%s1780_s29 + $0x18] ss:$2 sm:$0xf]  ;;  %v551_v28 = vmul.f32 %v550_v12, %v1790_v16  ;;  %v615_v33 = vmul.f32 %v614_v17, %v1787_v15  ;;  %v1832_v34 = vmul.f32 %v1796_v19, %v614_v17  ;;  %v1835_v35 = vmul.f32 %v1799_v20, %v614_v17 }
  0x14   : > { %v1476_v31 = vld [vmem:[%s1780_s29 + $0x11] ss:$2 sm:$0xf]  ;;  %v1828_v32 = vld [vmem:[%s1780_s29 + $0x28] ss:$2 sm:$0xf]  ;;  %v564_v40 = vmul.f32 %v1814_v26, %v562_v21  ;;  %v618_v41 = vmul.f32 %v1808_v23, %v614_v17  ;;  %v627_v42 = vmul.f32 %v1475_v24, %v1805_v22  ;;  %v565_v46 = vmul.f32 %v1817_v27, %v562_v21 }
  0x15   : > { %v1477_v37 = vld [vmem:[%s1780_s29 + $0x21] ss:$2 sm:$0xf]  ;;  %v1843_v38 = vld [vmem:[%s1780_s29 + $0x9] ss:$2 sm:$0xf]  ;;  %v628_v43 = vmul.f32 %v1476_v31, %v1805_v22  ;;  %v566_v47 = vmul.f32 %v1828_v32, %v562_v21 }
  0x16   : > { %v1846_v39 = vld [vmem:[%s1780_s29 + $0x19] ss:$2 sm:$0xf]  ;;  %v1478_v44 = vld [vmem:[%s1780_s29 + $0x31] ss:$2 sm:$0xf]  ;;  %v576_v48 = vmul.f32 %v1843_v38, %v574_v25 }
  0x17   : > { %v1854_v45 = vld [vmem:[%s1780_s29 + $0x29] ss:$2 sm:$0xf]  ;;  %v577_v49 = vmul.f32 %v1846_v39, %v574_v25  ;;  %v535_v50 = vrot.slane %v1843_v38, 7  ;;  %v536_v51 = vrot.slane %v1846_v39, 7  ;;  %v563_v53 = vmul.f32 0.0, %v562_v21 }
  0x18   : > { %v537_v52 = vrot.slane %v1854_v45, 7  ;;  %v575_v54 = vmul.f32 0.0, %v574_v25  ;;  %v578_v55 = vmul.f32 %v1854_v45, %v574_v25  ;;  %v587_v56 = vrot.slane %v1475_v24, 7  ;;  %v1486_v62 = vld [vmem:[%s1780_s29 + $0x39] ss:$2 sm:$0xf] }
  0x19   : > { %v588_v57 = vrot.slane %v1476_v31, 7  ;;  %v544_v58 = vsel %vm542_vm1, 0.0, %v535_v50  ;;  %v545_v59 = vsel %vm542_vm1, 0.0, %v536_v51  ;;  %v567_v61 = vadd.f32 %v563_v53, %v551_v28 }
  0x1a   : > { %v546_v60 = vsel %vm542_vm1, 0.0, %v537_v52  ;;  %v552_v63 = vmul.f32 %v550_v12, %v544_v58  ;;  %v553_v0 = vmul.f32 %v550_v12, %v545_v59  ;;  %v589_v3 = vrot.slane %v1477_v37, 7 }
  0x1b   : > { %v554_v1 = vmul.f32 %v550_v12, %v546_v60  ;;  %v579_v5 = vadd.f32 %v575_v54, %v567_v61  ;;  %v590_v6 = vrot.slane %v1478_v44, 7  ;;  %v595_v17 = vsel %vm542_vm1, 0.0, %v587_v56  ;;  %v1482_v61 = vld [vmem:[%s1780_s29 + $0x38] ss:$2 sm:$0xf] }
  0x1c   : > { %v596_v21 = vsel %vm542_vm1, 0.0, %v588_v57  ;;  %v568_v24 = vadd.f32 %v564_v40, %v552_v63  ;;  %v569_v25 = vadd.f32 %v565_v46, %v553_v0  ;;  %v597_v50 = vsel %vm542_vm1, 0.0, %v589_v3  ;;  %v1487_v46 = vld [vmem:[%s2102_s1 + $0x8] ss:$0 sm:$0xff] }
  0x1d   : > { %v570_v31 = vadd.f32 %v566_v47, %v554_v1  ;;  %v598_v51 = vsel %vm542_vm1, 0.0, %v590_v6  ;;  %v603_v28 = vmul.f32 %v602_v29, %v595_v17  ;;  %v604_v52 = vmul.f32 %v602_v29, %v596_v21 }
  0x1e   : > { %v605_v53 = vmul.f32 %v602_v29, %v597_v50  ;;  %v580_v14 = vadd.f32 %v576_v48, %v568_v24  ;;  %v581_v12 = vadd.f32 %v577_v49, %v569_v25  ;;  %v606_v54 = vmul.f32 %v602_v29, %v598_v51 }
  0x1f   : > { %v582_v18 = vadd.f32 %v578_v55, %v570_v31  ;;  %v607_v10 = vadd.f32 %v603_v28, %v579_v5  ;;  %v629_v56 = vmul.f32 %v1477_v37, %v1805_v22  ;;  %v630_v57 = vmul.f32 %v1478_v44, %v1805_v22 }
  0x20   : > { %v636_v40 = vrot.slane %v1486_v62, 7  ;;  %v608_v47 = vadd.f32 %v604_v52, %v580_v14  ;;  %v609_v63 = vadd.f32 %v605_v53, %v581_v12  ;;  %v643_v1 = vmul.f32 %v1824_v30, %v544_v58 }
  0x21   : > { %v610_v0 = vadd.f32 %v606_v54, %v582_v18  ;;  %v619_v48 = vadd.f32 %v615_v33, %v607_v10  ;;  %v644_v29 = vmul.f32 %v1824_v30, %v545_v59  ;;  %v645_v55 = vmul.f32 %v1824_v30, %v546_v60 }
  0x22   : > { %v638_v49 = vsel %vm542_vm1, 0.0, %v636_v40  ;;  %v620_v37 = vadd.f32 %v1832_v34, %v608_v47  ;;  %v621_v22 = vadd.f32 %v1835_v35, %v609_v63  ;;  %v655_v14 = vmul.f32 %v1814_v26, %v1839_v36 }
  0x23   : > { %v622_v44 = vadd.f32 %v618_v41, %v610_v0  ;;  %v646_v3 = vmul.f32 %v1824_v30, %v638_v49  ;;  %v631_v5 = vadd.f32 %v627_v42, %v619_v48  ;;  %v656_v10 = vmul.f32 %v1817_v27, %v1839_v36 }
  0x24   : > { %v657_v18 = vmul.f32 %v1828_v32, %v1839_v36  ;;  %v632_v33 = vadd.f32 %v628_v43, %v620_v37  ;;  %v633_v58 = vadd.f32 %v629_v56, %v621_v22  ;;  %v658_v34 = vmul.f32 %v1482_v61, %v1839_v36  ;;  %v1488_v32 = vld [vmem:[%s2103_s2] ss:$0 sm:$0xff] }
  0x25   : > { %v634_v59 = vadd.f32 %v630_v57, %v622_v44  ;;  %v647_v60 = vadd.f32 %v643_v1, %v631_v5  ;;  %v667_v35 = vmul.f32 %v1487_v46, %v1843_v38  ;;  %v668_v30 = vmul.f32 %v1487_v46, %v1846_v39 }
  0x26   : > { %v669_v41 = vmul.f32 %v1487_v46, %v1854_v45  ;;  %v648_v42 = vadd.f32 %v644_v29, %v632_v33  ;;  %v649_v26 = vadd.f32 %v645_v55, %v633_v58  ;;  %v670_v17 = vmul.f32 %v1487_v46, %v1486_v62 }
  0x27   : > { %v650_v6 = vadd.f32 %v646_v3, %v634_v59  ;;  %v659_v27 = vadd.f32 %v655_v14, %v647_v60 }
  0x28   : > { %v660_v43 = vadd.f32 %v656_v10, %v648_v42  ;;  %v661_v21 = vadd.f32 %v657_v18, %v649_v26 }
  0x29   : > { %v662_v24 = vadd.f32 %v658_v34, %v650_v6  ;;  %v671_v36 = vadd.f32 %v667_v35, %v659_v27 }
  0x2a   : > { %v672_v25 = vadd.f32 %v668_v30, %v660_v43  ;;  %v673_v31 = vadd.f32 %v669_v41, %v661_v21 }
  0x2b   : > { %v674_v38 = vadd.f32 %v670_v17, %v662_v24  ;;  %v681_v39 = vadd.f32 %v1488_v32, %v671_v36 }
  0x2c   : > { %v682_v50 = vadd.f32 %v1488_v32, %v672_v25  ;;  %v683_v45 = vadd.f32 %v1488_v32, %v673_v31 }
  0x2d   : > { %v684_v51 = vadd.f32 %v1488_v32, %v674_v38  ;;  %v686_v28 = vsel %vm685_vm2, %v681_v39, 0.0  ;;  %v699_v62 = vmul.f32 %v681_v39, %v681_v39 }
  0x2e   : > { %v687_v52 = vsel %vm685_vm2, %v682_v50, 0.0  ;;  %v689_v53 = vsel %vm685_vm2, %v683_v45, 0.0  ;;  %v700_v12 = vmul.f32 %v682_v50, %v682_v50  ;;  %v701_v61 = vmul.f32 %v683_v45, %v683_v45 }
  0x2f   : > { %v688_v54 = vadd.f32 %v687_v52, %v686_v28  ;;  %v702_v56 = vmul.f32 %v684_v51, %v684_v51  ;;  %v703_v57 = vsel %vm685_vm2, %v699_v62, 0.0  ;;  %v691_v40 = vsel %vm685_vm2, %v684_v51, 0.0  ;;  %v1625_v52 = vld [vmem:[%s2106_s5 + $0x8] sm:$0xff]  }
  0x30   : > { %v704_v46 = vsel %vm685_vm2, %v700_v12, 0.0  ;;  %v706_v0 = vsel %vm685_vm2, %v701_v61, 0.0  ;;  %v911_v28 = vcombine.low %v1787_v15, %v1796_v19  ;;  %v912_v62 = vcombine.low %v1799_v20, %v1808_v23  ;;  %v1626_v15 = vld [vmem:[%s2106_s5] sm:$0xff]  }
  0x31   : > { %v690_v47 = vadd.f32 %v689_v53, %v688_v54  ;;  %v705_v63 = vadd.f32 %v704_v46, %v703_v57  ;;  %v708_v1 = vsel %vm685_vm2, %v702_v56, 0.0  ;;  %v1489_v19 = vld [vmem:[%s2105_s4] ss:$0 sm:$0xff] }
  0x32   : > { %v915_v53 = vpack.c.bf16 %v912_v62, %v911_v28 }
  0x33   : > { %v692_v48 = vadd.f32 %v691_v40, %v690_v47  ;;  %v707_v49 = vadd.f32 %v706_v0, %v705_v63 }
  0x35   : > { %v693_v29 = vrot.slane %v692_v48, 4  ;;  %v709_v55 = vadd.f32 %v708_v1, %v707_v49 }
  0x37   : > { %v694_v37 = vadd.f32 %v693_v29, %v692_v48  ;;  %v710_v22 = vrot.slane %v709_v55, 4 }
  0x39   : > { %v695_v44 = vrot.slane %v694_v37, 2  ;;  %v711_v3 = vadd.f32 %v710_v22, %v709_v55 }
  0x3b   : > { %v696_v5 = vadd.f32 %v695_v44, %v694_v37  ;;  %v712_v14 = vrot.slane %v711_v3, 2 }
  0x3d   : > { %v697_v10 = vrot.slane %v696_v5, 1  ;;  %v713_v18 = vadd.f32 %v712_v14, %v711_v3  ;;  %v1628_v14 = vld [vmem:[%s2112_s11 + $0x10] sm:$0xff]  }
  0x3f   : > { %v698_v33 = vadd.f32 %v697_v10, %v696_v5  ;;  %v714_v58 = vrot.slane %v713_v18, 1  ;;  %v1627_v5 = vld [vmem:[%s2112_s11 + $0x18] sm:$0xff]   ;;  %v1629_v10 = vld [vmem:[%s2112_s11 + $0x8] sm:$0xff]  }
  0x41   : > { %v715_v59 = vadd.f32 %v714_v58, %v713_v18  ;;  %v716_v34 = vmul.f32 0.0625, %v698_v33  ;;  %v1630_v18 = vld [vmem:[%s2112_s11] sm:$0xff]   ;;  %v1631_v33 = vld [vmem:[%s2114_s13 + $0x38] sm:$0xff]  }
  0x42   : > { %v981_v58 = vld [vmem:[%s2110_s9] sm:$0xff] }
  0x43   : > { %v717_v60 = vmul.f32 0.0625, %v715_v59  ;;  %v718_v35 = vmul.f32 %v716_v34, %v716_v34  ;;  %v721_v26 = vsub.f32 %v681_v39, %v716_v34  ;;  %v722_v6 = vsub.f32 %v682_v50, %v716_v34  ;;  %v1621_v39 = vld [vmem:[%s2106_s5 + $0x18] sm:$0xff]   ;;  %v1622_v50 = vld [vmem:[%s2108_s7 + $0x8] sm:$0xff]  }
  0x44   : > { %v723_v17 = vsub.f32 %v683_v45, %v716_v34  ;;  %v724_v27 = vsub.f32 %v684_v51, %v716_v34  ;;  %1558 = vmatpush3.bf16.msra.mxu1 %v1621_v39  ;;  %v1623_v45 = vld [vmem:[%s2106_s5 + $0x10] sm:$0xff]   ;;  %v1624_v51 = vld [vmem:[%s2108_s7] sm:$0xff]   ;;  %v1002_v59 = vrot.slane %v981_v58, %v549_v7  ;;  %v1014_v34 = vrot.slane %v981_v58, %v561_v8 }
  0x45   : > { %v719_v30 = vsub.f32 %v717_v60, %v718_v35  ;;  %1559 = vmatprep.subr.bf16.mxu1 %v1659_v2  ;;  %v1023_v60 = vrot.slane %v1659_v2, 1  ;;  %v1499_v35 = vld [vmem:[%s2109_s8] ss:$0 sm:$0xff]  ;;  %v1039_v7 = vrot.slane %v981_v58, %v573_v11 }
  0x47   : > { %v720_v41 = vmax.f32 %v719_v30, 0.0  ;;  %v1493_v30 = vld [vmem:[%s2107_s6] ss:$0 sm:$0xff]  ;;  %v1983_v8 = vsel %vm1031_vm5, %v1023_v60, 0.0 }
  0x48   : > { %1560 = vmatpush3.bf16.msra.mxu1 %v1623_v45  ;;  %v2120_v45 = vsub.s32 5, %v1760_v4 }
  0x49   : > { %v725_v42 = vadd.f32 1e-05, %v720_v41  ;;  %1561 = vmatprep.subr.bf16.mxu1 %v1659_v2  ;;  %v1003_v41 = vmul.f32 %v1002_v59, %v1790_v16 }
  0x4b   : > { %1639 = vrsqrt.f32 %v725_v42  ;;  %v1015_v42 = vmul.f32 0.0, %v1014_v34 }
  0x4c   : > { %1562 = vmatpush3.bf16.msra.mxu1 %v1625_v52 }
  0x4d   : > { %1563 = vmatprep.subr.bf16.mxu1 %v1659_v2 }
  0x50   : > { %1564 = vmatpush3.bf16.msra.mxu1 %v1626_v15  ;;  %v2121_v15 = vsub.s32 7, %v1760_v4 }
  0x51   : > { %1589 = vmatprep.subr.bf16.mxu1 %v1659_v2 }
  0x58   : > { %v1640_v32 = vpop.eup %1639 }
  0x59   : > { %v727_v43 = vmul.f32 %v1640_v32, %v721_v26  ;;  %v728_v21 = vmul.f32 %v1640_v32, %v722_v6  ;;  %v729_v24 = vmul.f32 %v1640_v32, %v723_v17  ;;  %v730_v36 = vmul.f32 %v1640_v32, %v724_v27 }
  0x5a   : > { %v1019_v27 = vadd.f32 %v1015_v42, %v1003_v41  ;;  %v1040_v32 = vmul.f32 %v1039_v7, %v1983_v8 }
  0x5b   : > { %v739_v25 = vcombine.low %v727_v43, %v728_v21  ;;  %v740_v31 = vcombine.low %v729_v24, %v730_v36  ;;  %v1054_v24 = vrot.slane %v981_v58, %v601_v13 }
  0x5d   : > { %v743_v38 = vpack.c.bf16 %v740_v31, %v739_v25 }
  0x5f   : > { %1554 = vmatmul.mubr.msk.bf16.vlgmr.msra.gmra.mxu0 %vm763_vm3, %v743_v38  ;;  %v1066_v38 = vrot.slane %v981_v58, %v613_v9 }
  0x60   : > { %1573 = vmatprep.mubr.msk.bf16.mxu0 %vm1660_vm0, %v1659_v2  ;;  %1570 = vmatpush3.bf16.msra.mxu0 %v1622_v50  ;;  %v1044_v50 = vadd.f32 %v1040_v32, %v1019_v27 }
  0x61   : > { %1571 = vmatprep.subr.bf16.mxu0 %v1659_v2 }
  0x64   : > { %1572 = vmatpush3.bf16.msra.mxu0 %v1624_v51  ;;  %v2000_v51 = vrot.slane %v981_v58, %v2120_v45 }
  0x65   : > { %1577 = vmatprep.subr.bf16.mxu0 %v1659_v2 }
  0x67   : > { %1574 = vmatmul.mubr.msk.bf16.vlgmr.msra.gmra.mxu0 %vm763_vm3, %v915_v53 }
  0x68   : > { %1585 = vmatprep.mubr.msk.bf16.mxu0 %vm1660_vm0, %v1659_v2  ;;  %1578 = vmatpush3.bf16.msra.mxu0 %v1627_v5 }
  0x69   : > { %1579 = vmatprep.subr.bf16.mxu0 %v1659_v2 }
  0x6c   : > { %1580 = vmatpush3.bf16.msra.mxu0 %v1628_v14 }
  0x6d   : > { %1581 = vmatprep.subr.bf16.mxu0 %v1659_v2 }
  0x70   : > { %1582 = vmatpush3.bf16.msra.mxu0 %v1629_v10 }
  0x71   : > { %1583 = vmatprep.subr.bf16.mxu0 %v1659_v2 }
  0x74   : > { %1584 = vmatpush3.bf16.msra.mxu0 %v1630_v18 }
 0x11f   : > { %v801_v20 = vpop.f32.mrf.mxu0 }
 0x120   : > { %v802_v23 = vadd.f32 %v1489_v19, %v801_v20 }
 0x121   : > { %v1555_v12 = vpop.f32.mrf.mxu0 }
 0x122   : > { %v810_v54 = vmul.f32 0.70710677, %v802_v23  ;;  %v808_v0 = vmul.f32 0.5, %v802_v23  ;;  %v2122_v12 = vsub.s32 6, %v1760_v4 }
 0x123   : > { %v804_v61 = vpop.f32.mrf.mxu0 }
 0x124   : > { %1641 = verf.f32 %v810_v54  ;;  %v805_v56 = vadd.f32 %v1489_v19, %v804_v61  ;;  %v2007_v19 = vrot.slane %v981_v58, %v2121_v15  ;;  %v1093_v54 = vrot.slane %v981_v58, %v2122_v12 }
 0x125   : > { %v1556_v57 = vpop.f32.mrf.mxu0 }
 0x126   : > { %v811_v40 = vmul.f32 0.70710677, %v805_v56  ;;  %v809_v1 = vmul.f32 0.5, %v805_v56 }
 0x127   : > { %v972_v37 = vpop.f32.mrf.mxu0 }
 0x128   : > { %1643 = verf.f32 %v811_v40  ;;  %v973_v26 = vadd.f32 %v1499_v35, %v972_v37 }
 0x129   : > { %v1575_v22 = vpop.f32.mrf.mxu0 }
 0x12b   : > { %v975_v44 = vpop.f32.mrf.mxu0 }
 0x12c   : > { %v976_v39 = vadd.f32 %v1499_v35, %v975_v44 }
 0x12d   : > { %v1576_v3 = vpop.f32.mrf.mxu0 }
 0x131   : > { %v1642_v46 = vpop.eup %1641 }
 0x132   : > { %v814_v47 = vadd.f32 1.0, %v1642_v46 }
 0x134   : > { %v816_v49 = vmul.f32 %v814_v47, %v808_v0 }
 0x135   : > { %v1644_v63 = vpop.eup %1643 }
 0x136   : > { %v815_v48 = vadd.f32 1.0, %v1644_v63 }
 0x138   : > { %v817_v29 = vmul.f32 %v815_v48, %v809_v1 }
 0x13a   : > { %v826_v55 = vpack.c.bf16 %v817_v29, %v816_v49 }
 0x13c   : > { %1566 = vmatmul.mubr.msk.bf16.vlgmr.msra.gmra.mxu1 %vm858_vm4, %v826_v55 }
 0x13d   : > { %1605 = vmatprep.mubr.msk.bf16.mxu1 %vm1660_vm0, %v1659_v2  ;;  %1590 = vmatpush3.bf16.msra.mxu1 %v1631_v33 }
 0x13e   : > { %1591 = vmatprep.subr.bf16.mxu1 %v1659_v2 }
 0x1fc   : > { %v896_v6 = vpop.f32.mrf.mxu1 }
 0x1fd   : > { %v897_v17 = vadd.f32 %v1493_v30, %v896_v6 }
 0x1fe   : > { %v1567_v43 = vpop.f32.mrf.mxu1 }
 0x1ff   : > { %v1986_v21 = vadd.f32 %v973_v26, %v897_v17 }
 0x200   : > { %v899_v36 = vpop.f32.mrf.mxu1 }
 0x201   : > { %v1992_v25 = vcombine.high %v1986_v21, %v1986_v21  ;;  %v990_v11 = vrot.slane %v1986_v21, 7  ;;  %v1024_v31 = vrot.slane %v1986_v21, 1  ;;  %v900_v28 = vadd.f32 %v1493_v30, %v899_v36 }
 0x202   : > { %v1568_v13 = vpop.f32.mrf.mxu1  ;;  %v1016_v9 = vmul.f32 %v1014_v34, %v1986_v21  ;;  %v1067_v56 = vmul.f32 %v1066_v38, %v1986_v21 }
 0x203   : > { %v991_v62 = vrot.slane %v1992_v25, 7  ;;  %v996_v52 = vsel %vm542_vm1, 0.0, %v990_v11  ;;  %v1033_v53 = vsel %vm1031_vm5, %v1024_v31, 0.0  ;;  %v2014_v57 = vadd.f32 %v976_v39, %v900_v28  ;;  %v1503_v39 = vld [vmem:[%s2110_s9 + $0x8] ss:$0 sm:$0xff] }
 0x204   : > { %v1004_v20 = vmul.f32 %v1002_v59, %v996_v52  ;;  %v1055_v23 = vmul.f32 %v1054_v24, %v996_v52  ;;  %v1025_v40 = vrot.slane %v1992_v25, 1  ;;  %v1041_v63 = vmul.f32 %v1039_v7, %v1033_v53 }
 0x205   : > { %v997_v61 = vsel %vm542_vm1, 0.0, %v991_v62  ;;  %v1017_v1 = vmul.f32 %v1014_v34, %v1992_v25  ;;  %v1082_v48 = vmul.f32 %v2000_v51, %v1033_v53  ;;  %v987_v4 = vcombine.high %v2014_v57, %v2014_v57 }
 0x206   : > { %v1005_v46 = vmul.f32 %v1002_v59, %v997_v61  ;;  %v1020_v47 = vadd.f32 %v1016_v9, %v1004_v20  ;;  %v1059_v0 = vadd.f32 %v1055_v23, %v1044_v50  ;;  %v992_v49 = vrot.slane %v2014_v57, 7 }
 0x207   : > { %v1056_v55 = vmul.f32 %v1054_v24, %v997_v61  ;;  %v1026_v22 = vrot.slane %v2014_v57, 1  ;;  %v1068_v44 = vmul.f32 %v1066_v38, %v1992_v25  ;;  %v1034_v14 = vsel %vm1031_vm5, %v1025_v40, 0.0 }
 0x208   : > { %v1045_v29 = vadd.f32 %v1041_v63, %v1020_v47  ;;  %v1071_v37 = vadd.f32 %v1067_v56, %v1059_v0  ;;  %v998_v3 = vsel %vm542_vm1, 0.0, %v992_v49  ;;  %v1021_v5 = vadd.f32 %v1017_v1, %v1005_v46 }
 0x209   : > { %v1006_v33 = vmul.f32 %v1002_v59, %v998_v3  ;;  %v1018_v58 = vmul.f32 %v1014_v34, %v2014_v57  ;;  %v1094_v60 = vmul.f32 %v1093_v54, %v997_v61  ;;  %v1035_v35 = vsel %vm1031_vm5, %v1026_v22, 0.0 }
 0x20a   : > { %v1060_v10 = vadd.f32 %v1056_v55, %v1045_v29  ;;  %v1086_v18 = vadd.f32 %v1082_v48, %v1071_v37  ;;  %v1042_v30 = vmul.f32 %v1039_v7, %v1034_v14  ;;  %v1048_v41 = vrot.slane %v987_v4, 7 }
 0x20b   : > { %v1022_v26 = vadd.f32 %v1018_v58, %v1006_v33  ;;  %v1057_v6 = vmul.f32 %v1054_v24, %v998_v3  ;;  %v1043_v17 = vmul.f32 %v1039_v7, %v1035_v35  ;;  %v1075_v43 = vrot.slane %v987_v4, 1 }
 0x20c   : > { %v1072_v42 = vadd.f32 %v1068_v44, %v1060_v10  ;;  %v1046_v27 = vadd.f32 %v1042_v30, %v1021_v5  ;;  %v1050_v32 = vsel %vm542_vm1, 0.0, %v1048_v41  ;;  %v1083_v36 = vmul.f32 %v2000_v51, %v1034_v14 }
 0x20d   : > { %v1098_v11 = vadd.f32 %v1094_v60, %v1086_v18  ;;  %v1069_v59 = vmul.f32 %v1066_v38, %v2014_v57  ;;  %v1047_v31 = vadd.f32 %v1043_v17, %v1022_v26  ;;  %v1058_v34 = vmul.f32 %v1054_v24, %v1050_v32 }
 0x20e   : > { %v1061_v50 = vadd.f32 %v1057_v6, %v1046_v27  ;;  %v1077_v45 = vsel %vm1031_vm5, %v1075_v43, 0.0  ;;  %v1087_v28 = vadd.f32 %v1083_v36, %v1072_v42  ;;  %v1095_v7 = vmul.f32 %v1093_v54, %v998_v3 }
 0x20f   : > { %v1062_v13 = vadd.f32 %v1058_v34, %v1047_v31  ;;  %v1070_v62 = vmul.f32 %v1066_v38, %v987_v4  ;;  %v1097_v52 = vmul.f32 %v1093_v54, %v1790_v16  ;;  %v1106_v53 = vmul.f32 %v2007_v19, %v1992_v25  ;;  %v1504_v38 = vld [vmem:[%s2111_s10] ss:$0 sm:$0xff] }
 0x210   : > { %v1107_v15 = vmul.f32 %v2007_v19, %v2014_v57  ;;  %v1073_v24 = vadd.f32 %v1069_v59, %v1061_v50  ;;  %v1084_v20 = vmul.f32 %v2000_v51, %v1035_v35  ;;  %v1099_v9 = vadd.f32 %v1095_v7, %v1087_v28 }
 0x211   : > { %v1074_v23 = vadd.f32 %v1070_v62, %v1062_v13  ;;  %v1085_v12 = vmul.f32 %v2000_v51, %v1077_v45  ;;  %v1110_v61 = vadd.f32 %v1106_v53, %v1098_v11  ;;  %v1118_v56 = vmul.f32 %v1503_v39, %v1034_v14 }
 0x212   : > { %v1088_v16 = vadd.f32 %v1084_v20, %v1073_v24  ;;  %v1096_v40 = vmul.f32 %v1093_v54, %v1050_v32  ;;  %v1111_v46 = vadd.f32 %v1107_v15, %v1099_v9  ;;  %v1119_v25 = vmul.f32 %v1503_v39, %v1035_v35 }
 0x213   : > { %v1089_v47 = vadd.f32 %v1085_v12, %v1074_v23  ;;  %v1109_v63 = vmul.f32 0.0, %v2007_v19  ;;  %v1122_v0 = vadd.f32 %v1118_v56, %v1110_v61  ;;  %v1108_v48 = vmul.f32 %v2007_v19, %v987_v4 }
 0x214   : > { %v1100_v1 = vadd.f32 %v1096_v40, %v1088_v16  ;;  %v1123_v49 = vadd.f32 %v1119_v25, %v1111_v46  ;;  %v1121_v51 = vmul.f32 %v1503_v39, %v1983_v8  ;;  %v1120_v22 = vmul.f32 %v1503_v39, %v1077_v45 }
 0x215   : > { %v1101_v29 = vadd.f32 %v1097_v52, %v1089_v47  ;;  %v1132_v55 = vadd.f32 %v1504_v38, %v1122_v0 }
 0x216   : > { %v1112_v37 = vadd.f32 %v1108_v48, %v1100_v1  ;;  %v1133_v44 = vadd.f32 %v1504_v38, %v1123_v49  ;;  %v1632_v48 = vld [vmem:[%s2114_s13 + $0x30] sm:$0xff]   ;;  %v1633_v49 = vld [vmem:[%s2114_s13 + $0x28] sm:$0xff]  }
 0x217   : > { %v1113_v3 = vadd.f32 %v1109_v63, %v1101_v29  ;;  %v1150_v54 = vmul.f32 %v1132_v55, %v1132_v55  ;;  %v1137_v14 = vsel %vm1136_vm6, %v1132_v55, 0.0  ;;  %1592 = vmatpush3.bf16.msra.mxu1 %v1632_v48  ;;  %v1634_v29 = vld [vmem:[%s2114_s13 + $0x20] sm:$0xff]  }
 0x218   : > { %v1124_v5 = vadd.f32 %v1120_v22, %v1112_v37  ;;  %v1138_v10 = vsel %vm1136_vm6, %v1133_v44, 0.0  ;;  %v1151_v18 = vmul.f32 %v1133_v44, %v1133_v44  ;;  %1593 = vmatprep.subr.bf16.mxu1 %v1659_v2  ;;  %v1637_v37 = vld [vmem:[%s2114_s13 + $0x8] sm:$0xff]   ;;  %v1638_v22 = vld [vmem:[%s2114_s13] sm:$0xff]  }
 0x219   : > { %v1125_v33 = vadd.f32 %v1121_v51, %v1113_v3  ;;  %v1139_v58 = vadd.f32 %v1138_v10, %v1137_v14  ;;  %v1154_v4 = vsel %vm1136_vm6, %v1150_v54, 0.0  ;;  %v1635_v51 = vld [vmem:[%s2114_s13 + $0x18] sm:$0xff]  }
 0x21a   : > { %v1134_v19 = vadd.f32 %v1504_v38, %v1124_v5  ;;  %v1155_v8 = vsel %vm1136_vm6, %v1151_v18, 0.0 }
 0x21b   : > { %v1135_v60 = vadd.f32 %v1504_v38, %v1125_v33  ;;  %v1156_v35 = vadd.f32 %v1155_v8, %v1154_v4  ;;  %1594 = vmatpush3.bf16.msra.mxu1 %v1633_v49 }
 0x21c   : > { %v1140_v30 = vsel %vm1136_vm6, %v1134_v19, 0.0  ;;  %v1152_v41 = vmul.f32 %v1134_v19, %v1134_v19  ;;  %1595 = vmatprep.subr.bf16.mxu1 %v1659_v2 }
 0x21d   : > { %v1141_v42 = vadd.f32 %v1140_v30, %v1139_v58  ;;  %v1142_v26 = vsel %vm1136_vm6, %v1135_v60, 0.0  ;;  %v1153_v6 = vmul.f32 %v1135_v60, %v1135_v60 }
 0x21e   : > { %v1157_v17 = vsel %vm1136_vm6, %v1152_v41, 0.0 }
 0x21f   : > { %v1143_v27 = vadd.f32 %v1142_v26, %v1141_v42  ;;  %v1158_v32 = vadd.f32 %v1157_v17, %v1156_v35  ;;  %v1159_v43 = vsel %vm1136_vm6, %v1153_v6, 0.0  ;;  %1596 = vmatpush3.bf16.msra.mxu1 %v1634_v29  ;;  %v1511_v26 = vld [vmem:[%s2115_s14] ss:$0 sm:$0xff] }
 0x220   : > { %1597 = vmatprep.subr.bf16.mxu1 %v1659_v2 }
 0x221   : > { %v1144_v36 = vrot.slane %v1143_v27, 4  ;;  %v1160_v11 = vadd.f32 %v1159_v43, %v1158_v32 }
 0x223   : > { %v1145_v59 = vadd.f32 %v1144_v36, %v1143_v27  ;;  %v1161_v31 = vrot.slane %v1160_v11, 4  ;;  %1598 = vmatpush3.bf16.msra.mxu1 %v1635_v51 }
 0x224   : > { %1599 = vmatprep.subr.bf16.mxu1 %v1659_v2 }
 0x225   : > { %v1146_v34 = vrot.slane %v1145_v59, 2  ;;  %v1162_v39 = vadd.f32 %v1161_v31, %v1160_v11 }
 0x227   : > { %v1147_v50 = vadd.f32 %v1146_v34, %v1145_v59  ;;  %v1163_v45 = vrot.slane %v1162_v39, 2 }
 0x229   : > { %v1148_v28 = vrot.slane %v1147_v50, 1  ;;  %v1164_v7 = vadd.f32 %v1163_v45, %v1162_v39 }
 0x22b   : > { %v1149_v13 = vadd.f32 %v1148_v28, %v1147_v50  ;;  %v1165_v62 = vrot.slane %v1164_v7, 1 }
 0x22d   : > { %v1166_v52 = vadd.f32 %v1165_v62, %v1164_v7  ;;  %v1167_v53 = vmul.f32 0.0625, %v1149_v13 }
 0x22f   : > { %v1168_v15 = vmul.f32 0.0625, %v1166_v52  ;;  %v1169_v24 = vmul.f32 %v1167_v53, %v1167_v53  ;;  %v1172_v12 = vsub.f32 %v1132_v55, %v1167_v53  ;;  %v1173_v61 = vsub.f32 %v1133_v44, %v1167_v53  ;;  %v1636_v55 = vld [vmem:[%s2114_s13 + $0x10] sm:$0xff]   ;;  %v1505_v44 = vld [vmem:[%s2113_s12] ss:$0 sm:$0xff] }
 0x230   : > { %v1174_v56 = vsub.f32 %v1134_v19, %v1167_v53  ;;  %v1175_v38 = vsub.f32 %v1135_v60, %v1167_v53  ;;  %1600 = vmatpush3.bf16.msra.mxu1 %v1636_v55 }
 0x231   : > { %v1170_v20 = vsub.f32 %v1168_v15, %v1169_v24  ;;  %1601 = vmatprep.subr.bf16.mxu1 %v1659_v2 }
 0x233   : > { %v1171_v9 = vmax.f32 %v1170_v20, 0.0 }
 0x234   : > { %1602 = vmatpush3.bf16.msra.mxu1 %v1637_v37 }
 0x235   : > { %v1176_v23 = vadd.f32 1e-05, %v1171_v9  ;;  %1603 = vmatprep.subr.bf16.mxu1 %v1659_v2 }
 0x237   : > { %1645 = vrsqrt.f32 %v1176_v23 }
 0x238   : > { %1604 = vmatpush3.bf16.msra.mxu1 %v1638_v22 }
 0x244   : > { %v1646_v16 = vpop.eup %1645 }
 0x245   : > { %v1178_v40 = vmul.f32 %v1646_v16, %v1172_v12  ;;  %v1179_v46 = vmul.f32 %v1646_v16, %v1173_v61  ;;  %v1180_v25 = vmul.f32 %v1646_v16, %v1174_v56  ;;  %v1181_v47 = vmul.f32 %v1646_v16, %v1175_v38 }
 0x247   : > { %v1194_v63 = vcombine.low %v1178_v40, %v1179_v46  ;;  %v1195_v0 = vcombine.low %v1180_v25, %v1181_v47 }
 0x249   : > { %v1198_v1 = vpack.c.bf16 %v1195_v0, %v1194_v63 }
 0x24b   : > { %1586 = vmatmul.mubr.msk.bf16.vlgmr.msra.gmra.mxu0 %vm858_vm4, %v1198_v1 }
 0x30b   : > { %v1267_v3 = vpop.f32.mrf.mxu0 }
 0x30c   : > { %v1268_v54 = vadd.f32 %v1505_v44, %v1267_v3 }
 0x30d   : > { %v1587_v5 = vpop.f32.mrf.mxu0 }
 0x30e   : > { %v1276_v14 = vmul.f32 0.70710677, %v1268_v54  ;;  %v1274_v2 = vmul.f32 0.5, %v1268_v54 }
 0x30f   : > { %v1270_v10 = vpop.f32.mrf.mxu0 }
 0x310   : > { %1647 = verf.f32 %v1276_v14  ;;  %v1271_v18 = vadd.f32 %v1505_v44, %v1270_v10 }
 0x311   : > { %v1588_v33 = vpop.f32.mrf.mxu0 }
 0x312   : > { %v1277_v58 = vmul.f32 0.70710677, %v1271_v18  ;;  %v1275_v60 = vmul.f32 0.5, %v1271_v18 }
 0x314   : > { %1649 = verf.f32 %v1277_v58 }
 0x31d   : > { %v1648_v19 = vpop.eup %1647 }
 0x31e   : > { %v1280_v4 = vadd.f32 1.0, %v1648_v19 }
 0x320   : > { %v1282_v30 = vmul.f32 %v1280_v4, %v1274_v2 }
 0x321   : > { %v1650_v8 = vpop.eup %1649 }
 0x322   : > { %v1281_v35 = vadd.f32 1.0, %v1650_v8 }
 0x324   : > { %v1283_v41 = vmul.f32 %v1281_v35, %v1275_v60 }
 0x326   : > { %v1300_v42 = vpack.c.bf16 %v1283_v41, %v1282_v30 }
 0x328   : > { %1606 = vmatmul.mubr.bf16.vlgmr.msra.gmra.mxu1 %v1300_v42 }
 0x3e8   : > { %v1390_v6 = vpop.f32.mrf.mxu1 }
 0x3e9   : > { %v1391_v17 = vadd.f32 %v1511_v26, %v1390_v6 }
 0x3ea   : > { %v1607_v27 = vpop.f32.mrf.mxu1 }
 0x3eb   : > { %v1397_v32 = vadd.f32 %v1391_v17, %v1986_v21 }
 0x3ec   : > { %v1393_v43 = vpop.f32.mrf.mxu1 }
 0x3ed   : > { %1399 = vst.msk [vmem:[%s494_s24] sm:$0xff] %vm858_vm4, %v1397_v32  ;;  %v1394_v36 = vadd.f32 %v1511_v26, %v1393_v43 }
 0x3ee   : > { %v1608_v11 = vpop.f32.mrf.mxu1 }
 0x3ef   : > { %v1398_v59 = vadd.f32 %v1394_v36, %v2014_v57 }
 0x3f1   : > { %1400 = vst.msk [vmem:[%s494_s24 + $0x8] sm:$0xff] %vm858_vm4, %v1398_v59 }
 0x3f2 PF: > { %s25_s18 = sadd.s32 1, %s1657_s18  }
 0x3f3   : > { %p22_p4 = scmp.ge.s32.totalorder %s25_s18, 4  }
 0x3f5   :  { %24 = sbr.rel (!%p22_p4) target bundleno = 1 (0x1), region = 125 }

// kernel: mednext_encoder_forward.5
= control target key start
LH: loop header
LB: loop body
LE: loop exit
PB: predicated region body
PF: predicated region fallthrough
CT: control target
= control target key end

     0   :  { %s3291_s30 = smov 0   ;;  %s5388_s0 = inlined_call_operand.vmem [shape: f32[2,16,16,3], index: 0, kind: input, shape index: {}]   ;;  %s5389_s1 = inlined_call_operand.vmem [shape: f32[3,16], index: 1, kind: input, shape index: {}]   ;;  %s5390_s2 = inlined_call_operand.vmem [shape: f32[1,16], index: 2, kind: input, shape index: {}]   ;;  %s5391_s3 = inlined_call_operand.vmem [shape: f32[9,16], index: 3, kind: input, shape index: {}]   ;;  %s5392_s4 = inlined_call_operand.vmem [shape: f32[1,16], index: 4, kind: input, shape index: {}]   ;;  %s5393_s5 = inlined_call_operand.vmem [shape: bf16[16,32], index: 5, kind: input, shape index: {}]   ;;  %s5394_s6 = inlined_call_operand.vmem [shape: f32[1,32], index: 6, kind: input, shape index: {}]   ;;  %s5395_s7 = inlined_call_operand.vmem [shape: bf16[32,16], index: 7, kind: input, shape index: {}]   ;;  %s5396_s8 = inlined_call_operand.vmem [shape: f32[1,16], index: 8, kind: input, shape index: {}]   ;;  %s5397_s9 = inlined_call_operand.vmem [shape: f32[2,256,16], index: 9, kind: output, shape index: {}]  }
   0x1 LB: > { %s2924_s10 = sadd.s32 4294967295, %s3235_s30   ;;  %p2928_p0 = scmp.ge.s32.totalorder %s3235_s30, 1  ;;  %s3235_s30 = sphi %s3291_s30, %s19_s30  }
   0x2   : > { %p287_p1 = scmp.lt.s32.totalorder %s3235_s30, 3 }
   0x4   : > { %p288_p2 = pnand %p2928_p0, %p287_p1 }
   0x6   : > { %291 = sbr.rel (%p288_p2) target bundleno = 1010 (0x3f2), region = 56 }
   0xb   : > { %p323_p3 = scmp.lt.s32.totalorder %s2924_s10, 1  ;;  %v5404_v0 = vmov 1   ;;  %v5398_v1 = vmov 0   ;;  %v5400_v6 = vmov 2   ;;  %v528_v31 = vlaneseq  ;;  %v334_v42 = vld [vmem:[%s5389_s1] sm:$0x7] }
   0xc   : > { %3094 = vset.pattern.permute.xlu0 %v5404_v0  ;;  %3095 = vset.pattern.permute.xlu1 %v5398_v1  ;;  %vm1060_vm0 = vcmask 1040384   ;;  %vm1291_vm1 = vcmask 1046528   ;;  %vm1914_vm2 = vcmask 130048   ;;  %vm2595_vm3 = vcmask 261120  }
   0xd   : > { %s5716_s10 = smov (!%p323_p3, %s2924_s10), 1  ;;  %v3411_v35 = vshrl.u32 %v528_v31, 7 }
   0xe   : > { %s2975_s11 = sshll.u32 %s5716_s10, 8 }
   0xf   : > { %s3309_s14 = scalar_lea.vmem %s5388_s0, %s2975_s11  ;;  %v726_v38 = vsub.s32 1, %v3411_v35  ;;  %v530_v40 = vsub.s32 0, %v3411_v35  ;;  %s5256_s25 = scalar_lea.vmem %s5397_s9, %s2975_s11 }
  0x10   : > { %v337_v2 = vld [vmem:[%s3309_s14 + $0x8] sm:$0xff]  ;;  %v336_v3 = vld [vmem:[%s3309_s14] sm:$0xff]  ;;  %v342_v5 = vld [vmem:[%s3309_s14 + $0x30] sm:$0xff] }
  0x11   : > { %375 = vperm.xlu1 %3095, %v337_v2   ;;  %597 = vperm.xlu0 %3094, %v336_v3   ;;  %v341_v4 = vld [vmem:[%s3309_s14 + $0x28] sm:$0xff]  ;;  %v3318_v7 = vld [vmem:[%s3309_s14 + $0x50] sm:$0xff]  ;;  %v3323_v9 = vld [vmem:[%s3309_s14 + $0x58] sm:$0xff]  ;;  %v3435_v44 = vrot.slane %v334_v42, %v726_v38  ;;  %v3439_v45 = vrot.slane %v334_v42, %v530_v40 }
  0x12   : > { %v338_v8 = vld [vmem:[%s3309_s14 + $0x10] sm:$0xff]  ;;  %v339_v10 = vld [vmem:[%s3309_s14 + $0x18] sm:$0xff]  ;;  %v340_v11 = vld [vmem:[%s3309_s14 + $0x20] sm:$0xff] }
  0x13   : > { %v343_v12 = vld [vmem:[%s3309_s14 + $0x38] sm:$0xff]  ;;  %v344_v13 = vld [vmem:[%s3309_s14 + $0x40] sm:$0xff]  ;;  %v349_v15 = vld [vmem:[%s3309_s14 + $0x68] sm:$0xff] }
  0x14   : > { %v348_v14 = vld [vmem:[%s3309_s14 + $0x60] sm:$0xff]  ;;  %v3341_v16 = vld [vmem:[%s3309_s14 + $0x88] sm:$0xff]  ;;  %v3346_v17 = vld [vmem:[%s3309_s14 + $0x90] sm:$0xff] }
  0x15   : > { %3096 = vset.pattern.permute.xlu1 %v5404_v0  ;;  %617 = vperm.xlu0 %3094, %v341_v4   ;;  %v3351_v18 = vld [vmem:[%s3309_s14 + $0xb0] sm:$0xff]  ;;  %v3355_v19 = vld [vmem:[%s3309_s14 + $0xb8] sm:$0xff]  ;;  %v3365_v21 = vld [vmem:[%s3309_s14 + $0xe0] sm:$0xff] }
  0x16   : > { %601 = vperm.xlu1 %3096, %v337_v2   ;;  %v3360_v20 = vld [vmem:[%s3309_s14 + $0xd8] sm:$0xff]  ;;  %v345_v22 = vld [vmem:[%s3309_s14 + $0x48] sm:$0xff]  ;;  %v350_v23 = vld [vmem:[%s3309_s14 + $0x70] sm:$0xff] }
  0x17   : > { %v351_v24 = vld [vmem:[%s3309_s14 + $0x78] sm:$0xff]  ;;  %v352_v27 = vld [vmem:[%s3309_s14 + $0x80] sm:$0xff]  ;;  %v3406_v33 = vld [vmem:[%s3309_s14 + $0xa8] sm:$0xff] }
  0x18   : > { %v3401_v30 = vld [vmem:[%s3309_s14 + $0xa0] sm:$0xff]  ;;  %v3417_v37 = vld [vmem:[%s3309_s14 + $0xc8] sm:$0xff]  ;;  %v3431_v43 = vld [vmem:[%s3309_s14 + $0xd0] sm:$0xff] }
  0x19   : > { %621 = vperm.xlu0 %3094, %v342_v5   ;;  %v3445_v49 = vld [vmem:[%s3309_s14 + $0xf0] sm:$0xff]  ;;  %v3454_v54 = vld [vmem:[%s3309_s14 + $0xf8] sm:$0xff] }
  0x1a   : > { %3097 = vset.pattern.permute.xlu1 %v5400_v6  ;;  %5479 = vst [vmem:[#allocation2_spill] sm:$0xff] %v3445_v49  ;;  %5480 = vst [vmem:[#allocation3_spill] sm:$0xff] %v3454_v54  ;;  %v355_v61 = vld [vmem:[%s3309_s14 + $0x98] sm:$0xff] }
  0x1b   : > { %793 = vperm.xlu1 %3097, %v336_v3  }
  0x1d   : > { %637 = vperm.xlu0 %3094, %v3318_v7  }
  0x1f   : > { %3098 = vset.pattern.permute.xlu1 %v5404_v0 }
  0x20   : > { %605 = vperm.xlu1 %3098, %v338_v8  }
  0x21   : > { %641 = vperm.xlu0 %3094, %v3323_v9  }
  0x24   : > { %3099 = vset.pattern.permute.xlu1 %v5400_v6 }
  0x25   : > { %797 = vperm.xlu1 %3099, %v337_v2   ;;  %3115 = vset.pattern.permute.xlu0 %v5398_v1 }
  0x26   : > { %370 = vperm.xlu0 %3115, %v336_v3  }
  0x29   : > { %3100 = vset.pattern.permute.xlu1 %v5404_v0 }
  0x2a   : > { %609 = vperm.xlu1 %3100, %v339_v10   ;;  %380 = vperm.xlu0 %3115, %v338_v8  }
  0x2e   : > { %3101 = vset.pattern.permute.xlu1 %v5398_v1  ;;  %385 = vperm.xlu0 %3115, %v339_v10  }
  0x2f   : > { %390 = vperm.xlu1 %3101, %v340_v11  }
  0x32   : > { %405 = vperm.xlu0 %3115, %v343_v12  }
  0x33   : > { %3102 = vset.pattern.permute.xlu1 %v5404_v0 }
  0x34   : > { %613 = vperm.xlu1 %3102, %v340_v11  }
  0x36   : > { %410 = vperm.xlu0 %3115, %v344_v13  }
  0x38   : > { %3103 = vset.pattern.permute.xlu1 %v5398_v1 }
  0x39   : > { %395 = vperm.xlu1 %3103, %v341_v4  }
  0x3a   : > { %430 = vperm.xlu0 %3115, %v348_v14  }
  0x3d   : > { %3104 = vset.pattern.permute.xlu1 %v5400_v6 }
  0x3e   : > { %809 = vperm.xlu1 %3104, %v340_v11   ;;  %435 = vperm.xlu0 %3115, %v349_v15  }
  0x42   : > { %3105 = vset.pattern.permute.xlu1 %v5398_v1  ;;  %455 = vperm.xlu0 %3115, %v3341_v16  }
  0x43   : > { %400 = vperm.xlu1 %3105, %v342_v5  }
  0x46   : > { %460 = vperm.xlu0 %3115, %v3346_v17  }
  0x47   : > { %3106 = vset.pattern.permute.xlu1 %v5400_v6 }
  0x48   : > { %813 = vperm.xlu1 %3106, %v341_v4  }
  0x4a   : > { %480 = vperm.xlu0 %3115, %v3351_v18  }
  0x4c   : > { %3107 = vset.pattern.permute.xlu1 %v5404_v0 }
  0x4d   : > { %625 = vperm.xlu1 %3107, %v343_v12  }
  0x4e   : > { %485 = vperm.xlu0 %3115, %v3355_v19  }
  0x51   : > { %3108 = vset.pattern.permute.xlu1 %v5400_v6 }
  0x52   : > { %817 = vperm.xlu1 %3108, %v342_v5   ;;  %505 = vperm.xlu0 %3115, %v3360_v20  }
  0x56   : > { %3109 = vset.pattern.permute.xlu1 %v5404_v0  ;;  %510 = vperm.xlu0 %3115, %v3365_v21  }
  0x57   : > { %629 = vperm.xlu1 %3109, %v344_v13  }
  0x5a   : > { %3146 = vset.pattern.permute.xlu0 %v5400_v6 }
  0x5b   : > { %3110 = vset.pattern.permute.xlu1 %v5398_v1  ;;  %801 = vperm.xlu0 %3146, %v338_v8  }
  0x5c   : > { %415 = vperm.xlu1 %3110, %v345_v22  }
  0x5f   : > { %805 = vperm.xlu0 %3146, %v339_v10  }
  0x60   : > { %3111 = vset.pattern.permute.xlu1 %v5404_v0 }
  0x61   : > { %633 = vperm.xlu1 %3111, %v345_v22  }
  0x63   : > { %821 = vperm.xlu0 %3146, %v343_v12  }
  0x65   : > { %3112 = vset.pattern.permute.xlu1 %v5398_v1 }
  0x66   : > { %420 = vperm.xlu1 %3112, %v3318_v7  }
  0x67   : > { %825 = vperm.xlu0 %3146, %v344_v13  }
  0x6a   : > { %3113 = vset.pattern.permute.xlu1 %v5400_v6 }
  0x6b   : > { %829 = vperm.xlu1 %3113, %v345_v22   ;;  %841 = vperm.xlu0 %3146, %v348_v14  }
  0x6f   : > { %3114 = vset.pattern.permute.xlu1 %v5398_v1  ;;  %845 = vperm.xlu0 %3146, %v349_v15  }
  0x70   : > { %425 = vperm.xlu1 %3114, %v3323_v9  }
  0x73   : > { %861 = vperm.xlu0 %3146, %v3341_v16  }
  0x74   : > { %3116 = vset.pattern.permute.xlu1 %v5400_v6 }
  0x75   : > { %833 = vperm.xlu1 %3116, %v3318_v7   ;;  %v922_v7 = vsub.s32 2, %v3411_v35 }
  0x77   : > { %865 = vperm.xlu0 %3146, %v3346_v17   ;;  %v3487_v11 = vrot.slane %v334_v42, %v922_v7 }
  0x79   : > { %3117 = vset.pattern.permute.xlu1 %v5404_v0 }
  0x7a   : > { %645 = vperm.xlu1 %3117, %v348_v14  }
  0x7b   : > { %881 = vperm.xlu0 %3146, %v3351_v18  }
  0x7e   : > { %3118 = vset.pattern.permute.xlu1 %v5400_v6 }
  0x7f   : > { %837 = vperm.xlu1 %3118, %v3323_v9   ;;  %885 = vperm.xlu0 %3146, %v3355_v19  }
  0x83   : > { %3119 = vset.pattern.permute.xlu1 %v5404_v0  ;;  %901 = vperm.xlu0 %3146, %v3360_v20  }
  0x84   : > { %649 = vperm.xlu1 %3119, %v349_v15  }
  0x87   : > { %905 = vperm.xlu0 %3146, %v3365_v21  }
  0x88   : > { %3120 = vset.pattern.permute.xlu1 %v5398_v1 }
  0x89   : > { %440 = vperm.xlu1 %3120, %v350_v23  }
  0x8b   : > { %3150 = vset.pattern.permute.xlu0 %v5404_v0 }
  0x8c   : > { %v3394_v25 = vpop.permute.xlu1 %375  ;;  %v598_v26 = vpop.permute.xlu0 %597  ;;  %657 = vperm.xlu0 %3150, %v351_v24  }
  0x8d   : > { %3121 = vset.pattern.permute.xlu1 %v5404_v0  ;;  %v728_v46 = vmul.f32 %v3435_v44, %v598_v26  ;;  %v533_v22 = vmul.f32 %v3439_v45, %v3394_v25  ;;  %v3240_v26 = vmov 0.0  }
  0x8e   : > { %653 = vperm.xlu1 %3121, %v350_v23  }
  0x90   : > { %v618_v28 = vpop.permute.xlu0 %617  ;;  %661 = vperm.xlu0 %3150, %v352_v27  }
  0x91   : > { %v3398_v29 = vpop.permute.xlu1 %601  ;;  %v733_v60 = vmul.f32 %v3435_v44, %v618_v28 }
  0x92   : > { %3122 = vset.pattern.permute.xlu1 %v5398_v1  ;;  %v729_v15 = vmul.f32 %v3435_v44, %v3398_v29 }
  0x93   : > { %445 = vperm.xlu1 %3122, %v351_v24  }
  0x94   : > { %v622_v32 = vpop.permute.xlu0 %621  ;;  %677 = vperm.xlu0 %3150, %v3401_v30   ;;  %v761_v31 = vadd.f32 %v729_v15, %v533_v22 }
  0x95   : > { %v734_v8 = vmul.f32 %v3435_v44, %v622_v32  ;;  %v3510_v32 = vld [vmem:[%s5391_s3] sm:$0xff] }
  0x96   : > { %v3408_v34 = vpop.permute.xlu1 %793 }
  0x97   : > { %3123 = vset.pattern.permute.xlu1 %v5400_v6 }
  0x98   : > { %849 = vperm.xlu1 %3123, %v350_v23   ;;  %v3413_v36 = vpop.permute.xlu0 %637  ;;  %681 = vperm.xlu0 %3150, %v3406_v33  }
  0x9b   : > { %v3420_v39 = vpop.permute.xlu1 %605 }
  0x9c   : > { %3124 = vset.pattern.permute.xlu1 %v5398_v1  ;;  %v3424_v41 = vpop.permute.xlu0 %641  ;;  %697 = vperm.xlu0 %3150, %v3417_v37  }
  0x9d   : > { %450 = vperm.xlu1 %3124, %v352_v27  }
  0xa0   : > { %v798_v47 = vpop.permute.xlu1 %797  ;;  %701 = vperm.xlu0 %3150, %v3431_v43  }
  0xa1   : > { %3125 = vset.pattern.permute.xlu1 %v5400_v6  ;;  %v371_v48 = vpop.permute.xlu0 %370  ;;  %v925_v23 = vmul.f32 %v3487_v11, %v798_v47 }
  0xa2   : > { %v532_v50 = vmul.f32 %v3439_v45, %v371_v48  ;;  %853 = vperm.xlu1 %3125, %v351_v24  }
  0xa3   : > { %v957_v47 = vadd.f32 %v925_v23, %v761_v31 }
  0xa4   : > { %v760_v51 = vadd.f32 %v728_v46, %v532_v50  ;;  %717 = vperm.xlu0 %3150, %v3445_v49   ;;  %v3523_v46 = vld [vmem:[%s5390_s2] ss:$0 sm:$0xff] }
  0xa5   : > { %v3449_v52 = vpop.permute.xlu1 %609  ;;  %v3451_v53 = vpop.permute.xlu0 %380 }
  0xa6   : > { %3126 = vset.pattern.permute.xlu1 %v5404_v0 }
  0xa7   : > { %665 = vperm.xlu1 %3126, %v3341_v16   ;;  %v924_v16 = vmul.f32 %v3487_v11, %v3408_v34  ;;  %v3517_v34 = vrot.slane %v3510_v32, %v530_v40 }
  0xa8   : > { %721 = vperm.xlu0 %3150, %v3454_v54  }
  0xa9   : > { %v3459_v55 = vpop.permute.xlu0 %385  ;;  %v956_v28 = vadd.f32 %v924_v16, %v760_v51  ;;  %v3532_v51 = vrot.slane %v3510_v32, %v726_v38  ;;  %v1465_v38 = vsub.s32 3, %v3411_v35 }
  0xaa   : > { %v3461_v56 = vpop.permute.xlu1 %390 }
  0xab   : > { %3127 = vset.pattern.permute.xlu1 %v5400_v6  ;;  %v3535_v40 = vadd.f32 %v3523_v46, %v956_v28 }
  0xac   : > { %857 = vperm.xlu1 %3127, %v352_v27   ;;  %3155 = vset.pattern.permute.xlu0 %v5400_v6  ;;  %v3503_v27 = vrot.slane %v3240_v26, 7 }
  0xad   : > { %v406_v57 = vpop.permute.xlu0 %405  ;;  %917 = vperm.xlu0 %3155, %v3454_v54   ;;  %5483 = vst [vmem:[#allocation6_spill] sm:$0xff] %v3535_v40 }
  0xae   : > { %5481 = vst [vmem:[#allocation4_spill] sm:$0xff] %v3503_v27  ;;  %v539_v42 = vmul.f32 %v3439_v45, %v406_v57  ;;  %v3527_v50 = vsel %vm1060_vm0, 0.0, %v3503_v27  ;;  %v1161_v16 = vmul.f32 %v3517_v34, %v3503_v27 }
  0xaf   : > { %v3466_v58 = vpop.permute.xlu1 %613  ;;  %5482 = vst [vmem:[#allocation5_spill] sm:$0xff] %v3527_v50 }
  0xb0   : > { %3128 = vset.pattern.permute.xlu1 %v5404_v0 }
  0xb1   : > { %669 = vperm.xlu1 %3128, %v3346_v17   ;;  %v3470_v59 = vpop.permute.xlu0 %410 }
  0xb4   : > { %v396_v62 = vpop.permute.xlu1 %395 }
  0xb5   : > { %v537_v63 = vmul.f32 %v3439_v45, %v396_v62  ;;  %3129 = vset.pattern.permute.xlu1 %v5398_v1  ;;  %v3476_v2 = vpop.permute.xlu0 %430  ;;  %v3545_v62 = vrot.slane %v3240_v26, 1 }
  0xb6   : > { %465 = vperm.xlu1 %3129, %v355_v61  }
  0xb7   : > { %v765_v3 = vadd.f32 %v733_v60, %v537_v63  ;;  %5484 = vst [vmem:[#allocation7_spill] sm:$0xff] %v3545_v62  ;;  %v3567_v23 = vsel %vm1291_vm1, %v3545_v62, 0.0 }
  0xb8   : > { %5486 = vst [vmem:[#allocation9_spill] sm:$0xff] %v3567_v23 }
  0xb9   : > { %v3478_v4 = vpop.permute.xlu1 %809  ;;  %v3480_v5 = vpop.permute.xlu0 %435 }
  0xba   : > { %3130 = vset.pattern.permute.xlu1 %v5404_v0 }
  0xbb   : > { %673 = vperm.xlu1 %3130, %v355_v61  }
  0xbd   : > { %v3485_v9 = vpop.permute.xlu0 %455 }
  0xbe   : > { %v401_v10 = vpop.permute.xlu1 %400 }
  0xbf   : > { %v538_v12 = vmul.f32 %v3439_v45, %v401_v10  ;;  %3131 = vset.pattern.permute.xlu1 %v5398_v1  ;;  %v3554_v10 = vadd.f32 %v3523_v46, %v957_v47 }
  0xc0   : > { %470 = vperm.xlu1 %3131, %v3401_v30  }
  0xc1   : > { %v766_v13 = vadd.f32 %v734_v8, %v538_v12  ;;  %v3492_v14 = vpop.permute.xlu0 %460  ;;  %v1228_v8 = vmul.f32 0.0, %v3532_v51  ;;  %5485 = vst [vmem:[#allocation8_spill] sm:$0xff] %v3554_v10  ;;  %v1063_v12 = vrot.slane %v3535_v40, 7  ;;  %v1064_v31 = vrot.slane %v3554_v10, 7 }
  0xc3   : > { %v814_v17 = vpop.permute.xlu1 %813 }
  0xc4   : > { %v929_v24 = vmul.f32 %v3487_v11, %v814_v17  ;;  %3132 = vset.pattern.permute.xlu1 %v5400_v6  ;;  %v732_v17 = vmul.f32 %v3435_v44, %v3466_v58  ;;  %v536_v58 = vmul.f32 %v3439_v45, %v3461_v56  ;;  %v1065_v56 = vsel %vm1060_vm0, %v1063_v12, %v1064_v31 }
  0xc5   : > { %869 = vperm.xlu1 %3132, %v355_v61   ;;  %v3505_v29 = vpop.permute.xlu0 %480  ;;  %v3542_v61 = vrot.slane %v3510_v32, %v922_v7 }
  0xc6   : > { %v3512_v25 = vadd.f32 %v929_v24, %v765_v3  ;;  %v1160_v3 = vmul.f32 %v3517_v34, %v3527_v50  ;;  %v3570_v24 = vrot.slane %v3510_v32, %v1465_v38  ;;  %v1260_v38 = vadd.f32 %v1228_v8, %v1161_v16 }
  0xc7   : > { %v1391_v28 = vmul.f32 %v3542_v61, %v3545_v62 }
  0xc8   : > { %v626_v48 = vpop.permute.xlu1 %625  ;;  %v1259_v26 = vadd.f32 %v1228_v8, %v1160_v3  ;;  %v1392_v3 = vmul.f32 %v3542_v61, %v3567_v23 }
  0xc9   : > { %v735_v57 = vmul.f32 %v3435_v44, %v626_v48  ;;  %3133 = vset.pattern.permute.xlu1 %v5398_v1  ;;  %v3539_v60 = vpop.permute.xlu0 %485  ;;  %v1141_v48 = vsel %vm1060_vm0, 0.0, %v1063_v12  ;;  %v764_v1 = vadd.f32 %v732_v17, %v536_v58  ;;  %v1468_v17 = vmul.f32 %v3570_v24, %v1065_v56 }
  0xca   : > { %475 = vperm.xlu1 %3133, %v3406_v33   ;;  %v1467_v8 = vmul.f32 %v3570_v24, %v1141_v48  ;;  %v1423_v23 = vadd.f32 %v1391_v28, %v1259_v26  ;;  %v1424_v12 = vadd.f32 %v1392_v3, %v1260_v38  ;;  %v1162_v28 = vmul.f32 %v3517_v34, %v1141_v48 }
  0xcb   : > { %v3548_v63 = vadd.f32 %v735_v57, %v539_v42  ;;  %v928_v42 = vmul.f32 %v3487_v11, %v3478_v4  ;;  %v540_v57 = vmul.f32 %v3439_v45, %v3470_v59  ;;  %v1607_v4 = vsub.s32 5, %v3411_v35 }
  0xcc   : > { %v5488_v38 = vmov 2   ;;  %v1499_v3 = vadd.f32 %v1467_v8, %v1423_v23  ;;  %v1230_v48 = vmul.f32 %v3532_v51, %v3554_v10 }
  0xcd   : > { %v818_v7 = vpop.permute.xlu1 %817  ;;  %v3557_v15 = vpop.permute.xlu0 %505  ;;  %v960_v16 = vadd.f32 %v928_v42, %v764_v1  ;;  %v1163_v42 = vmul.f32 %v3517_v34, %v1065_v56  ;;  %v1229_v56 = vmul.f32 %v3532_v51, %v3535_v40 }
  0xce   : > { %v930_v22 = vmul.f32 %v3487_v11, %v818_v7  ;;  %3134 = vset.pattern.permute.xlu1 %v5400_v6  ;;  %v1533_v7 = vsub.s32 4, %v3411_v35  ;;  %v1675_v6 = vsub.s32 6, %v3411_v35 }
  0xcf   : > { %873 = vperm.xlu1 %3134, %v3401_v30   ;;  %v1261_v8 = vadd.f32 %v1229_v56, %v1162_v28 }
  0xd0   : > { %v3580_v47 = vadd.f32 %v930_v22, %v766_v13  ;;  %v1743_v22 = vsub.s32 7, %v3411_v35  ;;  %v3602_v31 = vrot.slane %v3510_v32, %v1533_v7  ;;  %v3605_v35 = vrot.slane %v3510_v32, %v1607_v4 }
  0xd1   : > { %v3585_v30 = vpop.permute.xlu0 %510  ;;  %v738_v7 = vmul.f32 %v3435_v44, %v3413_v36  ;;  %v730_v4 = vmul.f32 %v3435_v44, %v3420_v39  ;;  %v534_v36 = vmul.f32 %v3439_v45, %v3451_v53  ;;  %v3647_v53 = vadd.f32 %v3523_v46, %v3512_v25 }
  0xd2   : > { %v630_v13 = vpop.permute.xlu1 %629  ;;  %v3610_v1 = vrot.slane %v3510_v32, %v1743_v22  ;;  %v1535_v23 = vmul.f32 %v3602_v31, %v3535_v40 }
  0xd3   : > { %v736_v59 = vmul.f32 %v3435_v44, %v630_v13  ;;  %3135 = vset.pattern.permute.xlu1 %v5404_v0  ;;  %v1295_v13 = vrot.slane %v3554_v10, 1  ;;  %v1294_v0 = vrot.slane %v3535_v40, 1  ;;  %5489 = vst [vmem:[#allocation11_spill] sm:$0xff] %v3647_v53  ;;  %v762_v28 = vadd.f32 %v730_v4, %v534_v36  ;;  %v3666_v4 = vld [vmem:[%s3309_s14 + $0xc0] sm:$0xff] }
  0xd4   : > { %685 = vperm.xlu1 %3135, %v3351_v18   ;;  %v3613_v18 = vrot.slane %v3510_v32, %v1675_v6  ;;  %v3627_v6 = vmul.f32 %v3435_v44, %v3424_v41  ;;  %v1500_v32 = vadd.f32 %v1468_v17, %v1424_v12  ;;  %v1536_v41 = vmul.f32 %v3602_v31, %v3554_v10 }
  0xd5   : > { %v3598_v62 = vadd.f32 %v736_v59, %v540_v57  ;;  %v3618_v57 = vadd.f32 %v3523_v46, %v960_v16  ;;  %v1372_v22 = vsel %vm1291_vm1, %v1295_v13, 0.0  ;;  %v1296_v59 = vsel %vm1291_vm1, %v1294_v0, %v1295_v13 }
  0xd6   : > { %v802_v58 = vpop.permute.xlu0 %801  ;;  %v1262_v16 = vadd.f32 %v1230_v48, %v1163_v42  ;;  %v1567_v40 = vadd.f32 %v1535_v23, %v1499_v3  ;;  %v5490_v10 = vmov 1   ;;  %v1394_v0 = vmul.f32 %v3542_v61, %v1372_v22 }
  0xd7   : > { %v416_v26 = vpop.permute.xlu1 %415  ;;  %5487 = vst [vmem:[#allocation10_spill] sm:$0xff] %v3618_v57  ;;  %v1069_v12 = vrot.slane %v3618_v57, 7  ;;  %v731_v13 = vmul.f32 %v3435_v44, %v3449_v52  ;;  %v1393_v25 = vmul.f32 %v3542_v61, %v1296_v59  ;;  %v1609_v48 = vmul.f32 %v3605_v35, %v1296_v59 }
  0xd8   : > { %3136 = vset.pattern.permute.xlu1 %v5488_v38  ;;  %v541_v27 = vmul.f32 %v3439_v45, %v416_v26  ;;  %v3659_v26 = vadd.f32 %v3523_v46, %v3580_v47  ;;  %v926_v52 = vmul.f32 %v3487_v11, %v802_v58  ;;  %v1301_v36 = vrot.slane %v3647_v53, 1 }
  0xd9   : > { %877 = vperm.xlu1 %3136, %v3406_v33   ;;  %v535_v33 = vmul.f32 %v3439_v45, %v3459_v55  ;;  %v1568_v55 = vadd.f32 %v1536_v41, %v1500_v32  ;;  %v1610_v32 = vmul.f32 %v3605_v35, %v1372_v22  ;;  %v1143_v23 = vsel %vm1060_vm0, 0.0, %v1069_v12 }
  0xda   : > { %v806_v39 = vpop.permute.xlu0 %805  ;;  %5491 = vst [vmem:[#allocation12_spill] sm:$0xff] %v3659_v26  ;;  %v3673_v47 = vadd.f32 %v1609_v48, %v1567_v40  ;;  %v3683_v58 = vmul.f32 %v3439_v45, %v3480_v5  ;;  %v1070_v22 = vrot.slane %v3647_v53, 7  ;;  %v5495_v59 = vmov 0  }
  0xdb   : > { %v763_v56 = vadd.f32 %v731_v13, %v535_v33  ;;  %v1300_v40 = vrot.slane %v3618_v57, 1  ;;  %v3695_v5 = vmul.f32 %v3439_v45, %v3485_v9  ;;  %v927_v13 = vmul.f32 %v3487_v11, %v806_v39 }
  0xdc   : > { %v634_v17 = vpop.permute.xlu1 %633  ;;  %5493 = vst [vmem:[#allocation14_spill] sm:$0xff] %v3673_v47  ;;  %v1233_v48 = vmul.f32 %v3532_v51, %v3618_v57  ;;  %v3713_v9 = vmul.f32 %v3439_v45, %v3492_v14 }
  0xdd   : > { %v737_v50 = vmul.f32 %v3435_v44, %v634_v17  ;;  %3137 = vset.pattern.permute.xlu1 %v5490_v10  ;;  %v3671_v17 = vadd.f32 %v1394_v0, %v1262_v16  ;;  %v5411_v16 = vrot.slane %v3659_v26, 7  ;;  %5496 = vst [vmem:[#allocation16_spill] sm:$0xff] %v3695_v5  ;;  %v958_v0 = vadd.f32 %v926_v52, %v762_v28 }
  0xde   : > { %689 = vperm.xlu1 %3137, %v3355_v19   ;;  %v822_v42 = vpop.permute.xlu0 %821  ;;  %v3668_v19 = vadd.f32 %v1393_v25, %v1261_v8  ;;  %v1166_v8 = vmul.f32 %v3517_v34, %v1143_v23  ;;  %5499 = vst [vmem:[#allocation19_spill] sm:$0xff] %v3713_v9  ;;  %v3717_v28 = vmul.f32 %v3570_v24, %v1143_v23 }
  0xdf   : > { %v769_v3 = vadd.f32 %v737_v50, %v541_v27  ;;  %5492 = vst [vmem:[#allocation13_spill] sm:$0xff] %v3671_v17  ;;  %v3675_v27 = vadd.f32 %v1610_v32, %v1568_v55  ;;  %v3679_v50 = vmul.f32 %v3439_v45, %v3476_v2  ;;  %v931_v55 = vmul.f32 %v3487_v11, %v822_v42 }
  0xe0   : > { %v3704_v32 = vmul.f32 %v3602_v31, %v3618_v57  ;;  %v3708_v42 = vmul.f32 %v3610_v1, %v3618_v57  ;;  %5500 = vst [vmem:[#allocation20_spill] sm:$0xff] %v3717_v28  ;;  %v3720_v52 = vmul.f32 %v3613_v18, %v1143_v23  ;;  %v1144_v57 = vsel %vm1060_vm0, 0.0, %v5411_v16 }
  0xe1   : > { %v421_v41 = vpop.permute.xlu1 %420  ;;  %5494 = vst [vmem:[#allocation15_spill] sm:$0xff] %v3675_v27  ;;  %v3733_v23 = vadd.f32 %v3523_v46, %v958_v0  ;;  %v3750_v0 = vld [vmem:[%s5391_s3 + $0x8] ss:$0 sm:$0xff] }
  0xe2   : > { %v542_v33 = vmul.f32 %v3439_v45, %v421_v41  ;;  %3138 = vset.pattern.permute.xlu1 %v5495_v59  ;;  %v826_v2 = vpop.permute.xlu0 %825  ;;  %5497 = vst [vmem:[#allocation17_spill] sm:$0xff] %v3704_v32  ;;  %5498 = vst [vmem:[#allocation18_spill] sm:$0xff] %v3708_v42  ;;  %v1302_v41 = vsel %vm1291_vm1, %v1300_v40, %v1301_v36  ;;  %v963_v40 = vadd.f32 %v931_v55, %v3548_v63 }
  0xe3   : > { %490 = vperm.xlu1 %3138, %v3666_v4   ;;  %5501 = vst [vmem:[#allocation21_spill] sm:$0xff] %v3720_v52  ;;  %5502 = vst [vmem:[#allocation22_spill] sm:$0xff] %v3733_v23  ;;  %v1234_v63 = vmul.f32 %v3532_v51, %v3647_v53  ;;  %v3741_v55 = vmul.f32 %v3602_v31, %v3647_v53  ;;  %v932_v16 = vmul.f32 %v3487_v11, %v826_v2 }
  0xe4   : > { %v3698_v25 = vadd.f32 %v738_v7, %v542_v33  ;;  %v1071_v7 = vsel %vm1060_vm0, %v1069_v12, %v1070_v22  ;;  %v1265_v33 = vadd.f32 %v1233_v48, %v1166_v8  ;;  %v1374_v12 = vsel %vm1291_vm1, %v1301_v36, 0.0 }
  0xe5   : > { %v1397_v22 = vmul.f32 %v3542_v61, %v1302_v41  ;;  %v959_v8 = vadd.f32 %v927_v13, %v763_v56  ;;  %v1167_v48 = vmul.f32 %v3517_v34, %v1071_v7  ;;  %5503 = vst [vmem:[#allocation23_spill] sm:$0xff] %v3741_v55  ;;  %v3745_v36 = vmul.f32 %v3439_v45, %v3505_v29 }
  0xe6   : > { %v830_v39 = vpop.permute.xlu1 %829  ;;  %v3728_v14 = vpop.permute.xlu0 %841  ;;  %v3754_v56 = vmul.f32 %v3610_v1, %v3647_v53  ;;  %v3758_v13 = vmul.f32 %v3439_v45, %v3539_v60  ;;  %v1398_v29 = vmul.f32 %v3542_v61, %v1374_v12  ;;  %v3767_v27 = vadd.f32 %v3523_v46, %v963_v40 }
  0xe7   : > { %v933_v42 = vmul.f32 %v3487_v11, %v830_v39  ;;  %3139 = vset.pattern.permute.xlu1 %v5490_v10  ;;  %5504 = vst [vmem:[#allocation24_spill] sm:$0xff] %v3745_v36  ;;  %v1473_v39 = vmul.f32 %v3570_v24, %v1144_v57  ;;  %v3764_v36 = vmul.f32 %v3605_v35, %v1374_v12  ;;  %v1066_v2 = vrot.slane %v3733_v23, 7 }
  0xe8   : > { %693 = vperm.xlu1 %3139, %v3666_v4   ;;  %5505 = vst [vmem:[#allocation25_spill] sm:$0xff] %v3754_v56  ;;  %5506 = vst [vmem:[#allocation26_spill] sm:$0xff] %v3758_v13  ;;  %v1429_v53 = vadd.f32 %v1397_v22, %v1265_v33  ;;  %v3770_v56 = vadd.f32 %v3523_v46, %v959_v8  ;;  %v1266_v13 = vadd.f32 %v1234_v63, %v1167_v48 }
  0xe9   : > { %5507 = vst [vmem:[#allocation27_spill] sm:$0xff] %v3764_v36  ;;  %5508 = vst [vmem:[#allocation28_spill] sm:$0xff] %v3767_v27  ;;  %v965_v52 = vadd.f32 %v933_v42, %v769_v3  ;;  %v3776_v9 = vmul.f32 %v3750_v0, %v1374_v12  ;;  %v3780_v40 = vmul.f32 %v3439_v45, %v3557_v15  ;;  %v1073_v12 = vrot.slane %v3767_v27, 7 }
  0xea   : > { %5509 = vst [vmem:[#allocation29_spill] sm:$0xff] %v3770_v56  ;;  %v3783_v3 = vpop.permute.xlu0 %845  ;;  %v3786_v42 = vmul.f32 %v3570_v24, %v1071_v7  ;;  %v1505_v33 = vadd.f32 %v1473_v39, %v1429_v53  ;;  %v964_v22 = vadd.f32 %v932_v16, %v3598_v62  ;;  %v3795_v15 = vmul.f32 %v3605_v35, %v1302_v41 }
  0xeb   : > { %v426_v47 = vpop.permute.xlu1 %425  ;;  %5510 = vst [vmem:[#allocation30_spill] sm:$0xff] %v3776_v9  ;;  %5511 = vst [vmem:[#allocation31_spill] sm:$0xff] %v3780_v40  ;;  %v3798_v48 = vmul.f32 %v3613_v18, %v1071_v7  ;;  %v3801_v63 = vmul.f32 %v3750_v0, %v1302_v41  ;;  %v1235_v40 = vmul.f32 %v3532_v51, %v3659_v26  ;;  %v1142_v16 = vsel %vm1060_vm0, 0.0, %v1066_v2 }
  0xec   : > { %v543_v60 = vmul.f32 %v3439_v45, %v426_v47  ;;  %3140 = vset.pattern.permute.xlu1 %v5495_v59  ;;  %5512 = vst [vmem:[#allocation32_spill] sm:$0xff] %v3786_v42  ;;  %v1168_v47 = vmul.f32 %v3517_v34, %v1144_v57  ;;  %5513 = vst [vmem:[#allocation33_spill] sm:$0xff] %v3795_v15  ;;  %v1541_v62 = vmul.f32 %v3602_v31, %v3659_v26 }
  0xed   : > { %495 = vperm.xlu1 %3140, %v3417_v37   ;;  %5514 = vst [vmem:[#allocation34_spill] sm:$0xff] %v3798_v48  ;;  %5515 = vst [vmem:[#allocation35_spill] sm:$0xff] %v3801_v63  ;;  %v1430_v39 = vadd.f32 %v1398_v29, %v1266_v13  ;;  %v3812_v7 = vmul.f32 %v3610_v1, %v3659_v26  ;;  %v3816_v41 = vmul.f32 %v3439_v45, %v3585_v30 }
  0xee   : > { %v3791_v8 = vadd.f32 %v3627_v6, %v543_v60  ;;  %v1067_v6 = vrot.slane %v3770_v56, 7  ;;  %v1303_v60 = vrot.slane %v3659_v26, 1  ;;  %v1267_v9 = vadd.f32 %v1235_v40, %v1168_v47 }
  0xef   : > { %5516 = vst [vmem:[#allocation36_spill] sm:$0xff] %v3812_v7  ;;  %5517 = vst [vmem:[#allocation37_spill] sm:$0xff] %v3816_v41  ;;  %v1573_v63 = vadd.f32 %v1541_v62, %v1505_v33  ;;  %v3820_v48 = vmul.f32 %v3613_v18, %v1144_v57  ;;  %v3823_v36 = vadd.f32 %v3523_v46, %v964_v22  ;;  %v5520_v29 = vrot.slane %v3659_v26, 7  ;;  %v3832_v7 = vpop.permute.xlu0 %861 }
  0xf0   : > { %v834_v53 = vpop.permute.xlu1 %833  ;;  %v1231_v13 = vmul.f32 %v3532_v51, %v3733_v23  ;;  %v1304_v41 = vrot.slane %v3767_v27, 1  ;;  %v1164_v40 = vmul.f32 %v3517_v34, %v1142_v16  ;;  %v3837_v57 = vmul.f32 %v3602_v31, %v3733_v23 }
  0xf1   : > { %3141 = vset.pattern.permute.xlu1 %v5488_v38  ;;  %5518 = vst [vmem:[#allocation38_spill] sm:$0xff] %v3820_v48  ;;  %5519 = vst [vmem:[#allocation39_spill] sm:$0xff] %v3823_v36  ;;  %v1074_v30 = vsel %vm1060_vm0, %v5520_v29, %v1073_v12  ;;  %v3840_v47 = vadd.f32 %v3523_v46, %v965_v52  ;;  %v1297_v33 = vrot.slane %v3733_v23, 1  ;;  %v1298_v29 = vrot.slane %v3770_v56, 1 }
  0xf2   : > { %889 = vperm.xlu1 %3141, %v3666_v4   ;;  %5521 = vst [vmem:[#allocation40_spill] sm:$0xff] %v3837_v57  ;;  %v3843_v4 = vsel %vm1060_vm0, %v1066_v2, %v1067_v6  ;;  %v1232_v22 = vmul.f32 %v3532_v51, %v3770_v56  ;;  %v3850_v12 = vmul.f32 %v3602_v31, %v3770_v56  ;;  %v1075_v2 = vrot.slane %v3823_v36, 7 }
  0xf3   : > { %5522 = vst [vmem:[#allocation41_spill] sm:$0xff] %v3840_v47  ;;  %5523 = vst [vmem:[#allocation42_spill] sm:$0xff] %v3843_v4  ;;  %v3855_v26 = vmul.f32 %v3610_v1, %v3733_v23  ;;  %v1474_v52 = vmul.f32 %v3570_v24, %v1074_v30  ;;  %v934_v6 = vmul.f32 %v3487_v11, %v834_v53  ;;  %v1076_v53 = vrot.slane %v3840_v47, 7 }
  0xf4   : > { %5524 = vst [vmem:[#allocation43_spill] sm:$0xff] %v3850_v12  ;;  %v3862_v48 = vmul.f32 %v3570_v24, %v1142_v16  ;;  %v1305_v15 = vsel %vm1291_vm1, %v1303_v60, %v1304_v41  ;;  %v1165_v56 = vmul.f32 %v3517_v34, %v3843_v4  ;;  %v3868_v23 = vadd.f32 %v1231_v13, %v1164_v40  ;;  %v3882_v40 = vpop.permute.xlu0 %865 }
  0xf5   : > { %v646_v62 = vpop.permute.xlu1 %645  ;;  %5525 = vst [vmem:[#allocation44_spill] sm:$0xff] %v3855_v26  ;;  %v3871_v26 = vmul.f32 %v3613_v18, %v1142_v16  ;;  %v1169_v55 = vmul.f32 %v3517_v34, %v1074_v30  ;;  %v966_v32 = vadd.f32 %v934_v6, %v3698_v25  ;;  %v1236_v60 = vmul.f32 %v3532_v51, %v3767_v27 }
  0xf6   : > { %3142 = vset.pattern.permute.xlu1 %v5495_v59  ;;  %v740_v12 = vmul.f32 %v3435_v44, %v646_v62  ;;  %v1375_v57 = vsel %vm1291_vm1, %v1304_v41, 0.0  ;;  %v1542_v13 = vmul.f32 %v3602_v31, %v3767_v27  ;;  %v3885_v16 = vsel %vm1291_vm1, %v1297_v33, %v1298_v29 }
  0xf7   : > { %500 = vperm.xlu1 %3142, %v3431_v43   ;;  %5526 = vst [vmem:[#allocation45_spill] sm:$0xff] %v3871_v26  ;;  %v1506_v26 = vadd.f32 %v1474_v52, %v1430_v39  ;;  %v3889_v5 = vmul.f32 %v3610_v1, %v3767_v27  ;;  %v1145_v25 = vsel %vm1060_vm0, 0.0, %v1075_v2  ;;  %v1399_v41 = vmul.f32 %v3542_v61, %v1305_v15 }
  0xf8   : > { %v3893_v62 = vadd.f32 %v740_v12, %v3679_v50  ;;  %v1615_v54 = vmul.f32 %v3605_v35, %v1305_v15  ;;  %v3899_v33 = vadd.f32 %v1232_v22, %v1165_v56  ;;  %v1268_v39 = vadd.f32 %v1236_v60, %v1169_v55  ;;  %v3922_v28 = vpop.permute.xlu0 %881 }
  0xf9   : > { %5527 = vst [vmem:[#allocation46_spill] sm:$0xff] %v3889_v5  ;;  %v1400_v52 = vmul.f32 %v3542_v61, %v1375_v57  ;;  %v1077_v27 = vsel %vm1060_vm0, %v1075_v2, %v1076_v53  ;;  %v3905_v50 = vsel %vm1291_vm1, %v1298_v29, 0.0  ;;  %v1616_v12 = vmul.f32 %v3605_v35, %v1375_v57 }
  0xfa   : > { %v838_v6 = vpop.permute.xlu1 %837  ;;  %v1475_v5 = vmul.f32 %v3570_v24, %v1145_v25  ;;  %v1574_v56 = vadd.f32 %v1542_v13, %v1506_v26  ;;  %v3912_v55 = vmul.f32 %v3613_v18, %v1074_v30  ;;  %v3915_v22 = vmul.f32 %v3750_v0, %v1305_v15 }
  0xfb   : > { %v935_v49 = vmul.f32 %v3487_v11, %v838_v6  ;;  %3143 = vset.pattern.permute.xlu1 %v5488_v38  ;;  %v1683_v6 = vmul.f32 %v3613_v18, %v1145_v25  ;;  %v1431_v29 = vadd.f32 %v1399_v41, %v1267_v9  ;;  %v1647_v2 = vadd.f32 %v1615_v54, %v1573_v63 }
  0xfc   : > { %893 = vperm.xlu1 %3143, %v3417_v37   ;;  %5528 = vst [vmem:[#allocation47_spill] sm:$0xff] %v3912_v55  ;;  %5529 = vst [vmem:[#allocation48_spill] sm:$0xff] %v3915_v22  ;;  %v3918_v37 = vmul.f32 %v3750_v0, %v1375_v57  ;;  %v1307_v53 = vrot.slane %v3840_v47, 1  ;;  %v1476_v60 = vmul.f32 %v3570_v24, %v1077_v27  ;;  %v1306_v54 = vrot.slane %v3823_v36, 1 }
  0xfd   : > { %v967_v42 = vadd.f32 %v935_v49, %v3791_v8  ;;  %v1432_v49 = vadd.f32 %v1400_v52, %v1268_v39  ;;  %v1237_v26 = vmul.f32 %v3532_v51, %v3823_v36  ;;  %v936_v8 = vmul.f32 %v3487_v11, %v3728_v14 }
  0xfe   : > { %5530 = vst [vmem:[#allocation49_spill] sm:$0xff] %v3918_v37  ;;  %v937_v15 = vmul.f32 %v3487_v11, %v3783_v3  ;;  %v1507_v9 = vadd.f32 %v1475_v5, %v1431_v29  ;;  %v1543_v63 = vmul.f32 %v3602_v31, %v3823_v36  ;;  %v1715_v30 = vadd.f32 %v1683_v6, %v1647_v2 }
  0xff   : > { %v650_v17 = vpop.permute.xlu1 %649  ;;  %v1648_v57 = vadd.f32 %v1616_v12, %v1574_v56  ;;  %v1751_v13 = vmul.f32 %v3610_v1, %v3823_v36  ;;  %v1171_v14 = vmul.f32 %v3517_v34, %v1077_v27  ;;  %v1684_v41 = vmul.f32 %v3613_v18, %v1077_v27 }
 0x100   : > { %3144 = vset.pattern.permute.xlu1 %v5490_v10  ;;  %v1308_v3 = vsel %vm1291_vm1, %v1306_v54, %v1307_v53  ;;  %v1508_v39 = vadd.f32 %v1476_v60, %v1432_v49  ;;  %v3941_v52 = vadd.f32 %v3523_v46, %v966_v32  ;;  %v741_v5 = vmul.f32 %v3435_v44, %v650_v17  ;;  %v886_v60 = vpop.permute.xlu0 %885 }
 0x101   : > { %705 = vperm.xlu1 %3144, %v3360_v20   ;;  %v1170_v6 = vmul.f32 %v3517_v34, %v1145_v25  ;;  %v1238_v20 = vmul.f32 %v3532_v51, %v3840_v47  ;;  %v3949_v12 = vmul.f32 %v3487_v11, %v3832_v7  ;;  %v3952_v56 = vadd.f32 %v3523_v46, %v967_v42 }
 0x102   : > { %5531 = vst [vmem:[#allocation50_spill] sm:$0xff] %v3941_v52  ;;  %v1575_v29 = vadd.f32 %v1543_v63, %v1507_v9  ;;  %v1782_v2 = vadd.f32 %v1751_v13, %v1715_v30  ;;  %v1376_v32 = vsel %vm1291_vm1, %v1307_v53, 0.0  ;;  %v1544_v17 = vmul.f32 %v3602_v31, %v3840_v47 }
 0x103   : > { %5532 = vst [vmem:[#allocation51_spill] sm:$0xff] %v3952_v56  ;;  %v1270_v25 = vadd.f32 %v1238_v20, %v1171_v14  ;;  %v1401_v49 = vmul.f32 %v3542_v61, %v1308_v3  ;;  %v1617_v7 = vmul.f32 %v3605_v35, %v1308_v3  ;;  %v1716_v54 = vadd.f32 %v1684_v41, %v1648_v57 }
 0x104   : > { %v441_v27 = vpop.permute.xlu1 %440  ;;  %v1576_v42 = vadd.f32 %v1544_v17, %v1508_v39  ;;  %v1818_v9 = vmul.f32 %v3750_v0, %v1308_v3  ;;  %v1078_v63 = vrot.slane %v3941_v52, 7  ;;  %v773_v53 = vadd.f32 %v741_v5, %v3683_v58  ;;  %v902_v37 = vpop.permute.xlu0 %901 }
 0x105   : > { %3145 = vset.pattern.permute.xlu1 %v5488_v38  ;;  %v1269_v30 = vadd.f32 %v1237_v26, %v1170_v6  ;;  %v1402_v13 = vmul.f32 %v3542_v61, %v1376_v32  ;;  %v1752_v14 = vmul.f32 %v3610_v1, %v3840_v47  ;;  %v1079_v20 = vrot.slane %v3952_v56, 7 }
 0x106   : > { %897 = vperm.xlu1 %3145, %v3431_v43   ;;  %v1618_v36 = vmul.f32 %v3605_v35, %v1376_v32  ;;  %v1819_v57 = vmul.f32 %v3750_v0, %v1376_v32  ;;  %v1395_v41 = vmul.f32 %v3542_v61, %v3885_v16  ;;  %v1396_v3 = vmul.f32 %v3542_v61, %v3905_v50 }
 0x107   : > { %v1434_v58 = vadd.f32 %v1402_v13, %v1270_v25  ;;  %v1783_v26 = vadd.f32 %v1752_v14, %v1716_v54  ;;  %v1433_v39 = vadd.f32 %v1401_v49, %v1269_v30  ;;  %v1649_v5 = vadd.f32 %v1617_v7, %v1575_v29  ;;  %v4022_v13 = vld [vmem:[%s5392_s4] ss:$0 sm:$0xff] }
 0x108   : > { %v1650_v6 = vadd.f32 %v1618_v36, %v1576_v42  ;;  %v3975_v17 = vadd.f32 %v1818_v9, %v1782_v2  ;;  %v1146_v47 = vsel %vm1060_vm0, 0.0, %v1078_v63  ;;  %v968_v32 = vadd.f32 %v936_v8, %v3893_v62  ;;  %v3993_v62 = vld [vmem:[%s3309_s14 + $0xe8] sm:$0xff] }
 0x109   : > { %v654_v43 = vpop.permute.xlu1 %653  ;;  %v1080_v22 = vsel %vm1060_vm0, %v1078_v63, %v1079_v20  ;;  %v969_v55 = vadd.f32 %v937_v15, %v773_v53  ;;  %v546_v25 = vmul.f32 %v3439_v45, %v441_v27  ;;  %v1310_v29 = vrot.slane %v3952_v56, 1  ;;  %v4029_v20 = vpop.permute.xlu0 %905 }
 0x10a   : > { %3147 = vset.pattern.permute.xlu1 %v5490_v10  ;;  %5533 = vst [vmem:[#allocation52_spill] sm:$0xff] %v3975_v17  ;;  %v742_v49 = vmul.f32 %v3435_v44, %v654_v43  ;;  %v3986_v36 = vmul.f32 %v3487_v11, %v3882_v40  ;;  %v3990_v2 = vmul.f32 %v3487_v11, %v3922_v28  ;;  %v1309_v42 = vrot.slane %v3941_v52, 1  ;;  %v5540_v43 = vld [vmem:[#allocation13_spill] sm:$0xff] }
 0x10b   : > { %709 = vperm.xlu1 %3147, %v3365_v21   ;;  %v1427_v21 = vadd.f32 %v1395_v41, %v3868_v23  ;;  %v1851_v8 = vadd.f32 %v1819_v57, %v1783_v26  ;;  %v1477_v15 = vmul.f32 %v3570_v24, %v1146_v47  ;;  %v1470_v54 = vmul.f32 %v3570_v24, %v3843_v4 }
 0x10c   : > { %5534 = vst [vmem:[#allocation53_spill] sm:$0xff] %v3986_v36  ;;  %5535 = vst [vmem:[#allocation54_spill] sm:$0xff] %v3990_v2  ;;  %v774_v27 = vadd.f32 %v742_v49, %v546_v25  ;;  %v4001_v40 = vadd.f32 %v3523_v46, %v968_v32  ;;  %v1478_v28 = vmul.f32 %v3570_v24, %v1080_v22  ;;  %v5541_v25 = vld [vmem:[#allocation20_spill] sm:$0xff] }
 0x10d   : > { %v1428_v9 = vadd.f32 %v1396_v3, %v3899_v33  ;;  %v1239_v23 = vmul.f32 %v3532_v51, %v3941_v52  ;;  %v4009_v63 = vadd.f32 %v3523_v46, %v969_v55  ;;  %v4012_v53 = vmul.f32 %v3487_v11, %v886_v60 }
 0x10e   : > { %v446_v7 = vpop.permute.xlu1 %445  ;;  %5536 = vst [vmem:[#allocation55_spill] sm:$0xff] %v4001_v40  ;;  %v4017_v30 = vadd.f32 %v3862_v48, %v3668_v19  ;;  %v1172_v33 = vmul.f32 %v3517_v34, %v1146_v47  ;;  %v1545_v55 = vmul.f32 %v3602_v31, %v3941_v52  ;;  %v1685_v14 = vmul.f32 %v3613_v18, %v1146_v47 }
 0x10f   : > { %3148 = vset.pattern.permute.xlu1 %v5495_v59  ;;  %5537 = vst [vmem:[#allocation56_spill] sm:$0xff] %v4009_v63  ;;  %5538 = vst [vmem:[#allocation57_spill] sm:$0xff] %v4012_v53  ;;  %v1311_v60 = vsel %vm1291_vm1, %v1309_v42, %v1310_v29  ;;  %v4032_v57 = vadd.f32 %v4022_v13, %v1851_v8  ;;  %v1509_v19 = vadd.f32 %v1477_v15, %v1433_v39 }
 0x110   : > { %515 = vperm.xlu1 %3148, %v3993_v62   ;;  %v1753_v48 = vmul.f32 %v3610_v1, %v3941_v52  ;;  %v4037_v41 = vadd.f32 %v1470_v54, %v5540_v43  ;;  %v1081_v3 = vrot.slane %v4001_v40, 7  ;;  %v1510_v26 = vadd.f32 %v1478_v28, %v1434_v58 }
 0x111   : > { %5539 = vst [vmem:[#allocation58_spill] sm:$0xff] %v4032_v57  ;;  %v1686_v32 = vmul.f32 %v3613_v18, %v1080_v22  ;;  %v4042_v49 = vadd.f32 %v5541_v25, %v1427_v21  ;;  %v1619_v42 = vmul.f32 %v3605_v35, %v1311_v60  ;;  %v1082_v8 = vrot.slane %v4009_v63, 7  ;;  %v5543_v21 = vld [vmem:[#allocation32_spill] sm:$0xff] }
 0x112   : > { %v4047_v39 = vmul.f32 %v3487_v11, %v902_v37  ;;  %v1271_v54 = vadd.f32 %v1239_v23, %v1172_v33  ;;  %v1717_v43 = vadd.f32 %v1685_v14, %v1649_v5  ;;  %v1546_v58 = vmul.f32 %v3602_v31, %v3952_v56  ;;  %v658_v33 = vpop.permute.xlu0 %657 }
 0x113   : > { %v850_v47 = vpop.permute.xlu1 %849  ;;  %v4055_v28 = vadd.f32 %v5543_v21, %v1428_v9  ;;  %v1577_v25 = vadd.f32 %v1545_v55, %v1509_v19  ;;  %v1241_v52 = vmul.f32 %v3532_v51, %v4001_v40  ;;  %v1377_v37 = vsel %vm1291_vm1, %v1310_v29, 0.0 }
 0x114   : > { %5542 = vst [vmem:[#allocation13_spill] sm:$0xff] %v4047_v39  ;;  %v938_v15 = vmul.f32 %v3487_v11, %v850_v47  ;;  %3149 = vset.pattern.permute.xlu1 %v5490_v10  ;;  %v1147_v47 = vsel %vm1060_vm0, 0.0, %v1081_v3  ;;  %v1173_v10 = vmul.f32 %v3517_v34, %v1080_v22  ;;  %v1578_v5 = vadd.f32 %v1546_v58, %v1510_v26 }
 0x115   : > { %713 = vperm.xlu1 %3149, %v3993_v62   ;;  %v1718_v23 = vadd.f32 %v1686_v32, %v1650_v6  ;;  %v1312_v14 = vrot.slane %v4001_v40, 1  ;;  %v1240_v9 = vmul.f32 %v3532_v51, %v3952_v56  ;;  %v1651_v21 = vadd.f32 %v1619_v42, %v1577_v25 }
 0x116   : > { %v970_v39 = vadd.f32 %v938_v15, %v774_v27  ;;  %v1083_v55 = vsel %vm1060_vm0, %v1081_v3, %v1082_v8  ;;  %v1403_v29 = vmul.f32 %v3542_v61, %v1311_v60  ;;  %v1620_v27 = vmul.f32 %v3605_v35, %v1377_v37  ;;  %v5544_v8 = vld [vmem:[#allocation2_spill] sm:$0xff]  ;;  %v662_v36 = vpop.permute.xlu0 %661 }
 0x117   : > { %v1754_v22 = vmul.f32 %v3610_v1, %v3952_v56  ;;  %v1313_v6 = vrot.slane %v4009_v63, 1  ;;  %v1547_v26 = vmul.f32 %v3602_v31, %v4001_v40  ;;  %v1687_v32 = vmul.f32 %v3613_v18, %v1147_v47 }
 0x118   : > { %v4066_v19 = vpop.permute.xlu1 %450  ;;  %v547_v3 = vmul.f32 %v3439_v45, %v446_v7  ;;  %v743_v42 = vmul.f32 %v3435_v44, %v658_v33  ;;  %v1272_v15 = vadd.f32 %v1240_v9, %v1173_v10  ;;  %v1652_v58 = vadd.f32 %v1620_v27, %v1578_v5 }
 0x119   : > { %3151 = vset.pattern.permute.xlu1 %v5495_v59  ;;  %v1785_v25 = vadd.f32 %v1754_v22, %v1718_v23  ;;  %v1688_v56 = vmul.f32 %v3613_v18, %v1083_v55  ;;  %v1784_v57 = vadd.f32 %v1753_v48, %v1717_v43  ;;  %v1174_v53 = vmul.f32 %v3517_v34, %v1147_v47 }
 0x11a   : > { %520 = vperm.xlu1 %3151, %v5544_v8   ;;  %v1755_v17 = vmul.f32 %v3610_v1, %v4001_v40  ;;  %v1719_v2 = vadd.f32 %v1687_v32, %v1651_v21  ;;  %v1404_v4 = vmul.f32 %v3542_v61, %v1377_v37  ;;  %v1435_v7 = vadd.f32 %v1403_v29, %v1271_v54  ;;  %v678_v29 = vpop.permute.xlu0 %677 }
 0x11b   : > { %v1821_v33 = vmul.f32 %v3750_v0, %v1377_v37  ;;  %v1314_v8 = vsel %vm1291_vm1, %v1312_v14, %v1313_v6  ;;  %v1820_v5 = vmul.f32 %v3750_v0, %v1311_v60  ;;  %v1480_v23 = vmul.f32 %v3570_v24, %v1083_v55 }
 0x11c   : > { %v775_v48 = vadd.f32 %v743_v42, %v547_v3  ;;  %v1479_v9 = vmul.f32 %v3570_v24, %v1147_v47  ;;  %v1436_v21 = vadd.f32 %v1404_v4, %v1272_v15  ;;  %v1720_v22 = vadd.f32 %v1688_v56, %v1652_v58 }
 0x11d   : > { %v854_v10 = vpop.permute.xlu1 %853  ;;  %v1853_v27 = vadd.f32 %v1821_v33, %v1785_v25  ;;  %v1175_v54 = vmul.f32 %v3517_v34, %v1083_v55  ;;  %v1786_v37 = vadd.f32 %v1755_v17, %v1719_v2  ;;  %v1822_v14 = vmul.f32 %v3750_v0, %v1314_v8  ;;  %v5547_v25 = vld [vmem:[#allocation3_spill] sm:$0xff] }
 0x11e   : > { %v939_v43 = vmul.f32 %v3487_v11, %v854_v10  ;;  %3152 = vset.pattern.permute.xlu1 %v5488_v38  ;;  %v1378_v32 = vsel %vm1291_vm1, %v1313_v6, 0.0  ;;  %v1756_v3 = vmul.f32 %v3610_v1, %v4009_v63  ;;  %v4099_v42 = vadd.f32 %v3523_v46, %v970_v39 }
 0x11f   : > { %909 = vperm.xlu1 %3152, %v3993_v62   ;;  %v1511_v4 = vadd.f32 %v1479_v9, %v1435_v7  ;;  %v1273_v47 = vadd.f32 %v1241_v52, %v1174_v53  ;;  %v1852_v56 = vadd.f32 %v1820_v5, %v1784_v57  ;;  %v1242_v62 = vmul.f32 %v3532_v51, %v4009_v63  ;;  %v682_v7 = vpop.permute.xlu0 %681 }
 0x120   : > { %v971_v60 = vadd.f32 %v939_v43, %v775_v48  ;;  %5545 = vst [vmem:[#allocation20_spill] sm:$0xff] %v4099_v42  ;;  %v1512_v55 = vadd.f32 %v1480_v23, %v1436_v21  ;;  %v4104_v2 = vadd.f32 %v4022_v13, %v1853_v27  ;;  %v1548_v6 = vmul.f32 %v3602_v31, %v4009_v63  ;;  %v5548_v23 = vld [vmem:[#allocation16_spill] sm:$0xff]  ;;  %v5561_v63 = vld [vmem:[#allocation33_spill] sm:$0xff] }
 0x121   : > { %v1787_v15 = vadd.f32 %v1756_v3, %v1720_v22  ;;  %v1274_v39 = vadd.f32 %v1242_v62, %v1175_v54  ;;  %v1823_v52 = vmul.f32 %v3750_v0, %v1378_v32  ;;  %v1854_v53 = vadd.f32 %v1822_v14, %v1786_v37  ;;  %v5553_v14 = vld [vmem:[#allocation40_spill] sm:$0xff] }
 0x122   : > { %v666_v17 = vpop.permute.xlu1 %665  ;;  %5546 = vst [vmem:[#allocation32_spill] sm:$0xff] %v4104_v2  ;;  %v1405_v57 = vmul.f32 %v3542_v61, %v1314_v8  ;;  %v1084_v33 = vrot.slane %v4099_v42, 7  ;;  %v1579_v10 = vadd.f32 %v1547_v26, %v1511_v4  ;;  %v1621_v5 = vmul.f32 %v3605_v35, %v1314_v8 }
 0x123   : > { %v745_v58 = vmul.f32 %v3435_v44, %v666_v17  ;;  %3153 = vset.pattern.permute.xlu1 %v5495_v59  ;;  %v1580_v43 = vadd.f32 %v1548_v6, %v1512_v55  ;;  %v4118_v59 = vmul.f32 %v3487_v11, %v4029_v20  ;;  %v548_v9 = vmul.f32 %v3439_v45, %v4066_v19  ;;  %v3225_v55 = vld [vmem:[%s3309_s14 + $0xf0] sm:$0xff] }
 0x124   : > { %525 = vperm.xlu1 %3153, %v5547_v25   ;;  %v744_v21 = vmul.f32 %v3435_v44, %v662_v36  ;;  %v4124_v27 = vadd.f32 %v4022_v13, %v1852_v56  ;;  %v1406_v26 = vmul.f32 %v3542_v61, %v1378_v32  ;;  %v1855_v8 = vadd.f32 %v1823_v52, %v1787_v15  ;;  %v698_v36 = vpop.permute.xlu0 %697 }
 0x125   : > { %v777_v48 = vadd.f32 %v745_v58, %v5548_v23  ;;  %5549 = vst [vmem:[#allocation2_spill] sm:$0xff] %v4118_v59  ;;  %v4128_v22 = vadd.f32 %v3523_v46, %v971_v60  ;;  %v4132_v20 = vmul.f32 %v4104_v2, %v4104_v2  ;;  %v1622_v19 = vmul.f32 %v3605_v35, %v1378_v32 }
 0x126   : > { %5550 = vst [vmem:[#allocation3_spill] sm:$0xff] %v4124_v27  ;;  %v1437_v37 = vadd.f32 %v1405_v57, %v1273_v47  ;;  %v1569_v3 = vadd.f32 %v5553_v14, %v4017_v30  ;;  %v4139_v4 = vadd.f32 %v4022_v13, %v1854_v53  ;;  %v1148_v60 = vsel %vm1060_vm0, 0.0, %v1084_v33  ;;  %v5556_v57 = vld [vmem:[#allocation43_spill] sm:$0xff] }
 0x127   : > { %5551 = vst [vmem:[#allocation16_spill] sm:$0xff] %v4128_v22  ;;  %v858_v54 = vpop.permute.xlu1 %857  ;;  %5552 = vst [vmem:[#allocation59_spill] sm:$0xff] %v4132_v20  ;;  %v1653_v56 = vadd.f32 %v1621_v5, %v1579_v10  ;;  %v1438_v62 = vadd.f32 %v1406_v26, %v1274_v39  ;;  %v776_v17 = vadd.f32 %v744_v21, %v548_v9  ;;  %v1085_v30 = vrot.slane %v4128_v22, 7  ;;  %v5558_v26 = vld [vmem:[#allocation23_spill] sm:$0xff]  ;;  %v5571_v20 = vld [vmem:[#allocation34_spill] sm:$0xff] }
 0x128   : > { %3154 = vset.pattern.permute.xlu1 %v5488_v38  ;;  %5554 = vst [vmem:[#allocation40_spill] sm:$0xff] %v4139_v4  ;;  %v4143_v6 = vadd.f32 %v1622_v19, %v1580_v43  ;;  %v940_v32 = vmul.f32 %v3487_v11, %v858_v54  ;;  %v4147_v38 = vmul.f32 %v3435_v44, %v678_v29  ;;  %v5557_v29 = vld [vmem:[#allocation17_spill] sm:$0xff]  ;;  %v1315_v23 = vrot.slane %v4099_v42, 1  ;;  %v702_v43 = vpop.permute.xlu0 %701 }
 0x129   : > { %913 = vperm.xlu1 %3154, %v3225_v55   ;;  %v4150_v47 = vadd.f32 %v4022_v13, %v1855_v8  ;;  %v4154_v15 = vmul.f32 %v3435_v44, %v682_v7  ;;  %v4157_v58 = vmul.f32 %v3435_v44, %v698_v36  ;;  %v1481_v39 = vmul.f32 %v3570_v24, %v1148_v60 }
 0x12a   : > { %v972_v52 = vadd.f32 %v940_v32, %v776_v17  ;;  %v1570_v25 = vadd.f32 %v5556_v57, %v4037_v41  ;;  %v1571_v10 = vadd.f32 %v5557_v29, %v4042_v49  ;;  %v1243_v5 = vmul.f32 %v3532_v51, %v4099_v42 }
 0x12b   : > { %5555 = vst [vmem:[#allocation60_spill] sm:$0xff] %v4150_v47  ;;  %v1689_v7 = vmul.f32 %v3613_v18, %v1148_v60  ;;  %v1611_v9 = vmul.f32 %v3605_v35, %v3885_v16  ;;  %v1549_v21 = vmul.f32 %v3602_v31, %v4099_v42  ;;  %v1757_v41 = vmul.f32 %v3610_v1, %v4099_v42  ;;  %v5562_v42 = vld [vmem:[#allocation42_spill] sm:$0xff] }
 0x12c   : > { %v670_v53 = vpop.permute.xlu1 %669  ;;  %v1572_v49 = vadd.f32 %v5558_v26, %v4055_v28  ;;  %v1612_v8 = vmul.f32 %v3605_v35, %v3905_v50  ;;  %v1995_v54 = vmul.f32 %v4150_v47, %v4150_v47  ;;  %v1086_v19 = vsel %vm1060_vm0, %v1084_v33, %v1085_v30 }
 0x12d   : > { %v973_v36 = vadd.f32 %v3949_v12, %v777_v48  ;;  %v746_v14 = vmul.f32 %v3435_v44, %v670_v53  ;;  %v4185_v55 = vsel %vm1914_vm2, %v4150_v47, 0.0  ;;  %v1176_v17 = vmul.f32 %v3517_v34, %v1148_v60  ;;  %v718_v53 = vpop.permute.xlu0 %717 }
 0x12e   : > { %5559 = vst [vmem:[#allocation43_spill] sm:$0xff] %v4185_v55  ;;  %v1513_v32 = vadd.f32 %v1481_v39, %v1437_v37  ;;  %v4189_v28 = vmul.f32 %v3435_v44, %v702_v43  ;;  %v1721_v57 = vadd.f32 %v1689_v7, %v1653_v56  ;;  %v4192_v29 = vadd.f32 %v3523_v46, %v972_v52  ;;  %v5565_v39 = vld [vmem:[#allocation19_spill] sm:$0xff]  ;;  %v5578_v55 = vld [vmem:[#allocation44_spill] sm:$0xff] }
 0x12f   : > { %v1643_v33 = vadd.f32 %v1611_v9, %v1569_v3  ;;  %v1644_v30 = vadd.f32 %v1612_v8, %v1570_v25  ;;  %v1316_v12 = vrot.slane %v4128_v22, 1  ;;  %v1482_v48 = vmul.f32 %v3570_v24, %v1086_v19  ;;  %v5566_v3 = vld [vmem:[#allocation27_spill] sm:$0xff]  ;;  %v5568_v8 = vld [vmem:[#allocation14_spill] sm:$0xff] }
 0x130   : > { %5560 = vst [vmem:[#allocation17_spill] sm:$0xff] %v4192_v29  ;;  %v1645_v40 = vadd.f32 %v5561_v63, %v1571_v10  ;;  %v1678_v37 = vmul.f32 %v3613_v18, %v5562_v42  ;;  %v4200_v60 = vsel %vm1914_vm2, %v1995_v54, 0.0  ;;  %v4203_v56 = vadd.f32 %v3523_v46, %v973_v36  ;;  %v5569_v63 = vld [vmem:[#allocation45_spill] sm:$0xff] }
 0x131   : > { %v466_v26 = vpop.permute.xlu1 %465  ;;  %5563 = vst [vmem:[#allocation23_spill] sm:$0xff] %v4200_v60  ;;  %v778_v52 = vadd.f32 %v746_v14, %v5565_v39  ;;  %v1646_v25 = vadd.f32 %v5566_v3, %v1572_v49  ;;  %v1275_v7 = vadd.f32 %v1243_v5, %v1176_v17  ;;  %v1581_v43 = vadd.f32 %v1549_v21, %v1513_v32  ;;  %v5570_v54 = vld [vmem:[#allocation21_spill] sm:$0xff]  ;;  %v5572_v5 = vld [vmem:[#allocation15_spill] sm:$0xff]  ;;  %v5573_v17 = vld [vmem:[#allocation38_spill] sm:$0xff] }
 0x132   : > { %5564 = vst [vmem:[#allocation33_spill] sm:$0xff] %v4203_v56  ;;  %v4208_v9 = vmul.f32 %v3435_v44, %v718_v53  ;;  %v1709_v10 = vadd.f32 %v5569_v63, %v5568_v8  ;;  %v1788_v47 = vadd.f32 %v1757_v41, %v1721_v57  ;;  %v1087_v42 = vrot.slane %v4192_v29, 7  ;;  %v5574_v57 = vld [vmem:[#allocation47_spill] sm:$0xff] }
 0x133   : > { %v1711_v60 = vadd.f32 %v5570_v54, %v1643_v33  ;;  %v4215_v46 = vadd.f32 %v5571_v20, %v1644_v30  ;;  %v1317_v36 = vsel %vm1291_vm1, %v1315_v23, %v1316_v12  ;;  %v1514_v14 = vadd.f32 %v1482_v48, %v1438_v62  ;;  %v5575_v33 = vld [vmem:[#allocation29_spill] sm:$0xff]  ;;  %v722_v48 = vpop.permute.xlu0 %721 }
 0x134   : > { %5567 = vst [vmem:[#allocation42_spill] sm:$0xff] %v4208_v9  ;;  %v1710_v21 = vadd.f32 %v1678_v37, %v5572_v5  ;;  %v4220_v32 = vadd.f32 %v5573_v17, %v1645_v40  ;;  %v1244_v53 = vmul.f32 %v3532_v51, %v4128_v22  ;;  %v1088_v41 = vrot.slane %v4203_v56, 7 }
 0x135   : > { %v4226_v39 = vadd.f32 %v5574_v57, %v1646_v25  ;;  %v1746_v20 = vmul.f32 %v3610_v1, %v5575_v33  ;;  %v1177_v23 = vmul.f32 %v3517_v34, %v1086_v19  ;;  %v1379_v62 = vsel %vm1291_vm1, %v1316_v12, 0.0  ;;  %v5576_v57 = vld [vmem:[#allocation53_spill] sm:$0xff] }
 0x136   : > { %v674_v49 = vpop.permute.xlu1 %673  ;;  %v1550_v30 = vmul.f32 %v3602_v31, %v4128_v22  ;;  %v1690_v37 = vmul.f32 %v3613_v18, %v1086_v19  ;;  %v1824_v3 = vmul.f32 %v3750_v0, %v1317_v36  ;;  %v1089_v25 = vsel %vm1060_vm0, %v1087_v42, %v1088_v41 }
 0x137   : > { %v747_v40 = vmul.f32 %v3435_v44, %v674_v49  ;;  %v1149_v8 = vsel %vm1060_vm0, 0.0, %v1087_v42  ;;  %v1623_v54 = vmul.f32 %v3605_v35, %v1317_v36  ;;  %v1758_v12 = vmul.f32 %v3610_v1, %v4128_v22 }
 0x138   : > { %v1582_v63 = vadd.f32 %v1550_v30, %v1514_v14  ;;  %v551_v5 = vmul.f32 %v3439_v45, %v466_v26  ;;  %v1407_v17 = vmul.f32 %v3542_v61, %v1317_v36  ;;  %v1624_v49 = vmul.f32 %v3605_v35, %v1379_v62 }
 0x139   : > { %v974_v19 = vadd.f32 %v5576_v57, %v778_v52  ;;  %v4249_v41 = vmul.f32 %v3435_v44, %v722_v48  ;;  %v1276_v42 = vadd.f32 %v1244_v53, %v1177_v23  ;;  %v1691_v14 = vmul.f32 %v3613_v18, %v1149_v8 }
 0x13a   : > { %v1692_v30 = vmul.f32 %v3613_v18, %v1089_v25  ;;  %v779_v9 = vadd.f32 %v747_v40, %v551_v5  ;;  %v1722_v22 = vadd.f32 %v1690_v37, %v4143_v6  ;;  %v1856_v26 = vadd.f32 %v1824_v3, %v1788_v47  ;;  %v4267_v6 = vld [vmem:[%s5390_s2] ss:$0 sm:$0xff] }
 0x13b   : > { %v4246_v33 = vpop.permute.xlu1 %470  ;;  %5577 = vst [vmem:[#allocation19_spill] sm:$0xff] %v4249_v41  ;;  %v4255_v36 = vadd.f32 %v5578_v55, %v1709_v10  ;;  %v4257_v59 = vadd.f32 %v1746_v20, %v1710_v21  ;;  %v1408_v52 = vmul.f32 %v3542_v61, %v1379_v62  ;;  %v1656_v57 = vadd.f32 %v1624_v49, %v1582_v63  ;;  %v3156_v63 = vld [vmem:[%s5393_s5] sm:$0xff]  }
 0x13c   : > { %v1319_v48 = vrot.slane %v4203_v56, 1  ;;  %v1655_v41 = vadd.f32 %v1623_v54, %v1581_v43  ;;  %v1825_v53 = vmul.f32 %v3750_v0, %v1379_v62  ;;  %v1318_v23 = vrot.slane %v4192_v29, 1  ;;  %v5581_v54 = vld [vmem:[#allocation18_spill] sm:$0xff]  ;;  %3012 = vmatprep.subr.bf16.mxu0 %v3156_v63 }
 0x13d   : > { %v1483_v40 = vmul.f32 %v3570_v24, %v1149_v8  ;;  %v4270_v47 = vadd.f32 %v4267_v6, %v974_v19  ;;  %v1440_v55 = vadd.f32 %v1408_v52, %v1276_v42  ;;  %v1439_v10 = vadd.f32 %v1407_v17, %v1275_v7  ;;  %3013 = vmatpush3.bf16.msra.mxu0 %v3156_v63 }
 0x13e   : > { %v1723_v21 = vadd.f32 %v1691_v14, %v1655_v41  ;;  %v1724_v20 = vadd.f32 %v1692_v30, %v1656_v57  ;;  %v1789_v43 = vadd.f32 %v1758_v12, %v1722_v22  ;;  %v4273_v62 = vadd.f32 %v4022_v13, %v1856_v26 }
 0x13f   : > { %5579 = vst [vmem:[#allocation27_spill] sm:$0xff] %v4270_v47  ;;  %v4280_v5 = vadd.f32 %v5581_v54, %v1711_v60  ;;  %v1380_v49 = vsel %vm1291_vm1, %v1319_v48, 0.0  ;;  %v1760_v7 = vmul.f32 %v3610_v1, %v4203_v56  ;;  %v1178_v17 = vmul.f32 %v3517_v34, %v1149_v8 }
 0x140   : > { %v870_v37 = vpop.permute.xlu1 %869  ;;  %5580 = vst [vmem:[#allocation14_spill] sm:$0xff] %v4273_v62  ;;  %v1759_v22 = vmul.f32 %v3610_v1, %v4192_v29  ;;  %v1320_v12 = vsel %vm1291_vm1, %v1318_v23, %v1319_v48  ;;  %v1484_v19 = vmul.f32 %v3570_v24, %v1089_v25  ;;  %v1515_v41 = vadd.f32 %v1483_v40, %v1439_v10 }
 0x141   : > { %v943_v3 = vmul.f32 %v3487_v11, %v870_v37  ;;  %v1090_v42 = vrot.slane %v4270_v47, 7  ;;  %v1245_v60 = vmul.f32 %v3532_v51, %v4192_v29  ;;  %v1791_v30 = vadd.f32 %v1760_v7, %v1724_v20 }
 0x142   : > { %v1790_v14 = vadd.f32 %v1759_v22, %v1723_v21  ;;  %v1857_v52 = vadd.f32 %v1825_v53, %v1789_v43  ;;  %v4295_v8 = vsel %vm1914_vm2, %v4273_v62, 0.0  ;;  %v1246_v57 = vmul.f32 %v3532_v51, %v4203_v56 }
 0x143   : > { %v975_v26 = vadd.f32 %v943_v3, %v779_v9  ;;  %5582 = vst [vmem:[#allocation45_spill] sm:$0xff] %v4295_v8  ;;  %v1551_v48 = vmul.f32 %v3602_v31, %v4192_v29  ;;  %v1827_v40 = vmul.f32 %v3750_v0, %v1380_v49  ;;  %v1179_v10 = vmul.f32 %v3517_v34, %v1089_v25 }
 0x144   : > { %v1277_v21 = vadd.f32 %v1245_v60, %v1178_v17  ;;  %v1826_v9 = vmul.f32 %v3750_v0, %v1320_v12  ;;  %v4306_v53 = vmul.f32 %v4273_v62, %v4273_v62  ;;  %v1516_v20 = vadd.f32 %v1484_v19, %v1440_v55 }
 0x145   : > { %v476_v23 = vpop.permute.xlu1 %475  ;;  %v1583_v37 = vadd.f32 %v1551_v48, %v1515_v41  ;;  %v1150_v43 = vsel %vm1060_vm0, 0.0, %v1090_v42  ;;  %v1409_v3 = vmul.f32 %v3542_v61, %v1320_v12  ;;  %v1859_v54 = vadd.f32 %v1827_v40, %v1791_v30 }
 0x146   : > { %5583 = vst [vmem:[#allocation21_spill] sm:$0xff] %v4306_v53  ;;  %v1858_v63 = vadd.f32 %v1826_v9, %v1790_v14  ;;  %v4311_v7 = vadd.f32 %v4267_v6, %v975_v26  ;;  %v4314_v25 = vadd.f32 %v4022_v13, %v1857_v52  ;;  %v1410_v17 = vmul.f32 %v3542_v61, %v1380_v49 }
 0x147   : > { %v1552_v22 = vmul.f32 %v3602_v31, %v4203_v56  ;;  %v1625_v55 = vmul.f32 %v3605_v35, %v1320_v12  ;;  %v1626_v19 = vmul.f32 %v3605_v35, %v1380_v49  ;;  %v1441_v41 = vadd.f32 %v1409_v3, %v1277_v21 }
 0x148   : > { %5584 = vst [vmem:[#allocation34_spill] sm:$0xff] %v4311_v7  ;;  %5585 = vst [vmem:[#allocation15_spill] sm:$0xff] %v4314_v25  ;;  %v1485_v60 = vmul.f32 %v3570_v24, %v1150_v43  ;;  %v1278_v14 = vadd.f32 %v1246_v57, %v1179_v10  ;;  %v1693_v26 = vmul.f32 %v3613_v18, %v1150_v43  ;;  %v1091_v12 = vrot.slane %v4311_v7, 7 }
 0x149   : > { %v1657_v48 = vadd.f32 %v1625_v55, %v1583_v37  ;;  %v552_v52 = vmul.f32 %v3439_v45, %v4246_v33  ;;  %v1584_v40 = vadd.f32 %v1552_v22, %v1516_v20  ;;  %v4326_v9 = vadd.f32 %v4022_v13, %v1858_v63  ;;  %v918_v63 = vpop.permute.xlu0 %917 }
 0x14a   : > { %v874_v30 = vpop.permute.xlu1 %873  ;;  %v4329_v56 = vadd.f32 %v4022_v13, %v1859_v54  ;;  %v1180_v49 = vmul.f32 %v3517_v34, %v1150_v43  ;;  %v4335_v57 = vsel %vm1914_vm2, %v4314_v25, 0.0  ;;  %v4339_v10 = vmul.f32 %v4314_v25, %v4314_v25 }
 0x14b   : > { %5586 = vst [vmem:[#allocation38_spill] sm:$0xff] %v4326_v9  ;;  %5588 = vst [vmem:[#allocation53_spill] sm:$0xff] %v4335_v57  ;;  %v1247_v33 = vmul.f32 %v3532_v51, %v4270_v47  ;;  %v944_v21 = vmul.f32 %v3487_v11, %v874_v30  ;;  %v1321_v20 = vrot.slane %v4270_v47, 1  ;;  %v1517_v37 = vadd.f32 %v1485_v60, %v1441_v41 }
 0x14c   : > { %5587 = vst [vmem:[#allocation47_spill] sm:$0xff] %v4329_v56  ;;  %5589 = vst [vmem:[#allocation44_spill] sm:$0xff] %v4339_v10  ;;  %v1553_v43 = vmul.f32 %v3602_v31, %v4270_v47  ;;  %v1761_v3 = vmul.f32 %v3610_v1, %v4270_v47  ;;  %v1725_v54 = vadd.f32 %v1693_v26, %v1657_v48  ;;  %v4352_v62 = vsel %vm1914_vm2, %v4326_v9, 0.0  ;;  %v5594_v26 = vld [vmem:[#allocation5_spill] sm:$0xff] }
 0x14d   : > { %v780_v22 = vadd.f32 %v4147_v38, %v552_v52  ;;  %v1442_v55 = vadd.f32 %v1410_v17, %v1278_v14  ;;  %v1658_v29 = vadd.f32 %v1626_v19, %v1584_v40  ;;  %5590 = vst [vmem:[#allocation18_spill] sm:$0xff] %v4352_v62  ;;  %v4356_v41 = vsel %vm1914_vm2, %v4329_v56, 0.0  ;;  %v5593_v38 = vld [vmem:[#allocation25_spill] sm:$0xff] }
 0x14e   : > { %5591 = vst [vmem:[#allocation61_spill] sm:$0xff] %v4356_v41  ;;  %v1279_v60 = vadd.f32 %v1247_v33, %v1180_v49  ;;  %v1092_v30 = vsel %vm1060_vm0, %v1090_v42, %v1091_v12  ;;  %v1322_v47 = vrot.slane %v4311_v7, 1  ;;  %v4361_v48 = vmul.f32 %v3487_v11, %v918_v63  ;;  %v5596_v12 = vld [vmem:[#allocation36_spill] sm:$0xff]  ;;  %v5605_v56 = vld [vmem:[#allocation49_spill] sm:$0xff] }
 0x14f   : > { %v686_v25 = vpop.permute.xlu1 %685  ;;  %v976_v10 = vadd.f32 %v944_v21, %v780_v22  ;;  %v1779_v17 = vadd.f32 %v5593_v38, %v4215_v46  ;;  %v1585_v19 = vadd.f32 %v1553_v43, %v1517_v37  ;;  %v553_v14 = vmul.f32 %v3439_v45, %v476_v23  ;;  %v5597_v21 = vld [vmem:[#allocation46_spill] sm:$0xff]  ;;  %v5598_v37 = vld [vmem:[#allocation4_spill] sm:$0xff] }
 0x150   : > { %5592 = vst [vmem:[#allocation62_spill] sm:$0xff] %v4361_v48  ;;  %v4368_v52 = vmul.f32 %v3613_v18, %v5594_v26  ;;  %v1812_v40 = vmul.f32 %v3750_v0, %v3885_v16  ;;  %v1792_v42 = vadd.f32 %v1761_v3, %v1725_v54  ;;  %v1694_v49 = vmul.f32 %v3613_v18, %v1092_v30  ;;  %v5601_v3 = vld [vmem:[#allocation35_spill] sm:$0xff]  ;;  %v5603_v38 = vld [vmem:[#allocation30_spill] sm:$0xff] }
 0x151   : > { %v1780_v33 = vadd.f32 %v5596_v12, %v4220_v32  ;;  %v1781_v63 = vadd.f32 %v5597_v21, %v4226_v39  ;;  %v4379_v23 = vmul.f32 %v3613_v18, %v5598_v37  ;;  %v4382_v43 = vmul.f32 0.0, %v3610_v1 }
 0x152   : > { %5595 = vst [vmem:[#allocation25_spill] sm:$0xff] %v4368_v52  ;;  %v1813_v16 = vmul.f32 %v3750_v0, %v3905_v50  ;;  %v1846_v54 = vadd.f32 %v5601_v3, %v4280_v5  ;;  %v1323_v22 = vsel %vm1291_vm1, %v1321_v20, %v1322_v47  ;;  %v4390_v32 = vadd.f32 %v4267_v6, %v976_v10  ;;  %v5604_v3 = vld [vmem:[#allocation48_spill] sm:$0xff] }
 0x153   : > { %5599 = vst [vmem:[#allocation5_spill] sm:$0xff] %v4379_v23  ;;  %5600 = vst [vmem:[#allocation36_spill] sm:$0xff] %v4382_v43  ;;  %v750_v39 = vmul.f32 %v3435_v44, %v686_v25  ;;  %v1847_v26 = vadd.f32 %v5603_v38, %v1779_v17  ;;  %v1486_v12 = vmul.f32 %v3570_v24, %v1092_v30 }
 0x154   : > { %v878_v46 = vpop.permute.xlu1 %877  ;;  %5602 = vst [vmem:[#allocation46_spill] sm:$0xff] %v4390_v32  ;;  %v781_v21 = vadd.f32 %v4154_v15, %v553_v14  ;;  %v1844_v0 = vadd.f32 %v1812_v40, %v4255_v36  ;;  %v1726_v50 = vadd.f32 %v1694_v49, %v1658_v29  ;;  %v1845_v5 = vadd.f32 %v1813_v16, %v4257_v59  ;;  %v4407_v15 = vld [vmem:[%s5391_s3 + $0x8] ss:$0 sm:$0xff] }
 0x155   : > { %v945_v37 = vmul.f32 %v3487_v11, %v878_v46  ;;  %v1848_v20 = vadd.f32 %v5604_v3, %v1780_v33  ;;  %v1849_v10 = vadd.f32 %v5605_v56, %v1781_v63  ;;  %v1181_v9 = vmul.f32 %v3517_v34, %v1092_v30  ;;  %v5606_v30 = vld [vmem:[#allocation24_spill] sm:$0xff] }
 0x156   : > { %v1248_v25 = vmul.f32 %v3532_v51, %v4311_v7  ;;  %v1828_v17 = vmul.f32 %v4407_v15, %v1323_v22  ;;  %v1554_v59 = vmul.f32 %v3602_v31, %v4311_v7  ;;  %v1762_v29 = vmul.f32 %v3610_v1, %v4311_v7 }
 0x157   : > { %v977_v36 = vadd.f32 %v945_v37, %v781_v21  ;;  %v1093_v56 = vrot.slane %v4390_v32, 7  ;;  %v782_v14 = vadd.f32 %v750_v39, %v5606_v30  ;;  %v1381_v49 = vsel %vm1291_vm1, %v1322_v47, 0.0  ;;  %v5612_v30 = vld [vmem:[#allocation26_spill] sm:$0xff] }
 0x158   : > { %v1411_v33 = vmul.f32 %v3542_v61, %v1323_v22  ;;  %v1518_v63 = vadd.f32 %v1486_v12, %v1442_v55  ;;  %v4419_v46 = vadd.f32 %v4022_v13, %v1844_v0  ;;  %v1627_v16 = vmul.f32 %v3605_v35, %v1323_v22  ;;  %v5611_v0 = vld [vmem:[#allocation54_spill] sm:$0xff] }
 0x159   : > { %v690_v40 = vpop.permute.xlu1 %689  ;;  %v1793_v38 = vadd.f32 %v1762_v29, %v1726_v50  ;;  %v4423_v21 = vadd.f32 %v4267_v6, %v977_v36  ;;  %v1280_v3 = vadd.f32 %v1248_v25, %v1181_v9  ;;  %v1860_v7 = vadd.f32 %v1828_v17, %v1792_v42 }
 0x15a   : > { %5607 = vst [vmem:[#allocation4_spill] sm:$0xff] %v4419_v46  ;;  %v751_v37 = vmul.f32 %v3435_v44, %v690_v40  ;;  %v4427_v39 = vadd.f32 %v4022_v13, %v1845_v5  ;;  %v4430_v47 = vadd.f32 %v4022_v13, %v1846_v54  ;;  %v1829_v55 = vmul.f32 %v4407_v15, %v1381_v49 }
 0x15b   : > { %5608 = vst [vmem:[#allocation35_spill] sm:$0xff] %v4423_v21  ;;  %v1151_v12 = vsel %vm1060_vm0, 0.0, %v1093_v56  ;;  %v978_v22 = vadd.f32 %v5611_v0, %v782_v14  ;;  %v1094_v50 = vrot.slane %v4423_v21, 7  ;;  %v1412_v36 = vmul.f32 %v3542_v61, %v1381_v49 }
 0x15c   : > { %5609 = vst [vmem:[#allocation30_spill] sm:$0xff] %v4427_v39  ;;  %5610 = vst [vmem:[#allocation48_spill] sm:$0xff] %v4430_v47  ;;  %v1586_v29 = vadd.f32 %v1554_v59, %v1518_v63  ;;  %v1628_v9 = vmul.f32 %v3605_v35, %v1381_v49  ;;  %v1443_v42 = vadd.f32 %v1411_v33, %v1279_v60  ;;  %v1325_v54 = vrot.slane %v4423_v21, 1 }
 0x15d   : > { %v1861_v5 = vadd.f32 %v1829_v55, %v1793_v38  ;;  %v1659_v17 = vadd.f32 %v1627_v16, %v1585_v19  ;;  %v783_v40 = vadd.f32 %v751_v37, %v5612_v30  ;;  %v1444_v53 = vadd.f32 %v1412_v36, %v1280_v3 }
 0x15e   : > { %v491_v25 = vpop.permute.xlu1 %490  ;;  %v4441_v43 = vadd.f32 %v4022_v13, %v1860_v7  ;;  %v1487_v14 = vmul.f32 %v3570_v24, %v1151_v12  ;;  %v1095_v0 = vsel %vm1060_vm0, %v1093_v56, %v1094_v50  ;;  %v1324_v59 = vrot.slane %v4390_v32, 1  ;;  %v5618_v7 = vld [vmem:[#allocation52_spill] sm:$0xff] }
 0x15f   : > { %v4447_v49 = vadd.f32 %v4267_v6, %v978_v22  ;;  %v4450_v60 = vadd.f32 %v4022_v13, %v1847_v26  ;;  %v4453_v19 = vadd.f32 %v4022_v13, %v1848_v20  ;;  %v1660_v33 = vadd.f32 %v1628_v9, %v1586_v29  ;;  %v5621_v20 = vld [vmem:[#allocation57_spill] sm:$0xff] }
 0x160   : > { %5613 = vst [vmem:[#allocation49_spill] sm:$0xff] %v4441_v43  ;;  %v4456_v63 = vadd.f32 %v4022_v13, %v1849_v10  ;;  %v4460_v16 = vadd.f32 %v4022_v13, %v5618_v7  ;;  %v1916_v56 = vsel %vm1914_vm2, %v4427_v39, 0.0  ;;  %v4465_v38 = vadd.f32 %v4022_v13, %v1861_v5 }
 0x161   : > { %5614 = vst [vmem:[#allocation24_spill] sm:$0xff] %v4447_v49  ;;  %5615 = vst [vmem:[#allocation54_spill] sm:$0xff] %v4450_v60  ;;  %v1326_v26 = vsel %vm1291_vm1, %v1324_v59, %v1325_v54  ;;  %v1488_v37 = vmul.f32 %v3570_v24, %v1095_v0  ;;  %v979_v3 = vadd.f32 %v5621_v20, %v783_v40  ;;  %v4472_v10 = vsel %vm1914_vm2, %v4441_v43, 0.0 }
 0x162   : > { %5616 = vst [vmem:[#allocation26_spill] sm:$0xff] %v4453_v19  ;;  %5617 = vst [vmem:[#allocation63_spill] sm:$0xff] %v4456_v63  ;;  %v1182_v22 = vmul.f32 %v3517_v34, %v1151_v12  ;;  %v1519_v50 = vadd.f32 %v1487_v14, %v1443_v42  ;;  %v1915_v36 = vsel %vm1914_vm2, %v4419_v46, 0.0  ;;  %v1695_v29 = vmul.f32 %v3613_v18, %v1151_v12 }
 0x163   : > { %5619 = vst [vmem:[#allocation52_spill] sm:$0xff] %v4460_v16  ;;  %5620 = vst [vmem:[#allocation64_spill] sm:$0xff] %v4465_v38  ;;  %v694_v55 = vpop.permute.xlu1 %693  ;;  %v1096_v9 = vrot.slane %v4447_v49, 7  ;;  %v4480_v5 = vadd.f32 %v4267_v6, %v979_v3  ;;  %v1917_v30 = vadd.f32 %v1916_v56, %v1915_v36  ;;  %v1249_v40 = vmul.f32 %v3532_v51, %v4390_v32 }
 0x164   : > { %5622 = vst [vmem:[#allocation57_spill] sm:$0xff] %v4472_v10  ;;  %v1555_v59 = vmul.f32 %v3602_v31, %v4390_v32  ;;  %v1629_v7 = vmul.f32 %v3605_v35, %v1326_v26  ;;  %v1918_v42 = vsel %vm1914_vm2, %v4430_v47, 0.0  ;;  %v4491_v12 = vsel %vm1914_vm2, %v4465_v38, 0.0 }
 0x165   : > { %5623 = vst [vmem:[#allocation65_spill] sm:$0xff] %v4480_v5  ;;  %5624 = vst [vmem:[#allocation66_spill] sm:$0xff] %v4491_v12  ;;  %v1763_v14 = vmul.f32 %v3610_v1, %v4390_v32  ;;  %v1520_v20 = vadd.f32 %v1488_v37, %v1444_v53  ;;  %v1920_v56 = vsel %vm1914_vm2, %v4450_v60, 0.0  ;;  %v1281_v3 = vadd.f32 %v1249_v40, %v1182_v22 }
 0x166   : > { %v1587_v36 = vadd.f32 %v1555_v59, %v1519_v50  ;;  %v1097_v43 = vrot.slane %v4480_v5, 7  ;;  %v4500_v52 = vsel %vm1914_vm2, %v4453_v19, 0.0  ;;  %v1727_v10 = vadd.f32 %v1695_v29, %v1659_v17 }
 0x167   : > { %v1152_v38 = vsel %vm1060_vm0, 0.0, %v1096_v9  ;;  %v1556_v12 = vmul.f32 %v3602_v31, %v4423_v21  ;;  %v1919_v32 = vadd.f32 %v1918_v42, %v1917_v30  ;;  %v1382_v53 = vsel %vm1291_vm1, %v1325_v54, 0.0  ;;  %v5625_v42 = vld [vmem:[#allocation58_spill] sm:$0xff] }
 0x168   : > { %v496_v23 = vpop.permute.xlu1 %495  ;;  %v1661_v37 = vadd.f32 %v1629_v7, %v1587_v36  ;;  %v1696_v22 = vmul.f32 %v3613_v18, %v1095_v0  ;;  %v4509_v50 = vsel %vm1914_vm2, %v4456_v63, 0.0  ;;  %v1328_v59 = vrot.slane %v4480_v5, 1 }
 0x169   : > { %v1588_v40 = vadd.f32 %v1556_v12, %v1520_v20  ;;  %v752_v17 = vmul.f32 %v3435_v44, %v694_v55  ;;  %v4515_v29 = vsel %vm1914_vm2, %v4460_v16, 0.0  ;;  %v1327_v30 = vrot.slane %v4447_v49, 1 }
 0x16a   : > { %v1697_v54 = vmul.f32 %v3613_v18, %v1152_v38  ;;  %v1098_v7 = vsel %vm1060_vm0, %v1096_v9, %v1097_v43  ;;  %v4522_v36 = vsel %vm1914_vm2, %v5625_v42, 0.0  ;;  %v1183_v12 = vmul.f32 %v3517_v34, %v1095_v0 }
 0x16b   : > { %v1413_v20 = vmul.f32 %v3542_v61, %v1326_v26  ;;  %v1630_v55 = vmul.f32 %v3605_v35, %v1382_v53  ;;  %v556_v41 = vmul.f32 %v3439_v45, %v491_v25  ;;  %v1728_v48 = vadd.f32 %v1696_v22, %v1660_v33 }
 0x16c   : > { %v1729_v57 = vadd.f32 %v1697_v54, %v1661_v37  ;;  %v1830_v8 = vmul.f32 %v4407_v15, %v1326_v26  ;;  %v1329_v9 = vsel %vm1291_vm1, %v1327_v30, %v1328_v59  ;;  %v1698_v42 = vmul.f32 %v3613_v18, %v1098_v7 }
 0x16d   : > { %v890_v62 = vpop.permute.xlu1 %889  ;;  %v1662_v43 = vadd.f32 %v1630_v55, %v1588_v40  ;;  %v784_v63 = vadd.f32 %v752_v17, %v556_v41  ;;  %v1794_v0 = vadd.f32 %v1763_v14, %v1727_v10  ;;  %v1765_v19 = vmul.f32 %v3610_v1, %v4447_v49 }
 0x16e   : > { %v948_v16 = vmul.f32 %v3487_v11, %v890_v62  ;;  %v1250_v25 = vmul.f32 %v3532_v51, %v4423_v21  ;;  %v1764_v33 = vmul.f32 %v3610_v1, %v4423_v21  ;;  %v1251_v26 = vmul.f32 %v3532_v51, %v4447_v49 }
 0x16f   : > { %v1557_v62 = vmul.f32 %v3602_v31, %v4447_v49  ;;  %v1921_v22 = vadd.f32 %v1920_v56, %v1919_v32  ;;  %v1796_v10 = vadd.f32 %v1765_v19, %v1729_v57  ;;  %v1832_v14 = vmul.f32 %v4407_v15, %v1329_v9 }
 0x170   : > { %v980_v37 = vadd.f32 %v948_v16, %v784_v63  ;;  %v1282_v40 = vadd.f32 %v1250_v25, %v1183_v12  ;;  %v1795_v41 = vadd.f32 %v1764_v33, %v1728_v48  ;;  %v1445_v30 = vadd.f32 %v1413_v20, %v1281_v3 }
 0x171   : > { %v1862_v54 = vadd.f32 %v1830_v8, %v1794_v0  ;;  %v1730_v55 = vadd.f32 %v1698_v42, %v1662_v43  ;;  %v4545_v21 = vsel %vm1914_vm2, %v4124_v27, 0.0  ;;  %v1414_v60 = vmul.f32 %v3542_v61, %v1382_v53 }
 0x172   : > { %v501_v17 = vpop.permute.xlu1 %500  ;;  %v1831_v47 = vmul.f32 %v4407_v15, %v1382_v53  ;;  %v1490_v63 = vmul.f32 %v3570_v24, %v1098_v7  ;;  %v557_v32 = vmul.f32 %v3439_v45, %v496_v23  ;;  %v1184_v57 = vmul.f32 %v3517_v34, %v1152_v38 }
 0x173   : > { %v1489_v48 = vmul.f32 %v3570_v24, %v1152_v38  ;;  %v1766_v8 = vmul.f32 %v3610_v1, %v4480_v5  ;;  %v4556_v19 = vadd.f32 %v4267_v6, %v980_v37  ;;  %v1446_v16 = vadd.f32 %v1414_v60, %v1282_v40 }
 0x174   : > { %v1863_v56 = vadd.f32 %v1831_v47, %v1795_v41  ;;  %v1383_v3 = vsel %vm1291_vm1, %v1328_v59, 0.0  ;;  %v1864_v42 = vadd.f32 %v1832_v14, %v1796_v10  ;;  %v4560_v53 = vadd.f32 %v4022_v13, %v1862_v54 }
 0x175   : > { %5626 = vst [vmem:[#allocation67_spill] sm:$0xff] %v4556_v19  ;;  %v1185_v23 = vmul.f32 %v3517_v34, %v1098_v7  ;;  %v1797_v12 = vadd.f32 %v1766_v8, %v1730_v55  ;;  %v1521_v20 = vadd.f32 %v1489_v48, %v1445_v30  ;;  %v1522_v38 = vadd.f32 %v1490_v63, %v1446_v16 }
 0x176   : > { %5627 = vst [vmem:[#allocation68_spill] sm:$0xff] %v4560_v53  ;;  %v785_v0 = vadd.f32 %v4157_v58, %v557_v32  ;;  %v1923_v33 = vadd.f32 %v4500_v52, %v1921_v22  ;;  %v1252_v47 = vmul.f32 %v3532_v51, %v4480_v5  ;;  %v1558_v60 = vmul.f32 %v3602_v31, %v4480_v5 }
 0x177   : > { %v894_v43 = vpop.permute.xlu1 %893  ;;  %v1833_v59 = vmul.f32 %v4407_v15, %v1383_v3  ;;  %v1099_v7 = vrot.slane %v4556_v19, 7  ;;  %v4573_v37 = vadd.f32 %v4022_v13, %v1863_v56  ;;  %v4576_v40 = vadd.f32 %v4022_v13, %v1864_v42 }
 0x178   : > { %v949_v25 = vmul.f32 %v3487_v11, %v894_v43  ;;  %v1415_v58 = vmul.f32 %v3542_v61, %v1329_v9  ;;  %v1284_v52 = vadd.f32 %v1252_v47, %v1185_v23  ;;  %v1589_v10 = vadd.f32 %v1557_v62, %v1521_v20 }
 0x179   : > { %5628 = vst [vmem:[#allocation69_spill] sm:$0xff] %v4573_v37  ;;  %5629 = vst [vmem:[#allocation70_spill] sm:$0xff] %v4576_v40  ;;  %v1865_v22 = vadd.f32 %v1833_v59, %v1797_v12  ;;  %v1631_v14 = vmul.f32 %v3605_v35, %v1329_v9  ;;  %v1283_v30 = vadd.f32 %v1251_v26, %v1184_v57  ;;  %v4582_v54 = vsel %vm1914_vm2, %v4560_v53, 0.0 }
 0x17a   : > { %v981_v41 = vadd.f32 %v949_v25, %v785_v0  ;;  %v1590_v55 = vadd.f32 %v1558_v60, %v1522_v38  ;;  %v1932_v32 = vsel %vm1914_vm2, %v4104_v2, 0.0  ;;  %v1416_v48 = vmul.f32 %v3542_v61, %v1383_v3 }
 0x17b   : > { %v1153_v8 = vsel %vm1060_vm0, 0.0, %v1099_v7  ;;  %v1925_v62 = vadd.f32 %v4509_v50, %v1923_v33  ;;  %v4594_v9 = vsel %vm1914_vm2, %v4573_v37, 0.0  ;;  %v1632_v26 = vmul.f32 %v3605_v35, %v1383_v3 }
 0x17c   : > { %v706_v63 = vpop.permute.xlu1 %705  ;;  %v4589_v16 = vadd.f32 %v4267_v6, %v981_v41  ;;  %v4599_v57 = vsel %vm1914_vm2, %v4576_v40, 0.0  ;;  %v1447_v56 = vadd.f32 %v1415_v58, %v1283_v30  ;;  %v4602_v42 = vadd.f32 %v4022_v13, %v1865_v22 }
 0x17d   : > { %v1663_v23 = vadd.f32 %v1631_v14, %v1589_v10  ;;  %v558_v12 = vmul.f32 %v3439_v45, %v501_v17  ;;  %v1448_v20 = vadd.f32 %v1416_v48, %v1284_v52  ;;  %v1491_v50 = vmul.f32 %v3570_v24, %v1153_v8  ;;  %v5632_v48 = vld [vmem:[#allocation31_spill] sm:$0xff] }
 0x17e   : > { %5630 = vst [vmem:[#allocation71_spill] sm:$0xff] %v4589_v16  ;;  %5631 = vst [vmem:[#allocation72_spill] sm:$0xff] %v4602_v42  ;;  %v1699_v43 = vmul.f32 %v3613_v18, %v1153_v8  ;;  %v1664_v38 = vadd.f32 %v1632_v26, %v1590_v55  ;;  %v1934_v3 = vsel %vm1914_vm2, %v4139_v4, 0.0  ;;  %v1253_v0 = vmul.f32 %v3532_v51, %v4556_v19  ;;  %v5633_v26 = vld [vmem:[#allocation48_spill] sm:$0xff] }
 0x17f   : > { %v1100_v25 = vrot.slane %v4589_v16, 7  ;;  %v755_v13 = vmul.f32 %v3435_v44, %v706_v63  ;;  %v1927_v47 = vadd.f32 %v4515_v29, %v1925_v62  ;;  %v1186_v17 = vmul.f32 %v3517_v34, %v1153_v8 }
 0x180   : > { %v1330_v60 = vrot.slane %v4556_v19, 1  ;;  %v1559_v59 = vmul.f32 %v3602_v31, %v4556_v19  ;;  %v1331_v58 = vrot.slane %v4589_v16, 1  ;;  %v4621_v41 = vsel %vm1914_vm2, %v4602_v42, 0.0 }
 0x181   : > { %v898_v33 = vpop.permute.xlu1 %897  ;;  %v1767_v52 = vmul.f32 %v3610_v1, %v4556_v19  ;;  %v786_v22 = vadd.f32 %v4189_v28, %v558_v12  ;;  %v1984_v29 = vmul.f32 %v4419_v46, %v4419_v46  ;;  %v1523_v10 = vadd.f32 %v1491_v50, %v1447_v56 }
 0x182   : > { %v1731_v14 = vadd.f32 %v1699_v43, %v1663_v23  ;;  %v950_v30 = vmul.f32 %v3487_v11, %v898_v33  ;;  %v1985_v55 = vmul.f32 %v4427_v39, %v4427_v39  ;;  %v1101_v63 = vsel %vm1060_vm0, %v1099_v7, %v1100_v25  ;;  %v5634_v23 = vld [vmem:[#allocation54_spill] sm:$0xff]  ;;  %v5636_v25 = vld [vmem:[#allocation63_spill] sm:$0xff] }
 0x183   : > { %v787_v8 = vadd.f32 %v755_v13, %v5632_v48  ;;  %v1929_v62 = vadd.f32 %v4522_v36, %v1927_v47  ;;  %v1986_v19 = vmul.f32 %v5633_v26, %v5633_v26  ;;  %v1285_v28 = vadd.f32 %v1253_v0, %v1186_v17  ;;  %v5635_v33 = vld [vmem:[#allocation26_spill] sm:$0xff]  ;;  %v5637_v36 = vld [vmem:[#allocation52_spill] sm:$0xff] }
 0x184   : > { %v1332_v12 = vsel %vm1291_vm1, %v1330_v60, %v1331_v58  ;;  %v982_v5 = vadd.f32 %v950_v30, %v786_v22  ;;  %v1987_v50 = vmul.f32 %v5634_v23, %v5634_v23  ;;  %v1988_v7 = vmul.f32 %v5635_v33, %v5635_v33  ;;  %v5642_v33 = vld [vmem:[#allocation37_spill] sm:$0xff] }
 0x185   : > { %v1931_v43 = vadd.f32 %v4545_v21, %v1929_v62  ;;  %v4644_v13 = vmul.f32 %v5636_v25, %v5636_v25  ;;  %v4648_v47 = vmul.f32 %v5637_v36, %v5637_v36  ;;  %v1591_v0 = vadd.f32 %v1559_v59, %v1523_v10  ;;  %v5638_v21 = vld [vmem:[#allocation13_spill] sm:$0xff]  ;;  %v5640_v25 = vld [vmem:[#allocation58_spill] sm:$0xff] }
 0x186   : > { %v710_v56 = vpop.permute.xlu1 %709  ;;  %v1798_v17 = vadd.f32 %v1767_v52, %v1731_v14  ;;  %v1492_v60 = vmul.f32 %v3570_v24, %v1101_v63  ;;  %v1700_v22 = vmul.f32 %v3613_v18, %v1101_v63  ;;  %v1834_v30 = vmul.f32 %v4407_v15, %v1332_v12 }
 0x187   : > { %v983_v48 = vadd.f32 %v5638_v21, %v787_v8  ;;  %v4655_v62 = vadd.f32 %v4267_v6, %v982_v5  ;;  %v756_v49 = vmul.f32 %v3435_v44, %v710_v56  ;;  %v1933_v2 = vadd.f32 %v1932_v32, %v1931_v43 }
 0x188   : > { %v4660_v36 = vmul.f32 %v5640_v25, %v5640_v25  ;;  %v4664_v59 = vmul.f32 %v4124_v27, %v4124_v27  ;;  %v4668_v52 = vmul.f32 %v4139_v4, %v4139_v4  ;;  %v1187_v10 = vmul.f32 %v3517_v34, %v1101_v63 }
 0x189   : > { %5639 = vst [vmem:[#allocation31_spill] sm:$0xff] %v4655_v62  ;;  %v1102_v5 = vrot.slane %v4655_v62, 7  ;;  %v2016_v8 = vsel %vm1914_vm2, %v1984_v29, 0.0  ;;  %v2017_v32 = vsel %vm1914_vm2, %v1985_v55, 0.0  ;;  %v1254_v56 = vmul.f32 %v3532_v51, %v4589_v16 }
 0x18a   : > { %v1524_v43 = vadd.f32 %v1492_v60, %v1448_v20  ;;  %v4677_v21 = vsel %vm1914_vm2, %v1986_v19, 0.0  ;;  %v4680_v27 = vsel %vm1914_vm2, %v1987_v50, 0.0  ;;  %v1732_v4 = vadd.f32 %v1700_v22, %v1664_v38 }
 0x18b   : > { %v516_v14 = vpop.permute.xlu1 %515  ;;  %v1866_v25 = vadd.f32 %v1834_v30, %v1798_v17  ;;  %v4683_v63 = vadd.f32 %v4267_v6, %v983_v48  ;;  %v788_v23 = vadd.f32 %v756_v49, %v5642_v33  ;;  %v1384_v29 = vsel %vm1291_vm1, %v1331_v58, 0.0  ;;  %v5643_v49 = vld [vmem:[#allocation2_spill] sm:$0xff] }
 0x18c   : > { %v1417_v55 = vmul.f32 %v3542_v61, %v1332_v12  ;;  %v1560_v20 = vmul.f32 %v3602_v31, %v4589_v16  ;;  %v1768_v19 = vmul.f32 %v3610_v1, %v4589_v16  ;;  %v1286_v60 = vadd.f32 %v1254_v56, %v1187_v10  ;;  %v4704_v10 = vld [vmem:[%s5392_s4] ss:$0 sm:$0xff] }
 0x18d   : > { %5641 = vst [vmem:[#allocation13_spill] sm:$0xff] %v4683_v63  ;;  %v1154_v50 = vsel %vm1060_vm0, 0.0, %v1102_v5  ;;  %v1935_v38 = vadd.f32 %v1934_v3, %v1933_v2  ;;  %v4693_v17 = vadd.f32 %v2017_v32, %v2016_v8  ;;  %v1633_v30 = vmul.f32 %v3605_v35, %v1332_v12 }
 0x18e   : > { %v1592_v22 = vadd.f32 %v1560_v20, %v1524_v43  ;;  %v984_v33 = vadd.f32 %v5643_v49, %v788_v23  ;;  %v4698_v48 = vsel %vm1914_vm2, %v1988_v7, 0.0  ;;  %v1418_v26 = vmul.f32 %v3542_v61, %v1384_v29  ;;  %v5645_v49 = vld [vmem:[#allocation43_spill] sm:$0xff] }
 0x18f   : > { %v1799_v39 = vadd.f32 %v1768_v19, %v1732_v4  ;;  %v4707_v2 = vadd.f32 %v4704_v10, %v1866_v25  ;;  %v1103_v3 = vrot.slane %v4683_v63, 7  ;;  %v1634_v12 = vmul.f32 %v3605_v35, %v1384_v29 }
 0x190   : > { %v714_v58 = vpop.permute.xlu1 %713  ;;  %v1835_v23 = vmul.f32 %v4407_v15, %v1384_v29  ;;  %v1449_v8 = vadd.f32 %v1417_v55, %v1285_v28  ;;  %v1493_v7 = vmul.f32 %v3570_v24, %v1154_v50  ;;  %v1450_v32 = vadd.f32 %v1418_v26, %v1286_v60 }
 0x191   : > { %5644 = vst [vmem:[#allocation37_spill] sm:$0xff] %v4707_v2  ;;  %v1334_v4 = vrot.slane %v4683_v63, 1  ;;  %v1104_v56 = vsel %vm1060_vm0, %v1102_v5, %v1103_v3  ;;  %v4716_v43 = vadd.f32 %v4267_v6, %v984_v33  ;;  %v1666_v20 = vadd.f32 %v1634_v12, %v1592_v22 }
 0x192   : > { %v1665_v25 = vadd.f32 %v1633_v30, %v1591_v0  ;;  %v1701_v19 = vmul.f32 %v3613_v18, %v1154_v50  ;;  %v1937_v16 = vadd.f32 %v5645_v49, %v1935_v38  ;;  %v1867_v46 = vadd.f32 %v1835_v23, %v1799_v39 }
 0x193   : > { %v4722_v28 = vsel %vm1914_vm2, %v4707_v2, 0.0  ;;  %v1256_v26 = vmul.f32 %v3532_v51, %v4683_v63  ;;  %v1333_v29 = vrot.slane %v4655_v62, 1  ;;  %v1562_v55 = vmul.f32 %v3602_v31, %v4683_v63 }
 0x194   : > { %v1188_v0 = vmul.f32 %v3517_v34, %v1154_v50  ;;  %v1494_v60 = vmul.f32 %v3570_v24, %v1104_v56  ;;  %v1525_v22 = vadd.f32 %v1493_v7, %v1449_v8  ;;  %v1385_v39 = vsel %vm1291_vm1, %v1334_v4, 0.0 }
 0x195   : > { %v521_v5 = vpop.permute.xlu1 %520  ;;  %v1702_v38 = vmul.f32 %v3613_v18, %v1104_v56  ;;  %v1105_v30 = vrot.slane %v4716_v43, 7  ;;  %v757_v33 = vmul.f32 %v3435_v44, %v714_v58  ;;  %v1770_v3 = vmul.f32 %v3610_v1, %v4683_v63 }
 0x196   : > { %v1255_v12 = vmul.f32 %v3532_v51, %v4655_v62  ;;  %v1561_v50 = vmul.f32 %v3602_v31, %v4655_v62  ;;  %v1733_v23 = vadd.f32 %v1701_v19, %v1665_v25  ;;  %v4742_v8 = vadd.f32 %v4704_v10, %v1867_v46 }
 0x197   : > { %v1335_v7 = vsel %vm1291_vm1, %v1333_v29, %v1334_v4  ;;  %v1769_v49 = vmul.f32 %v3610_v1, %v4655_v62  ;;  %v561_v44 = vmul.f32 %v3439_v45, %v516_v14  ;;  %v1189_v58 = vmul.f32 %v3517_v34, %v1104_v56 }
 0x198   : > { %v1287_v63 = vadd.f32 %v1255_v12, %v1188_v0  ;;  %v1526_v2 = vadd.f32 %v1494_v60, %v1450_v32  ;;  %v1593_v42 = vadd.f32 %v1561_v50, %v1525_v22  ;;  %v1734_v37 = vadd.f32 %v1702_v38, %v1666_v20 }
 0x199   : > { %v1155_v53 = vsel %vm1060_vm0, 0.0, %v1105_v30  ;;  %v789_v25 = vadd.f32 %v757_v33, %v561_v44  ;;  %v1420_v19 = vmul.f32 %v3542_v61, %v1385_v39  ;;  %v1419_v4 = vmul.f32 %v3542_v61, %v1335_v7 }
 0x19a   : > { %v910_v40 = vpop.permute.xlu1 %909  ;;  %v1635_v29 = vmul.f32 %v3605_v35, %v1335_v7  ;;  %v1800_v62 = vadd.f32 %v1769_v49, %v1733_v23  ;;  %v1636_v14 = vmul.f32 %v3605_v35, %v1385_v39  ;;  %v1837_v56 = vmul.f32 %v4407_v15, %v1385_v39 }
 0x19b   : > { %v953_v46 = vmul.f32 %v3487_v11, %v910_v40  ;;  %v1836_v32 = vmul.f32 %v4407_v15, %v1335_v7  ;;  %v1451_v20 = vadd.f32 %v1419_v4, %v1287_v63  ;;  %v1703_v22 = vmul.f32 %v3613_v18, %v1155_v53 }
 0x19c   : > { %v1667_v60 = vadd.f32 %v1635_v29, %v1593_v42  ;;  %v1288_v38 = vadd.f32 %v1256_v26, %v1189_v58  ;;  %v1801_v40 = vadd.f32 %v1770_v3, %v1734_v37  ;;  %v1495_v33 = vmul.f32 %v3570_v24, %v1155_v53  ;;  %v5646_v3 = vld [vmem:[#allocation45_spill] sm:$0xff] }
 0x19d   : > { %v985_v0 = vadd.f32 %v953_v46, %v789_v25  ;;  %v1594_v50 = vadd.f32 %v1562_v55, %v1526_v2  ;;  %v1868_v49 = vadd.f32 %v1836_v32, %v1800_v62  ;;  %v1257_v39 = vmul.f32 %v3532_v51, %v4716_v43  ;;  %v5647_v2 = vld [vmem:[#allocation19_spill] sm:$0xff]  ;;  %v5648_v29 = vld [vmem:[#allocation53_spill] sm:$0xff] }
 0x19e   : > { %v1336_v7 = vrot.slane %v4716_v43, 1  ;;  %v1563_v42 = vmul.f32 %v3602_v31, %v4716_v43  ;;  %v562_v37 = vmul.f32 %v3439_v45, %v521_v5  ;;  %v1939_v44 = vadd.f32 %v5646_v3, %v1937_v16 }
 0x19f   : > { %v4760_v12 = vadd.f32 %v4267_v6, %v985_v0  ;;  %v526_v23 = vpop.permute.xlu1 %525  ;;  %v1735_v58 = vadd.f32 %v1703_v22, %v1667_v60  ;;  %v1771_v62 = vmul.f32 %v3610_v1, %v4716_v43  ;;  %v1190_v25 = vmul.f32 %v3517_v34, %v1155_v53  ;;  %v5650_v53 = vld [vmem:[#allocation62_spill] sm:$0xff] }
 0x1a0   : > { %v563_v63 = vmul.f32 %v3439_v45, %v526_v23  ;;  %v4775_v46 = vadd.f32 %v1837_v56, %v1801_v40  ;;  %v1527_v4 = vadd.f32 %v1495_v33, %v1451_v20  ;;  %v1941_v32 = vadd.f32 %v5648_v29, %v1939_v44  ;;  %v5649_v23 = vld [vmem:[#allocation42_spill] sm:$0xff] }
 0x1a1   : > { %v1106_v26 = vrot.slane %v4760_v12, 7  ;;  %v2020_v45 = vadd.f32 %v4677_v21, %v4693_v17  ;;  %v4781_v5 = vadd.f32 %v4704_v10, %v1868_v49  ;;  %v1337_v0 = vrot.slane %v4760_v12, 1  ;;  %v5651_v40 = vld [vmem:[#allocation18_spill] sm:$0xff] }
 0x1a2   : > { %v791_v55 = vadd.f32 %v5647_v2, %v563_v63  ;;  %v1452_v60 = vadd.f32 %v1420_v19, %v1288_v38  ;;  %v790_v63 = vadd.f32 %v5649_v23, %v562_v37  ;;  %v1943_v20 = vadd.f32 %v5651_v40, %v1941_v32 }
 0x1a3   : > { %v1107_v16 = vsel %vm1060_vm0, %v1105_v30, %v1106_v26  ;;  %v2022_v33 = vadd.f32 %v4680_v27, %v2020_v45  ;;  %v4789_v3 = vadd.f32 %v1771_v62, %v1735_v58  ;;  %v1668_v21 = vadd.f32 %v1636_v14, %v1594_v50  ;;  %v5652_v50 = vld [vmem:[#allocation61_spill] sm:$0xff] }
 0x1a4   : > { %v914_v22 = vpop.permute.xlu1 %913  ;;  %v987_v56 = vadd.f32 %v5650_v53, %v791_v55  ;;  %v1289_v49 = vadd.f32 %v1257_v39, %v1190_v25  ;;  %v1191_v30 = vmul.f32 %v3517_v34, %v1107_v16  ;;  %v1595_v26 = vadd.f32 %v1563_v42, %v1527_v4 }
 0x1a5   : > { %v954_v17 = vmul.f32 %v3487_v11, %v914_v22  ;;  %v2025_v19 = vsel %vm1914_vm2, %v4644_v13, 0.0  ;;  %v2027_v38 = vsel %vm1914_vm2, %v4648_v47, 0.0  ;;  %v1338_v37 = vsel %vm1291_vm1, %v1336_v7, %v1337_v0 }
 0x1a6   : > { %v1496_v44 = vmul.f32 %v3570_v24, %v1107_v16  ;;  %v4800_v27 = vadd.f32 %v4267_v6, %v987_v56  ;;  %v1258_v11 = vmul.f32 %v3532_v51, %v4760_v12  ;;  %v1945_v34 = vadd.f32 %v5652_v50, %v1943_v20 }
 0x1a7   : > { %v986_v14 = vadd.f32 %v954_v17, %v790_v63  ;;  %v2024_v39 = vadd.f32 %v4698_v48, %v2022_v33  ;;  %v2029_v13 = vsel %vm1914_vm2, %v4660_v36, 0.0  ;;  %v1386_v47 = vsel %vm1291_vm1, %v1337_v0, 0.0  ;;  %v5653_v48 = vld [vmem:[#allocation57_spill] sm:$0xff] }
 0x1a8   : > { %v1564_v7 = vmul.f32 %v3602_v31, %v4760_v12  ;;  %v2031_v58 = vsel %vm1914_vm2, %v4664_v59, 0.0  ;;  %v1290_v62 = vadd.f32 %v1258_v11, %v1191_v30  ;;  %v1704_v51 = vmul.f32 %v3613_v18, %v1107_v16 }
 0x1a9   : > { %v4812_v42 = vadd.f32 %v4267_v6, %v986_v14  ;;  %v1421_v2 = vmul.f32 %v3542_v61, %v1338_v37  ;;  %v1947_v55 = vadd.f32 %v5653_v48, %v1945_v34  ;;  %v1528_v25 = vadd.f32 %v1496_v44, %v1452_v60  ;;  %v5654_v44 = vld [vmem:[#allocation66_spill] sm:$0xff] }
 0x1aa   : > { %v1458_v36 = vrot.slane %v4800_v27, 7  ;;  %v1422_v6 = vmul.f32 %v3542_v61, %v1386_v47  ;;  %v1638_v32 = vmul.f32 %v3605_v35, %v1386_v47  ;;  %v1838_v59 = vmul.f32 %v4407_v15, %v1338_v37 }
 0x1ab   : > { %v1457_v4 = vrot.slane %v4812_v42, 7  ;;  %v1599_v29 = vrot.slane %v4812_v42, 1  ;;  %v2026_v45 = vadd.f32 %v2025_v19, %v2024_v39  ;;  %v1600_v16 = vrot.slane %v4800_v27, 1 }
 0x1ac   : > { %v1637_v60 = vmul.f32 %v3605_v35, %v1338_v37  ;;  %v1453_v23 = vadd.f32 %v1421_v2, %v1289_v49  ;;  %v1454_v63 = vadd.f32 %v1422_v6, %v1290_v62  ;;  %v1596_v61 = vadd.f32 %v1564_v7, %v1528_v25  ;;  %v5655_v25 = vld [vmem:[#allocation59_spill] sm:$0xff] }
 0x1ad   : > { %v1459_v0 = vsel %vm1060_vm0, %v1457_v4, %v1458_v36  ;;  %v1462_v22 = vsel %vm1060_vm0, 0.0, %v1457_v4  ;;  %v1736_v40 = vadd.f32 %v1704_v51, %v1668_v21  ;;  %v1601_v20 = vsel %vm1291_vm1, %v1599_v29, %v1600_v16 }
 0x1ae   : > { %v1497_v53 = vmul.f32 %v3570_v24, %v1462_v22  ;;  %v1498_v56 = vmul.f32 %v3570_v24, %v1459_v0  ;;  %v1705_v33 = vmul.f32 %v3613_v18, %v1462_v22  ;;  %v1565_v19 = vmul.f32 %v3602_v31, %v4812_v42 }
 0x1af   : > { %v1949_v14 = vadd.f32 %v5654_v44, %v1947_v55  ;;  %v1566_v49 = vmul.f32 %v3602_v31, %v4800_v27  ;;  %v1604_v37 = vsel %vm1291_vm1, %v1600_v16, 0.0  ;;  %v1669_v11 = vadd.f32 %v1637_v60, %v1595_v26 }
 0x1b0   : > { %v1529_v17 = vadd.f32 %v1497_v53, %v1453_v23  ;;  %v1530_v30 = vadd.f32 %v1498_v56, %v1454_v63  ;;  %v2028_v24 = vadd.f32 %v2027_v38, %v2026_v45  ;;  %v1639_v21 = vmul.f32 %v3605_v35, %v1601_v20  ;;  %v5656_v45 = vld [vmem:[#allocation25_spill] sm:$0xff] }
 0x1b1   : > { %v1706_v34 = vmul.f32 %v3613_v18, %v1459_v0  ;;  %v1951_v39 = vadd.f32 %v4582_v54, %v1949_v14  ;;  %v1772_v7 = vmul.f32 %v3610_v1, %v4760_v12  ;;  %v1737_v51 = vadd.f32 %v1705_v33, %v1669_v11 }
 0x1b2   : > { %v1597_v50 = vadd.f32 %v1565_v19, %v1529_v17  ;;  %v1598_v62 = vadd.f32 %v1566_v49, %v1530_v30  ;;  %v2030_v2 = vadd.f32 %v2029_v13, %v2028_v24  ;;  %v1670_v48 = vadd.f32 %v1638_v32, %v1596_v61  ;;  %v5659_v61 = vld [vmem:[#allocation36_spill] sm:$0xff]  ;;  %v5661_v19 = vld [vmem:[#allocation38_spill] sm:$0xff]  ;;  %v5663_v24 = vld [vmem:[#allocation9_spill] sm:$0xff] }
 0x1b3   : > { %v1953_v31 = vadd.f32 %v4594_v9, %v1951_v39  ;;  %v2033_v26 = vsel %vm1914_vm2, %v5655_v25, 0.0  ;;  %v1803_v38 = vadd.f32 %v1772_v7, %v1736_v40  ;;  %v1640_v36 = vmul.f32 %v3605_v35, %v1604_v37  ;;  %v5657_v35 = vld [vmem:[#allocation7_spill] sm:$0xff]  ;;  %v5662_v49 = vld [vmem:[#allocation44_spill] sm:$0xff] }
 0x1b4   : > { %v1671_v55 = vadd.f32 %v1639_v21, %v1597_v50  ;;  %v1773_v18 = vmul.f32 %v3610_v1, %v4812_v42  ;;  %v2032_v54 = vadd.f32 %v2031_v58, %v2030_v2  ;;  %v1839_v4 = vmul.f32 %v4407_v15, %v1386_v47  ;;  %v5664_v21 = vld [vmem:[#allocation23_spill] sm:$0xff] }
 0x1b5   : > { %v1870_v29 = vadd.f32 %v1838_v59, %v4789_v3  ;;  %v1738_v6 = vadd.f32 %v1706_v34, %v1670_v48  ;;  %v1955_v13 = vadd.f32 %v4599_v57, %v1953_v31  ;;  %v1672_v32 = vadd.f32 %v1640_v36, %v1598_v62  ;;  %v5665_v31 = vld [vmem:[#allocation47_spill] sm:$0xff] }
 0x1b6   : > { %v1739_v9 = vadd.f32 %v5656_v45, %v1671_v55  ;;  %v1804_v16 = vadd.f32 %v1773_v18, %v1737_v51  ;;  %v2034_v0 = vadd.f32 %v2033_v26, %v2032_v54  ;;  %v1774_v22 = vmul.f32 %v3610_v1, %v4800_v27  ;;  %v5666_v26 = vld [vmem:[#allocation49_spill] sm:$0xff] }
 0x1b7   : > { %v1842_v60 = vmul.f32 %v4407_v15, %v5657_v35  ;;  %v1957_v58 = vadd.f32 %v4621_v41, %v1955_v13  ;;  %v2035_v47 = vsel %vm1914_vm2, %v4668_v52, 0.0  ;;  %v1960_v3 = vsel %vm1914_vm2, %v4742_v8, 0.0  ;;  %v5658_v52 = vld [vmem:[#allocation5_spill] sm:$0xff]  ;;  %v5668_v35 = vld [vmem:[#allocation68_spill] sm:$0xff] }
 0x1b8   : > { %v4865_v57 = vadd.f32 %v4704_v10, %v4775_v46  ;;  %v1871_v59 = vadd.f32 %v1839_v4, %v1803_v38  ;;  %v1840_v23 = vmul.f32 %v4407_v15, %v1601_v20  ;;  %v1962_v1 = vsel %vm1914_vm2, %v4781_v5, 0.0  ;;  %v5660_v46 = vld [vmem:[#allocation21_spill] sm:$0xff]  ;;  %v5667_v4 = vld [vmem:[#allocation64_spill] sm:$0xff] }
 0x1b9   : > { %v4871_v63 = vadd.f32 %v4704_v10, %v1870_v29  ;;  %v1805_v41 = vadd.f32 %v1774_v22, %v1738_v6  ;;  %v1959_v53 = vadd.f32 %v4722_v28, %v1957_v58  ;;  %v1740_v56 = vadd.f32 %v5658_v52, %v1672_v32 }
 0x1ba   : > { %v1806_v40 = vadd.f32 %v5659_v61, %v1739_v9  ;;  %v1872_v33 = vadd.f32 %v1840_v23, %v1804_v16  ;;  %v2036_v17 = vadd.f32 %v2035_v47, %v2034_v0  ;;  %v2039_v30 = vsel %vm1914_vm2, %v5660_v46, 0.0 }
 0x1bb   : > { %v1998_v20 = vmul.f32 %v5661_v19, %v5661_v19  ;;  %v1841_v44 = vmul.f32 %v4407_v15, %v1604_v37  ;;  %v1961_v14 = vadd.f32 %v1960_v3, %v1959_v53  ;;  %v2041_v11 = vsel %vm1914_vm2, %v5662_v49, 0.0 }
 0x1bc   : > { %v4884_v28 = vadd.f32 %v4704_v10, %v1871_v59  ;;  %v1843_v50 = vmul.f32 %v4407_v15, %v5663_v24  ;;  %v2038_v34 = vadd.f32 %v5664_v21, %v2036_v17  ;;  %v1964_v39 = vsel %vm1914_vm2, %v4865_v57, 0.0  ;;  %v5669_v59 = vld [vmem:[#allocation69_spill] sm:$0xff] }
 0x1bd   : > { %v1966_v7 = vsel %vm1914_vm2, %v4871_v63, 0.0  ;;  %v1873_v62 = vadd.f32 %v1841_v44, %v1805_v41  ;;  %v1963_v37 = vadd.f32 %v1962_v1, %v1961_v14  ;;  %v1807_v51 = vadd.f32 %v5659_v61, %v1740_v56  ;;  %v5672_v24 = vld [vmem:[#allocation37_spill] sm:$0xff] }
 0x1be   : > { %v1874_v2 = vadd.f32 %v1842_v60, %v1806_v40  ;;  %v4895_v48 = vadd.f32 %v4704_v10, %v1872_v33  ;;  %v2040_v55 = vadd.f32 %v2039_v30, %v2038_v34  ;;  %v1999_v15 = vmul.f32 %v5665_v31, %v5665_v31  ;;  %v5670_v40 = vld [vmem:[#allocation70_spill] sm:$0xff] }
 0x1bf   : > { %v2043_v25 = vsel %vm1914_vm2, %v1998_v20, 0.0  ;;  %v2000_v38 = vmul.f32 %v5666_v26, %v5666_v26  ;;  %v1965_v36 = vadd.f32 %v1964_v39, %v1963_v37  ;;  %v1968_v18 = vsel %vm1914_vm2, %v4884_v28, 0.0  ;;  %v5671_v20 = vld [vmem:[#allocation72_spill] sm:$0xff] }
 0x1c0   : > { %v2042_v54 = vadd.f32 %v2041_v11, %v2040_v55  ;;  %v2001_v29 = vmul.f32 %v5667_v4, %v5667_v4  ;;  %v4907_v6 = vadd.f32 %v4704_v10, %v1873_v62  ;;  %v4910_v32 = vadd.f32 %v4704_v10, %v1874_v2 }
 0x1c1   : > { %v1967_v13 = vadd.f32 %v1966_v7, %v1965_v36  ;;  %v1970_v45 = vsel %vm1914_vm2, %v4895_v48, 0.0  ;;  %v1875_v9 = vadd.f32 %v1843_v50, %v1807_v51  ;;  %v2045_v0 = vsel %vm1914_vm2, %v1999_v15, 0.0 }
 0x1c2   : > { %v2044_v16 = vadd.f32 %v2043_v25, %v2042_v54  ;;  %v2047_v22 = vsel %vm1914_vm2, %v2000_v38, 0.0  ;;  %v2002_v60 = vmul.f32 %v5668_v35, %v5668_v35  ;;  %v2049_v3 = vsel %vm1914_vm2, %v2001_v29, 0.0 }
 0x1c3   : > { %v1969_v58 = vadd.f32 %v1968_v18, %v1967_v13  ;;  %v2003_v23 = vmul.f32 %v5669_v59, %v5669_v59  ;;  %v1972_v41 = vsel %vm1914_vm2, %v4907_v6, 0.0  ;;  %v1974_v53 = vsel %vm1914_vm2, %v4910_v32, 0.0 }
 0x1c4   : > { %v2046_v47 = vadd.f32 %v2045_v0, %v2044_v16  ;;  %v4926_v52 = vadd.f32 %v4704_v10, %v1875_v9  ;;  %v2051_v61 = vsel %vm1914_vm2, %v2002_v60, 0.0  ;;  %v2004_v33 = vmul.f32 %v5670_v40, %v5670_v40 }
 0x1c5   : > { %v1971_v1 = vadd.f32 %v1970_v45, %v1969_v58  ;;  %v2053_v30 = vsel %vm1914_vm2, %v2003_v23, 0.0  ;;  %v2005_v44 = vmul.f32 %v5671_v20, %v5671_v20  ;;  %v2006_v50 = vmul.f32 %v5672_v24, %v5672_v24 }
 0x1c6   : > { %v2048_v56 = vadd.f32 %v2047_v22, %v2046_v47  ;;  %v1976_v49 = vsel %vm1914_vm2, %v4926_v52, 0.0  ;;  %v2055_v10 = vsel %vm1914_vm2, %v2004_v33, 0.0  ;;  %v2007_v7 = vmul.f32 %v4742_v8, %v4742_v8 }
 0x1c7   : > { %v1973_v17 = vadd.f32 %v1972_v41, %v1971_v1  ;;  %v2057_v39 = vsel %vm1914_vm2, %v2005_v44, 0.0  ;;  %v2059_v51 = vsel %vm1914_vm2, %v2006_v50, 0.0  ;;  %v2008_v2 = vmul.f32 %v4781_v5, %v4781_v5 }
 0x1c8   : > { %v2050_v46 = vadd.f32 %v2049_v3, %v2048_v56  ;;  %v2061_v25 = vsel %vm1914_vm2, %v2007_v7, 0.0  ;;  %v2009_v18 = vmul.f32 %v4865_v57, %v4865_v57  ;;  %v2010_v29 = vmul.f32 %v4871_v63, %v4871_v63 }
 0x1c9   : > { %v1975_v14 = vadd.f32 %v1974_v53, %v1973_v17  ;;  %v2063_v54 = vsel %vm1914_vm2, %v2008_v2, 0.0  ;;  %v2011_v9 = vmul.f32 %v4884_v28, %v4884_v28  ;;  %v2012_v58 = vmul.f32 %v4895_v48, %v4895_v48 }
 0x1ca   : > { %v2052_v11 = vadd.f32 %v2051_v61, %v2050_v46  ;;  %v2065_v22 = vsel %vm1914_vm2, %v2009_v18, 0.0  ;;  %v2067_v60 = vsel %vm1914_vm2, %v2010_v29, 0.0  ;;  %v2013_v41 = vmul.f32 %v4907_v6, %v4907_v6  ;;  %v5674_v18 = vld [vmem:[#allocation30_spill] sm:$0xff] }
 0x1cb   : > { %v1977_v21 = vadd.f32 %v1976_v49, %v1975_v14  ;;  %v2069_v3 = vsel %vm1914_vm2, %v2011_v9, 0.0  ;;  %v2014_v53 = vmul.f32 %v4910_v32, %v4910_v32  ;;  %v2071_v56 = vsel %vm1914_vm2, %v2012_v58, 0.0 }
 0x1cc   : > { %v2054_v34 = vadd.f32 %v2053_v30, %v2052_v11  ;;  %v2015_v33 = vmul.f32 %v4926_v52, %v4926_v52  ;;  %v2073_v30 = vsel %vm1914_vm2, %v2013_v41, 0.0 }
 0x1cd   : > { %v1978_v62 = vrot.slane %v1977_v21, 4  ;;  %v2075_v44 = vsel %vm1914_vm2, %v2014_v53, 0.0 }
 0x1ce   : > { %v2056_v37 = vadd.f32 %v2055_v10, %v2054_v34  ;;  %v2077_v11 = vsel %vm1914_vm2, %v2015_v33, 0.0  ;;  %v5679_v33 = vld [vmem:[#allocation52_spill] sm:$0xff] }
 0x1cf   : > { %v1979_v55 = vadd.f32 %v1978_v62, %v1977_v21 }
 0x1d0   : > { %v2058_v15 = vadd.f32 %v2057_v39, %v2056_v37 }
 0x1d1   : > { %v1980_v38 = vrot.slane %v1979_v55, 2 }
 0x1d2   : > { %v2060_v36 = vadd.f32 %v2059_v51, %v2058_v15 }
 0x1d3   : > { %v1981_v13 = vadd.f32 %v1980_v38, %v1979_v55 }
 0x1d4   : > { %v2062_v45 = vadd.f32 %v2061_v25, %v2060_v36 }
 0x1d5   : > { %v1982_v16 = vrot.slane %v1981_v13, 1 }
 0x1d6   : > { %v2064_v0 = vadd.f32 %v2063_v54, %v2062_v45  ;;  %v5675_v54 = vld [vmem:[#allocation48_spill] sm:$0xff] }
 0x1d7   : > { %v1983_v23 = vadd.f32 %v1982_v16, %v1981_v13  ;;  %v5676_v13 = vld [vmem:[#allocation54_spill] sm:$0xff] }
 0x1d8   : > { %v2066_v47 = vadd.f32 %v2065_v22, %v2064_v0  ;;  %v5677_v16 = vld [vmem:[#allocation26_spill] sm:$0xff]  ;;  %v5678_v22 = vld [vmem:[#allocation63_spill] sm:$0xff] }
 0x1d9   : > { %v4965_v46 = vmul.f32 0.00390625, %v1983_v23 }
 0x1da   : > { %v2068_v1 = vadd.f32 %v2067_v60, %v2066_v47 }
 0x1db   : > { %v2116_v10 = vsub.f32 %v4871_v63, %v4965_v46  ;;  %v2117_v50 = vsub.f32 %v4884_v28, %v4965_v46  ;;  %v2118_v21 = vsub.f32 %v4895_v48, %v4965_v46  ;;  %v2119_v34 = vsub.f32 %v4907_v6, %v4965_v46 }
 0x1dc   : > { %v2070_v61 = vadd.f32 %v2069_v3, %v2068_v1  ;;  %v2120_v39 = vsub.f32 %v4910_v32, %v4965_v46  ;;  %v2121_v62 = vsub.f32 %v4926_v52, %v4965_v46  ;;  %v2087_v28 = vmul.f32 %v4965_v46, %v4965_v46  ;;  %v5673_v32 = vld [vmem:[#allocation4_spill] sm:$0xff] }
 0x1dd   : > { %v2090_v36 = vsub.f32 %v5673_v32, %v4965_v46  ;;  %v2091_v52 = vsub.f32 %v5674_v18, %v4965_v46  ;;  %v2092_v29 = vsub.f32 %v5675_v54, %v4965_v46  ;;  %v2093_v45 = vsub.f32 %v5676_v13, %v4965_v46 }
 0x1de   : > { %v2072_v17 = vadd.f32 %v2071_v56, %v2070_v61  ;;  %v2094_v0 = vsub.f32 %v5677_v16, %v4965_v46  ;;  %v2095_v60 = vsub.f32 %v5678_v22, %v4965_v46 }
 0x1e0   : > { %v2074_v14 = vadd.f32 %v2073_v30, %v2072_v17  ;;  %v2096_v17 = vsub.f32 %v5679_v33, %v4965_v46  ;;  %v5680_v30 = vld [vmem:[#allocation58_spill] sm:$0xff]  ;;  %v2111_v33 = vsub.f32 %v5671_v20, %v4965_v46  ;;  %v2114_v20 = vsub.f32 %v4781_v5, %v4965_v46 }
 0x1e1   : > { %v3158_v5 = vld [vmem:[%s5395_s7] sm:$0xff]  }
 0x1e2   : > { %v2076_v49 = vadd.f32 %v2075_v44, %v2074_v14  ;;  %v2097_v44 = vsub.f32 %v5680_v30, %v4965_v46  ;;  %v5681_v14 = vld [vmem:[#allocation3_spill] sm:$0xff] }
 0x1e4   : > { %v2078_v7 = vadd.f32 %v2077_v11, %v2076_v49  ;;  %v2098_v49 = vsub.f32 %v5681_v14, %v4965_v46  ;;  %v5682_v11 = vld [vmem:[#allocation32_spill] sm:$0xff] }
 0x1e6   : > { %v2079_v37 = vrot.slane %v2078_v7, 4 }
 0x1e8   : > { %v2080_v51 = vadd.f32 %v2079_v37, %v2078_v7  ;;  %v2099_v7 = vsub.f32 %v5682_v11, %v4965_v46  ;;  %v2115_v11 = vsub.f32 %v4865_v57, %v4965_v46  ;;  %v5095_v57 = vld [vmem:[%s5394_s6] ss:$0 sm:$0xff] }
 0x1ea   : > { %v2081_v2 = vrot.slane %v2080_v51, 2 }
 0x1ec   : > { %v2082_v63 = vadd.f32 %v2081_v2, %v2080_v51 }
 0x1ee   : > { %v2083_v55 = vrot.slane %v2082_v63, 1 }
 0x1f0   : > { %v2084_v15 = vadd.f32 %v2083_v55, %v2082_v63 }
 0x1f2   : > { %v2086_v48 = vmul.f32 0.00390625, %v2084_v15 }
 0x1f4   : > { %v2088_v25 = vsub.f32 %v2086_v48, %v2087_v28 }
 0x1f6   : > { %v2089_v38 = vmax.f32 %v2088_v25, 0.0 }
 0x1f8   : > { %v2122_v6 = vadd.f32 1e-05, %v2089_v38 }
 0x1fa   : > { %3159 = vrsqrt.f32 %v2122_v6 }
 0x207   : > { %v4992_v9 = vpop.eup %3159 }
 0x208   : > { %v2124_v58 = vmul.f32 %v4992_v9, %v2090_v36  ;;  %v2125_v47 = vmul.f32 %v4992_v9, %v2091_v52  ;;  %v2126_v3 = vmul.f32 %v4992_v9, %v2092_v29  ;;  %v2127_v23 = vmul.f32 %v4992_v9, %v2093_v45  ;;  %v5683_v52 = vld [vmem:[#allocation40_spill] sm:$0xff] }
 0x209   : > { %v2128_v1 = vmul.f32 %v4992_v9, %v2094_v0  ;;  %v2129_v41 = vmul.f32 %v4992_v9, %v2095_v60  ;;  %v2130_v37 = vmul.f32 %v4992_v9, %v2096_v17  ;;  %v2131_v51 = vmul.f32 %v4992_v9, %v2097_v44 }
 0x20a   : > { %v2158_v53 = vpack.c.bf16 %v2125_v47, %v2124_v58  ;;  %v2159_v56 = vpack.c.bf16 %v2127_v23, %v2126_v3  ;;  %v2132_v2 = vmul.f32 %v4992_v9, %v2098_v49  ;;  %v2133_v63 = vmul.f32 %v4992_v9, %v2099_v7 }
 0x20b   : > { %v2160_v61 = vpack.c.bf16 %v2129_v41, %v2128_v1  ;;  %v2150_v55 = vmul.f32 %v4992_v9, %v2116_v10  ;;  %v2151_v15 = vmul.f32 %v4992_v9, %v2117_v50  ;;  %v2152_v28 = vmul.f32 %v4992_v9, %v2118_v21  ;;  %v5684_v10 = vld [vmem:[#allocation60_spill] sm:$0xff]  ;;  %v5685_v21 = vld [vmem:[#allocation14_spill] sm:$0xff] }
 0x20c   : > { %3014 = vmatprep.mubr.msk.bf16.mxu0 %vm1914_vm2, %v2158_v53  ;;  %v2153_v48 = vmul.f32 %v4992_v9, %v2119_v34  ;;  %v2154_v25 = vmul.f32 %v4992_v9, %v2120_v39  ;;  %v2161_v38 = vpack.c.bf16 %v2131_v51, %v2130_v37  ;;  %v2155_v32 = vmul.f32 %v4992_v9, %v2121_v62  ;;  %v5686_v39 = vld [vmem:[#allocation15_spill] sm:$0xff] }
 0x20d   : > { %3015 = vmatmul.mubr.msk.bf16.vlgmr.msra.gmra.mxu0 %vm1914_vm2, %v2159_v56  ;;  %v2171_v6 = vpack.c.bf16 %v2151_v15, %v2150_v55  ;;  %v2162_v36 = vpack.c.bf16 %v2133_v63, %v2132_v2  ;;  %v2100_v54 = vsub.f32 %v5683_v52, %v4965_v46  ;;  %v2101_v50 = vsub.f32 %v5684_v10, %v4965_v46 }
 0x20e   : > { %3018 = vmatprep.mubr.msk.bf16.mxu0 %vm1914_vm2, %v2160_v61  ;;  %v2172_v18 = vpack.c.bf16 %v2153_v48, %v2152_v28  ;;  %v2173_v29 = vpack.c.bf16 %v2155_v32, %v2154_v25  ;;  %v2102_v34 = vsub.f32 %v5685_v21, %v4965_v46  ;;  %v2103_v13 = vsub.f32 %v5686_v39, %v4965_v46 }
 0x20f   : > { %v2134_v62 = vmul.f32 %v4992_v9, %v2100_v54  ;;  %v2135_v45 = vmul.f32 %v4992_v9, %v2101_v50  ;;  %v2104_v58 = vsub.f32 %v5661_v19, %v4965_v46  ;;  %v2105_v47 = vsub.f32 %v5665_v31, %v4965_v46 }
 0x210   : > { %v2136_v16 = vmul.f32 %v4992_v9, %v2102_v34  ;;  %v2137_v0 = vmul.f32 %v4992_v9, %v2103_v13  ;;  %v2106_v3 = vsub.f32 %v5666_v26, %v4965_v46  ;;  %v2107_v23 = vsub.f32 %v5667_v4, %v4965_v46 }
 0x211   : > { %v2163_v22 = vpack.c.bf16 %v2135_v45, %v2134_v62  ;;  %v2138_v1 = vmul.f32 %v4992_v9, %v2104_v58  ;;  %v2139_v41 = vmul.f32 %v4992_v9, %v2105_v47  ;;  %v2108_v31 = vsub.f32 %v5668_v35, %v4965_v46 }
 0x212   : > { %v2164_v60 = vpack.c.bf16 %v2137_v0, %v2136_v16  ;;  %v2140_v53 = vmul.f32 %v4992_v9, %v2106_v3  ;;  %v2141_v56 = vmul.f32 %v4992_v9, %v2107_v23  ;;  %v2109_v26 = vsub.f32 %v5669_v59, %v4965_v46 }
 0x213   : > { %v2165_v19 = vpack.c.bf16 %v2139_v41, %v2138_v1  ;;  %v2110_v4 = vsub.f32 %v5670_v40, %v4965_v46  ;;  %v2142_v17 = vmul.f32 %v4992_v9, %v2108_v31  ;;  %v2145_v14 = vmul.f32 %v4992_v9, %v2111_v33 }
 0x214   : > { %v2166_v61 = vpack.c.bf16 %v2141_v56, %v2140_v53  ;;  %v2143_v30 = vmul.f32 %v4992_v9, %v2109_v26  ;;  %v2112_v59 = vsub.f32 %v5672_v24, %v4965_v46  ;;  %v2113_v40 = vsub.f32 %v4742_v8, %v4965_v46  ;;  %v3157_v8 = vld [vmem:[%s5395_s7 + $0x8] sm:$0xff]  }
 0x215   : > { %3019 = vmatmul.mubr.msk.bf16.gmra.mxu0 %vm1914_vm2, %v2161_v38  ;;  %v2144_v44 = vmul.f32 %v4992_v9, %v2110_v4  ;;  %v2148_v51 = vmul.f32 %v4992_v9, %v2114_v20  ;;  %v2149_v2 = vmul.f32 %v4992_v9, %v2115_v11  ;;  %3046 = vmatprep.subr.bf16.mxu1 %v3157_v8 }
 0x216   : > { %3022 = vmatprep.mubr.msk.bf16.mxu0 %vm1914_vm2, %v2162_v36  ;;  %v2167_v35 = vpack.c.bf16 %v2143_v30, %v2142_v17  ;;  %v2146_v7 = vmul.f32 %v4992_v9, %v2112_v59  ;;  %v2147_v37 = vmul.f32 %v4992_v9, %v2113_v40  ;;  %3047 = vmatpush3.bf16.msra.mxu1 %v3157_v8 }
 0x217   : > { %v2168_v49 = vpack.c.bf16 %v2145_v14, %v2144_v44  ;;  %v2170_v63 = vpack.c.bf16 %v2149_v2, %v2148_v51  ;;  %3048 = vmatprep.subr.bf16.mxu1 %v3158_v5 }
 0x218   : > { %v2169_v24 = vpack.c.bf16 %v2147_v37, %v2146_v7 }
 0x21a   : > { %3049 = vmatpush3.bf16.msra.mxu1 %v3158_v5 }
 0x21d   : > { %3023 = vmatmul.mubr.msk.bf16.gmra.mxu0 %vm1914_vm2, %v2163_v22 }
 0x21e   : > { %3026 = vmatprep.mubr.msk.bf16.mxu0 %vm1914_vm2, %v2164_v60 }
 0x225   : > { %3027 = vmatmul.mubr.msk.bf16.gmra.mxu0 %vm1914_vm2, %v2165_v19 }
 0x226   : > { %3030 = vmatprep.mubr.msk.bf16.mxu0 %vm1914_vm2, %v2166_v61 }
 0x22d   : > { %3031 = vmatmul.mubr.msk.bf16.gmra.mxu0 %vm1914_vm2, %v2167_v35 }
 0x22e   : > { %3034 = vmatprep.mubr.msk.bf16.mxu0 %vm1914_vm2, %v2168_v49 }
 0x235   : > { %3035 = vmatmul.mubr.msk.bf16.gmra.mxu0 %vm1914_vm2, %v2169_v24 }
 0x236   : > { %3038 = vmatprep.mubr.msk.bf16.mxu0 %vm1914_vm2, %v2170_v63 }
 0x23d   : > { %3039 = vmatmul.mubr.msk.bf16.gmra.mxu0 %vm1914_vm2, %v2171_v6 }
 0x23e   : > { %3042 = vmatprep.mubr.msk.bf16.mxu0 %vm1914_vm2, %v2172_v18 }
 0x245   : > { %3043 = vmatmul.mubr.msk.bf16.gmra.mxu0 %vm1914_vm2, %v2173_v29 }
 0x2cd   : > { %v3016_v46 = vpop.f32.mrf.mxu0 }
 0x2ce   : > { %v2278_v9 = vadd.f32 %v3016_v46, %v5095_v57 }
 0x2cf   : > { %v2269_v55 = vpop.f32.mrf.mxu0 }
 0x2d0   : > { %v2430_v15 = vmul.f32 0.70710677, %v2278_v9  ;;  %v2270_v28 = vadd.f32 %v5095_v57, %v2269_v55  ;;  %v2398_v14 = vmul.f32 0.5, %v2278_v9 }
 0x2d1   : > { %v3017_v48 = vpop.f32.mrf.mxu0 }
 0x2d2   : > { %v2428_v25 = vmul.f32 0.70710677, %v2270_v28  ;;  %v2281_v38 = vadd.f32 %v3017_v48, %v5095_v57  ;;  %3161 = verf.f32 %v2430_v15  ;;  %v2396_v35 = vmul.f32 0.5, %v2270_v28 }
 0x2d3   : > { %v2272_v6 = vpop.f32.mrf.mxu0 }
 0x2d4   : > { %v2431_v32 = vmul.f32 0.70710677, %v2281_v38  ;;  %v2273_v36 = vadd.f32 %v5095_v57, %v2272_v6  ;;  %3163 = verf.f32 %v2428_v25  ;;  %v2399_v17 = vmul.f32 0.5, %v2281_v38 }
 0x2d5   : > { %v3020_v18 = vpop.f32.mrf.mxu0 }
 0x2d6   : > { %3165 = verf.f32 %v2431_v32  ;;  %v2429_v52 = vmul.f32 0.70710677, %v2273_v36  ;;  %v5102_v54 = vadd.f32 %v3020_v18, %v5095_v57  ;;  %v2397_v40 = vmul.f32 0.5, %v2273_v36 }
 0x2d7   : > { %v2285_v10 = vpop.f32.mrf.mxu0 }
 0x2d8   : > { %3167 = verf.f32 %v2429_v52  ;;  %v5105_v50 = vadd.f32 %v5095_v57, %v2285_v10  ;;  %v2434_v29 = vmul.f32 0.70710677, %v5102_v54 }
 0x2d9   : > { %v3021_v21 = vpop.f32.mrf.mxu0 }
 0x2da   : > { %v2432_v34 = vmul.f32 0.70710677, %v5105_v50  ;;  %v2297_v39 = vadd.f32 %v3021_v21, %v5095_v57  ;;  %v2400_v21 = vmul.f32 0.5, %v5105_v50 }
 0x2db   : > { %v2288_v13 = vpop.f32.mrf.mxu0 }
 0x2dc   : > { %3169 = verf.f32 %v2432_v34  ;;  %v2435_v62 = vmul.f32 0.70710677, %v2297_v39  ;;  %v5111_v45 = vadd.f32 %v5095_v57, %v2288_v13  ;;  %v2403_v52 = vmul.f32 0.5, %v2297_v39 }
 0x2dd   : > { %3171 = verf.f32 %v2434_v29  ;;  %v3024_v16 = vpop.f32.mrf.mxu0 }
 0x2de   : > { %3173 = verf.f32 %v2435_v62  ;;  %v2433_v0 = vmul.f32 0.70710677, %v5111_v45  ;;  %v5115_v22 = vadd.f32 %v3024_v16, %v5095_v57  ;;  %v2401_v34 = vmul.f32 0.5, %v5111_v45 }
 0x2df   : > { %v2301_v60 = vpop.f32.mrf.mxu0  ;;  %v3162_v47 = vpop.eup %3161  ;;  %v2402_v16 = vmul.f32 0.5, %v5102_v54 }
 0x2e0   : > { %3175 = verf.f32 %v2433_v0  ;;  %v2438_v58 = vmul.f32 0.70710677, %v5115_v22  ;;  %v5119_v3 = vadd.f32 %v5095_v57, %v2301_v60  ;;  %v2494_v33 = vadd.f32 1.0, %v3162_v47 }
 0x2e1   : > { %v3025_v23 = vpop.f32.mrf.mxu0  ;;  %v3164_v1 = vpop.eup %3163 }
 0x2e2   : > { %v5122_v41 = vadd.f32 %v3025_v23, %v5095_v57  ;;  %v2436_v56 = vmul.f32 0.70710677, %v5119_v3  ;;  %3177 = verf.f32 %v2438_v58  ;;  %v2492_v44 = vadd.f32 1.0, %v3164_v1 }
 0x2e3   : > { %v3166_v53 = vpop.eup %3165  ;;  %v2304_v19 = vpop.f32.mrf.mxu0  ;;  %v2526_v2 = vmul.f32 %v2494_v33, %v2398_v14 }
 0x2e4   : > { %v2495_v61 = vadd.f32 1.0, %v3166_v53  ;;  %v2439_v31 = vmul.f32 0.70710677, %v5122_v41  ;;  %v5127_v26 = vadd.f32 %v5095_v57, %v2304_v19  ;;  %3179 = verf.f32 %v2436_v56 }
 0x2e5   : > { %v3168_v4 = vpop.eup %3167  ;;  %v3028_v30 = vpop.f32.mrf.mxu0  ;;  %v2524_v8 = vmul.f32 %v2492_v44, %v2396_v35 }
 0x2e6   : > { %3181 = verf.f32 %v2439_v31  ;;  %v2437_v49 = vmul.f32 0.70710677, %v5127_v26  ;;  %v2527_v59 = vmul.f32 %v2495_v61, %v2399_v17  ;;  %v5131_v20 = vadd.f32 %v3028_v30, %v5095_v57 }
 0x2e7   : > { %v2317_v11 = vpop.f32.mrf.mxu0  ;;  %v2493_v7 = vadd.f32 1.0, %v3168_v4 }
 0x2e8   : > { %3183 = verf.f32 %v2437_v49  ;;  %v5134_v37 = vadd.f32 %v5095_v57, %v2317_v11  ;;  %v2442_v24 = vmul.f32 0.70710677, %v5131_v20  ;;  %v2561_v15 = vpack.c.bf16 %v2527_v59, %v2526_v2 }
 0x2e9   : > { %v3170_v51 = vpop.eup %3169  ;;  %v3029_v63 = vpop.f32.mrf.mxu0  ;;  %v2525_v5 = vmul.f32 %v2493_v7, %v2397_v40  ;;  %v2404_v49 = vmul.f32 0.5, %v5119_v3  ;;  %v2407_v59 = vmul.f32 0.5, %v5122_v41  ;;  %v2405_v7 = vmul.f32 0.5, %v5127_v26 }
 0x2ea   : > { %v3172_v46 = vpop.eup %3171  ;;  %v2440_v9 = vmul.f32 0.70710677, %v5134_v37  ;;  %v5139_v28 = vadd.f32 %v3029_v63, %v5095_v57  ;;  %v2496_v38 = vadd.f32 1.0, %v3170_v51  ;;  %v2406_v2 = vmul.f32 0.5, %v5115_v22 }
 0x2eb   : > { %v3174_v55 = vpop.eup %3173  ;;  %v2320_v48 = vpop.f32.mrf.mxu0  ;;  %v2560_v25 = vpack.c.bf16 %v2525_v5, %v2524_v8  ;;  %v2498_v18 = vadd.f32 1.0, %v3172_v46 }
 0x2ec   : > { %v2499_v6 = vadd.f32 1.0, %v3174_v55  ;;  %3185 = verf.f32 %v2440_v9  ;;  %v5142_v32 = vadd.f32 %v5095_v57, %v2320_v48  ;;  %v2443_v10 = vmul.f32 0.70710677, %v5139_v28 }
 0x2ed   : > { %v3176_v36 = vpop.eup %3175  ;;  %3187 = verf.f32 %v2442_v24  ;;  %3050 = vmatprep.mubr.msk.bf16.mxu1 %vm2595_vm3, %v2560_v25  ;;  %v3032_v29 = vpop.f32.mrf.mxu0  ;;  %v2528_v58 = vmul.f32 %v2496_v38, %v2400_v21  ;;  %v2530_v50 = vmul.f32 %v2498_v18, %v2402_v16  ;;  %v2408_v38 = vmul.f32 0.5, %v5134_v37 }
 0x2ee   : > { %v2497_v13 = vadd.f32 1.0, %v3176_v36  ;;  %v2441_v62 = vmul.f32 0.70710677, %v5142_v32  ;;  %3051 = vmatmul.mubr.msk.bf16.vlgmr.msra.gmra.mxu1 %vm2595_vm3, %v2561_v15  ;;  %v2531_v0 = vmul.f32 %v2499_v6, %v2403_v52  ;;  %3189 = verf.f32 %v2443_v10 }
 0x2ef   : > { %v5152_v39 = vadd.f32 %v3032_v29, %v5095_v57  ;;  %v2333_v60 = vpop.f32.mrf.mxu0  ;;  %v3178_v23 = vpop.eup %3177  ;;  %v2411_v6 = vmul.f32 0.5, %v5139_v28  ;;  %v2409_v37 = vmul.f32 0.5, %v5142_v32 }
 0x2f0   : > { %v2529_v47 = vmul.f32 %v2497_v13, %v2401_v34  ;;  %3191 = verf.f32 %v2441_v62  ;;  %v5156_v1 = vadd.f32 %v5095_v57, %v2333_v60  ;;  %v2563_v31 = vpack.c.bf16 %v2531_v0, %v2530_v50 }
 0x2f1   : > { %v2446_v45 = vmul.f32 0.70710677, %v5152_v39  ;;  %v3033_v53 = vpop.f32.mrf.mxu0  ;;  %v3180_v56 = vpop.eup %3179  ;;  %v2502_v11 = vadd.f32 1.0, %v3178_v23 }
 0x2f2   : > { %v2562_v19 = vpack.c.bf16 %v2529_v47, %v2528_v58  ;;  %v5159_v54 = vadd.f32 %v3033_v53, %v5095_v57  ;;  %v2500_v4 = vadd.f32 1.0, %v3180_v56  ;;  %v2444_v33 = vmul.f32 0.70710677, %v5156_v1 }
 0x2f3   : > { %v3182_v61 = vpop.eup %3181  ;;  %v2336_v17 = vpop.f32.mrf.mxu0  ;;  %3193 = verf.f32 %v2446_v45  ;;  %v2534_v15 = vmul.f32 %v2502_v11, %v2406_v2  ;;  %v2410_v47 = vmul.f32 0.5, %v5131_v20 }
 0x2f4   : > { %v2503_v30 = vadd.f32 1.0, %v3182_v61  ;;  %v2447_v44 = vmul.f32 0.70710677, %v5159_v54  ;;  %v5164_v14 = vadd.f32 %v5095_v57, %v2336_v17  ;;  %3054 = vmatprep.mubr.msk.bf16.mxu1 %vm2595_vm3, %v2562_v19  ;;  %3195 = verf.f32 %v2444_v33 }
 0x2f5   : > { %v3184_v35 = vpop.eup %3183  ;;  %v3036_v40 = vpop.f32.mrf.mxu0  ;;  %v2532_v3 = vmul.f32 %v2500_v4, %v2404_v49 }
 0x2f6   : > { %v2501_v51 = vadd.f32 1.0, %v3184_v35  ;;  %3197 = verf.f32 %v2447_v44  ;;  %3055 = vmatmul.mubr.msk.bf16.gmra.mxu1 %vm2595_vm3, %v2563_v31  ;;  %v2445_v24 = vmul.f32 0.70710677, %v5164_v14  ;;  %v5174_v63 = vadd.f32 %v3036_v40, %v5095_v57 }
 0x2f7   : > { %v2349_v8 = vpop.f32.mrf.mxu0  ;;  %v2535_v5 = vmul.f32 %v2503_v30, %v2407_v59 }
 0x2f8   : > { %v2533_v41 = vmul.f32 %v2501_v51, %v2405_v7  ;;  %v5177_v46 = vadd.f32 %v5095_v57, %v2349_v8  ;;  %3199 = verf.f32 %v2445_v24  ;;  %v2450_v22 = vmul.f32 0.70710677, %v5174_v63 }
 0x2f9   : > { %v3186_v9 = vpop.eup %3185  ;;  %v3037_v26 = vpop.f32.mrf.mxu0  ;;  %v2565_v10 = vpack.c.bf16 %v2535_v5, %v2534_v15  ;;  %v2415_v24 = vmul.f32 0.5, %v5159_v54  ;;  %v2413_v5 = vmul.f32 0.5, %v5164_v14 }
 0x2fa   : > { %v3188_v55 = vpop.eup %3187  ;;  %v2564_v48 = vpack.c.bf16 %v2533_v41, %v2532_v3  ;;  %v2448_v25 = vmul.f32 0.70710677, %v5177_v46  ;;  %v5184_v36 = vadd.f32 %v3037_v26, %v5095_v57  ;;  %v2504_v29 = vadd.f32 1.0, %v3186_v9 }
 0x2fb   : > { %v2352_v18 = vpop.f32.mrf.mxu0  ;;  %v3190_v52 = vpop.eup %3189  ;;  %v2506_v13 = vadd.f32 1.0, %v3188_v55  ;;  %v2412_v3 = vmul.f32 0.5, %v5156_v1  ;;  %v2414_v55 = vmul.f32 0.5, %v5152_v39  ;;  %v2416_v39 = vmul.f32 0.5, %v5177_v46 }
 0x2fc   : > { %3201 = verf.f32 %v2448_v25  ;;  %v5187_v21 = vadd.f32 %v5095_v57, %v2352_v18  ;;  %3058 = vmatprep.mubr.msk.bf16.mxu1 %vm2595_vm3, %v2564_v48  ;;  %v2507_v62 = vadd.f32 1.0, %v3190_v52  ;;  %v2451_v28 = vmul.f32 0.70710677, %v5184_v36 }
 0x2fd   : > { %v3192_v34 = vpop.eup %3191  ;;  %v3040_v16 = vpop.f32.mrf.mxu0  ;;  %3203 = verf.f32 %v2450_v22  ;;  %v2536_v45 = vmul.f32 %v2504_v29, %v2408_v38  ;;  %v2538_v19 = vmul.f32 %v2506_v13, %v2410_v47 }
 0x2fe   : > { %v2505_v0 = vadd.f32 1.0, %v3192_v34  ;;  %v2449_v60 = vmul.f32 0.70710677, %v5187_v21  ;;  %v5194_v58 = vadd.f32 %v3040_v16, %v5095_v57  ;;  %3059 = vmatmul.mubr.msk.bf16.gmra.mxu1 %vm2595_vm3, %v2565_v10  ;;  %v2539_v23 = vmul.f32 %v2507_v62, %v2411_v6 }
 0x2ff   : > { %3205 = verf.f32 %v2451_v28  ;;  %v2365_v50 = vpop.f32.mrf.mxu0  ;;  %v2419_v16 = vmul.f32 0.5, %v5184_v36 }
 0x300   : > { %v2537_v53 = vmul.f32 %v2505_v0, %v2409_v37  ;;  %3207 = verf.f32 %v2449_v60  ;;  %v2454_v32 = vmul.f32 0.70710677, %v5194_v58  ;;  %v3194_v56 = vpop.eup %3193  ;;  %v5200_v61 = vadd.f32 %v5095_v57, %v2365_v50 }
 0x301   : > { %v3041_v31 = vpop.f32.mrf.mxu0  ;;  %v3196_v4 = vpop.eup %3195  ;;  %v2567_v30 = vpack.c.bf16 %v2539_v23, %v2538_v19  ;;  %v2510_v2 = vadd.f32 1.0, %v3194_v56  ;;  %v2417_v23 = vmul.f32 0.5, %v5187_v21 }
 0x302   : > { %v2566_v33 = vpack.c.bf16 %v2537_v53, %v2536_v45  ;;  %v5203_v17 = vadd.f32 %v3041_v31, %v5095_v57  ;;  %v2452_v44 = vmul.f32 0.70710677, %v5200_v61  ;;  %3209 = verf.f32 %v2454_v32 }
 0x303   : > { %v3198_v20 = vpop.eup %3197  ;;  %v2368_v35 = vpop.f32.mrf.mxu0  ;;  %v2508_v11 = vadd.f32 1.0, %v3196_v4  ;;  %v2542_v6 = vmul.f32 %v2510_v2, %v2414_v55  ;;  %v2418_v45 = vmul.f32 0.5, %v5174_v63 }
 0x304   : > { %v2511_v49 = vadd.f32 1.0, %v3198_v20  ;;  %v2455_v59 = vmul.f32 0.70710677, %v5203_v17  ;;  %v5208_v40 = vadd.f32 %v5095_v57, %v2368_v35  ;;  %3062 = vmatprep.mubr.msk.bf16.mxu1 %vm2595_vm3, %v2566_v33  ;;  %3211 = verf.f32 %v2452_v44 }
 0x305   : > { %v3044_v7 = vpop.f32.mrf.mxu0  ;;  %v3200_v51 = vpop.eup %3199  ;;  %v2540_v22 = vmul.f32 %v2508_v11, %v2412_v3  ;;  %v2420_v44 = vmul.f32 0.5, %v5200_v61  ;;  %v2423_v63 = vmul.f32 0.5, %v5203_v17  ;;  %v2422_v11 = vmul.f32 0.5, %v5194_v58 }
 0x306   : > { %3213 = verf.f32 %v2455_v59  ;;  %v2453_v8 = vmul.f32 0.70710677, %v5208_v40  ;;  %3063 = vmatmul.mubr.msk.bf16.gmra.mxu1 %vm2595_vm3, %v2567_v30  ;;  %v2509_v41 = vadd.f32 1.0, %v3200_v51  ;;  %v5217_v9 = vadd.f32 %v3044_v7, %v5095_v57 }
 0x307   : > { %v2381_v26 = vpop.f32.mrf.mxu0  ;;  %v2543_v15 = vmul.f32 %v2511_v49, %v2415_v24  ;;  %v2421_v49 = vmul.f32 0.5, %v5208_v40 }
 0x308   : > { %3215 = verf.f32 %v2453_v8  ;;  %v5221_v54 = vadd.f32 %v5095_v57, %v2381_v26  ;;  %v2541_v25 = vmul.f32 %v2509_v41, %v2413_v5  ;;  %v2458_v38 = vmul.f32 0.70710677, %v5217_v9 }
 0x309   : > { %v3202_v48 = vpop.eup %3201  ;;  %v3045_v1 = vpop.f32.mrf.mxu0  ;;  %v2569_v13 = vpack.c.bf16 %v2543_v15, %v2542_v6 }
 0x30a   : > { %v2456_v14 = vmul.f32 0.70710677, %v5221_v54  ;;  %v2393_v18 = vadd.f32 %v3045_v1, %v5095_v57  ;;  %v3204_v52 = vpop.eup %3203  ;;  %v2568_v10 = vpack.c.bf16 %v2541_v25, %v2540_v22  ;;  %v2512_v62 = vadd.f32 1.0, %v3202_v48 }
 0x30b   : > { %v2384_v29 = vpop.f32.mrf.mxu0  ;;  %3217 = verf.f32 %v2458_v38  ;;  %v2514_v47 = vadd.f32 1.0, %v3204_v52  ;;  %v2424_v58 = vmul.f32 0.5, %v5221_v54  ;;  %v2426_v25 = vmul.f32 0.5, %v5217_v9 }
 0x30c   : > { %v3206_v34 = vpop.eup %3205  ;;  %v2459_v37 = vmul.f32 0.70710677, %v2393_v18  ;;  %3219 = verf.f32 %v2456_v14  ;;  %v2385_v60 = vadd.f32 %v5095_v57, %v2384_v29  ;;  %3066 = vmatprep.mubr.msk.bf16.mxu1 %vm2595_vm3, %v2568_v10  ;;  %v2544_v53 = vmul.f32 %v2512_v62, %v2416_v39  ;;  %v5687_v29 = vld [vmem:[#allocation22_spill] sm:$0xff] }
 0x30d   : > { %v3208_v28 = vpop.eup %3207  ;;  %v2515_v0 = vadd.f32 1.0, %v3206_v34  ;;  %v2546_v31 = vmul.f32 %v2514_v47, %v2418_v45  ;;  %v2427_v15 = vmul.f32 0.5, %v2393_v18  ;;  %v5248_v18 = vld [vmem:[%s5396_s8] ss:$0 sm:$0xff] }
 0x30e   : > { %v2513_v50 = vadd.f32 1.0, %v3208_v28  ;;  %3221 = verf.f32 %v2459_v37  ;;  %3067 = vmatmul.mubr.msk.bf16.gmra.mxu1 %vm2595_vm3, %v2569_v13  ;;  %v2457_v46 = vmul.f32 0.70710677, %v2385_v60  ;;  %v2425_v48 = vmul.f32 0.5, %v2385_v60  ;;  %v5688_v37 = vld [vmem:[#allocation6_spill] sm:$0xff]  ;;  %v5689_v60 = vld [vmem:[#allocation29_spill] sm:$0xff] }
 0x30f   : > { %v2547_v32 = vmul.f32 %v2515_v0, %v2419_v16  ;;  %v3210_v36 = vpop.eup %3209 }
 0x310   : > { %v2545_v56 = vmul.f32 %v2513_v50, %v2417_v23  ;;  %3223 = verf.f32 %v2457_v46  ;;  %v2518_v35 = vadd.f32 1.0, %v3210_v36  ;;  %v5690_v46 = vld [vmem:[#allocation8_spill] sm:$0xff] }
 0x311   : > { %v3212_v19 = vpop.eup %3211  ;;  %v2571_v33 = vpack.c.bf16 %v2547_v32, %v2546_v31 }
 0x312   : > { %v2570_v57 = vpack.c.bf16 %v2545_v56, %v2544_v53  ;;  %v2516_v20 = vadd.f32 1.0, %v3212_v19  ;;  %v2550_v3 = vmul.f32 %v2518_v35, %v2422_v11  ;;  %v5691_v56 = vld [vmem:[#allocation12_spill] sm:$0xff] }
 0x313   : > { %v3214_v4 = vpop.eup %3213 }
 0x314   : > { %v2519_v30 = vadd.f32 1.0, %v3214_v4  ;;  %3070 = vmatprep.mubr.msk.bf16.mxu1 %vm2595_vm3, %v2570_v57  ;;  %v2548_v7 = vmul.f32 %v2516_v20, %v2420_v44  ;;  %v5692_v57 = vld [vmem:[#allocation10_spill] sm:$0xff] }
 0x315   : > { %v3216_v21 = vpop.eup %3215 }
 0x316   : > { %v2517_v59 = vadd.f32 1.0, %v3216_v21  ;;  %3071 = vmatmul.mubr.msk.bf16.gmra.mxu1 %vm2595_vm3, %v2571_v33  ;;  %v2551_v51 = vmul.f32 %v2519_v30, %v2423_v63  ;;  %v5693_v30 = vld [vmem:[#allocation28_spill] sm:$0xff]  ;;  %v5694_v63 = vld [vmem:[#allocation11_spill] sm:$0xff] }
 0x318   : > { %v2549_v2 = vmul.f32 %v2517_v59, %v2421_v49  ;;  %v3218_v24 = vpop.eup %3217  ;;  %v2573_v26 = vpack.c.bf16 %v2551_v51, %v2550_v3 }
 0x319   : > { %v3220_v8 = vpop.eup %3219  ;;  %v2522_v40 = vadd.f32 1.0, %v3218_v24 }
 0x31a   : > { %v2572_v5 = vpack.c.bf16 %v2549_v2, %v2548_v7  ;;  %v2520_v17 = vadd.f32 1.0, %v3220_v8  ;;  %v5695_v7 = vld [vmem:[#allocation50_spill] sm:$0xff]  ;;  %v5696_v8 = vld [vmem:[#allocation39_spill] sm:$0xff] }
 0x31b   : > { %v3222_v41 = vpop.eup %3221  ;;  %v2554_v14 = vmul.f32 %v2522_v40, %v2426_v25  ;;  %v5698_v40 = vld [vmem:[#allocation41_spill] sm:$0xff] }
 0x31c   : > { %v2523_v61 = vadd.f32 1.0, %v3222_v41  ;;  %3074 = vmatprep.mubr.msk.bf16.mxu1 %vm2595_vm3, %v2572_v5  ;;  %v2552_v1 = vmul.f32 %v2520_v17, %v2424_v58 }
 0x31d   : > { %v3224_v55 = vpop.eup %3223 }
 0x31e   : > { %3075 = vmatmul.mubr.msk.bf16.gmra.mxu1 %vm2595_vm3, %v2573_v26  ;;  %v2521_v22 = vadd.f32 1.0, %v3224_v55  ;;  %v2555_v38 = vmul.f32 %v2523_v61, %v2427_v15  ;;  %v5697_v26 = vld [vmem:[#allocation51_spill] sm:$0xff] }
 0x320   : > { %v2553_v6 = vmul.f32 %v2521_v22, %v2425_v48  ;;  %v2575_v10 = vpack.c.bf16 %v2555_v38, %v2554_v14  ;;  %v5699_v22 = vld [vmem:[#allocation20_spill] sm:$0xff] }
 0x322   : > { %v2574_v52 = vpack.c.bf16 %v2553_v6, %v2552_v1  ;;  %v5700_v6 = vld [vmem:[#allocation55_spill] sm:$0xff] }
 0x324   : > { %3078 = vmatprep.mubr.msk.bf16.mxu1 %vm2595_vm3, %v2574_v52 }
 0x326   : > { %3079 = vmatmul.mubr.msk.bf16.gmra.mxu1 %vm2595_vm3, %v2575_v10 }
 0x3ae   : > { %v3052_v54 = vpop.f32.mrf.mxu1 }
 0x3af   : > { %v2687_v39 = vadd.f32 %v3052_v54, %v5248_v18  ;;  %v5701_v54 = vld [vmem:[#allocation16_spill] sm:$0xff] }
 0x3b0   : > { %v2678_v9 = vpop.f32.mrf.mxu1 }
 0x3b1   : > { %v2807_v34 = vadd.f32 %v2687_v39, %v5687_v29  ;;  %v2679_v13 = vadd.f32 %v5248_v18, %v2678_v9 }
 0x3b2   : > { %v3053_v62 = vpop.f32.mrf.mxu1 }
 0x3b3   : > { %2839 = vst.msk [vmem:[%s5256_s25 + $0x10] sm:$0xff] %vm1914_vm2, %v2807_v34  ;;  %v2805_v28 = vadd.f32 %v2679_v13, %v5688_v37  ;;  %v2690_v16 = vadd.f32 %v3053_v62, %v5248_v18  ;;  %v5702_v34 = vld [vmem:[#allocation56_spill] sm:$0xff] }
 0x3b4   : > { %v2681_v0 = vpop.f32.mrf.mxu1 }
 0x3b5   : > { %2837 = vst.msk [vmem:[%s5256_s25] sm:$0xff] %vm1914_vm2, %v2805_v28  ;;  %v2808_v47 = vadd.f32 %v2690_v16, %v5689_v60  ;;  %v2682_v23 = vadd.f32 %v5248_v18, %v2681_v0  ;;  %v5703_v28 = vld [vmem:[#allocation27_spill] sm:$0xff] }
 0x3b6   : > { %v3056_v50 = vpop.f32.mrf.mxu1 }
 0x3b7   : > { %2840 = vst.msk [vmem:[%s5256_s25 + $0x18] sm:$0xff] %vm1914_vm2, %v2808_v47  ;;  %v2806_v45 = vadd.f32 %v2682_v23, %v5690_v46  ;;  %v2703_v53 = vadd.f32 %v3056_v50, %v5248_v18  ;;  %v5704_v47 = vld [vmem:[#allocation17_spill] sm:$0xff] }
 0x3b8   : > { %v2694_v32 = vpop.f32.mrf.mxu1 }
 0x3b9   : > { %2838 = vst.msk [vmem:[%s5256_s25 + $0x8] sm:$0xff] %vm1914_vm2, %v2806_v45  ;;  %v2811_v36 = vadd.f32 %v2703_v53, %v5691_v56  ;;  %v2695_v19 = vadd.f32 %v5248_v18, %v2694_v32  ;;  %v5705_v45 = vld [vmem:[#allocation34_spill] sm:$0xff] }
 0x3ba   : > { %v3057_v31 = vpop.f32.mrf.mxu1 }
 0x3bb   : > { %2843 = vst.msk [vmem:[%s5256_s25 + $0x30] sm:$0xff] %vm1914_vm2, %v2811_v36  ;;  %v2809_v4 = vadd.f32 %v2695_v19, %v5692_v57  ;;  %v2706_v33 = vadd.f32 %v3057_v31, %v5248_v18  ;;  %v5706_v36 = vld [vmem:[#allocation33_spill] sm:$0xff] }
 0x3bc   : > { %v2697_v20 = vpop.f32.mrf.mxu1 }
 0x3bd   : > { %2841 = vst.msk [vmem:[%s5256_s25 + $0x20] sm:$0xff] %vm1914_vm2, %v2809_v4  ;;  %v2812_v21 = vadd.f32 %v2706_v33, %v5693_v30  ;;  %v2698_v44 = vadd.f32 %v5248_v18, %v2697_v20  ;;  %v5707_v4 = vld [vmem:[#allocation24_spill] sm:$0xff] }
 0x3be   : > { %v3060_v35 = vpop.f32.mrf.mxu1 }
 0x3bf   : > { %2844 = vst.msk [vmem:[%s5256_s25 + $0x38] sm:$0xff] %vm1914_vm2, %v2812_v21  ;;  %v2810_v49 = vadd.f32 %v2698_v44, %v5694_v63  ;;  %v2719_v59 = vadd.f32 %v3060_v35, %v5248_v18  ;;  %v5708_v21 = vld [vmem:[#allocation46_spill] sm:$0xff] }
 0x3c0   : > { %v2710_v11 = vpop.f32.mrf.mxu1 }
 0x3c1   : > { %2842 = vst.msk [vmem:[%s5256_s25 + $0x28] sm:$0xff] %vm1914_vm2, %v2810_v49  ;;  %v2815_v51 = vadd.f32 %v2719_v59, %v5695_v7  ;;  %v2711_v2 = vadd.f32 %v5248_v18, %v2710_v11  ;;  %v5709_v49 = vld [vmem:[#allocation65_spill] sm:$0xff] }
 0x3c2   : > { %v3061_v24 = vpop.f32.mrf.mxu1 }
 0x3c3   : > { %2847 = vst.msk [vmem:[%s5256_s25 + $0x50] sm:$0xff] %vm1914_vm2, %v2815_v51  ;;  %v2813_v3 = vadd.f32 %v2711_v2, %v5696_v8  ;;  %v2722_v5 = vadd.f32 %v3061_v24, %v5248_v18  ;;  %v5710_v51 = vld [vmem:[#allocation35_spill] sm:$0xff] }
 0x3c4   : > { %v2713_v41 = vpop.f32.mrf.mxu1 }
 0x3c5   : > { %2845 = vst.msk [vmem:[%s5256_s25 + $0x40] sm:$0xff] %vm1914_vm2, %v2813_v3  ;;  %v2816_v61 = vadd.f32 %v2722_v5, %v5697_v26  ;;  %v2714_v17 = vadd.f32 %v5248_v18, %v2713_v41  ;;  %v5711_v3 = vld [vmem:[#allocation31_spill] sm:$0xff] }
 0x3c6   : > { %v3064_v55 = vpop.f32.mrf.mxu1 }
 0x3c7   : > { %2848 = vst.msk [vmem:[%s5256_s25 + $0x58] sm:$0xff] %vm1914_vm2, %v2816_v61  ;;  %v2814_v15 = vadd.f32 %v2714_v17, %v5698_v40  ;;  %v2735_v58 = vadd.f32 %v3064_v55, %v5248_v18  ;;  %v5712_v61 = vld [vmem:[#allocation67_spill] sm:$0xff] }
 0x3c8   : > { %v2726_v48 = vpop.f32.mrf.mxu1 }
 0x3c9   : > { %2846 = vst.msk [vmem:[%s5256_s25 + $0x48] sm:$0xff] %vm1914_vm2, %v2814_v15  ;;  %v2819_v25 = vadd.f32 %v2735_v58, %v5699_v22  ;;  %v2727_v38 = vadd.f32 %v5248_v18, %v2726_v48  ;;  %v5713_v15 = vld [vmem:[#allocation13_spill] sm:$0xff] }
 0x3ca   : > { %v3065_v1 = vpop.f32.mrf.mxu1 }
 0x3cb   : > { %2851 = vst.msk [vmem:[%s5256_s25 + $0x70] sm:$0xff] %vm1914_vm2, %v2819_v25  ;;  %v2817_v14 = vadd.f32 %v2727_v38, %v5700_v6  ;;  %v2738_v52 = vadd.f32 %v3065_v1, %v5248_v18  ;;  %v5714_v25 = vld [vmem:[#allocation71_spill] sm:$0xff] }
 0x3cc   : > { %v2729_v10 = vpop.f32.mrf.mxu1 }
 0x3cd   : > { %2849 = vst.msk [vmem:[%s5256_s25 + $0x60] sm:$0xff] %vm1914_vm2, %v2817_v14  ;;  %v2820_v39 = vadd.f32 %v2738_v52, %v5701_v54  ;;  %v2730_v9 = vadd.f32 %v5248_v18, %v2729_v10 }
 0x3ce   : > { %v3068_v29 = vpop.f32.mrf.mxu1 }
 0x3cf   : > { %2852 = vst.msk [vmem:[%s5256_s25 + $0x78] sm:$0xff] %vm1914_vm2, %v2820_v39  ;;  %v2818_v13 = vadd.f32 %v2730_v9, %v5702_v34  ;;  %v2751_v62 = vadd.f32 %v3068_v29, %v5248_v18 }
 0x3d0   : > { %v2742_v37 = vpop.f32.mrf.mxu1 }
 0x3d1   : > { %2850 = vst.msk [vmem:[%s5256_s25 + $0x68] sm:$0xff] %vm1914_vm2, %v2818_v13  ;;  %v2823_v16 = vadd.f32 %v2751_v62, %v5703_v28  ;;  %v2743_v0 = vadd.f32 %v5248_v18, %v2742_v37 }
 0x3d2   : > { %v3069_v60 = vpop.f32.mrf.mxu1 }
 0x3d3   : > { %2855 = vst.msk [vmem:[%s5256_s25 + $0x90] sm:$0xff] %vm1914_vm2, %v2823_v16  ;;  %v2821_v23 = vadd.f32 %v2743_v0, %v5704_v47  ;;  %v2754_v50 = vadd.f32 %v3069_v60, %v5248_v18 }
 0x3d4   : > { %v2745_v46 = vpop.f32.mrf.mxu1 }
 0x3d5   : > { %2853 = vst.msk [vmem:[%s5256_s25 + $0x80] sm:$0xff] %vm1914_vm2, %v2821_v23  ;;  %v2824_v53 = vadd.f32 %v2754_v50, %v5705_v45  ;;  %v2746_v32 = vadd.f32 %v5248_v18, %v2745_v46 }
 0x3d6   : > { %v3072_v56 = vpop.f32.mrf.mxu1 }
 0x3d7   : > { %2856 = vst.msk [vmem:[%s5256_s25 + $0x98] sm:$0xff] %vm1914_vm2, %v2824_v53  ;;  %v2822_v19 = vadd.f32 %v2746_v32, %v5706_v36  ;;  %v2767_v31 = vadd.f32 %v3072_v56, %v5248_v18 }
 0x3d8   : > { %v2758_v57 = vpop.f32.mrf.mxu1 }
 0x3d9   : > { %2854 = vst.msk [vmem:[%s5256_s25 + $0x88] sm:$0xff] %vm1914_vm2, %v2822_v19  ;;  %v2827_v33 = vadd.f32 %v2767_v31, %v5707_v4  ;;  %v2759_v20 = vadd.f32 %v5248_v18, %v2758_v57 }
 0x3da   : > { %v3073_v30 = vpop.f32.mrf.mxu1 }
 0x3db   : > { %2859 = vst.msk [vmem:[%s5256_s25 + $0xb0] sm:$0xff] %vm1914_vm2, %v2827_v33  ;;  %v2825_v44 = vadd.f32 %v2759_v20, %v5708_v21  ;;  %v2770_v35 = vadd.f32 %v3073_v30, %v5248_v18 }
 0x3dc   : > { %v2761_v63 = vpop.f32.mrf.mxu1 }
 0x3dd   : > { %2857 = vst.msk [vmem:[%s5256_s25 + $0xa0] sm:$0xff] %vm1914_vm2, %v2825_v44  ;;  %v2828_v59 = vadd.f32 %v2770_v35, %v5709_v49  ;;  %v2762_v11 = vadd.f32 %v5248_v18, %v2761_v63 }
 0x3de   : > { %v3076_v7 = vpop.f32.mrf.mxu1 }
 0x3df   : > { %2860 = vst.msk [vmem:[%s5256_s25 + $0xb8] sm:$0xff] %vm1914_vm2, %v2828_v59  ;;  %v2826_v2 = vadd.f32 %v2762_v11, %v5710_v51  ;;  %v2783_v24 = vadd.f32 %v3076_v7, %v5248_v18 }
 0x3e0   : > { %v2774_v8 = vpop.f32.mrf.mxu1 }
 0x3e1   : > { %2858 = vst.msk [vmem:[%s5256_s25 + $0xa8] sm:$0xff] %vm1914_vm2, %v2826_v2  ;;  %v2831_v5 = vadd.f32 %v2783_v24, %v5711_v3  ;;  %v2775_v41 = vadd.f32 %v5248_v18, %v2774_v8 }
 0x3e2   : > { %v3077_v26 = vpop.f32.mrf.mxu1 }
 0x3e3   : > { %2863 = vst.msk [vmem:[%s5256_s25 + $0xd0] sm:$0xff] %vm1914_vm2, %v2831_v5  ;;  %v2829_v17 = vadd.f32 %v2775_v41, %v5712_v61  ;;  %v2786_v55 = vadd.f32 %v3077_v26, %v5248_v18 }
 0x3e4   : > { %v2777_v40 = vpop.f32.mrf.mxu1 }
 0x3e5   : > { %2861 = vst.msk [vmem:[%s5256_s25 + $0xc0] sm:$0xff] %vm1914_vm2, %v2829_v17  ;;  %v2832_v58 = vadd.f32 %v2786_v55, %v5713_v15  ;;  %v2778_v48 = vadd.f32 %v5248_v18, %v2777_v40 }
 0x3e6   : > { %v3080_v22 = vpop.f32.mrf.mxu1 }
 0x3e7   : > { %2864 = vst.msk [vmem:[%s5256_s25 + $0xd8] sm:$0xff] %vm1914_vm2, %v2832_v58  ;;  %v2830_v38 = vadd.f32 %v2778_v48, %v5714_v25  ;;  %v2799_v1 = vadd.f32 %v3080_v22, %v5248_v18 }
 0x3e8   : > { %v2790_v6 = vpop.f32.mrf.mxu1 }
 0x3e9   : > { %2862 = vst.msk [vmem:[%s5256_s25 + $0xc8] sm:$0xff] %vm1914_vm2, %v2830_v38  ;;  %v2835_v14 = vadd.f32 %v2799_v1, %v4812_v42  ;;  %v2791_v52 = vadd.f32 %v5248_v18, %v2790_v6 }
 0x3ea   : > { %v3081_v10 = vpop.f32.mrf.mxu1 }
 0x3eb   : > { %2867 = vst.msk [vmem:[%s5256_s25 + $0xf0] sm:$0xff] %vm1914_vm2, %v2835_v14  ;;  %v2833_v54 = vadd.f32 %v2791_v52, %v4716_v43  ;;  %v2802_v39 = vadd.f32 %v3081_v10, %v5248_v18 }
 0x3ec   : > { %v2793_v9 = vpop.f32.mrf.mxu1 }
 0x3ed   : > { %2865 = vst.msk [vmem:[%s5256_s25 + $0xe0] sm:$0xff] %vm1914_vm2, %v2833_v54  ;;  %v2836_v29 = vadd.f32 %v2802_v39, %v4800_v27  ;;  %v2794_v34 = vadd.f32 %v5248_v18, %v2793_v9 }
 0x3ef   : > { %2868 = vst.msk [vmem:[%s5256_s25 + $0xf8] sm:$0xff] %vm1914_vm2, %v2836_v29  ;;  %v2834_v42 = vadd.f32 %v2794_v34, %v4760_v12 }
 0x3f1   : > { %2866 = vst.msk [vmem:[%s5256_s25 + $0xe8] sm:$0xff] %vm1914_vm2, %v2834_v42 }
 0x3f2 PF: > { %s19_s30 = sadd.s32 1, %s3235_s30  }
 0x3f3   : > { %p16_p4 = scmp.ge.s32.totalorder %s19_s30, 4  }
 0x3f5   :  { %18 = sbr.rel (!%p16_p4) target bundleno = 1 (0x1), region = 86 }

// kernel: mednext_encoder_forward.8
= control target key start
LH: loop header
LB: loop body
LE: loop exit
PB: predicated region body
PF: predicated region fallthrough
CT: control target
= control target key end

     0   :  { %s1860_s18 = smov 0   ;;  %s2193_s0 = inlined_call_operand.vmem [shape: f32[2,4,4,64], index: 0, kind: input, shape index: {}]   ;;  %s2194_s1 = inlined_call_operand.vmem [shape: f32[9,64], index: 1, kind: input, shape index: {}]   ;;  %s2195_s2 = inlined_call_operand.vmem [shape: f32[1,64], index: 2, kind: input, shape index: {}]   ;;  %s2196_s3 = inlined_call_operand.vmem [shape: bf16[64,128], index: 3, kind: input, shape index: {}]   ;;  %s2197_s4 = inlined_call_operand.vmem [shape: f32[1,128], index: 4, kind: input, shape index: {}]   ;;  %s2198_s5 = inlined_call_operand.vmem [shape: bf16[128,128], index: 5, kind: input, shape index: {}]   ;;  %s2199_s6 = inlined_call_operand.vmem [shape: f32[1,128], index: 6, kind: input, shape index: {}]   ;;  %s2200_s7 = inlined_call_operand.vmem [shape: bf16[64,128], index: 7, kind: input, shape index: {}]   ;;  %s2201_s8 = inlined_call_operand.vmem [shape: f32[1,128], index: 8, kind: input, shape index: {}]   ;;  %s2202_s9 = inlined_call_operand.vmem [shape: f32[9,128], index: 9, kind: input, shape index: {}]   ;;  %s2203_s10 = inlined_call_operand.vmem [shape: f32[1,128], index: 10, kind: input, shape index: {}]   ;;  %s2204_s11 = inlined_call_operand.vmem [shape: bf16[128,256], index: 11, kind: input, shape index: {}]   ;;  %s2205_s12 = inlined_call_operand.vmem [shape: f32[1,256], index: 12, kind: input, shape index: {}]   ;;  %s2206_s13 = inlined_call_operand.vmem [shape: bf16[256,128], index: 13, kind: input, shape index: {}]   ;;  %s2207_s14 = inlined_call_operand.vmem [shape: f32[1,128], index: 14, kind: input, shape index: {}]   ;;  %s2208_s15 = inlined_call_operand.vmem [shape: f32[2,4,128], index: 15, kind: output, shape index: {}]  }
   0x1 LB: > { %s1529_s19 = sadd.s32 4294967295, %s1774_s18   ;;  %p1533_p0 = scmp.ge.s32.totalorder %s1774_s18, 1  ;;  %s1774_s18 = sphi %s1860_s18, %s25_s18  }
   0x2   : > { %p437_p1 = scmp.lt.s32.totalorder %s1774_s18, 3 }
   0x4   : > { %p438_p2 = pnand %p1533_p0, %p437_p1 }
   0x5   : > { %p484_p3 = scmp.lt.s32.totalorder (!%p438_p2), %s1529_s19, 1 }
   0x6   : > { %441 = sbr.rel (%p438_p2) target bundleno = 996 (0x3e4), region = 80 }
   0xb   : > { %v1702_v0 = vld [vmem:[%s2196_s3 + $0x18] sm:$0xff]   ;;  %v1776_v1 = vmov 0.0   ;;  %v521_v2 = vlaneseq  ;;  %v1703_v3 = vld [vmem:[%s2196_s3 + $0x10] sm:$0xff]   ;;  %vm1777_vm0 = vmmov 0   ;;  %s2210_s19 = smov (!%p484_p3, %s1529_s19), 1  ;;  %v1704_v5 = vld [vmem:[%s2196_s3 + $0x8] sm:$0xff]  }
   0xc   : > { %1646 = vmatprep.subr.bf16.mxu0 %v1776_v1  ;;  %1658 = vmatprep.subr.bf16.mxu1 %v1776_v1  ;;  %v514_v4 = vrot.slane %v1776_v1, 7  ;;  %vm518_vm1 = vcmask 1040384   ;;  %s1604_s26 = sshll.u32 %s2210_s19, 4  ;;  %v1893_v7 = vld [vmem:[%s2194_s1] sm:$0xff]  ;;  %v1706_v8 = vld [vmem:[%s2198_s5 + $0x38] sm:$0xff]   ;;  %v1707_v31 = vld [vmem:[%s2198_s5 + $0x30] sm:$0xff]  }
   0xd   : > { %1647 = vmatpush3.bf16.msra.mxu0 %v1702_v0  ;;  %1654 = vmatprep.mubr.msk.bf16.mxu0 %vm1777_vm0, %v1776_v1  ;;  %v1887_v6 = vshrl.u32 %v521_v2, 7  ;;  %s1910_s20 = scalar_lea.vmem %s2193_s0, %s1604_s26  ;;  %v1705_v14 = vld [vmem:[%s2196_s3] sm:$0xff]   ;;  %v1544_v55 = vld [vmem:[%s2194_s1 + $0x8] ss:$0 sm:$0xff]  ;;  %vm613_vm2 = vcmask 517120   ;;  %vm696_vm3 = vcmask 523264  }
   0xe   : > { %1648 = vmatprep.subr.bf16.mxu0 %v1776_v1  ;;  %1674 = vmatprep.mubr.msk.bf16.mxu1 %vm1777_vm0, %v1776_v1  ;;  %v1913_v13 = vsel %vm518_vm1, 0.0, %v514_v4  ;;  %v1538_v15 = vld [vmem:[%s1910_s20 + $0x1] ss:$2 sm:$0x3]  ;;  %vm1091_vm4 = vcmask 1041408   ;;  %s1536_s25 = sshll.u32 %s2210_s19, 2 }
   0xf   : > { %v1900_v9 = vsub.s32 0, %v1887_v6  ;;  %v1903_v10 = vsub.s32 1, %v1887_v6  ;;  %v539_v11 = vsub.s32 2, %v1887_v6  ;;  %v555_v12 = vsub.s32 3, %v1887_v6  ;;  %1659 = vmatpush3.bf16.msra.mxu1 %v1706_v8  ;;  %s492_s28 = scalar_lea.vmem %s2208_s15, %s1536_s25 }
  0x10   : > { %1660 = vmatprep.subr.bf16.mxu1 %v1776_v1  ;;  %v1539_v19 = vld [vmem:[%s1910_s20 + $0x9] ss:$2 sm:$0x3]  ;;  %v1540_v20 = vld [vmem:[%s1910_s20 + $0x4] ss:$2 sm:$0x3] }
  0x11   : > { %1649 = vmatpush3.bf16.msra.mxu0 %v1703_v3  ;;  %v524_v16 = vrot.slane %v1893_v7, %v1900_v9  ;;  %v532_v17 = vrot.slane %v1893_v7, %v1903_v10  ;;  %v540_v18 = vrot.slane %v1893_v7, %v539_v11  ;;  %v1542_v21 = vld [vmem:[%s1910_s20 + $0x5] ss:$2 sm:$0x3]  ;;  %v1543_v22 = vld [vmem:[%s1910_s20 + $0xd] ss:$2 sm:$0x3]  ;;  %v556_v25 = vrot.slane %v1893_v7, %v555_v12 }
  0x12   : > { %1650 = vmatprep.subr.bf16.mxu0 %v1776_v1  ;;  %v1937_v26 = vld [vmem:[%s1910_s20] ss:$2 sm:$0x3]  ;;  %v515_v27 = vrot.slane %v1542_v21, 7  ;;  %v547_v32 = vrot.slane %v1538_v15, 7  ;;  %v548_v33 = vrot.slane %v1539_v19, 7 }
  0x13   : > { %v525_v23 = vmul.f32 %v524_v16, %v1913_v13  ;;  %v534_v24 = vmul.f32 %v1540_v20, %v532_v17  ;;  %v533_v28 = vmul.f32 0.0, %v532_v17  ;;  %v541_v29 = vmul.f32 0.0, %v540_v18  ;;  %v1945_v36 = vld [vmem:[%s1910_s20 + $0x8] ss:$2 sm:$0x3]  ;;  %1661 = vmatpush3.bf16.msra.mxu1 %v1707_v31 }
  0x14   : > { %v542_v30 = vmul.f32 %v1542_v21, %v540_v18  ;;  %v563_v34 = vsub.s32 4, %v1887_v6  ;;  %v571_v35 = vsub.s32 5, %v1887_v6  ;;  %v520_v37 = vsel %vm518_vm1, 0.0, %v515_v27  ;;  %1662 = vmatprep.subr.bf16.mxu1 %v1776_v1  ;;  %v1541_v59 = vld [vmem:[%s1910_s20 + $0xc] ss:$2 sm:$0x3] }
  0x15   : > { %1651 = vmatpush3.bf16.msra.mxu0 %v1704_v5  ;;  %v535_v38 = vadd.f32 %v533_v28, %v525_v23  ;;  %v578_v39 = vrot.slane %v1543_v22, 7  ;;  %v583_v40 = vsub.s32 6, %v1887_v6  ;;  %v526_v41 = vmul.f32 %v524_v16, %v520_v37 }
  0x16   : > { %1652 = vmatprep.subr.bf16.mxu0 %v1776_v1  ;;  %v551_v42 = vsel %vm518_vm1, 0.0, %v547_v32  ;;  %v552_v43 = vsel %vm518_vm1, 0.0, %v548_v33  ;;  %v564_v44 = vrot.slane %v1893_v7, %v563_v34  ;;  %v572_v47 = vrot.slane %v1893_v7, %v571_v35 }
  0x17   : > { %v543_v45 = vadd.f32 %v541_v29, %v535_v38  ;;  %v557_v46 = vmul.f32 %v556_v25, %v551_v42  ;;  %v536_v48 = vadd.f32 %v534_v24, %v526_v41  ;;  %v558_v49 = vmul.f32 %v556_v25, %v552_v43 }
  0x18   : > { %v565_v50 = vmul.f32 %v564_v44, %v1937_v26  ;;  %v580_v51 = vsel %vm518_vm1, 0.0, %v578_v39  ;;  %v573_v53 = vmul.f32 %v1538_v15, %v572_v47  ;;  %v584_v54 = vrot.slane %v1893_v7, %v583_v40  ;;  %v1545_v15 = vld [vmem:[%s2195_s2] ss:$0 sm:$0xff] }
  0x19   : > { %1653 = vmatpush3.bf16.msra.mxu0 %v1705_v14  ;;  %v559_v52 = vadd.f32 %v557_v46, %v543_v45  ;;  %v544_v56 = vadd.f32 %v542_v30, %v536_v48  ;;  %v566_v57 = vmul.f32 %v1945_v36, %v564_v44  ;;  %v591_v58 = vsub.s32 7, %v1887_v6 }
  0x1a   : > { %1678 = vmatprep.subr.bf16.mxu0 %v1776_v1  ;;  %v585_v61 = vmul.f32 %v584_v54, %v520_v37  ;;  %v574_v63 = vmul.f32 %v1539_v19, %v572_v47  ;;  %v586_v4 = vmul.f32 %v584_v54, %v580_v51  ;;  %v601_v14 = vmul.f32 %v1544_v55, %v1542_v21 }
  0x1b   : > { %v567_v60 = vadd.f32 %v565_v50, %v559_v52  ;;  %v560_v62 = vadd.f32 %v558_v49, %v544_v56  ;;  %v592_v0 = vrot.slane %v1893_v7, %v591_v58  ;;  %v602_v19 = vmul.f32 %v1544_v55, %v1543_v22 }
  0x1c   : > { %v1778_v56 = vmov 1983009808  }
  0x1d   : > { %v575_v2 = vadd.f32 %v573_v53, %v567_v60  ;;  %v568_v3 = vadd.f32 %v566_v57, %v560_v62  ;;  %v593_v5 = vmul.f32 %v1540_v20, %v592_v0  ;;  %v594_v17 = vmul.f32 %v1541_v59, %v592_v0 }
  0x1e   : > { %v657_v57 = vunpack.c.l.s4 %v1778_v56  ;;  %v1733_v56 = vld [vmem:[%s2204_s11 + $0x20] ss:$8 sps:$4 sm:$0xff]  }
  0x1f   : > { %v587_v8 = vadd.f32 %v585_v61, %v575_v2  ;;  %v576_v16 = vadd.f32 %v574_v63, %v568_v3 }
  0x20   : > { %v658_v61 = vunpack.c.0.s8 %v657_v57  ;;  %v1738_v57 = vld [vmem:[%s2204_s11 + $0x14] ss:$8 sps:$4 sm:$0xff]  }
  0x21   : > { %v595_v18 = vadd.f32 %v593_v5, %v587_v8  ;;  %v588_v23 = vadd.f32 %v586_v4, %v576_v16  ;;  %v1708_v8 = vld [vmem:[%s2198_s5 + $0x28] sm:$0xff]   ;;  %v1711_v16 = vld [vmem:[%s2200_s7 + $0x10] sm:$0xff]  }
  0x22   : > { %v1977_v2 = vsub.s32 %v658_v61, %v1887_v6  ;;  %1663 = vmatpush3.bf16.msra.mxu1 %v1708_v8  ;;  %v1739_v61 = vld [vmem:[%s2204_s11] ss:$8 sps:$4 sm:$0xff]  }
  0x23   : > { %v603_v24 = vadd.f32 %v601_v14, %v595_v18  ;;  %v596_v25 = vadd.f32 %v594_v17, %v588_v23  ;;  %v1709_v14 = vld [vmem:[%s2200_s7 + $0x18] sm:$0xff]   ;;  %1664 = vmatprep.subr.bf16.mxu1 %v1776_v1  ;;  %v867_v18 = vcombine.low %v1937_v26, %v1945_v36  ;;  %v1713_v23 = vld [vmem:[%s2200_s7 + $0x8] sm:$0xff]   ;;  %v1715_v26 = vld [vmem:[%s2200_s7] sm:$0xff]  }
  0x24   : > { %v1712_v17 = vld [vmem:[%s2198_s5 + $0x18] sm:$0xff]   ;;  %v1716_v36 = vld [vmem:[%s2198_s5 + $0x8] sm:$0xff]   ;;  %v1552_v8 = vld [vmem:[%s2199_s6] ss:$0 sm:$0xff] }
  0x25   : > { %v611_v27 = vadd.f32 %v1545_v15, %v603_v24  ;;  %v604_v7 = vadd.f32 %v602_v19, %v596_v25  ;;  %v1714_v19 = vld [vmem:[%s2198_s5 + $0x10] sm:$0xff]   ;;  %v874_v24 = vrot.slane %v867_v18, %v1977_v2 }
  0x27   : > { %v614_v28 = vsel %vm613_vm2, %v611_v27, 0.0  ;;  %v623_v29 = vmul.f32 %v611_v27, %v611_v27  ;;  %v612_v30 = vadd.f32 %v1545_v15, %v604_v7  ;;  %v1710_v15 = vld [vmem:[%s2198_s5 + $0x20] sm:$0xff]   ;;  %v876_v25 = vpack.c.bf16 %v874_v24, %v874_v24 }
  0x28   : > { %1665 = vmatpush3.bf16.msra.mxu1 %v1710_v15  ;;  %v1546_v7 = vld [vmem:[%s2197_s4] ss:$0 sm:$0xff] }
  0x29   : > { %v615_v20 = vsel %vm613_vm2, %v612_v30, 0.0  ;;  %v624_v31 = vmul.f32 %v612_v30, %v612_v30  ;;  %v625_v21 = vsel %vm613_vm2, %v623_v29, 0.0  ;;  %1666 = vmatprep.subr.bf16.mxu1 %v1776_v1 }
  0x2a   : > { %v616_v32 = vadd.f32 %v615_v20, %v614_v28 }
  0x2b   : > { %v626_v33 = vsel %vm613_vm2, %v624_v31, 0.0 }
  0x2c   : > { %v617_v37 = vrot.slane %v616_v32, 4  ;;  %v627_v38 = vadd.f32 %v626_v33, %v625_v21  ;;  %1667 = vmatpush3.bf16.msra.mxu1 %v1712_v17 }
  0x2d   : > { %1668 = vmatprep.subr.bf16.mxu1 %v1776_v1 }
  0x2e   : > { %v618_v39 = vadd.f32 %v617_v37, %v616_v32  ;;  %v628_v41 = vrot.slane %v627_v38, 4 }
  0x30   : > { %v619_v42 = vrot.slane %v618_v39, 2  ;;  %v629_v43 = vadd.f32 %v628_v41, %v627_v38  ;;  %1669 = vmatpush3.bf16.msra.mxu1 %v1714_v19 }
  0x31   : > { %1670 = vmatprep.subr.bf16.mxu1 %v1776_v1 }
  0x32   : > { %v620_v44 = vadd.f32 %v619_v42, %v618_v39  ;;  %v630_v22 = vrot.slane %v629_v43, 2 }
  0x34   : > { %v621_v45 = vrot.slane %v620_v44, 1  ;;  %v631_v46 = vadd.f32 %v630_v22, %v629_v43  ;;  %1671 = vmatpush3.bf16.msra.mxu1 %v1716_v36  ;;  %v1718_v22 = vld [vmem:[%s2204_s11 + $0x70] ss:$8 sps:$4 sm:$0xff]  }
  0x35   : > { %1672 = vmatprep.subr.bf16.mxu1 %v1776_v1 }
  0x36   : > { %v622_v47 = vadd.f32 %v621_v45, %v620_v44  ;;  %v632_v48 = vrot.slane %v631_v46, 1  ;;  %v1720_v45 = vld [vmem:[%s2204_s11 + $0x74] ss:$8 sps:$4 sm:$0xff]  }
  0x38   : > { %v633_v49 = vadd.f32 %v632_v48, %v631_v46  ;;  %v634_v50 = vmul.f32 0.25, %v622_v47  ;;  %v1723_v46 = vld [vmem:[%s2204_s11 + $0x64] ss:$8 sps:$4 sm:$0xff]   ;;  %v1721_v47 = vld [vmem:[%s2204_s11 + $0x60] ss:$8 sps:$4 sm:$0xff]  }
  0x39   : > { %v1726_v48 = vld [vmem:[%s2204_s11 + $0x54] ss:$8 sps:$4 sm:$0xff]  }
  0x3a   : > { %v635_v51 = vmul.f32 0.25, %v633_v49  ;;  %v636_v52 = vmul.f32 %v634_v50, %v634_v50  ;;  %v639_v59 = vsub.f32 %v611_v27, %v634_v50  ;;  %v640_v60 = vsub.f32 %v612_v30, %v634_v50  ;;  %v1717_v27 = vld [vmem:[%s2198_s5] sm:$0xff]   ;;  %v1724_v50 = vld [vmem:[%s2204_s11 + $0x50] ss:$8 sps:$4 sm:$0xff]  }
  0x3b   : > { %1673 = vmatpush3.bf16.msra.mxu1 %v1717_v27  ;;  %v1779_v49 = vmov 0  }
  0x3c   : > { %v637_v53 = vsub.f32 %v635_v51, %v636_v52  ;;  %v1729_v51 = vld [vmem:[%s2204_s11 + $0x44] ss:$8 sps:$4 sm:$0xff]   ;;  %v1727_v52 = vld [vmem:[%s2204_s11 + $0x40] ss:$8 sps:$4 sm:$0xff]  }
  0x3e   : > { %v638_v54 = vmax.f32 %v637_v53, 0.0  ;;  %v1732_v53 = vld [vmem:[%s2204_s11 + $0x34] ss:$8 sps:$4 sm:$0xff]  }
  0x40   : > { %v641_v55 = vadd.f32 1e-05, %v638_v54  ;;  %v1730_v54 = vld [vmem:[%s2204_s11 + $0x30] ss:$8 sps:$4 sm:$0xff]  }
  0x42   : > { %1758 = vrsqrt.f32 %v641_v55  ;;  %v1735_v55 = vld [vmem:[%s2204_s11 + $0x24] ss:$8 sps:$4 sm:$0xff]  }
  0x4f   : > { %v1759_v62 = vpop.eup %1758 }
  0x50   : > { %v643_v63 = vmul.f32 %v1759_v62, %v639_v59  ;;  %v644_v0 = vmul.f32 %v1759_v62, %v640_v60  ;;  %v1736_v59 = vld [vmem:[%s2204_s11 + $0x10] ss:$8 sps:$4 sm:$0xff]   ;;  %v1741_v60 = vld [vmem:[%s2204_s11 + $0x4] ss:$8 sps:$4 sm:$0xff]  }
  0x51   : > { %v1742_v62 = vld [vmem:[%s2206_s13 + $0x78] sm:$0xff]  }
  0x52   : > { %v655_v3 = vcombine.low %v643_v63, %v644_v0  ;;  %v1743_v63 = vld [vmem:[%s2206_s13 + $0x38] sm:$0xff]   ;;  %1624 = vmatprep.subr.bf16.mxu1 %v1742_v62  ;;  %v952_v0 = vld [vmem:[%s2202_s9] sm:$0xff] }
  0x53   : > { %v994_v17 = vrot.slane %v952_v0, %v539_v11  ;;  %v1014_v11 = vrot.slane %v952_v0, %v555_v12  ;;  %v1050_v12 = vrot.slane %v1776_v1, %v1900_v9 }
  0x54   : > { %v662_v4 = vrot.slane %v655_v3, %v1977_v2  ;;  %v1561_v3 = vld [vmem:[%s2201_s8] ss:$0 sm:$0xff] }
  0x56   : > { %v664_v5 = vpack.c.bf16 %v662_v4, %v662_v4  ;;  %v972_v4 = vrot.slane %v952_v0, %v1900_v9 }
  0x58   : > { %1655 = vmatmul.mubr.msk.bf16.vlgmr.msra.gmra.mxu0 %vm696_vm3, %v664_v5  ;;  %v980_v5 = vrot.slane %v952_v0, %v1903_v10 }
  0x59   : > { %1686 = vmatprep.mubr.msk.bf16.mxu0 %vm1777_vm0, %v1776_v1  ;;  %1679 = vmatpush3.bf16.msra.mxu0 %v1709_v14  ;;  %v985_v14 = vrot.slane %v1776_v1, 1 }
  0x5a   : > { %1680 = vmatprep.subr.bf16.mxu0 %v1776_v1  ;;  %v981_v19 = vmul.f32 0.0, %v980_v5 }
  0x5d   : > { %1681 = vmatpush3.bf16.msra.mxu0 %v1711_v16 }
  0x5e   : > { %1682 = vmatprep.subr.bf16.mxu0 %v1776_v1 }
  0x61   : > { %1683 = vmatpush3.bf16.msra.mxu0 %v1713_v23  ;;  %v973_v23 = vmul.f32 %v972_v4, %v1913_v13 }
  0x62   : > { %1684 = vmatprep.subr.bf16.mxu0 %v1776_v1 }
  0x65   : > { %1685 = vmatpush3.bf16.msra.mxu0 %v1715_v26  ;;  %v989_v26 = vsel %vm518_vm1, %v985_v14, 0.0 }
  0x66   : > { %1243 = vmatprep.subr.bf16.mxu0 %v1720_v45  ;;  %v1042_v45 = vrot.slane %v952_v0, %v571_v35 }
  0x68   : > { %1687 = vmatmul.mubr.msk.bf16.vlgmr.msra.gmra.mxu0 %vm696_vm3, %v876_v25 }
  0x69   : > { %1244 = vmatpush1.bf16.msra.mxu0 %v1718_v22  ;;  %1275 = vmatprep.mubr.bf16.mxu0 %v1779_v49 }
  0x6a   : > { %1245 = vmatprep.subr.bf16.mxu0 %v1723_v46 }
  0x6d   : > { %1246 = vmatpush1.bf16.msra.mxu0 %v1721_v47 }
  0x6e   : > { %1247 = vmatprep.subr.bf16.mxu0 %v1726_v48 }
  0x71   : > { %1248 = vmatpush1.bf16.msra.mxu0 %v1724_v50 }
  0x72   : > { %1249 = vmatprep.subr.bf16.mxu0 %v1729_v51  ;;  %v1056_v51 = vrot.slane %v952_v0, %v583_v40  ;;  %v1567_v40 = vld [vmem:[%s2202_s9 + $0x8] ss:$0 sm:$0xff] }
  0x75   : > { %1250 = vmatpush1.bf16.msra.mxu0 %v1727_v52 }
  0x76   : > { %1251 = vmatprep.subr.bf16.mxu0 %v1732_v53 }
  0x79   : > { %1252 = vmatpush1.bf16.msra.mxu0 %v1730_v54  ;;  %v1052_v54 = vsel %vm518_vm1, 0.0, %v1050_v12 }
  0x7a   : > { %1253 = vmatprep.subr.bf16.mxu0 %v1735_v55  ;;  %v1064_v55 = vrot.slane %v952_v0, %v591_v58 }
  0x7c   : > { %v1066_v14 = vmul.f32 0.0, %v1064_v55 }
  0x7d   : > { %1254 = vmatpush1.bf16.msra.mxu0 %v1733_v56 }
  0x7e   : > { %1255 = vmatprep.subr.bf16.mxu0 %v1738_v57 }
  0x81   : > { %1256 = vmatpush1.bf16.msra.mxu0 %v1736_v59  ;;  %v1072_v59 = vrot.slane %v1776_v1, %v1903_v10  ;;  %v1568_v1 = vld [vmem:[%s2203_s10] ss:$0 sm:$0xff] }
  0x82   : > { %1257 = vmatprep.subr.bf16.mxu0 %v1741_v60 }
  0x85   : > { %1258 = vmatpush1.bf16.msra.mxu0 %v1739_v61 }
 0x118   : > { %v734_v28 = vpop.f32.mrf.mxu0 }
 0x119   : > { %v735_v29 = vadd.f32 %v1546_v7, %v734_v28  ;;  %v983_v7 = vadd.f32 %v981_v19, %v973_v23  ;;  %v995_v28 = vmul.f32 %v994_v17, %v989_v26 }
 0x11a   : > { %v1656_v30 = vpop.f32.mrf.mxu0 }
 0x11b   : > { %v741_v20 = vmul.f32 0.70710677, %v735_v29  ;;  %v740_v33 = vmul.f32 0.5, %v735_v29 }
 0x11c   : > { %v737_v31 = vpop.f32.mrf.mxu0 }
 0x11d   : > { %1760 = verf.f32 %v741_v20 }
 0x11e   : > { %v1657_v21 = vpop.f32.mrf.mxu0 }
 0x11f   : > { %v1022_v21 = vrot.slane %v952_v0, %v563_v34  ;;  %v1074_v0 = vsel %vm518_vm1, %v1072_v59, 0.0  ;;  %v1746_v59 = vld [vmem:[%s2206_s13 + $0x68] sm:$0xff]  }
 0x128   : > { %v945_v41 = vpop.f32.mrf.mxu0 }
 0x129   : > { %v946_v15 = vadd.f32 %v1561_v3, %v945_v41 }
 0x12a   : > { %v1761_v32 = vpop.eup %1760  ;;  %v1688_v42 = vpop.f32.mrf.mxu0 }
 0x12b   : > { %v743_v37 = vadd.f32 1.0, %v1761_v32 }
 0x12c   : > { %v948_v43 = vpop.f32.mrf.mxu0 }
 0x12d   : > { %v744_v38 = vmul.f32 %v743_v37, %v740_v33 }
 0x12e   : > { %v1689_v44 = vpop.f32.mrf.mxu0 }
 0x12f   : > { %v761_v39 = vpack.c.bf16 %v744_v38, %v744_v38  ;;  %v997_v38 = vadd.f32 %v995_v28, %v983_v7 }
 0x131   : > { %1675 = vmatmul.mubr.bf16.vlgmr.msra.gmra.mxu1 %v761_v39 }
 0x132   : > { %1625 = vmatpush3.bf16.msra.mxu1 %v1743_v63 }
 0x1f1   : > { %v851_v16 = vpop.f32.mrf.mxu1 }
 0x1f2   : > { %v852_v18 = vadd.f32 %v1552_v8, %v851_v16 }
 0x1f3   : > { %v1676_v24 = vpop.f32.mrf.mxu1 }
 0x1f4   : > { %v2098_v36 = vadd.f32 %v946_v15, %v852_v18  ;;  %v1080_v18 = vmul.f32 %v1567_v40, %v1074_v0  ;;  %v1151_v0 = vld [vmem:[%s2205_s12] sm:$0x3] }
 0x1f5   : > { %v854_v25 = vpop.f32.mrf.mxu1 }
 0x1f6   : > { %v962_v27 = vrot.slane %v2098_v36, %v1977_v2 }
 0x1f7   : > { %v1677_v29 = vpop.f32.mrf.mxu1 }
 0x1f8   : > { %v963_v30 = vcombine.high %v962_v27, %v962_v27  ;;  %v966_v20 = vrot.slane %v962_v27, 7  ;;  %v986_v31 = vrot.slane %v962_v27, 1  ;;  %v1002_v13 = vrot.slane %v962_v27, %v1900_v9 }
 0x1f9   : > { %v1030_v32 = vrot.slane %v962_v27, %v1903_v10  ;;  %v982_v42 = vmul.f32 %v980_v5, %v962_v27  ;;  %v1023_v49 = vmul.f32 %v1022_v21, %v962_v27  ;;  %v1058_v5 = vmul.f32 %v1056_v51, %v1052_v54 }
 0x1fa   : > { %v968_v33 = vsel %vm518_vm1, 0.0, %v966_v20  ;;  %v990_v37 = vsel %vm518_vm1, %v986_v31, 0.0  ;;  %v1006_v39 = vrot.slane %v963_v30, %v1900_v9  ;;  %v1009_v43 = vsel %vm518_vm1, 0.0, %v1002_v13 }
 0x1fb   : > { %v974_v41 = vmul.f32 %v972_v4, %v968_v33  ;;  %v1015_v22 = vmul.f32 %v1014_v11, %v1009_v43  ;;  %v1034_v34 = vrot.slane %v963_v30, %v1903_v10  ;;  %v996_v47 = vmul.f32 %v994_v17, %v990_v37 }
 0x1fc   : > { %v1010_v44 = vsel %vm518_vm1, 0.0, %v1006_v39  ;;  %v1037_v48 = vsel %vm518_vm1, %v1030_v32, 0.0  ;;  %v1024_v61 = vmul.f32 %v1022_v21, %v963_v30  ;;  %v1065_v58 = vmul.f32 %v1064_v55, %v963_v30 }
 0x1fd   : > { %v984_v46 = vadd.f32 %v982_v42, %v974_v41  ;;  %v1017_v50 = vadd.f32 %v1015_v22, %v997_v38  ;;  %v1016_v53 = vmul.f32 %v1014_v11, %v1010_v44  ;;  %v1038_v57 = vsel %vm518_vm1, %v1034_v34, 0.0 }
 0x1fe   : > { %v1043_v35 = vmul.f32 %v1042_v45, %v1037_v48  ;;  %v1057_v63 = vmul.f32 %v1056_v51, %v1010_v44  ;;  %v1044_v4 = vmul.f32 %v1042_v45, %v1038_v57  ;;  %v1079_v16 = vmul.f32 %v1567_v40, %v1038_v57  ;;  %v1744_v57 = vld [vmem:[%s2206_s13 + $0x70] sm:$0xff]  }
 0x1ff   : > { %v998_v52 = vadd.f32 %v996_v47, %v984_v46  ;;  %v1025_v56 = vadd.f32 %v1023_v49, %v1017_v50  ;;  %1626 = vmatprep.subr.bf16.mxu1 %v1744_v57  ;;  %v1752_v40 = vld [vmem:[%s2206_s13 + $0x50] sm:$0xff]  }
 0x201   : > { %v1018_v60 = vadd.f32 %v1016_v53, %v998_v52  ;;  %v1045_v62 = vadd.f32 %v1043_v35, %v1025_v56  ;;  %v1745_v35 = vld [vmem:[%s2206_s13 + $0x30] sm:$0xff]  }
 0x202   : > { %1627 = vmatpush3.bf16.msra.mxu1 %v1745_v35 }
 0x203   : > { %v1026_v3 = vadd.f32 %v1024_v61, %v1018_v60  ;;  %v1059_v6 = vadd.f32 %v1057_v63, %v1045_v62  ;;  %1628 = vmatprep.subr.bf16.mxu1 %v1746_v59  ;;  %v1748_v60 = vld [vmem:[%s2206_s13 + $0x60] sm:$0xff]   ;;  %v1750_v62 = vld [vmem:[%s2206_s13 + $0x58] sm:$0xff]  }
 0x204   : > { %v1749_v61 = vld [vmem:[%s2206_s13 + $0x20] sm:$0xff]   ;;  %v1751_v63 = vld [vmem:[%s2206_s13 + $0x18] sm:$0xff]  }
 0x205   : > { %v1046_v8 = vadd.f32 %v1044_v4, %v1026_v3  ;;  %v1067_v15 = vadd.f32 %v1065_v58, %v1059_v6  ;;  %v1753_v3 = vld [vmem:[%s2206_s13 + $0x10] sm:$0xff]   ;;  %v1754_v4 = vld [vmem:[%s2206_s13 + $0x48] sm:$0xff]   ;;  %v1756_v6 = vld [vmem:[%s2206_s13 + $0x40] sm:$0xff]  }
 0x206   : > { %v1757_v58 = vld [vmem:[%s2206_s13] sm:$0xff]  }
 0x207   : > { %v1060_v17 = vadd.f32 %v1058_v5, %v1046_v8  ;;  %v1081_v23 = vadd.f32 %v1079_v16, %v1067_v15  ;;  %v1755_v5 = vld [vmem:[%s2206_s13 + $0x8] sm:$0xff]   ;;  %v1156_v8 = vrot.slane %v1151_v0, %v1900_v9 }
 0x209   : > { %v1068_v19 = vadd.f32 %v1066_v14, %v1060_v17  ;;  %v1089_v24 = vadd.f32 %v1568_v1, %v1081_v23  ;;  %v1160_v14 = vrot.slane %v1151_v0, %v1903_v10 }
 0x20b   : > { %v1082_v26 = vadd.f32 %v1080_v18, %v1068_v19  ;;  %v1101_v27 = vmul.f32 %v1089_v24, %v1089_v24  ;;  %v1092_v7 = vsel %vm1091_vm4, %v1089_v24, 0.0 }
 0x20d   : > { %v1090_v25 = vadd.f32 %v1568_v1, %v1082_v26  ;;  %v1103_v20 = vsel %vm1091_vm4, %v1101_v27, 0.0 }
 0x20f   : > { %v1093_v28 = vsel %vm1091_vm4, %v1090_v25, 0.0  ;;  %v1102_v29 = vmul.f32 %v1090_v25, %v1090_v25 }
 0x210   : > { %v1094_v30 = vadd.f32 %v1093_v28, %v1092_v7 }
 0x211   : > { %v1104_v31 = vsel %vm1091_vm4, %v1102_v29, 0.0 }
 0x212   : > { %v1095_v11 = vrot.slane %v1094_v30, 4  ;;  %v1105_v13 = vadd.f32 %v1104_v31, %v1103_v20 }
 0x214   : > { %v1096_v21 = vadd.f32 %v1095_v11, %v1094_v30  ;;  %v1106_v32 = vrot.slane %v1105_v13, 4  ;;  %v1585_v11 = vld [vmem:[%s2207_s14] ss:$0 sm:$0xff] }
 0x216   : > { %v1097_v33 = vrot.slane %v1096_v21, 2  ;;  %v1107_v37 = vadd.f32 %v1106_v32, %v1105_v13 }
 0x218   : > { %v1098_v38 = vadd.f32 %v1097_v33, %v1096_v21  ;;  %v1108_v39 = vrot.slane %v1107_v37, 2 }
 0x21a   : > { %v1099_v41 = vrot.slane %v1098_v38, 1  ;;  %v1109_v42 = vadd.f32 %v1108_v39, %v1107_v37 }
 0x21c   : > { %v1100_v43 = vadd.f32 %v1099_v41, %v1098_v38  ;;  %v1110_v12 = vrot.slane %v1109_v42, 1 }
 0x21e   : > { %v1111_v44 = vadd.f32 %v1110_v12, %v1109_v42  ;;  %v1112_v22 = vmul.f32 0.25, %v1100_v43 }
 0x220   : > { %v1113_v34 = vmul.f32 0.25, %v1111_v44  ;;  %v1114_v45 = vmul.f32 %v1112_v22, %v1112_v22  ;;  %v1117_v49 = vsub.f32 %v1089_v24, %v1112_v22  ;;  %v1118_v50 = vsub.f32 %v1090_v25, %v1112_v22 }
 0x222   : > { %v1115_v46 = vsub.f32 %v1113_v34, %v1114_v45 }
 0x224   : > { %v1116_v47 = vmax.f32 %v1115_v46, 0.0 }
 0x226   : > { %v1119_v48 = vadd.f32 1e-05, %v1116_v47 }
 0x228   : > { %1762 = vrsqrt.f32 %v1119_v48 }
 0x235   : > { %v1763_v51 = vpop.eup %1762 }
 0x236   : > { %v1121_v52 = vmul.f32 %v1763_v51, %v1117_v49  ;;  %v1122_v53 = vmul.f32 %v1763_v51, %v1118_v50 }
 0x238   : > { %v1141_v54 = vcombine.low %v1121_v52, %v1122_v53 }
 0x23a   : > { %v1148_v55 = vrot.slane %v1141_v54, %v1977_v2  ;;  %v1747_v2 = vld [vmem:[%s2206_s13 + $0x28] sm:$0xff]  }
 0x23b   : > { %1629 = vmatpush3.bf16.msra.mxu1 %v1747_v2 }
 0x23c   : > { %v1150_v56 = vpack.c.bf16 %v1148_v55, %v1148_v55  ;;  %1630 = vmatprep.subr.bf16.mxu1 %v1748_v60 }
 0x23e   : > { %1276 = vmatmul.mubr.bf16.vlgmr.msra.gmra.mxu0 %v1150_v56 }
 0x23f   : > { %1631 = vmatpush3.bf16.msra.mxu1 %v1749_v61 }
 0x240   : > { %1632 = vmatprep.subr.bf16.mxu1 %v1750_v62 }
 0x243   : > { %1633 = vmatpush3.bf16.msra.mxu1 %v1751_v63 }
 0x244   : > { %1634 = vmatprep.subr.bf16.mxu1 %v1752_v40 }
 0x247   : > { %1635 = vmatpush3.bf16.msra.mxu1 %v1753_v3 }
 0x248   : > { %1636 = vmatprep.subr.bf16.mxu1 %v1754_v4 }
 0x24b   : > { %1637 = vmatpush3.bf16.msra.mxu1 %v1755_v5 }
 0x24c   : > { %1638 = vmatprep.subr.bf16.mxu1 %v1756_v6 }
 0x24f   : > { %1639 = vmatpush3.bf16.msra.mxu1 %v1757_v58 }
 0x2fe   : > { %v1277_v15 = vpop.f32.mrf.mxu0 }
 0x2ff   : > { %v1278_v16 = vadd.f32 %v1277_v15, %v1156_v8 }
 0x300   : > { %v1279_v1 = vpop.f32.mrf.mxu0 }
 0x301   : > { %v1286_v17 = vmul.f32 0.70710677, %v1278_v16  ;;  %v1280_v18 = vadd.f32 %v1279_v1, %v1160_v14  ;;  %v1284_v7 = vmul.f32 0.5, %v1278_v16 }
 0x302   : > { %v1281_v23 = vpop.f32.mrf.mxu0 }
 0x303   : > { %1764 = verf.f32 %v1286_v17  ;;  %v1287_v19 = vmul.f32 0.70710677, %v1280_v18  ;;  %v1285_v28 = vmul.f32 0.5, %v1280_v18 }
 0x304   : > { %v1282_v24 = vpop.f32.mrf.mxu0 }
 0x305   : > { %1766 = verf.f32 %v1287_v19 }
 0x310   : > { %v1765_v26 = vpop.eup %1764 }
 0x311   : > { %v1290_v25 = vadd.f32 1.0, %v1765_v26 }
 0x312   : > { %v1767_v27 = vpop.eup %1766 }
 0x313   : > { %v1291_v29 = vadd.f32 1.0, %v1767_v27  ;;  %v1292_v9 = vmul.f32 %v1290_v25, %v1284_v7 }
 0x315   : > { %v1293_v30 = vmul.f32 %v1291_v29, %v1285_v28  ;;  %v1326_v20 = vpack.c.bf16 %v1292_v9, %v1292_v9 }
 0x317   : > { %v1327_v10 = vpack.c.bf16 %v1293_v30, %v1293_v30 }
 0x319   : > { %1463 = vmatprep.mubr.bf16.mxu1 %v1327_v10 }
 0x31a   : > { %1464 = vmatmul.mubr.bf16.vlgmr.msra.gmra.mxu1 %v1326_v20 }
 0x3da   : > { %v1640_v31 = vpop.f32.mrf.mxu1 }
 0x3dc   : > { %v1641_v13 = vpop.f32.mrf.mxu1 }
 0x3dd   : > { %v1642_v21 = vadd.f32 %v1641_v13, %v1640_v31 }
 0x3de   : > { %v1643_v32 = vpop.f32.mrf.mxu1 }
 0x3df   : > { %v1466_v33 = vadd.f32 %v1642_v21, %v1585_v11 }
 0x3e0   : > { %v1644_v37 = vpop.f32.mrf.mxu1 }
 0x3e1   : > { %v1471_v38 = vadd.f32 %v1466_v33, %v2098_v36 }
 0x3e3   : > { %1472 = vst [vmem:[%s492_s28] sm:$0xf] %v1471_v38 }
 0x3e4 PF: > { %s25_s18 = sadd.s32 1, %s1774_s18  }
 0x3e5   : > { %p22_p4 = scmp.ge.s32.totalorder %s25_s18, 4  }
 0x3e7   :  { %24 = sbr.rel (!%p22_p4) target bundleno = 1 (0x1), region = 117 }

// kernel: mednext_encoder_forward.9
= control target key start
LH: loop header
LB: loop body
LE: loop exit
PB: predicated region body
PF: predicated region fallthrough
CT: control target
= control target key end

     0   :  { %14 = vsyncpa [#allocation3], 0  ;;  %s1689_s0 = inlined_call_operand.vmem [shape: f32[2,2,2,128], index: 0, kind: input, shape index: {}]   ;;  %s1690_s1 = inlined_call_operand.vmem [shape: f32[9,128], index: 1, kind: input, shape index: {}]   ;;  %s1691_s2 = inlined_call_operand.vmem [shape: f32[1,128], index: 2, kind: input, shape index: {}]   ;;  %s1692_s3 = inlined_call_operand.vmem [shape: bf16[128,256], index: 3, kind: input, shape index: {}]   ;;  %s1693_s4 = inlined_call_operand.vmem [shape: f32[1,256], index: 4, kind: input, shape index: {}]   ;;  %s1694_s5 = inlined_call_operand.vmem [shape: bf16[256,256], index: 5, kind: input, shape index: {}]   ;;  %s1695_s6 = inlined_call_operand.vmem [shape: f32[1,256], index: 6, kind: input, shape index: {}]   ;;  %s1696_s7 = inlined_call_operand.vmem [shape: bf16[128,256], index: 7, kind: input, shape index: {}]   ;;  %s1697_s8 = inlined_call_operand.vmem [shape: f32[1,256], index: 8, kind: input, shape index: {}]   ;;  %s1698_s9 = inlined_call_operand.hbm [shape: f32[2,1,256], index: 9, kind: output, shape index: {}]  }
   0x1   :  { %16 = vsyncpa [#allocation3 + $0x1], 0  ;;  %s1379_s30 = smov 0   ;;  %s1381_s10 = smov 0  }
   0x2   :  { %s1383_s11 = smov 0   ;;  %s1385_s12 = smov 0  }
   0x3 LB: > { %s1400_s13 = sadd.s32 4294967295, %s1324_s12   ;;  %s1040_s14 = sadd.s32 4294967294, %s1324_s12   ;;  %s1324_s12 = sphi %s1385_s12, %s1704_s12   ;;  %s1320_s11 = sphi %s1383_s11, %s1703_s11   ;;  %s1316_s10 = sphi %s1381_s10, %s1702_s10   ;;  %s1312_s30 = sphi %s1379_s30, %s1701_s30  }
   0x4   : > { %s1404_s15 = sadd.s32 1, %s1324_s12   ;;  %s223_s16 = sadd.s32 1, %s1320_s11 }
   0x5   : > { %s220_s17 = ssub.s32 %s1324_s12, %s1404_s15  ;;  %p233_p0 = scmp.ne.s32.totalorder %s1320_s11, %s1316_s10 }
   0x6   : > { %p221_p1 = scmp.eq.s32.totalorder %s220_s17, 0  ;;  %p234_p2 = scmp.eq.s32.totalorder %s1400_s13, 1 }
   0x7   : > { %p239_p3 = scmp.ne.s32.totalorder %s1316_s10, %s1312_s30  ;;  %p240_p4 = scmp.eq.s32.totalorder %s1040_s14, 1 }
   0x8   : > { %s1415_s18 = scalar_select %p221_p1, %s1320_s11, %s223_s16  }
   0x9   : > { %p1417_p5 = por %p234_p2, %p233_p0  ;;  %p1421_p6 = por %p240_p4, %p239_p3 }
   0xa   : > { %p1043_p7 = scmp.ge.s32.totalorder %s1324_s12, 1  ;;  %p290_p8 = scmp.lt.s32.totalorder %s1324_s12, 3 }
   0xc   : > { %p291_p9 = pnand %p1043_p7, %p290_p8 }
   0xd   : > { %p326_p10 = scmp.lt.s32.totalorder (!%p291_p9), %s1400_s13, 1  ;;  %s323_s25 = sand.u32 (!%p291_p9), 1, %s1316_s10  }
   0xe   : > { %294 = sbr.rel (%p291_p9) target bundleno = 509 (0x1fd), region = 56  ;;  %s1044_s26 = sshll.u32 (!%p291_p9), %s323_s25, 1 }
   0xf   : > { %s325_s27 = scalar_lea.vmem (!%p291_p9), [#allocation2], %s1044_s26  ;;  %s966_s22 = scalar_lea.sflag (!%p291_p9), [#allocation3], %s323_s25 }
  0x10   : > { %s980_s28 = sshll.u32 (!%p291_p9), %s325_s27, 4  ;;  %s981_s28 = int_to_ptr.vmem [resolvable:$true] %s980_s28 }
  0x13   : > { %v1162_v0 = vld [vmem:[%s1692_s3 + $0x74] ss:$8 sps:$4 sm:$0xff]   ;;  %v1164_v1 = vld [vmem:[%s1692_s3 + $0x70] ss:$8 sps:$4 sm:$0xff]   ;;  %v1326_v2 = vmov 0   ;;  %s327_s16 = scalar_select %p326_p10, %s1400_s13, 1 }
  0x14   : > { %524 = vmatprep.mubr.bf16.mxu0 %v1326_v2  ;;  %492 = vmatprep.subr.bf16.mxu0 %v1162_v0  ;;  %v1165_v3 = vld [vmem:[%s1692_s3 + $0x64] ss:$8 sps:$4 sm:$0xff]   ;;  %v1167_v4 = vld [vmem:[%s1692_s3 + $0x60] ss:$8 sps:$4 sm:$0xff]   ;;  %v1168_v5 = vld [vmem:[%s1692_s3 + $0x54] ss:$8 sps:$4 sm:$0xff]  }
  0x15   : > { %493 = vmatpush1.bf16.msra.mxu0 %v1164_v1  ;;  %v1170_v6 = vld [vmem:[%s1692_s3 + $0x50] ss:$8 sps:$4 sm:$0xff]   ;;  %v1171_v7 = vld [vmem:[%s1692_s3 + $0x44] ss:$8 sps:$4 sm:$0xff]   ;;  %s1119_s24 = sshll.u32 %s327_s16, 2  ;;  %s1264_s16 = scalar_lea.vmem %s981_s28, 32 }
  0x16   : > { %494 = vmatprep.subr.bf16.mxu0 %v1165_v3  ;;  %v339_v8 = vld [vmem:[%s1690_s1] sm:$0xff]  ;;  %s1460_s17 = scalar_lea.vmem %s1689_s0, %s1119_s24  ;;  %v1174_v10 = vld [vmem:[%s1692_s3 + $0x34] ss:$8 sps:$4 sm:$0xff]   ;;  %v1176_v11 = vld [vmem:[%s1692_s3 + $0x30] ss:$8 sps:$4 sm:$0xff]   ;;  %s1120_s24 = sshll.u32 %s1400_s13, 5 }
  0x17   : > { %v1173_v9 = vld [vmem:[%s1692_s3 + $0x40] ss:$8 sps:$4 sm:$0xff]   ;;  %v342_v12 = vmul.f32 0.0, %v339_v8  ;;  %v1177_v13 = vld [vmem:[%s1692_s3 + $0x24] ss:$8 sps:$4 sm:$0xff]   ;;  %v355_v18 = vrot.slane %v339_v8, 4  ;;  %s978_s21 = scalar_lea.hbm %s1698_s9, %s1120_s24  ;;  %p1265_p11 = scmp.ne.s32.totalorder %s981_s28, %s1264_s16 }
  0x18   : > { %v1472_v14 = vld [vmem:[%s1460_s17] ss:$2 sm:$0x1]  ;;  %v1186_v15 = vld [vmem:[%s1694_s5 + $0x74] ss:$8 sps:$4 sm:$0xff]   ;;  %v359_v24 = vrot.slane %v339_v8, 5 }
  0x19   : > { %495 = vmatpush1.bf16.msra.mxu0 %v1167_v4  ;;  %v345_v16 = vrot.slane %v342_v12, 1  ;;  %v348_v17 = vrot.slane %v342_v12, 2  ;;  %v1188_v19 = vld [vmem:[%s1694_s5 + $0x70] ss:$8 sps:$4 sm:$0xff]   ;;  %749 = vmatprep.subr.bf16.mxu1 %v1186_v15  ;;  %v1189_v21 = vld [vmem:[%s1694_s5 + $0x64] ss:$8 sps:$4 sm:$0xff]   ;;  %v357_v29 = vmul.f32 %v355_v18, %v1472_v14  ;;  %p1266_p12 = pnand %p1265_p11, %p1417_p5 }
  0x1a   : > { %496 = vmatprep.subr.bf16.mxu0 %v1168_v5  ;;  %v1047_v20 = vld [vmem:[%s1460_s17 + $0x1] ss:$2 sm:$0x1]  ;;  %v351_v23 = vrot.slane %v342_v12, 3  ;;  %750 = vmatpush1.bf16.msra.mxu1 %v1188_v19  ;;  %v1192_v26 = vld [vmem:[%s1694_s5 + $0x54] ss:$8 sps:$4 sm:$0xff]  }
  0x1b   : > { %v347_v22 = vadd.f32 %v345_v16, %v342_v12  ;;  %v1191_v25 = vld [vmem:[%s1694_s5 + $0x60] ss:$8 sps:$4 sm:$0xff]   ;;  %751 = vmatprep.subr.bf16.mxu1 %v1189_v21  ;;  %v1180_v30 = vld [vmem:[%s1692_s3 + $0x14] ss:$8 sps:$4 sm:$0xff]   ;;  %v361_v33 = vmul.f32 %v1047_v20, %v359_v24  ;;  %v366_v34 = vrot.slane %v339_v8, 7  ;;  %v363_v40 = vrot.slane %v342_v12, 6  ;;  %p1267_p13 = pneg %p1266_p12 }
  0x1c   : > { %v1179_v27 = vld [vmem:[%s1692_s3 + $0x20] ss:$8 sps:$4 sm:$0xff]   ;;  %v1194_v35 = vld [vmem:[%s1694_s5 + $0x50] ss:$8 sps:$4 sm:$0xff]   ;;  %v1195_v36 = vld [vmem:[%s1694_s5 + $0x44] ss:$8 sps:$4 sm:$0xff]  }
  0x1d   : > { %497 = vmatpush1.bf16.msra.mxu0 %v1170_v6  ;;  %v350_v28 = vadd.f32 %v348_v17, %v347_v22  ;;  %v1048_v31 = vld [vmem:[%s1460_s17 + $0x2] ss:$2 sm:$0x1]  ;;  %v1182_v37 = vld [vmem:[%s1692_s3 + $0x10] ss:$8 sps:$4 sm:$0xff]  }
  0x1e   : > { %498 = vmatprep.subr.bf16.mxu0 %v1171_v7  ;;  %752 = vmatpush1.bf16.msra.mxu1 %v1191_v25  ;;  %v1183_v38 = vld [vmem:[%s1692_s3 + $0x4] ss:$8 sps:$4 sm:$0xff]   ;;  %v1049_v41 = vld [vmem:[%s1460_s17 + $0x3] ss:$2 sm:$0x1]  ;;  %v368_v44 = vmul.f32 %v1048_v31, %v366_v34  ;;  %s1328_s17 = smov [#allocation2]  }
  0x1f   : > { %v353_v32 = vadd.f32 %v351_v23, %v350_v28  ;;  %753 = vmatprep.subr.bf16.mxu1 %v1192_v26  ;;  %v340_v42 = vld [vmem:[%s1690_s1 + $0x8] sm:$0x1]  ;;  %v1198_v46 = vld [vmem:[%s1694_s5 + $0x34] ss:$8 sps:$4 sm:$0xff]   ;;  %v1200_v52 = vld [vmem:[%s1694_s5 + $0x30] ss:$8 sps:$4 sm:$0xff]  }
  0x20   : > { %v1197_v45 = vld [vmem:[%s1694_s5 + $0x40] ss:$8 sps:$4 sm:$0xff]   ;;  %v370_v49 = vmul.f32 %v1049_v41, %v340_v42  ;;  %v1209_v50 = vld [vmem:[%s1696_s7 + $0x74] ss:$8 sps:$4 sm:$0xff]   ;;  %v1201_v54 = vld [vmem:[%s1694_s5 + $0x24] ss:$8 sps:$4 sm:$0xff]  }
  0x21   : > { %499 = vmatpush1.bf16.msra.mxu0 %v1173_v9  ;;  %v358_v39 = vadd.f32 %v357_v29, %v353_v32  ;;  %v1185_v47 = vld [vmem:[%s1692_s3] ss:$8 sps:$4 sm:$0xff]   ;;  %v1204_v57 = vld [vmem:[%s1694_s5 + $0x14] ss:$8 sps:$4 sm:$0xff]   ;;  %v1206_v60 = vld [vmem:[%s1694_s5 + $0x10] ss:$8 sps:$4 sm:$0xff]  }
  0x22   : > { %500 = vmatprep.subr.bf16.mxu0 %v1174_v10  ;;  %754 = vmatpush1.bf16.msra.mxu1 %v1194_v35  ;;  %v341_v53 = vld [vmem:[%s1691_s2] sm:$0x1]  ;;  %v1210_v62 = vld [vmem:[%s1694_s5 + $0x4] ss:$8 sps:$4 sm:$0xff]   ;;  %v1216_v3 = vld [vmem:[%s1694_s5 + $0xf4] ss:$8 sps:$4 sm:$0xff]  }
  0x23   : > { %v362_v43 = vadd.f32 %v361_v33, %v358_v39  ;;  %755 = vmatprep.subr.bf16.mxu1 %v1195_v36  ;;  %v1203_v56 = vld [vmem:[%s1694_s5 + $0x20] ss:$8 sps:$4 sm:$0xff]   ;;  %v1218_v4 = vld [vmem:[%s1694_s5 + $0xf0] ss:$8 sps:$4 sm:$0xff]   ;;  %v1215_v10 = vld [vmem:[%s1696_s7 + $0x64] ss:$8 sps:$4 sm:$0xff]   ;;  %v806_v36 = vpack.c.bf16 %v1472_v14, %v1472_v14  ;;  %v482_v39 = vlaneseq }
  0x24   : > { %v1212_v1 = vld [vmem:[%s1694_s5] ss:$8 sps:$4 sm:$0xff]   ;;  %v1207_v8 = vld [vmem:[%s1696_s7 + $0x70] ss:$8 sps:$4 sm:$0xff]   ;;  %v1221_v12 = vld [vmem:[%s1696_s7 + $0x54] ss:$8 sps:$4 sm:$0xff]  }
  0x25   : > { %501 = vmatpush1.bf16.msra.mxu0 %v1176_v11  ;;  %v365_v48 = vadd.f32 %v363_v40, %v362_v43  ;;  %v1213_v11 = vld [vmem:[%s1696_s7 + $0x60] ss:$8 sps:$4 sm:$0xff]   ;;  %v1222_v15 = vld [vmem:[%s1694_s5 + $0xe4] ss:$8 sps:$4 sm:$0xff]   ;;  %v1228_v18 = vld [vmem:[%s1694_s5 + $0xd4] ss:$8 sps:$4 sm:$0xff]  }
  0x26   : > { %502 = vmatprep.subr.bf16.mxu0 %v1177_v13  ;;  %756 = vmatpush1.bf16.msra.mxu1 %v1197_v45  ;;  %v1219_v13 = vld [vmem:[%s1696_s7 + $0x50] ss:$8 sps:$4 sm:$0xff]   ;;  %v1227_v16 = vld [vmem:[%s1696_s7 + $0x44] ss:$8 sps:$4 sm:$0xff]   ;;  %v1225_v17 = vld [vmem:[%s1696_s7 + $0x40] ss:$8 sps:$4 sm:$0xff]  }
  0x27   : > { %v369_v51 = vadd.f32 %v368_v44, %v365_v48  ;;  %757 = vmatprep.subr.bf16.mxu1 %v1198_v46  ;;  %v1230_v19 = vld [vmem:[%s1694_s5 + $0xd0] ss:$8 sps:$4 sm:$0xff]   ;;  %v1233_v20 = vld [vmem:[%s1696_s7 + $0x34] ss:$8 sps:$4 sm:$0xff]   ;;  %v1234_v22 = vld [vmem:[%s1694_s5 + $0xc4] ss:$8 sps:$4 sm:$0xff]  }
  0x28   : > { %v1231_v21 = vld [vmem:[%s1696_s7 + $0x30] ss:$8 sps:$4 sm:$0xff]   ;;  %v1236_v23 = vld [vmem:[%s1694_s5 + $0xc0] ss:$8 sps:$4 sm:$0xff]   ;;  %v1239_v25 = vld [vmem:[%s1696_s7 + $0x24] ss:$8 sps:$4 sm:$0xff]  }
  0x29   : > { %503 = vmatpush1.bf16.msra.mxu0 %v1179_v27  ;;  %v371_v55 = vadd.f32 %v370_v49, %v369_v51  ;;  %v1237_v24 = vld [vmem:[%s1696_s7 + $0x20] ss:$8 sps:$4 sm:$0xff]   ;;  %v1240_v26 = vld [vmem:[%s1694_s5 + $0xb4] ss:$8 sps:$4 sm:$0xff]   ;;  %v1242_v27 = vld [vmem:[%s1694_s5 + $0xb0] ss:$8 sps:$4 sm:$0xff]  }
  0x2a   : > { %504 = vmatprep.subr.bf16.mxu0 %v1180_v30  ;;  %758 = vmatpush1.bf16.msra.mxu1 %v1200_v52  ;;  %v1245_v28 = vld [vmem:[%s1696_s7 + $0x14] ss:$8 sps:$4 sm:$0xff]   ;;  %v1246_v29 = vld [vmem:[%s1694_s5 + $0xa4] ss:$8 sps:$4 sm:$0xff]   ;;  %v1243_v30 = vld [vmem:[%s1696_s7 + $0x10] ss:$8 sps:$4 sm:$0xff]  }
  0x2b   : > { %v372_v58 = vadd.f32 %v371_v55, %v341_v53  ;;  %759 = vmatprep.subr.bf16.mxu1 %v1201_v54  ;;  %v1251_v31 = vld [vmem:[%s1696_s7 + $0x4] ss:$8 sps:$4 sm:$0xff]   ;;  %v1248_v32 = vld [vmem:[%s1694_s5 + $0xa0] ss:$8 sps:$4 sm:$0xff]   ;;  %v1252_v33 = vld [vmem:[%s1694_s5 + $0x94] ss:$8 sps:$4 sm:$0xff]  }
  0x2c   : > { %v1249_v34 = vld [vmem:[%s1696_s7] ss:$8 sps:$4 sm:$0xff]   ;;  %v1254_v35 = vld [vmem:[%s1694_s5 + $0x90] ss:$8 sps:$4 sm:$0xff]   ;;  %v483_v40 = vshrl.u32 %v482_v39, 7  ;;  %vm962_vm0 = vcmp.lt.s32.totalorder %v482_v39, 256 }
  0x2d   : > { %505 = vmatpush1.bf16.msra.mxu0 %v1182_v37  ;;  %v374_v59 = vmul.f32 %v372_v58, %v372_v58  ;;  %v379_v5 = vsub.f32 %v372_v58, %v372_v58  ;;  %v1255_v37 = vld [vmem:[%s1694_s5 + $0x84] ss:$8 sps:$4 sm:$0xff]   ;;  %v400_v14 = vld [vmem:[%s1693_s4] sm:$0x3]  ;;  %s1268_s23 = sshll.u32 %s1328_s17, 4  ;;  %s1269_s23 = int_to_ptr.vmem [resolvable:$false] %s1268_s23 }
  0x2e   : > { %506 = vmatprep.subr.bf16.mxu0 %v1183_v38  ;;  %760 = vmatpush1.bf16.msra.mxu1 %v1203_v56  ;;  %v1257_v38 = vld [vmem:[%s1694_s5 + $0x80] ss:$8 sps:$4 sm:$0xff]   ;;  %v484_v41 = vsub.s32 0, %v483_v40  ;;  %v488_v42 = vsub.s32 1, %v483_v40  ;;  %s1270_s13 = scalar_lea.vmem %s1269_s23, 64  ;;  %p1271_p0 = scmp.lt.s32.totalorder %s981_s28, %s1269_s23 }
  0x2f   : > { %v377_v61 = vsub.f32 %v374_v59, %v374_v59  ;;  %761 = vmatprep.subr.bf16.mxu1 %v1204_v57  ;;  %p1272_p1 = scmp.lt.s32.totalorder %s1270_s13, %s1264_s16 }
  0x30   : > { %v485_v43 = vrot.slane %v400_v14, %v484_v41  ;;  %v489_v44 = vrot.slane %v400_v14, %v488_v42 }
  0x31   : > { %507 = vmatpush1.bf16.msra.mxu0 %v1185_v47  ;;  %v378_v63 = vmax.f32 %v377_v61, 0.0  ;;  %p1273_p2 = por %p1272_p1, %p1271_p0 }
  0x32   : > { %899 = vmatprep.subr.bf16.mxu0 %v1209_v50  ;;  %762 = vmatpush1.bf16.msra.mxu1 %v1206_v60 }
  0x33   : > { %v380_v0 = vadd.f32 1e-05, %v378_v63  ;;  %763 = vmatprep.subr.bf16.mxu1 %v1210_v62  ;;  %p1274_p3 = pnand %p1273_p2, %p1267_p13 }
  0x35   : > { %1258 = vrsqrt.f32 %v380_v0 }
  0x36   : > { %764 = vmatpush1.bf16.msra.mxu1 %v1212_v1 }
  0x37   : > { %765 = vmatprep.subr.bf16.mxu1 %v1216_v3 }
  0x3a   : > { %766 = vmatpush2.bf16.msra.mxu1 %v1218_v4  ;;  %v807_v4 = vld [vmem:[%s1697_s8] sm:$0x3] }
  0x3b   : > { %767 = vmatprep.subr.bf16.mxu1 %v1222_v15 }
  0x42   : > { %v1259_v6 = vpop.eup %1258 }
  0x43   : > { %v382_v7 = vmul.f32 %v1259_v6, %v379_v5  ;;  %v577_v5 = vld [vmem:[%s1695_s6] sm:$0x3]  ;;  %v892_v6 = vrot.slane %v807_v4, %v484_v41 }
  0x45   : > { %v399_v9 = vpack.c.bf16 %v382_v7, %v382_v7  ;;  %v742_v7 = vrot.slane %v577_v5, %v484_v41 }
  0x47   : > { %525 = vmatmul.mubr.bf16.vlgmr.msra.gmra.mxu0 %v399_v9 }
  0x48   : > { %900 = vmatpush1.bf16.msra.mxu0 %v1207_v8  ;;  %931 = vmatprep.mubr.bf16.mxu0 %v1326_v2  ;;  %v1224_v2 = vld [vmem:[%s1694_s5 + $0xe0] ss:$8 sps:$4 sm:$0xff]   ;;  %v1327_v8 = vmov 1966171168  }
  0x49   : > { %901 = vmatprep.subr.bf16.mxu0 %v1215_v10  ;;  %768 = vmatpush2.bf16.msra.mxu1 %v1224_v2  ;;  %v946_v9 = vunpack.c.l.s4 %v1327_v8  ;;  %v896_v10 = vrot.slane %v807_v4, %v488_v42 }
  0x4a   : > { %769 = vmatprep.subr.bf16.mxu1 %v1228_v18 }
  0x4b   : > { %v947_v2 = vunpack.c.0.s8 %v946_v9 }
  0x4c   : > { %902 = vmatpush1.bf16.msra.mxu0 %v1213_v11  ;;  %v746_v11 = vrot.slane %v577_v5, %v488_v42 }
  0x4d   : > { %903 = vmatprep.subr.bf16.mxu0 %v1221_v12  ;;  %770 = vmatpush2.bf16.msra.mxu1 %v1230_v19 }
  0x4e   : > { %771 = vmatprep.subr.bf16.mxu1 %v1234_v22  ;;  %v950_v22 = vsub.s32 %v947_v2, %v483_v40 }
  0x50   : > { %904 = vmatpush1.bf16.msra.mxu0 %v1219_v13 }
  0x51   : > { %905 = vmatprep.subr.bf16.mxu0 %v1227_v16  ;;  %772 = vmatpush2.bf16.msra.mxu1 %v1236_v23 }
  0x52   : > { %773 = vmatprep.subr.bf16.mxu1 %v1240_v26 }
  0x54   : > { %906 = vmatpush1.bf16.msra.mxu0 %v1225_v17 }
  0x55   : > { %907 = vmatprep.subr.bf16.mxu0 %v1233_v20  ;;  %774 = vmatpush2.bf16.msra.mxu1 %v1242_v27 }
  0x56   : > { %775 = vmatprep.subr.bf16.mxu1 %v1246_v29 }
  0x58   : > { %908 = vmatpush1.bf16.msra.mxu0 %v1231_v21 }
  0x59   : > { %909 = vmatprep.subr.bf16.mxu0 %v1239_v25  ;;  %776 = vmatpush2.bf16.msra.mxu1 %v1248_v32 }
  0x5a   : > { %777 = vmatprep.subr.bf16.mxu1 %v1252_v33 }
  0x5c   : > { %910 = vmatpush1.bf16.msra.mxu0 %v1237_v24 }
  0x5d   : > { %911 = vmatprep.subr.bf16.mxu0 %v1245_v28  ;;  %778 = vmatpush2.bf16.msra.mxu1 %v1254_v35 }
  0x5e   : > { %779 = vmatprep.subr.bf16.mxu1 %v1255_v37 }
  0x60   : > { %912 = vmatpush1.bf16.msra.mxu0 %v1243_v30 }
  0x61   : > { %913 = vmatprep.subr.bf16.mxu0 %v1251_v31  ;;  %780 = vmatpush2.bf16.msra.mxu1 %v1257_v38 }
  0x64   : > { %914 = vmatpush1.bf16.msra.mxu0 %v1249_v34 }
  0x67   : > { %932 = vmatmul.mubr.bf16.vlgmr.msra.gmra.mxu0 %v806_v36 }
 0x107   : > { %v526_v45 = vpop.f32.mrf.mxu0 }
 0x108   : > { %v527_v46 = vadd.f32 %v526_v45, %v485_v43 }
 0x109   : > { %v528_v47 = vpop.f32.mrf.mxu0 }
 0x10a   : > { %v535_v48 = vmul.f32 0.70710677, %v527_v46  ;;  %v529_v49 = vadd.f32 %v528_v47, %v489_v44  ;;  %v533_v56 = vmul.f32 0.5, %v527_v46 }
 0x10b   : > { %v530_v50 = vpop.f32.mrf.mxu0 }
 0x10c   : > { %1260 = verf.f32 %v535_v48  ;;  %v536_v51 = vmul.f32 0.70710677, %v529_v49  ;;  %v534_v57 = vmul.f32 0.5, %v529_v49 }
 0x10d   : > { %v531_v52 = vpop.f32.mrf.mxu0 }
 0x10e   : > { %1262 = verf.f32 %v536_v51 }
 0x119   : > { %v1261_v53 = vpop.eup %1260 }
 0x11a   : > { %v539_v54 = vadd.f32 1.0, %v1261_v53 }
 0x11b   : > { %v1263_v55 = vpop.eup %1262 }
 0x11c   : > { %v540_v58 = vadd.f32 1.0, %v1263_v55  ;;  %v541_v59 = vmul.f32 %v539_v54, %v533_v56 }
 0x11e   : > { %v542_v60 = vmul.f32 %v540_v58, %v534_v57  ;;  %v575_v62 = vpack.c.bf16 %v541_v59, %v541_v59 }
 0x120   : > { %v576_v61 = vpack.c.bf16 %v542_v60, %v542_v60 }
 0x122   : > { %781 = vmatprep.mubr.bf16.mxu1 %v576_v61 }
 0x123   : > { %782 = vmatmul.mubr.bf16.vlgmr.msra.gmra.mxu1 %v575_v62 }
 0x127   : > { %v933_v63 = vpop.f32.mrf.mxu0 }
 0x128   : > { %v934_v13 = vadd.f32 %v933_v63, %v892_v6 }
 0x129   : > { %v935_v0 = vpop.f32.mrf.mxu0 }
 0x12a   : > { %v936_v17 = vadd.f32 %v935_v0, %v896_v10 }
 0x12b   : > { %v937_v1 = vpop.f32.mrf.mxu0 }
 0x12d   : > { %v938_v3 = vpop.f32.mrf.mxu0 }
 0x1e3   : > { %v783_v12 = vpop.f32.mrf.mxu1 }
 0x1e4   : > { %v784_v15 = vadd.f32 %v783_v12, %v742_v7 }
 0x1e5   : > { %v785_v16 = vpop.f32.mrf.mxu1 }
 0x1e6   : > { %v786_v18 = vadd.f32 %v785_v16, %v746_v11  ;;  %v940_v20 = vadd.f32 %v934_v13, %v784_v15 }
 0x1e7   : > { %v787_v19 = vpop.f32.mrf.mxu1 }
 0x1e8   : > { %v941_v21 = vadd.f32 %v936_v17, %v786_v18 }
 0x1e9   : > { %v788_v23 = vpop.f32.mrf.mxu1 }
 0x1ea   : > { %v944_v24 = vcombine.low %v940_v20, %v941_v21 }
 0x1ec   : > { %v951_v25 = vrot.slane %v944_v24, %v950_v22 }
 0x1ee   : > { %v958_v26 = vrot.slane %v951_v25, %v950_v22 }
 0x1f0   : > { %964 = vst.msk [vmem:[%s325_s27] sm:$0x3] %vm962_vm0, %v958_v26 }
 0x1f1   : > { %1277 = shalt.err (!%p1274_p3)
}
 0x1f2   : > { %s1278_s26 = scalar_lea.hbm %s978_s21, 32  ;;  %s1282_s27 = scalar_lea.hbm %s1698_s9, 64 }
 0x1f3   : > { %p1279_p4 = scmp.ne.s32.totalorder %s978_s21, %s1278_s26  ;;  %p1283_p9 = scmp.lt.s32.totalorder %s978_s21, %s1698_s9 }
 0x1f4   : > { %p1284_p10 = scmp.lt.s32.totalorder %s1282_s27, %s1278_s26 }
 0x1f5   : > { %p1280_p7 = pnand %p1279_p4, %p1417_p5 }
 0x1f6   : > { %p1285_p11 = por %p1284_p10, %p1283_p9 }
 0x1f7   : > { %p1281_p8 = pneg %p1280_p7 }
 0x1f9   : > { %p1286_p12 = pnand %p1285_p11, %p1281_p8 }
 0x1fb   : > { %1289 = shalt.err (!%p1286_p12)
}
 0x1fc   : > { %1121 = dma.vmem_to_hbm [thread:$0]  (%p1417_p5), %s981_s28, 32, %s978_s21, %s966_s22  }
 0x1fd PF: > { %p1127_p13 = scmp.ge.s32.totalorder %s1324_s12, 2  ;;  %s992_s16 = sand.u32 1, %s1312_s30  }
 0x1fe   : > { %s993_s17 = scalar_lea.sflag [#allocation3], %s992_s16 }
 0x1ff   : > { %p1124_p0 = pnand %p1127_p13, %p1421_p6 }
 0x201   : > { %p1125_p1 = pneg %p1124_p0 }
 0x203   : > { %1307 = dma.done.wait (%p1125_p1), %s993_s17, 32  }
 0x204   : > { %1309 = vsyncadd (%p1125_p1), %s993_s17, 4294967264  ;;  %p19_p2 = scmp.ge.s32.totalorder %s1404_s15, 4   ;;  %s1701_s30 = smov %s1316_s10 }
 0x205   : > { %s1702_s10 = smov %s1320_s11  ;;  %s1703_s11 = smov %s1415_s18 }
 0x206   : > { %s1704_s12 = smov %s1404_s15  ;;  %21 = sbr.rel (!%p19_p2) target bundleno = 3 (0x3), region = 94 }
 0x20b   :  { %998 = vsyncpa [#allocation3], 1 }
 0x20c   :  { %1000 = vsyncpa [#allocation3 + $0x1], 1 }

</bundles_post_ra>
